<compile_context>
chip_gen: v7x
topology: tpu7x:2x2x1
jax: 0.10.0
libtpu: 0.0.40
codegen_flags: <defaults>
</compile_context>

<pallas_src>
import functools
import math

import jax
import jax.numpy as jnp
import numpy as np
from jax.experimental import pallas as pl
from jax.experimental.pallas import tpu as pltpu


def _round_up(a: int, b: int) -> int:
    return ((a + b - 1) // b) * b


def _cdiv(a: int, b: int) -> int:
    return -(-a // b)


def _sine_encoding_kernel(x_ref, tab_ref, o_ref, *, slots: int, groups: int,
                          width0: int):
    # x_ref:   (TM, slots*groups) f32 -- packed positions for this row block
    # tab_ref: (slots+1, width0)  f32 -- rows 0..slots-1: per-slot masked freqs,
    #                                    row `slots`: phase shift (0 | pi/2)
    # o_ref:   (TM, groups*width0) out dtype
    x = x_ref[...]
    tab = tab_ref[...]
    shift = tab[slots:slots + 1, :]                       # (1, width0)
    for g in range(groups):                               # static unroll (<=8)
        phase = shift
        base = g * slots
        for p in range(slots):                            # static unroll (<=8)
            phase = phase + x[:, base + p:base + p + 1] * tab[p:p + 1, :]
        # 128-lane-aligned slice (width0 % 128 == 0 in the packed path) ->
        # full-width unmasked stores.
        o_ref[:, g * width0:(g + 1) * width0] = jnp.sin(phase).astype(o_ref.dtype)


def _build_table(features: int, omega: float, slots: int, width0: int):
    """Host-side (slots+1, width0) f32 table: masked freqs + phase shifts."""
    half = features // 2
    # Mirror the PyTorch buffer exactly: float64 linspace, omega**(-t), -> f32.
    t = np.linspace(0.0, 1.0, half, dtype=np.float64)
    freqs = np.power(np.float64(omega), -t).astype(np.float32)        # (half,)
    freq_f = np.concatenate([freqs, freqs])                           # (F,)
    shift_f = np.concatenate([np.zeros(half, np.float32),
                              np.full(half, np.pi / 2.0, np.float32)])
    table = np.zeros((slots + 1, width0), dtype=np.float32)
    for p in range(slots):
        table[p, p * features:(p + 1) * features] = freq_f
        table[slots, p * features:(p + 1) * features] = shift_f
    return jnp.asarray(table)


@functools.partial(
    jax.jit, static_argnames=("features", "omega", "block_rows", "out_dtype"))
def sine_encoding(x, *, features: int, omega: float = 100.0,
                  block_rows: int | None = None, out_dtype=jnp.float32):
    assert features % 2 == 0, "features must be even"

    # ---- packing geometry --------------------------------------------------
    # width0 = smallest lane period that is a multiple of 128 (lcm(F, 128)).
    width0 = (features * 128) // math.gcd(features, 128)
    slots = width0 // features
    if slots > 8:
        # Too many masked FMAs per element -> unpacked fallback (masked stores).
        # TODO(synk): generalize lane-dense packing for such feature sizes.
        width0, slots = features, 1
    groups = max(1, 512 // width0) if width0 % 128 == 0 else 1
    pack = slots * groups                 # positions per output row
    width = width0 * groups               # lanes per output row

    table = _build_table(features, omega, slots, width0)

    # ---- flatten / minimal padding ------------------------------------------
    orig_shape = x.shape
    x_flat = jnp.reshape(x, (-1,)).astype(jnp.float32)
    n = x_flat.shape[0]
    rows = _cdiv(max(n, 1), pack)
    rows_pad = _round_up(rows, 16)        # 16: safe for f32 and bf16 out tiles
    n_pad = rows_pad * pack
    if n_pad != n:
        x_flat = jnp.pad(x_flat, (0, n_pad - n))
    x_packed = x_flat.reshape(rows_pad, pack)

    # ---- row tiling ----------------------------------------------------------
    if block_rows is None:
        tm_target = max(16, _round_up((2 * 1024 * 1024) // (width * 4), 16))
    else:
        tm_target = max(16, _round_up(block_rows, 16))
    tm_cap = _round_up(_cdiv(rows_pad, 2), 16)   # keep grid >= 2 (v7x megacore)
    tm = max(16, min(tm_target, tm_cap, rows_pad))
    grid = (_cdiv(rows_pad, tm),)                # boundary block masked by Pallas

    kernel = functools.partial(_sine_encoding_kernel, slots=slots,
                               groups=groups, width0=width0)

    out = pl.pallas_call(
        kernel,
        out_shape=jax.ShapeDtypeStruct((rows_pad, width), out_dtype),
        grid_spec=pltpu.PrefetchScalarGridSpec(
            num_scalar_prefetch=0,
            grid=grid,
            in_specs=[
                pl.BlockSpec((tm, pack), lambda i: (i, 0)),
                pl.BlockSpec((slots + 1, width0), lambda i: (0, 0)),
            ],
            out_specs=pl.BlockSpec((tm, width), lambda i: (i, 0)),
        ),
        compiler_params=pltpu.CompilerParams(
            dimension_semantics=("parallel",),
        ),
    )(x_packed, table)

    out = out.reshape(n_pad, features)           # free row-major reinterpretation
    if n_pad != n:
        out = out[:n]
    return out.reshape(*orig_shape, features)


def sine_encoding_ref(x, *, features: int, omega: float = 100.0):
    """Pure-JAX reference mirroring the PyTorch module."""
    half = features // 2
    t = np.linspace(0.0, 1.0, half, dtype=np.float64)
    freqs = jnp.asarray(np.power(np.float64(omega), -t).astype(np.float32))
    phase = x[..., None].astype(jnp.float32) * freqs
    return jnp.concatenate([jnp.sin(phase), jnp.cos(phase)], axis=-1)


if __name__ == "__main__":
    key = jax.random.PRNGKey(0)
    # (*) = (2, 4, 16, 16) -> 2048 positions; output (2, 4, 16, 16, 64).
    x = jax.random.normal(key, (2, 4, 16, 16), dtype=jnp.float32) * 10.0
    features = 64

    out = sine_encoding(x, features=features, omega=100.0)
    out = jax.block_until_ready(out)

    ref = sine_encoding_ref(x, features=features, omega=100.0)
    assert out.shape == (*x.shape, features), out.shape
    err = float(jnp.max(jnp.abs(out - ref)))
    assert err < 2e-5, err
    print("KERNEL_OK")
</pallas_src>

<mosaic_0001>
module attributes {stable_mosaic.version = 11 : i64} {
  func.func @_sine_encoding_kernel(%arg0: i32, %arg1: memref<128x8xf32, #tpu.memory_space<vmem>>, %arg2: memref<3x128xf32, #tpu.memory_space<vmem>>, %arg3: memref<128x512xf32, #tpu.memory_space<vmem>>) attributes {dimension_semantics = [#tpu.dimension_semantics<parallel>], iteration_bounds = array<i64: 2>, scalar_prefetch = 0 : i64, scratch_operands = 0 : i64, tpu.core_type = #tpu.core_type<tc>, window_params = [{transform_indices = @transform_0, window_bounds = array<i64: 128, 8>}, {pipeline_mode = #tpu.pipeline_mode<synchronous>, transform_indices = @transform_1, window_bounds = array<i64: 3, 128>}, {transform_indices = @transform_2, window_bounds = array<i64: 128, 512>}]} {
    %c0 = arith.constant 0 : index
    %c0_0 = arith.constant 0 : index
    %0 = vector.load %arg1[%c0, %c0_0] : memref<128x8xf32, #tpu.memory_space<vmem>>, vector<128x8xf32>
    %c0_1 = arith.constant 0 : index
    %c0_2 = arith.constant 0 : index
    %1 = vector.load %arg2[%c0_1, %c0_2] : memref<3x128xf32, #tpu.memory_space<vmem>>, vector<3x128xf32>
    %2 = vector.extract_strided_slice %1 {offsets = [2, 0], sizes = [1, 128], strides = [1, 1]} : vector<3x128xf32> to vector<1x128xf32>
    %3 = vector.extract_strided_slice %0 {offsets = [0, 0], sizes = [128, 1], strides = [1, 1]} : vector<128x8xf32> to vector<128x1xf32>
    %4 = vector.extract_strided_slice %1 {offsets = [0, 0], sizes = [1, 128], strides = [1, 1]} : vector<3x128xf32> to vector<1x128xf32>
    %5 = vector.broadcast %3 : vector<128x1xf32> to vector<128x128xf32>
    %6 = vector.broadcast %4 : vector<1x128xf32> to vector<128x128xf32>
    %7 = arith.mulf %5, %6 : vector<128x128xf32>
    %8 = vector.broadcast %2 : vector<1x128xf32> to vector<128x128xf32>
    %9 = arith.addf %8, %7 : vector<128x128xf32>
    %10 = vector.extract_strided_slice %0 {offsets = [0, 1], sizes = [128, 1], strides = [1, 1]} : vector<128x8xf32> to vector<128x1xf32>
    %11 = vector.extract_strided_slice %1 {offsets = [1, 0], sizes = [1, 128], strides = [1, 1]} : vector<3x128xf32> to vector<1x128xf32>
    %12 = vector.broadcast %10 : vector<128x1xf32> to vector<128x128xf32>
    %13 = vector.broadcast %11 : vector<1x128xf32> to vector<128x128xf32>
    %14 = arith.mulf %12, %13 : vector<128x128xf32>
    %15 = arith.addf %9, %14 : vector<128x128xf32>
    %16 = math.sin %15 : vector<128x128xf32>
    %c0_3 = arith.constant 0 : index
    %c0_4 = arith.constant 0 : index
    %17 = vector.load %arg3[%c0_3, %c0_4] : memref<128x512xf32, #tpu.memory_space<vmem>>, vector<128x128xf32>
    tpu.vector_store %arg3[%c0_3, %c0_4], %16 {strides = array<i32>} : memref<128x512xf32, #tpu.memory_space<vmem>>, vector<128x128xf32>,
    %18 = vector.extract_strided_slice %0 {offsets = [0, 2], sizes = [128, 1], strides = [1, 1]} : vector<128x8xf32> to vector<128x1xf32>
    %19 = vector.extract_strided_slice %1 {offsets = [0, 0], sizes = [1, 128], strides = [1, 1]} : vector<3x128xf32> to vector<1x128xf32>
    %20 = vector.broadcast %18 : vector<128x1xf32> to vector<128x128xf32>
    %21 = vector.broadcast %19 : vector<1x128xf32> to vector<128x128xf32>
    %22 = arith.mulf %20, %21 : vector<128x128xf32>
    %23 = vector.broadcast %2 : vector<1x128xf32> to vector<128x128xf32>
    %24 = arith.addf %23, %22 : vector<128x128xf32>
    %25 = vector.extract_strided_slice %0 {offsets = [0, 3], sizes = [128, 1], strides = [1, 1]} : vector<128x8xf32> to vector<128x1xf32>
    %26 = vector.extract_strided_slice %1 {offsets = [1, 0], sizes = [1, 128], strides = [1, 1]} : vector<3x128xf32> to vector<1x128xf32>
    %27 = vector.broadcast %25 : vector<128x1xf32> to vector<128x128xf32>
    %28 = vector.broadcast %26 : vector<1x128xf32> to vector<128x128xf32>
    %29 = arith.mulf %27, %28 : vector<128x128xf32>
    %30 = arith.addf %24, %29 : vector<128x128xf32>
    %31 = math.sin %30 : vector<128x128xf32>
    %c0_5 = arith.constant 0 : index
    %c128 = arith.constant 128 : index
    %32 = vector.load %arg3[%c0_5, %c128] : memref<128x512xf32, #tpu.memory_space<vmem>>, vector<128x128xf32>
    tpu.vector_store %arg3[%c0_5, %c128], %31 {strides = array<i32>} : memref<128x512xf32, #tpu.memory_space<vmem>>, vector<128x128xf32>,
    %33 = vector.extract_strided_slice %0 {offsets = [0, 4], sizes = [128, 1], strides = [1, 1]} : vector<128x8xf32> to vector<128x1xf32>
    %34 = vector.extract_strided_slice %1 {offsets = [0, 0], sizes = [1, 128], strides = [1, 1]} : vector<3x128xf32> to vector<1x128xf32>
    %35 = vector.broadcast %33 : vector<128x1xf32> to vector<128x128xf32>
    %36 = vector.broadcast %34 : vector<1x128xf32> to vector<128x128xf32>
    %37 = arith.mulf %35, %36 : vector<128x128xf32>
    %38 = vector.broadcast %2 : vector<1x128xf32> to vector<128x128xf32>
    %39 = arith.addf %38, %37 : vector<128x128xf32>
    %40 = vector.extract_strided_slice %0 {offsets = [0, 5], sizes = [128, 1], strides = [1, 1]} : vector<128x8xf32> to vector<128x1xf32>
    %41 = vector.extract_strided_slice %1 {offsets = [1, 0], sizes = [1, 128], strides = [1, 1]} : vector<3x128xf32> to vector<1x128xf32>
    %42 = vector.broadcast %40 : vector<128x1xf32> to vector<128x128xf32>
    %43 = vector.broadcast %41 : vector<1x128xf32> to vector<128x128xf32>
    %44 = arith.mulf %42, %43 : vector<128x128xf32>
    %45 = arith.addf %39, %44 : vector<128x128xf32>
    %46 = math.sin %45 : vector<128x128xf32>
    %c0_6 = arith.constant 0 : index
    %c256 = arith.constant 256 : index
    %47 = vector.load %arg3[%c0_6, %c256] : memref<128x512xf32, #tpu.memory_space<vmem>>, vector<128x128xf32>
    tpu.vector_store %arg3[%c0_6, %c256], %46 {strides = array<i32>} : memref<128x512xf32, #tpu.memory_space<vmem>>, vector<128x128xf32>,
    %48 = vector.extract_strided_slice %0 {offsets = [0, 6], sizes = [128, 1], strides = [1, 1]} : vector<128x8xf32> to vector<128x1xf32>
    %49 = vector.extract_strided_slice %1 {offsets = [0, 0], sizes = [1, 128], strides = [1, 1]} : vector<3x128xf32> to vector<1x128xf32>
    %50 = vector.broadcast %48 : vector<128x1xf32> to vector<128x128xf32>
    %51 = vector.broadcast %49 : vector<1x128xf32> to vector<128x128xf32>
    %52 = arith.mulf %50, %51 : vector<128x128xf32>
    %53 = vector.broadcast %2 : vector<1x128xf32> to vector<128x128xf32>
    %54 = arith.addf %53, %52 : vector<128x128xf32>
    %55 = vector.extract_strided_slice %0 {offsets = [0, 7], sizes = [128, 1], strides = [1, 1]} : vector<128x8xf32> to vector<128x1xf32>
    %56 = vector.extract_strided_slice %1 {offsets = [1, 0], sizes = [1, 128], strides = [1, 1]} : vector<3x128xf32> to vector<1x128xf32>
    %57 = vector.broadcast %55 : vector<128x1xf32> to vector<128x128xf32>
    %58 = vector.broadcast %56 : vector<1x128xf32> to vector<128x128xf32>
    %59 = arith.mulf %57, %58 : vector<128x128xf32>
    %60 = arith.addf %54, %59 : vector<128x128xf32>
    %61 = math.sin %60 : vector<128x128xf32>
    %c0_7 = arith.constant 0 : index
    %c384 = arith.constant 384 : index
    %62 = vector.load %arg3[%c0_7, %c384] : memref<128x512xf32, #tpu.memory_space<vmem>>, vector<128x128xf32>
    tpu.vector_store %arg3[%c0_7, %c384], %61 {strides = array<i32>} : memref<128x512xf32, #tpu.memory_space<vmem>>, vector<128x128xf32>,
    return
  }
  func.func @transform_0(%arg0: i32) -> (i32, i32) {
    %c0_i32 = arith.constant 0 : i32
    %c0_i32_0 = arith.constant 0 : i32
    return %arg0, %c0_i32 : i32, i32
  }
  func.func @transform_1(%arg0: i32) -> (i32, i32) {
    %c0_i32 = arith.constant 0 : i32
    %c0_i32_0 = arith.constant 0 : i32
    %c0_i32_1 = arith.constant 0 : i32
    return %c0_i32, %c0_i32_0 : i32, i32
  }
  func.func @transform_2(%arg0: i32) -> (i32, i32) {
    %c0_i32 = arith.constant 0 : i32
    %c0_i32_0 = arith.constant 0 : i32
    return %arg0, %c0_i32 : i32, i32
  }
}

</mosaic_0001>

<bundles_post_ra>
// kernel: sine_encoding.1
= control target key start
LH: loop header
LB: loop body
LE: loop exit
PB: predicated region body
PF: predicated region fallthrough
CT: control target
= control target key end

     0   :  { %s8629_s9 = smov 0   ;;  %s14440_s0 = inlined_call_operand.vmem [shape: f32[256,8], index: 0, kind: input, shape index: {}]   ;;  %s14441_s1 = inlined_call_operand.vmem [shape: f32[3,128], index: 1, kind: input, shape index: {}]   ;;  %s14442_s2 = inlined_call_operand.vmem [shape: f32[256,512], index: 2, kind: output, shape index: {}]  }
   0x1 LB: > { %s7740_s10 = sadd.s32 4294967295, %s8598_s9   ;;  %p7744_p0 = scmp.ge.s32.totalorder %s8598_s9, 1  ;;  %s8598_s9 = sphi %s8629_s9, %s12_s9  }
   0x2   : > { %p113_p1 = scmp.lt.s32.totalorder %s8598_s9, 3 }
   0x4   : > { %p114_p2 = pnand %p7744_p0, %p113_p1 }
   0x5   : > { %s7745_s11 = sshll.u32 (!%p114_p2), %s7740_s10, 4  ;;  %v8600_v0 = vmov (!%p114_p2), 0   ;;  %v8601_v17 = vmov (!%p114_p2), 1   ;;  %v8602_v18 = vmov (!%p114_p2), 2   ;;  %v8603_v19 = vmov (!%p114_p2), 3  }
   0x6   : > { %117 = sbr.rel (%p114_p2) target bundleno = 1853 (0x73d), region = 28  ;;  %8288 = vset.pattern.permute.xlu1 (!%p114_p2), %v8600_v0  ;;  %8287 = vset.pattern.permute.xlu0 (!%p114_p2), %v8600_v0  ;;  %p137_p3 = scmp.lt.s32.totalorder (!%p114_p2), %s7745_s11, 31  ;;  %v8604_v21 = vmov (!%p114_p2), 4   ;;  %v246_v29 = vlaneseq (!%p114_p2)  ;;  %v165_v36 = vld [vmem:[%s14441_s1] sm:$0x7] (!%p114_p2)  ;;  %v14443_v46 = vmov (!%p114_p2), 6  }
   0x8   : > { %v247_v32 = vshrl.u32 (!%p114_p2), %v246_v29, 7 }
   0xa   : > { %v248_v35 = vsub.s32 (!%p114_p2), 0, %v247_v32  ;;  %v268_v40 = vsub.s32 (!%p114_p2), 2, %v247_v32  ;;  %v352_v41 = vsub.s32 (!%p114_p2), 1, %v247_v32 }
   0xc   : > { %v8794_v39 = vrot.slane (!%p114_p2), %v165_v36, %v248_v35  ;;  %v8804_v47 = vrot.slane (!%p114_p2), %v165_v36, %v268_v40  ;;  %v8807_v48 = vrot.slane (!%p114_p2), %v165_v36, %v352_v41 }
   0xd   : > { %s14591_s11 = smov (!%p137_p3, %s7745_s11), 31 }
   0xe   : > { %s7746_s12 = sshll.u32 %s14591_s11, 3  ;;  %s8008_s18 = sshll.u32 %s14591_s11, 5 }
   0xf   : > { %s8643_s15 = scalar_lea.vmem %s14440_s0, %s7746_s12  ;;  %s9106_s21 = scalar_lea.vmem %s14442_s2, %s8008_s18 }
  0x10   : > { %v8646_v1 = vld [vmem:[%s8643_s15 + $0x10] sm:$0xff]  ;;  %v8649_v2 = vld [vmem:[%s8643_s15] sm:$0xff]  ;;  %v8654_v3 = vld [vmem:[%s8643_s15 + $0x18] sm:$0xff] }
  0x11   : > { %178 = vperm.xlu1 %8288, %v8646_v1   ;;  %168 = vperm.xlu0 %8287, %v8649_v2   ;;  %v8657_v4 = vld [vmem:[%s8643_s15 + $0x8] sm:$0xff]  ;;  %v8665_v6 = vld [vmem:[%s8643_s15 + $0x20] sm:$0xff]  ;;  %v8670_v7 = vld [vmem:[%s8643_s15 + $0x38] sm:$0xff] }
  0x12   : > { %v8662_v5 = vld [vmem:[%s8643_s15 + $0x28] sm:$0xff]  ;;  %v8673_v8 = vld [vmem:[%s8643_s15 + $0x30] sm:$0xff]  ;;  %v8681_v10 = vld [vmem:[%s8643_s15 + $0x40] sm:$0xff] }
  0x13   : > { %v8678_v9 = vld [vmem:[%s8643_s15 + $0x48] sm:$0xff]  ;;  %v8686_v11 = vld [vmem:[%s8643_s15 + $0x58] sm:$0xff]  ;;  %v8689_v12 = vld [vmem:[%s8643_s15 + $0x50] sm:$0xff] }
  0x14   : > { %v8694_v13 = vld [vmem:[%s8643_s15 + $0x68] sm:$0xff]  ;;  %v8697_v14 = vld [vmem:[%s8643_s15 + $0x60] sm:$0xff]  ;;  %v8702_v15 = vld [vmem:[%s8643_s15 + $0x78] sm:$0xff] }
  0x15   : > { %183 = vperm.xlu1 %8288, %v8654_v3   ;;  %173 = vperm.xlu0 %8287, %v8657_v4   ;;  %v8705_v16 = vld [vmem:[%s8643_s15 + $0x70] sm:$0xff] }
  0x19   : > { %193 = vperm.xlu1 %8288, %v8662_v5   ;;  %188 = vperm.xlu0 %8287, %v8665_v6  }
  0x1d   : > { %203 = vperm.xlu1 %8288, %v8670_v7   ;;  %198 = vperm.xlu0 %8287, %v8673_v8  }
  0x21   : > { %213 = vperm.xlu1 %8288, %v8678_v9   ;;  %208 = vperm.xlu0 %8287, %v8681_v10  }
  0x25   : > { %223 = vperm.xlu1 %8288, %v8686_v11   ;;  %218 = vperm.xlu0 %8287, %v8689_v12  }
  0x29   : > { %233 = vperm.xlu1 %8288, %v8694_v13   ;;  %228 = vperm.xlu0 %8287, %v8697_v14  }
  0x2d   : > { %243 = vperm.xlu1 %8288, %v8702_v15   ;;  %238 = vperm.xlu0 %8287, %v8705_v16  }
  0x31   : > { %8290 = vset.pattern.permute.xlu1 %v8601_v17  ;;  %8289 = vset.pattern.permute.xlu0 %v8601_v17 }
  0x32   : > { %291 = vperm.xlu1 %8290, %v8657_v4   ;;  %287 = vperm.xlu0 %8289, %v8649_v2  }
  0x36   : > { %295 = vperm.xlu1 %8290, %v8646_v1   ;;  %299 = vperm.xlu0 %8289, %v8654_v3  }
  0x3a   : > { %303 = vperm.xlu1 %8290, %v8665_v6   ;;  %307 = vperm.xlu0 %8289, %v8662_v5  }
  0x3e   : > { %311 = vperm.xlu1 %8290, %v8673_v8   ;;  %315 = vperm.xlu0 %8289, %v8670_v7  }
  0x42   : > { %319 = vperm.xlu1 %8290, %v8681_v10   ;;  %323 = vperm.xlu0 %8289, %v8678_v9  }
  0x46   : > { %327 = vperm.xlu1 %8290, %v8689_v12   ;;  %331 = vperm.xlu0 %8289, %v8686_v11  }
  0x4a   : > { %335 = vperm.xlu1 %8290, %v8697_v14   ;;  %339 = vperm.xlu0 %8289, %v8694_v13  }
  0x4e   : > { %343 = vperm.xlu1 %8290, %v8705_v16   ;;  %347 = vperm.xlu0 %8289, %v8702_v15  }
  0x52   : > { %8291 = vset.pattern.permute.xlu1 %v8602_v18  ;;  %8292 = vset.pattern.permute.xlu0 %v8602_v18 }
  0x53   : > { %2067 = vperm.xlu1 %8291, %v8649_v2   ;;  %2071 = vperm.xlu0 %8292, %v8657_v4  }
  0x57   : > { %2075 = vperm.xlu1 %8291, %v8646_v1   ;;  %2083 = vperm.xlu0 %8292, %v8665_v6  }
  0x5b   : > { %2079 = vperm.xlu1 %8291, %v8654_v3   ;;  %2091 = vperm.xlu0 %8292, %v8673_v8  }
  0x5f   : > { %2087 = vperm.xlu1 %8291, %v8662_v5   ;;  %2099 = vperm.xlu0 %8292, %v8681_v10  }
  0x63   : > { %2095 = vperm.xlu1 %8291, %v8670_v7   ;;  %2107 = vperm.xlu0 %8292, %v8689_v12  }
  0x67   : > { %2103 = vperm.xlu1 %8291, %v8678_v9   ;;  %2115 = vperm.xlu0 %8292, %v8697_v14  }
  0x6b   : > { %2111 = vperm.xlu1 %8291, %v8686_v11   ;;  %2123 = vperm.xlu0 %8292, %v8705_v16  }
  0x6f   : > { %2119 = vperm.xlu1 %8291, %v8694_v13   ;;  %8293 = vset.pattern.permute.xlu0 %v8603_v19 }
  0x70   : > { %2163 = vperm.xlu0 %8293, %v8649_v2  }
  0x73   : > { %2127 = vperm.xlu1 %8291, %v8702_v15  }
  0x74   : > { %2175 = vperm.xlu0 %8293, %v8654_v3  }
  0x77   : > { %8294 = vset.pattern.permute.xlu1 %v8603_v19 }
  0x78   : > { %2167 = vperm.xlu1 %8294, %v8657_v4   ;;  %2183 = vperm.xlu0 %8293, %v8662_v5  }
  0x7c   : > { %2171 = vperm.xlu1 %8294, %v8646_v1   ;;  %2191 = vperm.xlu0 %8293, %v8670_v7  }
  0x80   : > { %2179 = vperm.xlu1 %8294, %v8665_v6   ;;  %2199 = vperm.xlu0 %8293, %v8678_v9  }
  0x84   : > { %2187 = vperm.xlu1 %8294, %v8673_v8   ;;  %2207 = vperm.xlu0 %8293, %v8686_v11  }
  0x88   : > { %2195 = vperm.xlu1 %8294, %v8681_v10   ;;  %2215 = vperm.xlu0 %8293, %v8694_v13  }
  0x8c   : > { %2203 = vperm.xlu1 %8294, %v8689_v12   ;;  %2223 = vperm.xlu0 %8293, %v8702_v15  }
  0x90   : > { %v179_v20 = vpop.permute.xlu1 %178  ;;  %2211 = vperm.xlu1 %8294, %v8697_v14   ;;  %8296 = vset.pattern.permute.xlu0 %v8604_v21  ;;  %v169_v22 = vpop.permute.xlu0 %168 }
  0x91   : > { %3943 = vperm.xlu0 %8296, %v8657_v4   ;;  %v250_v42 = vmul.f32 %v8794_v39, %v169_v22  ;;  %v252_v55 = vmul.f32 %v8794_v39, %v179_v20 }
  0x93   : > { %v270_v49 = vadd.f32 %v8804_v47, %v250_v42  ;;  %v272_v63 = vadd.f32 %v8804_v47, %v252_v55  ;;  %v14455_v55 = vmov 920167782  }
  0x94   : > { %v8757_v23 = vpop.permute.xlu1 %183  ;;  %2219 = vperm.xlu1 %8294, %v8705_v16   ;;  %v174_v24 = vpop.permute.xlu0 %173 }
  0x95   : > { %3955 = vperm.xlu0 %8296, %v8665_v6   ;;  %v251_v43 = vmul.f32 %v8794_v39, %v174_v24  ;;  %v8840_v19 = vmul.f32 %v8794_v39, %v8757_v23  ;;  %v8606_v23 = vmov 683565275  }
  0x97   : > { %v271_v50 = vadd.f32 %v8804_v47, %v251_v43 }
  0x98   : > { %v8761_v25 = vpop.permute.xlu1 %193  ;;  %8295 = vset.pattern.permute.xlu1 %v8604_v21  ;;  %v8763_v26 = vpop.permute.xlu0 %188 }
  0x99   : > { %3939 = vperm.xlu1 %8295, %v8649_v2   ;;  %3963 = vperm.xlu0 %8296, %v8673_v8  }
  0x9c   : > { %v8767_v27 = vpop.permute.xlu1 %203  ;;  %v8769_v28 = vpop.permute.xlu0 %198 }
  0x9d   : > { %3947 = vperm.xlu1 %8295, %v8646_v1   ;;  %3971 = vperm.xlu0 %8296, %v8681_v10  }
  0xa0   : > { %v8773_v30 = vpop.permute.xlu1 %213  ;;  %v8775_v31 = vpop.permute.xlu0 %208 }
  0xa1   : > { %3951 = vperm.xlu1 %8295, %v8654_v3   ;;  %3979 = vperm.xlu0 %8296, %v8689_v12  }
  0xa4   : > { %v8779_v33 = vpop.permute.xlu1 %223  ;;  %v8781_v34 = vpop.permute.xlu0 %218 }
  0xa5   : > { %3959 = vperm.xlu1 %8295, %v8662_v5   ;;  %3987 = vperm.xlu0 %8296, %v8697_v14  }
  0xa8   : > { %v8788_v37 = vpop.permute.xlu1 %233  ;;  %v8790_v38 = vpop.permute.xlu0 %228 }
  0xa9   : > { %3967 = vperm.xlu1 %8295, %v8670_v7   ;;  %3995 = vperm.xlu0 %8296, %v8705_v16  }
  0xac   : > { %v8798_v44 = vpop.permute.xlu1 %243  ;;  %v8800_v45 = vpop.permute.xlu0 %238 }
  0xad   : > { %3975 = vperm.xlu1 %8295, %v8678_v9   ;;  %8298 = vset.pattern.permute.xlu0 %v14443_v46 }
  0xae   : > { %5811 = vperm.xlu0 %8298, %v8649_v2  }
  0xb1   : > { %v292_v51 = vpop.permute.xlu1 %291  ;;  %3983 = vperm.xlu1 %8295, %v8686_v11   ;;  %v288_v52 = vpop.permute.xlu0 %287 }
  0xb2   : > { %v355_v53 = vmul.f32 %v8807_v48, %v292_v51  ;;  %v354_v54 = vmul.f32 %v8807_v48, %v288_v52  ;;  %5823 = vperm.xlu0 %8298, %v8654_v3   ;;  %v14446_v51 = vmov 2131351028  }
  0xb4   : > { %v8816_v56 = vadd.f32 %v355_v53, %v271_v50  ;;  %v8818_v57 = vadd.f32 %v354_v54, %v270_v49  ;;  %v14448_v49 = vmov 2475754826   ;;  %v14450_v53 = vmov 2102212464  }
  0xb5   : > { %v296_v58 = vpop.permute.xlu1 %295  ;;  %3991 = vperm.xlu1 %8295, %v8694_v13   ;;  %v300_v18 = vpop.permute.xlu0 %299 }
  0xb6   : > { %v490_v59 = vand.u32 2147483647, %v8816_v56  ;;  %v493_v60 = vand.u32 2139095040, %v8816_v56  ;;  %5831 = vperm.xlu0 %8298, %v8662_v5   ;;  %v386_v61 = vand.u32 2147483647, %v8818_v57  ;;  %v389_v62 = vand.u32 2139095040, %v8818_v57 }
  0xb7   : > { %v356_v1 = vmul.f32 %v8807_v48, %v296_v58  ;;  %v8843_v29 = vmul.f32 %v8807_v48, %v300_v18  ;;  %vm492_vm13 = vcmp.lt.s32.totalorder %v8816_v56, 0  ;;  %vm388_vm14 = vcmp.lt.s32.totalorder %v8818_v57, 0 }
  0xb8   : > { %v494_v0 = vshrl.u32 %v493_v60, 23  ;;  %v497_v2 = vand.u32 8388607, %v490_v59  ;;  %v390_v3 = vshrl.u32 %v389_v62, 23  ;;  %v393_v4 = vand.u32 8388607, %v386_v61 }
  0xb9   : > { %3999 = vperm.xlu1 %8295, %v8702_v15   ;;  %v8833_v5 = vadd.f32 %v356_v1, %v272_v63  ;;  %v14453_v1 = vmov 1326507024  }
  0xba   : > { %v7754_v6 = vadd.s32 4294967169, %v494_v0  ;;  %5839 = vperm.xlu0 %8298, %v8670_v7   ;;  %v7750_v8 = vadd.s32 4294967169, %v390_v3  ;;  %v498_v12 = vor.u32 8388608, %v497_v2  ;;  %v394_v14 = vor.u32 8388608, %v393_v4 }
  0xbb   : > { %v597_v17 = vand.u32 2139095040, %v8833_v5 }
  0xbc   : > { %v500_v10 = vadd.s32 1, %v7754_v6  ;;  %v396_v16 = vadd.s32 1, %v7750_v8  ;;  %v8845_v32 = vshll.u32 %v498_v12, 8  ;;  %v8849_v36 = vshll.u32 %v394_v14, 8 }
  0xbd   : > { %v598_v21 = vshrl.u32 %v597_v17, 23 }
  0xbe   : > { %vm501_vm0 = vcmp.gt.s32.totalorder %v500_v10, 0  ;;  %5847 = vperm.xlu0 %8298, %v8678_v9   ;;  %vm397_vm1 = vcmp.gt.s32.totalorder %v396_v16, 0  ;;  %v594_v9 = vand.u32 2147483647, %v8833_v5 }
  0xbf   : > { %v502_v20 = vsel %vm501_vm0, %v500_v10, 0  ;;  %v398_v24 = vsel %vm397_vm1, %v396_v16, 0  ;;  %v8853_v43 = vadd.s32 4294967169, %v598_v21  ;;  %vm8977_vm1 = vcmp.le.f32.partialorder %v490_v59, 0.7853982 }
  0xc0   : > { %v503_v22 = vshrl.u32 %v502_v20, 5  ;;  %v504_v7 = vand.u32 31, %v502_v20  ;;  %v8847_v35 = vshrl.u32 %v398_v24, 5  ;;  %v400_v42 = vand.u32 31, %v398_v24 }
  0xc2   : > { %v505_v40 = vsub.s32 32, %v504_v7  ;;  %v507_v41 = vshll.u32 %v8606_v23, %v504_v7  ;;  %5855 = vperm.xlu0 %8298, %v8686_v11   ;;  %v510_v50 = vshll.u32 %v14448_v49, %v504_v7  ;;  %v513_v52 = vshll.u32 %v14446_v51, %v504_v7 }
  0xc3   : > { %v516_v54 = vshll.u32 %v14450_v53, %v504_v7  ;;  %v519_v58 = vshll.u32 %v14455_v55, %v504_v7  ;;  %vm522_vm2 = vcmp.lt.s32.totalorder %v503_v22, 1  ;;  %vm524_vm3 = vcmp.lt.s32.totalorder %v503_v22, 3 }
  0xc4   : > { %v508_v60 = vshrl.u32 %v14448_v49, %v505_v40  ;;  %v511_v62 = vshrl.u32 %v14446_v51, %v505_v40  ;;  %v514_v63 = vshrl.u32 %v14450_v53, %v505_v40  ;;  %v506_v11 = vshrl.u32 %v8606_v23, %v505_v40 }
  0xc5   : > { %v517_v0 = vshrl.u32 %v14455_v55, %v505_v40  ;;  %v520_v2 = vshrl.u32 %v14453_v1, %v505_v40  ;;  %v401_v8 = vsub.s32 32, %v400_v42  ;;  %vm525_vm4 = vcmp.lt.s32.totalorder %v503_v22, 4 }
  0xc6   : > { %v509_v3 = vor.u32 %v508_v60, %v507_v41  ;;  %v512_v4 = vor.u32 %v511_v62, %v510_v50  ;;  %v515_v6 = vor.u32 %v514_v63, %v513_v52  ;;  %5863 = vperm.xlu0 %8298, %v8694_v13   ;;  %v403_v14 = vshll.u32 %v8606_v23, %v400_v42 }
  0xc7   : > { %v518_v10 = vor.u32 %v517_v0, %v516_v54  ;;  %v521_v12 = vor.u32 %v520_v2, %v519_v58  ;;  %v406_v40 = vshll.u32 %v14448_v49, %v400_v42  ;;  %vm523_vm5 = vcmp.lt.s32.totalorder %v503_v22, 2 }
  0xc8   : > { %v526_v16 = vsel %vm522_vm2, %v506_v11, %v509_v3  ;;  %v527_v17 = vsel %vm525_vm4, %v515_v6, 2102212464  ;;  %v530_v18 = vsel %vm522_vm2, %v509_v3, %v512_v4  ;;  %v534_v20 = vsel %vm522_vm2, %v512_v4, %v515_v6 }
  0xc9   : > { %v528_v21 = vsel %vm524_vm3, %v512_v4, %v527_v17  ;;  %v531_v7 = vsel %vm525_vm4, %v518_v10, 920167782  ;;  %v535_v24 = vsel %vm525_vm4, %v521_v12, 1326507024  ;;  %v404_v50 = vshrl.u32 %v14448_v49, %v401_v8 }
  0xca   : > { %v532_v13 = vsel %vm524_vm3, %v515_v6, %v531_v7  ;;  %v536_v41 = vsel %vm524_vm3, %v518_v10, %v535_v24  ;;  %5871 = vperm.xlu0 %8298, %v8702_v15   ;;  %v529_v52 = vsel %vm523_vm5, %v526_v16, %v528_v21  ;;  %v407_v60 = vshrl.u32 %v14446_v51, %v401_v8 }
  0xcb   : > { %v533_v54 = vsel %vm523_vm5, %v530_v18, %v532_v13  ;;  %v537_v58 = vsel %vm523_vm5, %v534_v20, %v536_v41  ;;  %v405_v22 = vor.u32 %v404_v50, %v403_v14  ;;  %v409_v3 = vshll.u32 %v14446_v51, %v400_v42 }
  0xcc   : > { %v8879_v62 = vmul.u32.u64.low %v8845_v32, %v537_v58  ;;  %v8880_v63 = vmul.u32.u64.high %v8845_v32, %v537_v58, %v8879_v62  ;;  %v8883_v11 = vmul.u32.u64.low %v8845_v32, %v533_v54  ;;  %v8884_v0 = vmul.u32.u64.high %v8845_v32, %v533_v54, %v8883_v11 }
  0xcd   : > { %v408_v2 = vor.u32 %v407_v60, %v406_v40  ;;  %v410_v15 = vshrl.u32 %v14450_v53, %v401_v8  ;;  %v412_v4 = vshll.u32 %v14450_v53, %v400_v42  ;;  %v413_v6 = vshrl.u32 %v14455_v55, %v401_v8 }
  0xce   : > { %v415_v10 = vshll.u32 %v14455_v55, %v400_v42  ;;  %v416_v12 = vshrl.u32 %v14453_v1, %v401_v8  ;;  %v545_v16 = vmul.u32 %v8845_v32, %v529_v52  ;;  %v402_v17 = vshrl.u32 %v8606_v23, %v401_v8 }
  0xcf   : > { %v411_v18 = vor.u32 %v410_v15, %v409_v3  ;;  %vm418_vm6 = vcmp.lt.s32.totalorder %v8847_v35, 1  ;;  %vm547_vm7 = vc.u32 %v8880_v63, %v8883_v11  ;;  %v548_v14 = vadd.s32 1, %v8884_v0 }
  0xd0   : > { %v414_v20 = vor.u32 %v413_v6, %v412_v4  ;;  %vm419_vm8 = vcmp.lt.s32.totalorder %v8847_v35, 2  ;;  %v417_v21 = vor.u32 %v416_v12, %v415_v10  ;;  %vm420_vm9 = vcmp.lt.s32.totalorder %v8847_v35, 3 }
  0xd1   : > { %vm421_vm10 = vcmp.lt.s32.totalorder %v8847_v35, 4  ;;  %v426_v42 = vsel %vm418_vm6, %v405_v22, %v408_v2  ;;  %v549_v32 = vsel %vm547_vm7, %v548_v14, %v8884_v0  ;;  %v430_v24 = vsel %vm418_vm6, %v408_v2, %v411_v18  ;;  %v304_v35 = vpop.permute.xlu1 %303 }
  0xd2   : > { %v423_v8 = vsel %vm421_vm10, %v411_v18, 2102212464  ;;  %v427_v7 = vsel %vm421_vm10, %v414_v20, 920167782  ;;  %v550_v40 = vadd.s32 %v549_v32, %v545_v16  ;;  %v422_v13 = vsel %vm418_vm6, %v402_v17, %v405_v22 }
  0xd3   : > { %v428_v41 = vsel %vm420_vm9, %v411_v18, %v427_v7  ;;  %v431_v50 = vsel %vm421_vm10, %v417_v21, 1326507024  ;;  %v424_v52 = vsel %vm420_vm9, %v408_v2, %v423_v8  ;;  %v604_v60 = vadd.s32 1, %v8853_v43 }
  0xd4   : > { %v429_v54 = vsel %vm419_vm8, %v426_v42, %v428_v41  ;;  %v432_v58 = vsel %vm420_vm9, %v414_v20, %v431_v50  ;;  %v551_v62 = vadd.s32 536870912, %v550_v40  ;;  %v601_v2 = vand.u32 8388607, %v594_v9 }
  0xd5   : > { %v433_v3 = vsel %vm419_vm8, %v430_v24, %v432_v58  ;;  %v8909_v0 = vmul.u32.u64.low %v8849_v36, %v429_v54  ;;  %v8910_v15 = vmul.u32.u64.high %v8849_v36, %v429_v54, %v8909_v0  ;;  %vm605_vm11 = vcmp.gt.s32.totalorder %v604_v60, 0 }
  0xd6   : > { %v8914_v22 = vmul.u32.u64.low %v8849_v36, %v433_v3  ;;  %v8915_v4 = vmul.u32.u64.high %v8849_v36, %v433_v3, %v8914_v22  ;;  %v273_v43 = vadd.f32 %v8804_v47, %v8840_v19  ;;  %v552_v6 = vshrl.u32 %v551_v62, 30 }
  0xd7   : > { %v425_v10 = vsel %vm419_vm8, %v422_v13, %v424_v52  ;;  %v606_v12 = vsel %vm605_vm11, %v604_v60, 0  ;;  %v255_v16 = vmul.f32 %v8794_v39, %v8761_v25  ;;  %v444_v14 = vadd.s32 1, %v8910_v15 }
  0xd8   : > { %v608_v17 = vand.u32 31, %v606_v12  ;;  %v553_v18 = vshll.u32 %v552_v6, 30  ;;  %v8927_v20 = vadd.f32 %v8843_v29, %v273_v43  ;;  %v441_v21 = vmul.u32 %v8849_v36, %v425_v10 }
  0xd9   : > { %vm443_vm12 = vc.u32 %v8915_v4, %v8909_v0  ;;  %v602_v19 = vor.u32 8388608, %v601_v2  ;;  %v8936_v25 = vadd.f32 %v8804_v47, %v255_v16  ;;  %v8940_v7 = vmul.f32 %v8794_v39, %v8763_v26 }
  0xda   : > { %v609_v42 = vsub.s32 32, %v608_v17  ;;  %v8932_v32 = vsub.s32 %v550_v40, %v553_v18  ;;  %v445_v8 = vsel %vm443_vm12, %v444_v14, %v8910_v15  ;;  %v546_v36 = vadd.s32 %v8883_v11, %v8880_v63 }
  0xdb   : > { %v446_v29 = vadd.s32 %v445_v8, %v441_v21  ;;  %v698_v40 = vand.u32 2147483647, %v8927_v20  ;;  %v8948_v13 = vmul.f32 %v8807_v48, %v304_v35  ;;  %v8951_v52 = vshll.u32 %v602_v19, 8 }
  0xdc   : > { %v556_v24 = vsub.s32 0, %v8932_v32  ;;  %v612_v50 = vshrl.u32 %v14448_v49, %v609_v42  ;;  %v701_v26 = vand.u32 2139095040, %v8927_v20  ;;  %v8955_v58 = vshrl.u32 %v606_v12, 5 }
  0xdd   : > { %v447_v41 = vadd.s32 536870912, %v446_v29  ;;  %v615_v63 = vshrl.u32 %v14446_v51, %v609_v42  ;;  %v618_v11 = vshrl.u32 %v14450_v53, %v609_v42  ;;  %v576_v60 = vsub.s32 4, %v552_v6 }
  0xde   : > { %v7755_v54 = vmin.u32 %v556_v24, %v8932_v32  ;;  %v611_v3 = vshll.u32 %v8606_v23, %v608_v17  ;;  %v621_v15 = vshrl.u32 %v14455_v55, %v609_v42  ;;  %v614_v2 = vshll.u32 %v14448_v49, %v608_v17 }
  0xdf   : > { %v448_v62 = vshrl.u32 %v447_v41, 30  ;;  %v617_v43 = vshll.u32 %v14446_v51, %v608_v17  ;;  %v624_v10 = vshrl.u32 %v14453_v1, %v609_v42  ;;  %v620_v18 = vshll.u32 %v14450_v53, %v608_v17 }
  0xe0   : > { %v558_v22 = vclz %v7755_v54  ;;  %v613_v12 = vor.u32 %v612_v50, %v611_v3  ;;  %v702_v14 = vshrl.u32 %v701_v26, 23  ;;  %v616_v19 = vor.u32 %v615_v63, %v614_v2 }
  0xe1   : > { %v449_v16 = vshll.u32 %v448_v62, 30  ;;  %v619_v35 = vor.u32 %v618_v11, %v617_v43  ;;  %v623_v8 = vshll.u32 %v14455_v55, %v608_v17  ;;  %v8968_v24 = vsel %vm492_vm13, %v576_v60, %v552_v6 }
  0xe2   : > { %v7756_v21 = vadd.s32 4294967294, %v558_v22  ;;  %v610_v54 = vshrl.u32 %v8606_v23, %v609_v42  ;;  %v622_v46 = vor.u32 %v621_v15, %v620_v18  ;;  %v472_v50 = vsub.s32 4, %v448_v62 }
  0xe3   : > { %v8971_v41 = vsub.s32 %v446_v29, %v449_v16  ;;  %v625_v3 = vor.u32 %v624_v10, %v623_v8  ;;  %vm626_vm0 = vcmp.lt.s32.totalorder %v8955_v58, 1  ;;  %vm628_vm2 = vcmp.lt.s32.totalorder %v8955_v58, 3 }
  0xe4   : > { %vm7757_vm15 = vcmp.lt.s32.totalorder %v7756_v21, 0  ;;  %vm629_vm3 = vcmp.lt.s32.totalorder %v8955_v58, 4  ;;  %vm8986_vm4 = vcmp.le.f32.partialorder %v386_v61, 0.7853982  ;;  %v634_v59 = vsel %vm626_vm0, %v613_v12, %v616_v19 }
  0xe5   : > { %v561_v6 = vsel %vm7757_vm15, 0, %v7756_v21  ;;  %v452_v26 = vsub.s32 0, %v8971_v41  ;;  %v631_v11 = vsel %vm629_vm3, %v619_v35, 2102212464  ;;  %v635_v22 = vsel %vm629_vm3, %v622_v46, 920167782 }
  0xe6   : > { %v562_v42 = vsub.s32 32, %v561_v6  ;;  %v566_v29 = vsub.s32 4294967266, %v561_v6  ;;  %v563_v60 = vshll.u32 %v8932_v32, %v561_v6  ;;  %v638_v2 = vsel %vm626_vm0, %v616_v19, %v619_v35 }
  0xe7   : > { %v7751_v15 = vmin.u32 %v452_v26, %v8971_v41  ;;  %v636_v61 = vsel %vm628_vm2, %v619_v35, %v635_v22  ;;  %v639_v16 = vsel %vm629_vm3, %v625_v3, 1326507024  ;;  %vm627_vm5 = vcmp.lt.s32.totalorder %v8955_v58, 2 }
  0xe8   : > { %v564_v43 = vshrl.u32 %v546_v36, %v562_v42  ;;  %v567_v10 = vadd.s32 127, %v566_v29  ;;  %v630_v21 = vsel %vm626_vm0, %v610_v54, %v613_v12  ;;  %v632_v32 = vsel %vm628_vm2, %v616_v19, %v631_v11 }
  0xe9   : > { %v454_v18 = vclz %v7751_v15  ;;  %v637_v26 = vsel %vm627_vm5, %v634_v59, %v636_v61  ;;  %v640_v36 = vsel %vm628_vm2, %v622_v46, %v639_v16  ;;  %v473_v22 = vsel %vm388_vm14, %v472_v50, %v448_v62 }
  0xea   : > { %v565_v8 = vor.u32 %v564_v43, %v563_v60  ;;  %v568_v6 = vshll.u32 %v567_v10, 23  ;;  %v641_v29 = vsel %vm627_vm5, %v638_v2, %v640_v36  ;;  %v442_v19 = vadd.s32 %v8909_v0, %v8915_v4 }
  0xeb   : > { %v7752_v42 = vadd.s32 4294967294, %v454_v18  ;;  %v9006_v35 = vmul.u32.u64.low %v8951_v52, %v637_v26  ;;  %v9007_v3 = vmul.u32.u64.high %v8951_v52, %v637_v26, %v9006_v35  ;;  %v633_v58 = vsel %vm627_vm5, %v630_v21, %v632_v32 }
  0xec   : > { %v569_v15 = vor.u32 4788187, %v568_v6  ;;  %v9012_v12 = vmul.u32.u64.low %v8951_v52, %v641_v29  ;;  %v9013_v54 = vmul.u32.u64.high %v8951_v52, %v641_v29, %v9012_v12  ;;  %v7762_v46 = vadd.s32 4294967169, %v702_v14  ;;  %v308_v6 = vpop.permute.xlu0 %307 }
  0xed   : > { %vm7753_vm6 = vcmp.lt.s32.totalorder %v7752_v42, 0  ;;  %v572_v59 = vcvt.s32.f32 %v565_v8  ;;  %v579_v60 = vsel %vm8977_vm1, 0, %v8968_v24  ;;  %v475_v62 = vsel %vm8986_vm4, 0, %v473_v22 }
  0xee   : > { %v570_v11 = vand.u32 2147483647, %v569_v15  ;;  %v457_v2 = vsel %vm7753_vm6, 0, %v7752_v42  ;;  %v652_v50 = vadd.s32 1, %v9007_v3  ;;  %v649_v0 = vmul.u32 %v8951_v52, %v633_v58 }
  0xef   : > { %v458_v43 = vsub.s32 32, %v457_v2  ;;  %v462_v10 = vsub.s32 4294967266, %v457_v2  ;;  %vm651_vm7 = vc.u32 %v9013_v54, %v9006_v35  ;;  %v708_v4 = vadd.s32 1, %v7762_v46 }
  0xf0   : > { %v573_v61 = vmul.f32 %v572_v59, %v570_v11  ;;  %v459_v14 = vshll.u32 %v8971_v41, %v457_v2  ;;  %v653_v24 = vsel %vm651_vm7, %v652_v50, %v9007_v3  ;;  %v583_v32 = vadd.s32 3, %v579_v60 }
  0xf1   : > { %v460_v16 = vshrl.u32 %v442_v19, %v458_v43  ;;  %v463_v18 = vadd.s32 127, %v462_v10  ;;  %v654_v8 = vadd.s32 %v653_v24, %v649_v0  ;;  %vm709_vm8 = vcmp.gt.s32.totalorder %v708_v4, 0 }
  0xf2   : > { %v574_v21 = vxor.u32 2147483648, %v573_v61  ;;  %v479_v42 = vadd.s32 3, %v475_v62  ;;  %v710_v29 = vsel %vm709_vm8, %v708_v4, 0  ;;  %v705_v41 = vand.u32 8388607, %v698_v40 }
  0xf3   : > { %v461_v26 = vor.u32 %v460_v16, %v459_v14  ;;  %v464_v36 = vshll.u32 %v463_v18, 23  ;;  %v655_v15 = vadd.s32 536870912, %v654_v8  ;;  %v712_v22 = vand.u32 31, %v710_v29 }
  0xf4   : > { %v575_v52 = vsel %vm492_vm13, %v574_v21, %v573_v61  ;;  %v274_v3 = vadd.f32 %v8804_v47, %v8940_v7  ;;  %v9037_v58 = vmul.f32 %v8807_v48, %v308_v6  ;;  %v9039_v46 = vand.u32 3, %v583_v32 }
  0xf5   : > { %v578_v12 = vsel %vm8977_vm1, %v8816_v56, %v575_v52  ;;  %v465_v19 = vor.u32 4788187, %v464_v36  ;;  %vm596_vm9 = vcmp.lt.s32.totalorder %v8833_v5, 0  ;;  %v656_v11 = vshrl.u32 %v655_v15, 30 }
  0xf6   : > { %8304 = vcosq.f32 %v578_v12  ;;  %v713_v59 = vsub.s32 32, %v712_v22  ;;  %v468_v2 = vcvt.s32.f32 %v461_v26  ;;  %v9042_v43 = vand.u32 3, %v479_v42 }
  0xf7   : > { %8306 = vsinq.f32 %v578_v12  ;;  %v466_v60 = vand.u32 2147483647, %v465_v19  ;;  %v657_v7 = vshll.u32 %v656_v11, 30  ;;  %v706_v10 = vor.u32 8388608, %v705_v41 }
  0xf8   : > { %v716_v17 = vshrl.u32 %v14448_v49, %v713_v59  ;;  %v9046_v62 = vadd.f32 %v8948_v13, %v274_v3  ;;  %v9049_v61 = vadd.s32 %v9006_v35, %v9013_v54  ;;  %v719_v0 = vshrl.u32 %v14446_v51, %v713_v59 }
  0xf9   : > { %v469_v50 = vmul.f32 %v468_v2, %v466_v60  ;;  %v722_v4 = vshrl.u32 %v14450_v53, %v713_v59  ;;  %vm589_vm10 = vcmp.eq.s32.totalorder %v9039_v46, 2  ;;  %v9054_v14 = vsub.s32 %v654_v8, %v657_v7 }
  0xfa   : > { %v9056_v16 = vshrl.u32 %v710_v29, 5  ;;  %v715_v18 = vshll.u32 %v8606_v23, %v712_v22  ;;  %v725_v24 = vshrl.u32 %v14455_v55, %v713_v59  ;;  %vm586_vm11 = vcmp.eq.s32.totalorder %v9039_v46, 0 }
  0xfb   : > { %v470_v13 = vxor.u32 2147483648, %v469_v50  ;;  %v680_v21 = vsub.s32 4, %v656_v11  ;;  %v718_v35 = vshll.u32 %v14448_v49, %v712_v22  ;;  %v721_v54 = vshll.u32 %v14446_v51, %v712_v22 }
  0xfc   : > { %vm585_vm12 = vcmp.lt.s32.totalorder %v9039_v46, 2  ;;  %v660_v32 = vsub.s32 0, %v9054_v14  ;;  %v717_v8 = vor.u32 %v716_v17, %v715_v18  ;;  %v724_v6 = vshll.u32 %v14450_v53, %v712_v22 }
  0xfd   : > { %v9066_v26 = vshll.u32 %v706_v10, 8  ;;  %vm582_vm13 = vweird.f32 %v8816_v56  ;;  %v471_v36 = vsel %vm388_vm14, %v470_v13, %v469_v50  ;;  %v720_v42 = vor.u32 %v719_v0, %v718_v35 }
  0xfe   : > { %v723_v29 = vor.u32 %v722_v4, %v721_v54  ;;  %v728_v52 = vshrl.u32 %v14453_v1, %v713_v59  ;;  %v474_v15 = vsel %vm8986_vm4, %v8818_v57, %v471_v36  ;;  %v7759_v41 = vmin.u32 %v660_v32, %v9054_v14 }
  0xff   : > { %v726_v3 = vor.u32 %v725_v24, %v724_v6  ;;  %v727_v12 = vshll.u32 %v14455_v55, %v712_v22  ;;  %8308 = vcosq.f32 %v474_v15  ;;  %v9079_v19 = vsel %vm596_vm9, %v680_v21, %v656_v11 }
 0x100   : > { %v714_v60 = vshrl.u32 %v8606_v23, %v713_v59  ;;  %vm730_vm14 = vcmp.lt.s32.totalorder %v9056_v16, 1  ;;  %v8305_v2 = vpop.eup %8304  ;;  %8310 = vsinq.f32 %v474_v15  ;;  %vm9085_vm15 = vcmp.le.f32.partialorder %v594_v9, 0.7853982 }
 0x101   : > { %v662_v7 = vclz %v7759_v41  ;;  %v729_v10 = vor.u32 %v728_v52, %v727_v12  ;;  %vm731_vm0 = vcmp.lt.s32.totalorder %v9056_v16, 2  ;;  %v8307_v22 = vpop.eup %8306  ;;  %v590_v11 = vxor.u32 2147483648, %v8305_v2 }
 0x102   : > { %vm732_vm1 = vcmp.lt.s32.totalorder %v9056_v16, 3  ;;  %vm733_vm2 = vcmp.lt.s32.totalorder %v9056_v16, 4  ;;  %v738_v59 = vsel %vm730_vm14, %v717_v8, %v720_v42  ;;  %v587_v17 = vxor.u32 2147483648, %v8307_v22 }
 0x103   : > { %v7760_v50 = vadd.s32 4294967294, %v662_v7  ;;  %v735_v9 = vsel %vm733_vm2, %v723_v29, 2102212464  ;;  %v739_v0 = vsel %vm733_vm2, %v726_v3, 920167782  ;;  %v591_v4 = vsel %vm589_vm10, %v590_v11, %v8307_v22 }
 0x104   : > { %v734_v18 = vsel %vm730_vm14, %v714_v60, %v717_v8  ;;  %v740_v24 = vsel %vm732_vm1, %v723_v29, %v739_v0  ;;  %v742_v13 = vsel %vm730_vm14, %v720_v42, %v723_v29  ;;  %v588_v21 = vsel %vm586_vm11, %v8305_v2, %v587_v17 }
 0x105   : > { %vm7761_vm3 = vcmp.lt.s32.totalorder %v7760_v50, 0  ;;  %v741_v35 = vsel %vm731_vm0, %v738_v59, %v740_v24  ;;  %v743_v54 = vsel %vm733_vm2, %v729_v10, 1326507024  ;;  %v592_v32 = vsel %vm585_vm12, %v588_v21, %v591_v4 }
 0x106   : > { %v665_v8 = vsel %vm7761_vm3, 0, %v7760_v50  ;;  %v736_v6 = vsel %vm732_vm1, %v720_v42, %v735_v9  ;;  %v744_v36 = vsel %vm732_vm1, %v726_v3, %v743_v54  ;;  %v593_v29 = vsel %vm582_vm13, nan, %v592_v32 }
 0x107   : > { %vm478_vm4 = vweird.f32 %v8818_v57  ;;  %v666_v52 = vsub.s32 32, %v665_v8  ;;  %v667_v15 = vshll.u32 %v9054_v14, %v665_v8  ;;  %v670_v41 = vsub.s32 4294967266, %v665_v8  ;;  %2051 = vst [vmem:[%s9106_s21 + $0x20] sm:$0xff] %v593_v29 }
 0x108   : > { %v745_v46 = vsel %vm731_vm0, %v742_v13, %v744_v36  ;;  %v9126_v12 = vmul.u32.u64.low %v9066_v26, %v741_v35  ;;  %v9127_v60 = vmul.u32.u64.high %v9066_v26, %v741_v35, %v9126_v12  ;;  %v805_v42 = vand.u32 2139095040, %v9046_v62 }
 0x109   : > { %v668_v56 = vshrl.u32 %v9049_v61, %v666_v52  ;;  %v671_v3 = vadd.s32 127, %v670_v41  ;;  %v9133_v2 = vmul.u32.u64.low %v9066_v26, %v745_v46  ;;  %v9134_v7 = vmul.u32.u64.high %v9066_v26, %v745_v46, %v9133_v2  ;;  %v8309_v14 = vpop.eup %8308 }
 0x10a   : > { %vm481_vm5 = vcmp.lt.s32.totalorder %v9042_v43, 2  ;;  %vm485_vm6 = vcmp.eq.s32.totalorder %v9042_v43, 2  ;;  %v683_v10 = vsel %vm9085_vm15, 0, %v9079_v19  ;;  %v806_v22 = vshrl.u32 %v805_v42, 23  ;;  %v8311_v11 = vpop.eup %8310 }
 0x10b   : > { %v486_v59 = vxor.u32 2147483648, %v8309_v14  ;;  %v669_v17 = vor.u32 %v668_v56, %v667_v15  ;;  %v672_v50 = vshll.u32 %v671_v3, 23  ;;  %v737_v61 = vsel %vm731_vm0, %v734_v18, %v736_v6 }
 0x10c   : > { %v483_v9 = vxor.u32 2147483648, %v8311_v11  ;;  %v756_v0 = vadd.s32 1, %v9127_v60  ;;  %v802_v4 = vand.u32 2147483647, %v9046_v62  ;;  %v7766_v24 = vadd.s32 4294967169, %v806_v22  ;;  %v9181_v22 = vld [vmem:[%s8643_s15 + $0x8] sm:$0xff] }
 0x10d   : > { %vm482_vm7 = vcmp.eq.s32.totalorder %v9042_v43, 0  ;;  %v487_v13 = vsel %vm485_vm6, %v486_v59, %v8311_v11  ;;  %v673_v21 = vor.u32 4788187, %v672_v50  ;;  %v687_v19 = vadd.s32 3, %v683_v10 }
 0x10e   : > { %v484_v35 = vsel %vm482_vm7, %v8309_v14, %v483_v9  ;;  %v753_v54 = vmul.u32 %v9066_v26, %v737_v61  ;;  %vm755_vm8 = vc.u32 %v9134_v7, %v9126_v12  ;;  %v812_v16 = vadd.s32 1, %v7766_v24  ;;  %v8561_v61 = vld [vmem:[%s8643_s15] sm:$0xff] }
 0x10f   : > { %v488_v18 = vsel %vm481_vm5, %v484_v35, %v487_v13  ;;  %v674_v32 = vand.u32 2147483647, %v673_v21  ;;  %v676_v8 = vcvt.s32.f32 %v669_v17  ;;  %v757_v6 = vsel %vm755_vm8, %v756_v0, %v9127_v60 }
 0x110   : > { %v489_v36 = vsel %vm478_vm4, nan, %v488_v18  ;;  %v758_v29 = vadd.s32 %v757_v6, %v753_v54  ;;  %v809_v52 = vand.u32 8388607, %v802_v4  ;;  %vm813_vm10 = vcmp.gt.s32.totalorder %v812_v16, 0  ;;  %v9199_v18 = vld [vmem:[%s8643_s15 + $0x10] sm:$0xff] }
 0x111   : > { %2050 = vst [vmem:[%s9106_s21] sm:$0xff] %v489_v36  ;;  %v677_v26 = vmul.f32 %v676_v8, %v674_v32  ;;  %v814_v15 = vsel %vm813_vm10, %v812_v16, 0  ;;  %v9159_v41 = vadd.f32 %v9037_v58, %v8936_v25  ;;  %v9163_v60 = vmul.f32 %v8794_v39, %v8767_v27 }
 0x112   : > { %v759_v43 = vadd.s32 536870912, %v758_v29  ;;  %v816_v46 = vand.u32 31, %v814_v15  ;;  %v9167_v57 = vmul.f32 %v8794_v39, %v8769_v28  ;;  %v9169_v56 = vand.u32 3, %v687_v19 }
 0x113   : > { %v678_v42 = vxor.u32 2147483648, %v677_v26  ;;  %vm700_vm11 = vcmp.lt.s32.totalorder %v8927_v20, 0  ;;  %v810_v25 = vor.u32 8388608, %v809_v52  ;;  %v8612_v2 = vmov 5  }
 0x114   : > { %v760_v3 = vshrl.u32 %v759_v43, 30  ;;  %v817_v58 = vsub.s32 32, %v816_v46  ;;  %8297 = vset.pattern.permute.xlu1 %v8612_v2  ;;  %8300 = vset.pattern.permute.xlu0 %v8612_v2  ;;  %v9176_v14 = vshrl.u32 %v814_v15, 5  ;;  %v819_v28 = vshll.u32 %v8606_v23, %v816_v46 }
 0x115   : > { %v679_v27 = vsel %vm596_vm9, %v678_v42, %v677_v26  ;;  %v909_v10 = vand.u32 2139095040, %v9159_v41  ;;  %4039 = vperm.xlu1 %8297, %v9181_v22   ;;  %v822_v17 = vshll.u32 %v14448_v49, %v816_v46  ;;  %v825_v50 = vshll.u32 %v14446_v51, %v816_v46  ;;  %4035 = vperm.xlu0 %8300, %v8561_v61  }
 0x116   : > { %v682_v11 = vsel %vm9085_vm15, %v8833_v5, %v679_v27  ;;  %v761_v59 = vshll.u32 %v760_v3, 30  ;;  %v820_v9 = vshrl.u32 %v14448_v49, %v817_v58  ;;  %v823_v0 = vshrl.u32 %v14446_v51, %v817_v58 }
 0x117   : > { %8312 = vcosq.f32 %v682_v11  ;;  %v826_v24 = vshrl.u32 %v14450_v53, %v817_v58  ;;  %v828_v63 = vshll.u32 %v14450_v53, %v816_v46  ;;  %v829_v21 = vshrl.u32 %v14455_v55, %v817_v58 }
 0x118   : > { %8314 = vsinq.f32 %v682_v11  ;;  %v9193_v13 = vsub.s32 %v758_v29, %v761_v59  ;;  %v784_v19 = vsub.s32 4, %v760_v3  ;;  %v821_v35 = vor.u32 %v820_v9, %v819_v28  ;;  %v8563_v29 = vld [vmem:[%s8643_s15 + $0x18] sm:$0xff]  ;;  %v8565_v59 = vld [vmem:[%s8643_s15 + $0x28] sm:$0xff] }
 0x119   : > { %v824_v54 = vor.u32 %v823_v0, %v822_v17  ;;  %v831_v16 = vshll.u32 %v14455_v55, %v816_v46  ;;  %4043 = vperm.xlu1 %8297, %v9199_v18   ;;  %v827_v8 = vor.u32 %v826_v24, %v825_v50  ;;  %v830_v6 = vor.u32 %v829_v21, %v828_v63 }
 0x11a   : > { %v764_v32 = vsub.s32 0, %v9193_v13  ;;  %v832_v36 = vshrl.u32 %v14453_v1, %v817_v58  ;;  %4047 = vperm.xlu0 %8300, %v8563_v29   ;;  %vm693_vm9 = vcmp.eq.s32.totalorder %v9169_v56, 2  ;;  %v9206_v52 = vshll.u32 %v810_v25, 8 }
 0x11b   : > { %v14444_v26 = vand.u32 2147483647, %v9159_v41  ;;  %v910_v15 = vshrl.u32 %v909_v10, 23  ;;  %vm690_vm12 = vcmp.eq.s32.totalorder %v9169_v56, 0  ;;  %vm9212_vm13 = vcmp.le.f32.partialorder %v698_v40, 0.7853982 }
 0x11c   : > { %v7763_v46 = vmin.u32 %v764_v32, %v9193_v13  ;;  %v833_v42 = vor.u32 %v832_v36, %v831_v16  ;;  %vm834_vm14 = vcmp.lt.s32.totalorder %v9176_v14, 1  ;;  %vm837_vm15 = vcmp.lt.s32.totalorder %v9176_v14, 4  ;;  %v9230_v10 = vld [vmem:[%s8643_s15 + $0x20] sm:$0xff]  ;;  %v9255_v36 = vld [vmem:[%s8643_s15 + $0x30] sm:$0xff] }
 0x11d   : > { %vm689_vm0 = vcmp.lt.s32.totalorder %v9169_v56, 2  ;;  %v9222_v25 = vsel %vm700_vm11, %v784_v19, %v760_v3  ;;  %v818_v27 = vshrl.u32 %v8606_v23, %v817_v58  ;;  %v842_v40 = vsel %vm834_vm14, %v821_v35, %v824_v54  ;;  %4051 = vperm.xlu1 %8297, %v9230_v10  }
 0x11e   : > { %v843_v28 = vsel %vm837_vm15, %v830_v6, 920167782  ;;  %vm686_vm1 = vweird.f32 %v8833_v5  ;;  %v766_v11 = vclz %v7763_v46  ;;  %vm836_vm2 = vcmp.lt.s32.totalorder %v9176_v14, 3  ;;  %4055 = vperm.xlu0 %8300, %v8565_v59  }
 0x11f   : > { %v839_v3 = vsel %vm837_vm15, %v827_v8, 2102212464  ;;  %v846_v58 = vsel %vm834_vm14, %v824_v54, %v827_v8  ;;  %vm835_vm3 = vcmp.lt.s32.totalorder %v9176_v14, 2  ;;  %v844_v17 = vsel %vm836_vm2, %v827_v8, %v843_v28 }
 0x120   : > { %v847_v50 = vsel %vm837_vm15, %v833_v42, 1326507024  ;;  %v7770_v61 = vadd.s32 4294967169, %v910_v15  ;;  %v7764_v9 = vadd.s32 4294967294, %v766_v11  ;;  %v838_v0 = vsel %vm834_vm14, %v818_v27, %v821_v35 }
 0x121   : > { %v845_v24 = vsel %vm835_vm3, %v842_v40, %v844_v17  ;;  %v848_v63 = vsel %vm836_vm2, %v830_v6, %v847_v50  ;;  %v8313_v21 = vpop.eup %8312  ;;  %v840_v19 = vsel %vm836_vm2, %v824_v54, %v839_v3  ;;  %4059 = vperm.xlu1 %8297, %v9255_v36   ;;  %v8567_v54 = vld [vmem:[%s8643_s15 + $0x38] sm:$0xff]  ;;  %v754_v42 = vadd.s32 %v9126_v12, %v9134_v7  ;;  %v9276_v7 = vld [vmem:[%s8643_s15 + $0x40] sm:$0xff] }
 0x122   : > { %v849_v16 = vsel %vm835_vm3, %v846_v58, %v848_v63  ;;  %v9250_v32 = vmul.u32.u64.low %v9206_v52, %v845_v24  ;;  %v9251_v8 = vmul.u32.u64.high %v9206_v52, %v845_v24, %v9250_v32  ;;  %v8315_v29 = vpop.eup %8314  ;;  %v694_v35 = vxor.u32 2147483648, %v8313_v21  ;;  %4063 = vperm.xlu0 %8300, %v8567_v54  }
 0x123   : > { %vm7765_vm4 = vcmp.lt.s32.totalorder %v7764_v9, 0  ;;  %v9259_v6 = vmul.u32.u64.low %v9206_v52, %v849_v16  ;;  %v9260_v15 = vmul.u32.u64.high %v9206_v52, %v849_v16, %v9259_v6  ;;  %v691_v46 = vxor.u32 2147483648, %v8315_v29 }
 0x124   : > { %v769_v27 = vsel %vm7765_vm4, 0, %v7764_v9  ;;  %v916_v40 = vadd.s32 1, %v7770_v61  ;;  %v695_v28 = vsel %vm693_vm9, %v694_v35, %v8315_v29  ;;  %v841_v58 = vsel %vm835_vm3, %v838_v0, %v840_v19  ;;  %v8569_v0 = vld [vmem:[%s8643_s15 + $0x48] sm:$0xff]  ;;  %v9297_v35 = vld [vmem:[%s8643_s15 + $0x50] sm:$0xff] }
 0x125   : > { %v770_v11 = vsub.s32 32, %v769_v27  ;;  %v774_v3 = vsub.s32 4294967266, %v769_v27  ;;  %v692_v59 = vsel %vm690_vm12, %v8313_v21, %v691_v46  ;;  %v787_v17 = vsel %vm9212_vm13, 0, %v9222_v25  ;;  %4067 = vperm.xlu1 %8297, %v9276_v7   ;;  %v312_v21 = vpop.permute.xlu1 %311 }
 0x126   : > { %v860_v12 = vadd.s32 1, %v9251_v8  ;;  %vm917_vm5 = vcmp.gt.s32.totalorder %v916_v40, 0  ;;  %v696_v50 = vsel %vm689_vm0, %v692_v59, %v695_v28  ;;  %v771_v14 = vshll.u32 %v9193_v13, %v769_v27  ;;  %4071 = vperm.xlu0 %8300, %v8569_v0  }
 0x127   : > { %v772_v61 = vshrl.u32 %v754_v42, %v770_v11  ;;  %v775_v9 = vadd.s32 127, %v774_v3  ;;  %v697_v25 = vsel %vm686_vm1, nan, %v696_v50  ;;  %v857_v24 = vmul.u32 %v9206_v52, %v841_v58  ;;  %v9304_v42 = vld [vmem:[%s8643_s15 + $0x60] sm:$0xff] }
 0x128   : > { %vm859_vm6 = vc.u32 %v9260_v15, %v9250_v32  ;;  %v918_v63 = vsel %vm917_vm5, %v916_v40, 0  ;;  %2052 = vst [vmem:[%s9106_s21 + $0x40] sm:$0xff] %v697_v25  ;;  %v9292_v16 = vadd.f32 %v8804_v47, %v9163_v60  ;;  %v276_v5 = vadd.f32 %v8804_v47, %v9167_v57 }
 0x129   : > { %v773_v56 = vor.u32 %v772_v61, %v771_v14  ;;  %v776_v19 = vshll.u32 %v775_v9, 23  ;;  %v861_v13 = vsel %vm859_vm6, %v860_v12, %v9251_v8  ;;  %v920_v52 = vand.u32 31, %v918_v63  ;;  %4075 = vperm.xlu1 %8297, %v9297_v35  }
 0x12a   : > { %v862_v29 = vadd.s32 %v861_v13, %v857_v24  ;;  %v791_v54 = vadd.s32 3, %v787_v17  ;;  %v913_v46 = vand.u32 8388607, %v14444_v26  ;;  %v360_v8 = vmul.f32 %v8807_v48, %v312_v21  ;;  %4083 = vperm.xlu0 %8300, %v9304_v42  }
 0x12b   : > { %v777_v6 = vor.u32 4788187, %v776_v19  ;;  %v780_v60 = vcvt.s32.f32 %v773_v56  ;;  %v9307_v57 = vshrl.u32 %v918_v63, 5  ;;  %v921_v40 = vsub.s32 32, %v920_v52  ;;  %v8572_v19 = vld [vmem:[%s8643_s15 + $0x78] sm:$0xff] }
 0x12c   : > { %v863_v27 = vadd.s32 536870912, %v862_v29  ;;  %v923_v11 = vshll.u32 %v8606_v23, %v920_v52  ;;  %v926_v3 = vshll.u32 %v14448_v49, %v920_v52  ;;  %v929_v58 = vshll.u32 %v14446_v51, %v920_v52 }
 0x12d   : > { %v778_v28 = vand.u32 2147483647, %v777_v6  ;;  %v924_v17 = vshrl.u32 %v14448_v49, %v921_v40  ;;  %v927_v12 = vshrl.u32 %v14446_v51, %v921_v40  ;;  %v932_v50 = vshll.u32 %v14450_v53, %v920_v52 }
 0x12e   : > { %v864_v59 = vshrl.u32 %v863_v27, 30  ;;  %v14466_v14 = vmov 6   ;;  %vm804_vm7 = vcmp.lt.s32.totalorder %v9046_v62, 0  ;;  %v930_v9 = vshrl.u32 %v14450_v53, %v921_v40  ;;  %4095 = vperm.xlu0 %8300, %v8572_v19  }
 0x12f   : > { %8299 = vset.pattern.permute.xlu1 %v14466_v14  ;;  %v781_v61 = vmul.f32 %v780_v60, %v778_v28  ;;  %v933_v0 = vshrl.u32 %v14455_v55, %v921_v40  ;;  %v936_v25 = vshrl.u32 %v14453_v1, %v921_v40  ;;  %v914_v63 = vor.u32 8388608, %v913_v46 }
 0x130   : > { %5815 = vperm.xlu1 %8299, %v9181_v22   ;;  %v865_v24 = vshll.u32 %v864_v59, 30  ;;  %v925_v21 = vor.u32 %v924_v17, %v923_v11  ;;  %v935_v56 = vshll.u32 %v14455_v55, %v920_v52  ;;  %v928_v6 = vor.u32 %v927_v12, %v926_v3 }
 0x131   : > { %v782_v13 = vxor.u32 2147483648, %v781_v61  ;;  %v931_v60 = vor.u32 %v930_v9, %v929_v58  ;;  %v934_v27 = vor.u32 %v933_v0, %v932_v50  ;;  %v9323_v28 = vand.u32 3, %v791_v54 }
 0x132   : > { %v9325_v14 = vsub.s32 %v862_v29, %v865_v24  ;;  %vm938_vm8 = vcmp.lt.s32.totalorder %v9307_v57, 1  ;;  %v9328_v26 = vadd.f32 %v360_v8, %v276_v5  ;;  %v888_v46 = vsub.s32 4, %v864_v59 }
 0x133   : > { %v783_v22 = vsel %vm700_vm11, %v782_v13, %v781_v61  ;;  %v937_v11 = vor.u32 %v936_v25, %v935_v56  ;;  %vm939_vm10 = vcmp.lt.s32.totalorder %v9307_v57, 2  ;;  %vm940_vm9 = vcmp.lt.s32.totalorder %v9307_v57, 3 }
 0x134   : > { %5819 = vperm.xlu1 %8299, %v9199_v18   ;;  %v786_v52 = vsel %vm9212_vm13, %v8927_v20, %v783_v22  ;;  %v868_v29 = vsub.s32 0, %v9325_v14  ;;  %vm941_vm12 = vcmp.lt.s32.totalorder %v9307_v57, 4  ;;  %v946_v54 = vsel %vm938_vm8, %v925_v21, %v928_v6 }
 0x135   : > { %8316 = vcosq.f32 %v786_v52  ;;  %v943_v5 = vsel %vm941_vm12, %v931_v60, 2102212464  ;;  %v947_v8 = vsel %vm941_vm12, %v934_v27, 920167782  ;;  %v922_v18 = vshrl.u32 %v8606_v23, %v921_v40 }
 0x136   : > { %8318 = vsinq.f32 %v786_v52  ;;  %v7767_v3 = vmin.u32 %v868_v29, %v9325_v14  ;;  %v948_v43 = vsel %vm940_vm9, %v931_v60, %v947_v8  ;;  %v950_v17 = vsel %vm938_vm8, %v928_v6, %v931_v60 }
 0x137   : > { %v949_v58 = vsel %vm939_vm10, %v946_v54, %v948_v43  ;;  %v951_v12 = vsel %vm941_vm12, %v937_v11, 1326507024  ;;  %v954_v50 = vshll.u32 %v914_v63, 8  ;;  %v889_v9 = vsel %vm804_vm7, %v888_v46, %v864_v59 }
 0x138   : > { %5827 = vperm.xlu1 %8299, %v9230_v10   ;;  %v870_v61 = vclz %v7767_v3  ;;  %v942_v40 = vsel %vm938_vm8, %v922_v18, %v925_v21  ;;  %v944_v0 = vsel %vm940_vm9, %v928_v6, %v943_v5  ;;  %v952_v25 = vsel %vm940_vm9, %v934_v27, %v951_v12 }
 0x139   : > { %v9359_v24 = vmul.u32.u64.low %v954_v50, %v949_v58  ;;  %v9360_v56 = vmul.u32.u64.high %v954_v50, %v949_v58, %v9359_v24  ;;  %v1013_v63 = vand.u32 2139095040, %v9328_v26  ;;  %v258_v10 = vmul.f32 %v8794_v39, %v8775_v31 }
 0x13a   : > { %vm9368_vm11 = vcmp.le.f32.partialorder %v802_v4, 0.7853982  ;;  %v7768_v21 = vadd.s32 4294967294, %v870_v61  ;;  %v953_v19 = vsel %vm939_vm10, %v950_v17, %v952_v25  ;;  %vm793_vm13 = vcmp.lt.s32.totalorder %v9323_v28, 2 }
 0x13b   : > { %v891_v13 = vsel %vm9368_vm11, 0, %v889_v9  ;;  %v9377_v6 = vmul.u32.u64.low %v954_v50, %v953_v19  ;;  %v9378_v60 = vmul.u32.u64.high %v954_v50, %v953_v19, %v9377_v6  ;;  %v1014_v27 = vshrl.u32 %v1013_v63, 23 }
 0x13c   : > { %5835 = vperm.xlu1 %8299, %v9255_v36   ;;  %vm794_vm14 = vcmp.eq.s32.totalorder %v9323_v28, 0  ;;  %vm797_vm15 = vcmp.eq.s32.totalorder %v9323_v28, 2  ;;  %vm7769_vm0 = vcmp.lt.s32.totalorder %v7768_v21, 0  ;;  %v945_v31 = vsel %vm939_vm10, %v942_v40, %v944_v0 }
 0x13d   : > { %v873_v4 = vsel %vm7769_vm0, 0, %v7768_v21  ;;  %v964_v22 = vadd.s32 1, %v9360_v56  ;;  %v1010_v46 = vand.u32 2147483647, %v9328_v26  ;;  %v7774_v11 = vadd.s32 4294967169, %v1014_v27 }
 0x13e   : > { %v858_v52 = vadd.s32 %v9250_v32, %v9260_v15  ;;  %v874_v29 = vsub.s32 32, %v873_v4  ;;  %v878_v5 = vsub.s32 4294967266, %v873_v4  ;;  %v895_v36 = vadd.s32 3, %v891_v13  ;;  %v316_v32 = vpop.permute.xlu0 %315 }
 0x13f   : > { %v8317_v54 = vpop.eup %8316  ;;  %v875_v8 = vshll.u32 %v9325_v14, %v873_v4  ;;  %v961_v3 = vmul.u32 %v954_v50, %v945_v31  ;;  %vm963_vm1 = vc.u32 %v9378_v60, %v9359_v24  ;;  %v1020_v57 = vadd.s32 1, %v7774_v11 }
 0x140   : > { %5843 = vperm.xlu1 %8299, %v9276_v7   ;;  %v8319_v18 = vpop.eup %8318  ;;  %v798_v43 = vxor.u32 2147483648, %v8317_v54  ;;  %v876_v58 = vshrl.u32 %v858_v52, %v874_v29  ;;  %v879_v17 = vadd.s32 127, %v878_v5  ;;  %v965_v12 = vsel %vm963_vm1, %v964_v22, %v9360_v56 }
 0x141   : > { %v795_v15 = vxor.u32 2147483648, %v8319_v18  ;;  %v966_v61 = vadd.s32 %v965_v12, %v961_v3  ;;  %v1017_v9 = vand.u32 8388607, %v1010_v46  ;;  %vm1021_vm2 = vcmp.gt.s32.totalorder %v1020_v57, 0 }
 0x142   : > { %v799_v14 = vsel %vm797_vm15, %v798_v43, %v8319_v18  ;;  %v877_v50 = vor.u32 %v876_v58, %v875_v8  ;;  %v880_v40 = vshll.u32 %v879_v17, 23  ;;  %v1022_v7 = vsel %vm1021_vm2, %v1020_v57, 0 }
 0x143   : > { %v796_v0 = vsel %vm794_vm14, %v8317_v54, %v795_v15  ;;  %v967_v25 = vadd.s32 536870912, %v966_v61  ;;  %v1024_v63 = vand.u32 31, %v1022_v7  ;;  %v361_v56 = vmul.f32 %v8807_v48, %v316_v32 }
 0x144   : > { %5851 = vperm.xlu1 %8299, %v9297_v35   ;;  %v9404_v21 = vmul.f32 %v8794_v39, %v8773_v30  ;;  %vm790_vm3 = vweird.f32 %v8927_v20  ;;  %v800_v19 = vsel %vm793_vm13, %v796_v0, %v799_v14  ;;  %v881_v13 = vor.u32 4788187, %v880_v40 }
 0x145   : > { %v801_v6 = vsel %vm790_vm3, nan, %v800_v19  ;;  %v9409_v27 = vshrl.u32 %v967_v25, 30  ;;  %v1018_v31 = vor.u32 8388608, %v1017_v9  ;;  %v1025_v4 = vsub.s32 32, %v1024_v63 }
 0x146   : > { %v9412_v22 = vadd.f32 %v8804_v47, %v258_v10  ;;  %2053 = vst [vmem:[%s9106_s21 + $0x60] sm:$0xff] %v801_v6  ;;  %v882_v35 = vand.u32 2147483647, %v881_v13  ;;  %v884_v11 = vcvt.s32.f32 %v877_v50  ;;  %v9415_v52 = vand.u32 3, %v895_v36  ;;  %v8574_v6 = vld [vmem:[%s8643_s15 + $0x58] sm:$0xff] }
 0x147   : > { %v969_v30 = vshll.u32 %v9409_v27, 30  ;;  %v1027_v20 = vshll.u32 %v8606_v23, %v1024_v63  ;;  %v1028_v28 = vshrl.u32 %v14448_v49, %v1025_v4  ;;  %v9421_v29 = vadd.f32 %v361_v56, %v9292_v16 }
 0x148   : > { %5859 = vperm.xlu1 %8299, %v9304_v42   ;;  %v885_v5 = vmul.f32 %v884_v11, %v882_v35  ;;  %v1031_v10 = vshrl.u32 %v14446_v51, %v1025_v4  ;;  %v1034_v54 = vshrl.u32 %v14450_v53, %v1025_v4  ;;  %v1037_v36 = vshrl.u32 %v14455_v55, %v1025_v4 }
 0x149   : > { %v9427_v8 = vsub.s32 %v966_v61, %v969_v30  ;;  %v1023_v3 = vshrl.u32 %v1022_v7, 5  ;;  %v1030_v57 = vshll.u32 %v14448_v49, %v1024_v63  ;;  %v9430_v18 = vshll.u32 %v1018_v31, 8  ;;  %v8573_v61 = vld [vmem:[%s8643_s15 + $0x70] sm:$0xff] }
 0x14a   : > { %v886_v43 = vxor.u32 2147483648, %v885_v5  ;;  %v1029_v16 = vor.u32 %v1028_v28, %v1027_v20  ;;  %v1033_v58 = vshll.u32 %v14446_v51, %v1024_v63  ;;  %v1036_v42 = vshll.u32 %v14450_v53, %v1024_v63 }
 0x14b   : > { %vm908_vm4 = vcmp.lt.s32.totalorder %v9159_v41, 0  ;;  %v972_v17 = vsub.s32 0, %v9427_v8  ;;  %v1032_v12 = vor.u32 %v1031_v10, %v1030_v57  ;;  %v1039_v32 = vshll.u32 %v14455_v55, %v1024_v63 }
 0x14c   : > { %v1040_v15 = vshrl.u32 %v14453_v1, %v1025_v4  ;;  %5867 = vperm.xlu1 %8299, %v8573_v61   ;;  %v887_v9 = vsel %vm804_vm7, %v886_v43, %v885_v5  ;;  %v962_v14 = vadd.s32 %v9359_v24, %v9378_v60  ;;  %v1035_v50 = vor.u32 %v1034_v54, %v1033_v58  ;;  %v8575_v58 = vld [vmem:[%s8643_s15 + $0x68] sm:$0xff] }
 0x14d   : > { %v1038_v40 = vor.u32 %v1037_v36, %v1036_v42  ;;  %v890_v7 = vsel %vm9368_vm11, %v9046_v62, %v887_v9  ;;  %v7771_v0 = vmin.u32 %v972_v17, %v9427_v8  ;;  %v992_v25 = vsub.s32 4, %v9409_v27 }
 0x14e   : > { %v1041_v63 = vor.u32 %v1040_v15, %v1039_v32  ;;  %8320 = vcosq.f32 %v890_v7  ;;  %v1026_v56 = vshrl.u32 %v8606_v23, %v1025_v4  ;;  %vm1042_vm5 = vcmp.lt.s32.totalorder %v1023_v3, 1 }
 0x14f   : > { %vm1043_vm6 = vcmp.lt.s32.totalorder %v1023_v3, 2  ;;  %8322 = vsinq.f32 %v890_v7  ;;  %v974_v19 = vclz %v7771_v0  ;;  %vm1045_vm7 = vcmp.lt.s32.totalorder %v1023_v3, 4 }
 0x150   : > { %v1050_v24 = vsel %vm1042_vm5, %v1029_v16, %v1032_v12  ;;  %8301 = vset.pattern.permute.xlu1 %v8612_v2  ;;  %vm1044_vm8 = vcmp.lt.s32.totalorder %v1023_v3, 3  ;;  %v1047_v59 = vsel %vm1045_vm7, %v1035_v50, 2102212464  ;;  %v1051_v60 = vsel %vm1045_vm7, %v1038_v40, 920167782  ;;  %v320_v3 = vpop.permute.xlu1 %319 }
 0x151   : > { %v1054_v13 = vsel %vm1042_vm5, %v1032_v12, %v1035_v50  ;;  %4079 = vperm.xlu1 %8301, %v8574_v6   ;;  %v7772_v31 = vadd.s32 4294967294, %v974_v19  ;;  %v1046_v35 = vsel %vm1042_vm5, %v1026_v56, %v1029_v16  ;;  %v1052_v11 = vsel %vm1044_vm8, %v1035_v50, %v1051_v60 }
 0x152   : > { %v1055_v30 = vsel %vm1045_vm7, %v1041_v63, 1326507024  ;;  %v1048_v4 = vsel %vm1044_vm8, %v1032_v12, %v1047_v59  ;;  %v1053_v20 = vsel %vm1043_vm6, %v1050_v24, %v1052_v11  ;;  %v1117_v5 = vand.u32 2139095040, %v9421_v29 }
 0x153   : > { %v1056_v28 = vsel %vm1044_vm8, %v1038_v40, %v1055_v30  ;;  %vm7773_vm10 = vcmp.lt.s32.totalorder %v7772_v31, 0  ;;  %v9455_v10 = vmul.u32.u64.low %v9430_v18, %v1053_v20  ;;  %v9456_v54 = vmul.u32.u64.high %v9430_v18, %v1053_v20, %v9455_v10 }
 0x154   : > { %v1057_v2 = vsel %vm1043_vm6, %v1054_v13, %v1056_v28  ;;  %v977_v36 = vsel %vm7773_vm10, 0, %v7772_v31  ;;  %v993_v57 = vsel %vm908_vm4, %v992_v25, %v9409_v27  ;;  %vm894_vm9 = vweird.f32 %v9046_v62 }
 0x155   : > { %v9463_v43 = vmul.u32.u64.low %v9430_v18, %v1057_v2  ;;  %v9464_v16 = vmul.u32.u64.high %v9430_v18, %v1057_v2, %v9463_v43  ;;  %4087 = vperm.xlu1 %8301, %v8575_v58   ;;  %v978_v42 = vsub.s32 32, %v977_v36  ;;  %v982_v17 = vsub.s32 4294967266, %v977_v36 }
 0x156   : > { %v1049_v12 = vsel %vm1043_vm6, %v1046_v35, %v1048_v4  ;;  %v1118_v32 = vshrl.u32 %v1117_v5, 23  ;;  %vm897_vm12 = vcmp.lt.s32.totalorder %v9415_v52, 2  ;;  %vm901_vm11 = vcmp.eq.s32.totalorder %v9415_v52, 2 }
 0x157   : > { %v14469_v15 = vand.u32 2147483647, %v9159_v41  ;;  %v979_v9 = vshll.u32 %v9427_v8, %v977_v36  ;;  %v980_v50 = vshrl.u32 %v962_v14, %v978_v42  ;;  %v983_v40 = vadd.s32 127, %v982_v17  ;;  %v324_v42 = vpop.permute.xlu0 %323 }
 0x158   : > { %v1068_v7 = vadd.s32 1, %v9456_v54  ;;  %v7778_v0 = vadd.s32 4294967169, %v1118_v32  ;;  %v8321_v25 = vpop.eup %8320  ;;  %v1065_v56 = vmul.u32 %v9430_v18, %v1049_v12  ;;  %vm1067_vm14 = vc.u32 %v9464_v16, %v9455_v10 }
 0x159   : > { %vm9473_vm13 = vcmp.le.f32.partialorder %v14469_v15, 0.7853982  ;;  %v1114_v19 = vand.u32 2147483647, %v9421_v29  ;;  %4091 = vperm.xlu1 %8301, %v8573_v61   ;;  %v8323_v24 = vpop.eup %8322  ;;  %v902_v8 = vxor.u32 2147483648, %v8321_v25  ;;  %v981_v14 = vor.u32 %v980_v50, %v979_v9 }
 0x15a   : > { %v995_v63 = vsel %vm9473_vm13, 0, %v993_v57  ;;  %v984_v59 = vshll.u32 %v983_v40, 23  ;;  %v1069_v60 = vsel %vm1067_vm14, %v1068_v7, %v9456_v54  ;;  %v899_v13 = vxor.u32 2147483648, %v8323_v24 }
 0x15b   : > { %v1070_v6 = vadd.s32 %v1069_v60, %v1065_v56  ;;  %v1124_v31 = vadd.s32 1, %v7778_v0  ;;  %v362_v35 = vmul.f32 %v8807_v48, %v320_v3  ;;  %vm898_vm15 = vcmp.eq.s32.totalorder %v9415_v52, 0 }
 0x15c   : > { %v903_v18 = vsel %vm901_vm11, %v902_v8, %v8323_v24  ;;  %v985_v11 = vor.u32 4788187, %v984_v59  ;;  %v999_v30 = vadd.s32 3, %v995_v63  ;;  %v900_v61 = vsel %vm898_vm15, %v8321_v25, %v899_v13 }
 0x15d   : > { %v1071_v4 = vadd.s32 536870912, %v1070_v6  ;;  %v1121_v20 = vand.u32 8388607, %v1114_v19  ;;  %vm1125_vm0 = vcmp.gt.s32.totalorder %v1124_v31, 0  ;;  %v904_v28 = vsel %vm897_vm12, %v900_v61, %v903_v18 }
 0x15e   : > { %v986_v5 = vand.u32 2147483647, %v985_v11  ;;  %v988_v2 = vcvt.s32.f32 %v981_v14  ;;  %v1126_v54 = vsel %vm1125_vm0, %v1124_v31, 0  ;;  %v905_v36 = vsel %vm894_vm9, nan, %v904_v28 }
 0x15f   : > { %v9496_v57 = vshrl.u32 %v1071_v4, 30  ;;  %v1128_v43 = vand.u32 31, %v1126_v54  ;;  %v9499_v58 = vadd.f32 %v362_v35, %v9412_v22  ;;  %2054 = vst [vmem:[%s9106_s21 + $0x80] sm:$0xff] %v905_v36  ;;  %v9504_v12 = vadd.f32 %v8804_v47, %v9404_v21 }
 0x160   : > { %v989_v17 = vmul.f32 %v988_v2, %v986_v5  ;;  %v9507_v9 = vand.u32 3, %v999_v30  ;;  %v1122_v62 = vor.u32 8388608, %v1121_v20  ;;  %v9510_v50 = vmul.f32 %v8807_v48, %v324_v42 }
 0x161   : > { %v1073_v52 = vshll.u32 %v9496_v57, 30  ;;  %v1129_v32 = vsub.s32 32, %v1128_v43  ;;  %v1127_v22 = vshrl.u32 %v1126_v54, 5  ;;  %v1221_v0 = vand.u32 2139095040, %v9499_v58 }
 0x162   : > { %v990_v15 = vxor.u32 2147483648, %v989_v17  ;;  %v1131_v3 = vshll.u32 %v8606_v23, %v1128_v43  ;;  %v1134_v8 = vshll.u32 %v14448_v49, %v1128_v43  ;;  %v1137_v14 = vshll.u32 %v14446_v51, %v1128_v43 }
 0x163   : > { %v9512_v40 = vsub.s32 %v1070_v6, %v1073_v52  ;;  %v1132_v7 = vshrl.u32 %v14448_v49, %v1129_v32  ;;  %v1135_v25 = vshrl.u32 %v14446_v51, %v1129_v32  ;;  %v1138_v63 = vshrl.u32 %v14450_v53, %v1129_v32 }
 0x164   : > { %v991_v21 = vsel %vm908_vm4, %v990_v15, %v989_v17  ;;  %v1140_v60 = vshll.u32 %v14450_v53, %v1128_v43  ;;  %v1141_v13 = vshrl.u32 %v14455_v55, %v1129_v32  ;;  %v1143_v27 = vshll.u32 %v14455_v55, %v1128_v43 }
 0x165   : > { %v994_v56 = vsel %vm9473_vm13, %v9159_v41, %v991_v21  ;;  %v1076_v24 = vsub.s32 0, %v9512_v40  ;;  %v1133_v59 = vor.u32 %v1132_v7, %v1131_v3  ;;  %v1136_v31 = vor.u32 %v1135_v25, %v1134_v8 }
 0x166   : > { %8324 = vcosq.f32 %v994_v56  ;;  %v1139_v35 = vor.u32 %v1138_v63, %v1137_v14  ;;  %v1142_v18 = vor.u32 %v1141_v13, %v1140_v60  ;;  %v1144_v11 = vshrl.u32 %v14453_v1, %v1129_v32 }
 0x167   : > { %8326 = vsinq.f32 %v994_v56  ;;  %v7775_v6 = vmin.u32 %v1076_v24, %v9512_v40  ;;  %v1162_v30 = vshll.u32 %v1122_v62, 8  ;;  %v1130_v4 = vshrl.u32 %v8606_v23, %v1129_v32 }
 0x168   : > { %vm1146_vm1 = vcmp.lt.s32.totalorder %v1127_v22, 1  ;;  %v1222_v20 = vshrl.u32 %v1221_v0, 23  ;;  %v1145_v28 = vor.u32 %v1144_v11, %v1143_v27  ;;  %vm1147_vm2 = vcmp.lt.s32.totalorder %v1127_v22, 2 }
 0x169   : > { %v1078_v61 = vclz %v7775_v6  ;;  %vm1148_vm3 = vcmp.lt.s32.totalorder %v1127_v22, 3  ;;  %vm1149_vm4 = vcmp.lt.s32.totalorder %v1127_v22, 4  ;;  %v1154_v54 = vsel %vm1146_vm1, %v1133_v59, %v1136_v31 }
 0x16a   : > { %v1151_v2 = vsel %vm1149_vm4, %v1139_v35, 2102212464  ;;  %v1155_v36 = vsel %vm1149_vm4, %v1142_v18, 920167782  ;;  %vm1001_vm5 = vcmp.lt.s32.totalorder %v9507_v9, 2  ;;  %v1150_v42 = vsel %vm1146_vm1, %v1130_v4, %v1133_v59 }
 0x16b   : > { %v7776_v5 = vadd.s32 4294967294, %v1078_v61  ;;  %v1156_v43 = vsel %vm1148_vm3, %v1139_v35, %v1155_v36  ;;  %v1158_v17 = vsel %vm1146_vm1, %v1136_v31, %v1139_v35  ;;  %v1159_v52 = vsel %vm1149_vm4, %v1145_v28, 1326507024 }
 0x16c   : > { %vm998_vm6 = vweird.f32 %v9159_v41  ;;  %vm1012_vm7 = vcmp.lt.s32.totalorder %v9328_v26, 0  ;;  %v1152_v32 = vsel %vm1148_vm3, %v1136_v31, %v1151_v2  ;;  %v1157_v15 = vsel %vm1147_vm2, %v1154_v54, %v1156_v43 }
 0x16d   : > { %vm7777_vm8 = vcmp.lt.s32.totalorder %v7776_v5, 0  ;;  %v1160_v62 = vsel %vm1148_vm3, %v1142_v18, %v1159_v52  ;;  %v9541_v21 = vmul.u32.u64.low %v1162_v30, %v1157_v15  ;;  %v9542_v3 = vmul.u32.u64.high %v1162_v30, %v1157_v15, %v9541_v21 }
 0x16e   : > { %v1081_v7 = vsel %vm7777_vm8, 0, %v7776_v5  ;;  %v1161_v0 = vsel %vm1147_vm2, %v1158_v17, %v1160_v62  ;;  %vm1005_vm10 = vcmp.eq.s32.totalorder %v9507_v9, 2  ;;  %v1066_v25 = vadd.s32 %v9455_v10, %v9464_v16 }
 0x16f   : > { %v1082_v63 = vsub.s32 32, %v1081_v7  ;;  %v1086_v56 = vsub.s32 4294967266, %v1081_v7  ;;  %v1153_v8 = vsel %vm1147_vm2, %v1150_v42, %v1152_v32  ;;  %v7782_v60 = vadd.s32 4294967169, %v1222_v20 }
 0x170   : > { %v8325_v24 = vpop.eup %8324  ;;  %v9549_v14 = vmul.u32.u64.low %v1162_v30, %v1161_v0  ;;  %v9550_v59 = vmul.u32.u64.high %v1162_v30, %v1161_v0, %v9549_v14  ;;  %v1083_v31 = vshll.u32 %v9512_v40, %v1081_v7  ;;  %v1096_v11 = vsub.s32 4, %v9496_v57 }
 0x171   : > { %v8327_v13 = vpop.eup %8326  ;;  %v1006_v6 = vxor.u32 2147483648, %v8325_v24  ;;  %v1084_v35 = vshrl.u32 %v1066_v25, %v1082_v63  ;;  %v1087_v18 = vadd.s32 127, %v1086_v56  ;;  %v1172_v10 = vadd.s32 1, %v9542_v3 }
 0x172   : > { %v1003_v27 = vxor.u32 2147483648, %v8327_v13  ;;  %v1228_v16 = vadd.s32 1, %v7782_v60  ;;  %vm1002_vm9 = vcmp.eq.s32.totalorder %v9507_v9, 0  ;;  %v1169_v28 = vmul.u32 %v1162_v30, %v1153_v8 }
 0x173   : > { %v1007_v22 = vsel %vm1005_vm10, %v1006_v6, %v8327_v13  ;;  %v1085_v61 = vor.u32 %v1084_v35, %v1083_v31  ;;  %v1088_v4 = vshll.u32 %v1087_v18, 23  ;;  %vm1171_vm12 = vc.u32 %v9550_v59, %v9541_v21 }
 0x174   : > { %v1004_v20 = vsel %vm1002_vm9, %v8325_v24, %v1003_v27  ;;  %vm1229_vm11 = vcmp.gt.s32.totalorder %v1228_v16, 0  ;;  %v1173_v2 = vsel %vm1171_vm12, %v1172_v10, %v9542_v3  ;;  %v1218_v54 = vand.u32 2147483647, %v9499_v58 }
 0x175   : > { %v1008_v40 = vsel %vm1001_vm5, %v1004_v20, %v1007_v22  ;;  %v1089_v5 = vor.u32 4788187, %v1088_v4  ;;  %v1097_v42 = vsel %vm1012_vm7, %v1096_v11, %v9496_v57  ;;  %v1174_v30 = vadd.s32 %v1173_v2, %v1169_v28 }
 0x176   : > { %v1009_v36 = vsel %vm998_vm6, nan, %v1008_v40  ;;  %v1230_v43 = vsel %vm1229_vm11, %v1228_v16, 0  ;;  %v9571_v17 = vmul.f32 %v8794_v39, %v8779_v33  ;;  %v1092_v52 = vcvt.s32.f32 %v1085_v61 }
 0x177   : > { %2055 = vst [vmem:[%s9106_s21 + $0xa0] sm:$0xff] %v1009_v36  ;;  %v1090_v9 = vand.u32 2147483647, %v1089_v5  ;;  %v1232_v32 = vand.u32 31, %v1230_v43  ;;  %v9576_v15 = vmul.f32 %v8794_v39, %v8781_v34  ;;  %vm9580_vm13 = vcmp.le.f32.partialorder %v1010_v46, 0.7853982 }
 0x178   : > { %v1175_v57 = vadd.s32 536870912, %v1174_v30  ;;  %v9586_v62 = vadd.f32 %v9510_v50, %v9504_v12  ;;  %v1099_v7 = vsel %vm9580_vm13, 0, %v1097_v42  ;;  %v1225_v0 = vand.u32 8388607, %v1218_v54 }
 0x179   : > { %v1093_v33 = vmul.f32 %v1092_v52, %v1090_v9  ;;  %v1233_v34 = vsub.s32 32, %v1232_v32  ;;  %v1231_v25 = vshrl.u32 %v1230_v43, 5  ;;  %v1235_v46 = vshll.u32 %v8606_v23, %v1232_v32 }
 0x17a   : > { %v9592_v3 = vshrl.u32 %v1175_v57, 30  ;;  %v1238_v63 = vshll.u32 %v14448_v49, %v1232_v32  ;;  %v1241_v50 = vshll.u32 %v14446_v51, %v1232_v32  ;;  %v1244_v60 = vshll.u32 %v14450_v53, %v1232_v32 }
 0x17b   : > { %v1094_v56 = vxor.u32 2147483648, %v1093_v33  ;;  %v1236_v24 = vshrl.u32 %v14448_v49, %v1233_v34  ;;  %v1239_v12 = vshrl.u32 %v14446_v51, %v1233_v34  ;;  %v1242_v14 = vshrl.u32 %v14450_v53, %v1233_v34 }
 0x17c   : > { %v1177_v8 = vshll.u32 %v9592_v3, 30  ;;  %v1245_v13 = vshrl.u32 %v14455_v55, %v1233_v34  ;;  %v1247_v35 = vshll.u32 %v14455_v55, %v1232_v32  ;;  %v1248_v18 = vshrl.u32 %v14453_v1, %v1233_v34 }
 0x17d   : > { %v1095_v6 = vsel %vm1012_vm7, %v1094_v56, %v1093_v33  ;;  %v1237_v31 = vor.u32 %v1236_v24, %v1235_v46  ;;  %v1240_v10 = vor.u32 %v1239_v12, %v1238_v63  ;;  %v1243_v16 = vor.u32 %v1242_v14, %v1241_v50 }
 0x17e   : > { %v1098_v27 = vsel %vm9580_vm13, %v9328_v26, %v1095_v6  ;;  %v9610_v11 = vsub.s32 %v1174_v30, %v1177_v8  ;;  %v1103_v22 = vadd.s32 3, %v1099_v7  ;;  %v1246_v61 = vor.u32 %v1245_v13, %v1244_v60 }
 0x17f   : > { %8328 = vcosq.f32 %v1098_v27  ;;  %v1249_v4 = vor.u32 %v1248_v18, %v1247_v35  ;;  %v1226_v28 = vor.u32 8388608, %v1225_v0  ;;  %v1234_v40 = vshrl.u32 %v8606_v23, %v1233_v34 }
 0x180   : > { %8330 = vsinq.f32 %v1098_v27  ;;  %v1180_v20 = vsub.s32 0, %v9610_v11  ;;  %vm1250_vm14 = vcmp.lt.s32.totalorder %v1231_v25, 1  ;;  %vm1252_vm15 = vcmp.lt.s32.totalorder %v1231_v25, 3 }
 0x181   : > { %vm1253_vm0 = vcmp.lt.s32.totalorder %v1231_v25, 4  ;;  %v1325_v5 = vand.u32 2139095040, %v9586_v62  ;;  %v1254_v36 = vsel %vm1250_vm14, %v1234_v40, %v1237_v31  ;;  %v1258_v30 = vsel %vm1250_vm14, %v1237_v31, %v1240_v10 }
 0x182   : > { %v7779_v2 = vmin.u32 %v1180_v20, %v9610_v11  ;;  %v1255_v42 = vsel %vm1253_vm0, %v1243_v16, 2102212464  ;;  %v1259_v9 = vsel %vm1253_vm0, %v1246_v61, 920167782  ;;  %v1262_v52 = vsel %vm1250_vm14, %v1240_v10, %v1243_v16 }
 0x183   : > { %v1256_v43 = vsel %vm1252_vm15, %v1240_v10, %v1255_v42  ;;  %v1263_v32 = vsel %vm1253_vm0, %v1249_v4, 1326507024  ;;  %v1104_v41 = vand.u32 3, %v1103_v22  ;;  %vm1116_vm1 = vcmp.lt.s32.totalorder %v9421_v29, 0 }
 0x184   : > { %v1182_v57 = vclz %v7779_v2  ;;  %v1266_v33 = vshll.u32 %v1226_v28, 8  ;;  %vm1251_vm2 = vcmp.lt.s32.totalorder %v1231_v25, 2  ;;  %v1260_v7 = vsel %vm1252_vm15, %v1243_v16, %v1259_v9 }
 0x185   : > { %v1264_v0 = vsel %vm1252_vm15, %v1246_v61, %v1263_v32  ;;  %v1326_v34 = vshrl.u32 %v1325_v5, 23  ;;  %vm1102_vm3 = vweird.f32 %v9328_v26  ;;  %v1257_v63 = vsel %vm1251_vm2, %v1254_v36, %v1256_v43 }
 0x186   : > { %v7780_v46 = vadd.s32 4294967294, %v1182_v57  ;;  %v1261_v56 = vsel %vm1251_vm2, %v1258_v30, %v1260_v7  ;;  %v1265_v24 = vsel %vm1251_vm2, %v1262_v52, %v1264_v0  ;;  %vm1106_vm4 = vcmp.eq.s32.totalorder %v1104_v41, 0  ;;  %v328_v7 = vpop.permute.xlu1 %327 }
 0x187   : > { %v9621_v12 = vmul.u32.u64.low %v1266_v33, %v1265_v24  ;;  %v9622_v50 = vmul.u32.u64.high %v1266_v33, %v1265_v24, %v9621_v12  ;;  %v9624_v8 = vmul.u32.u64.low %v1266_v33, %v1261_v56  ;;  %v9625_v14 = vmul.u32.u64.high %v1266_v33, %v1261_v56, %v9624_v8 }
 0x188   : > { %vm1109_vm5 = vcmp.eq.s32.totalorder %v1104_v41, 2  ;;  %vm7781_vm6 = vcmp.lt.s32.totalorder %v7780_v46, 0  ;;  %v7786_v60 = vadd.s32 4294967169, %v1326_v34  ;;  %v1170_v13 = vadd.s32 %v9541_v21, %v9550_v59 }
 0x189   : > { %v8329_v25 = vpop.eup %8328  ;;  %v1185_v6 = vsel %vm7781_vm6, 0, %v7780_v46  ;;  %v1200_v31 = vsub.s32 4, %v9592_v3  ;;  %v1322_v35 = vand.u32 2147483647, %v9586_v62  ;;  %v1273_v22 = vmul.u32 %v1266_v33, %v1257_v63 }
 0x18a   : > { %v8331_v18 = vpop.eup %8330  ;;  %v1110_v27 = vxor.u32 2147483648, %v8329_v25  ;;  %v1186_v10 = vsub.s32 32, %v1185_v6  ;;  %v1190_v16 = vsub.s32 4294967266, %v1185_v6  ;;  %v1187_v4 = vshll.u32 %v9610_v11, %v1185_v6 }
 0x18b   : > { %v1107_v61 = vxor.u32 2147483648, %v8331_v18  ;;  %vm1275_vm7 = vc.u32 %v9622_v50, %v9624_v8  ;;  %v1276_v20 = vadd.s32 1, %v9625_v14  ;;  %v1332_v40 = vadd.s32 1, %v7786_v60 }
 0x18c   : > { %v1111_v21 = vsel %vm1109_vm5, %v1110_v27, %v8331_v18  ;;  %v1188_v59 = vshrl.u32 %v1170_v13, %v1186_v10  ;;  %v1191_v28 = vadd.s32 127, %v1190_v16  ;;  %vm1105_vm8 = vcmp.lt.s32.totalorder %v1104_v41, 2 }
 0x18d   : > { %v1108_v5 = vsel %vm1106_vm4, %v8329_v25, %v1107_v61  ;;  %v1201_v2 = vsel %vm1116_vm1, %v1200_v31, %v9592_v3  ;;  %v1277_v11 = vsel %vm1275_vm7, %v1276_v20, %v9625_v14  ;;  %vm9646_vm10 = vcmp.le.f32.partialorder %v1114_v19, 0.7853982 }
 0x18e   : > { %v1112_v36 = vsel %vm1105_vm8, %v1108_v5, %v1111_v21  ;;  %v1189_v42 = vor.u32 %v1188_v59, %v1187_v4  ;;  %v1192_v30 = vshll.u32 %v1191_v28, 23  ;;  %v1278_v43 = vadd.s32 %v1277_v11, %v1273_v22 }
 0x18f   : > { %v1113_v9 = vsel %vm1102_vm3, nan, %v1112_v36  ;;  %v1329_v32 = vand.u32 8388607, %v1322_v35  ;;  %vm1333_vm9 = vcmp.gt.s32.totalorder %v1332_v40, 0  ;;  %v1203_v41 = vsel %vm9646_vm10, 0, %v1201_v2 }
 0x190   : > { %2056 = vst [vmem:[%s9106_s21 + $0xc0] sm:$0xff] %v1113_v9  ;;  %v1193_v3 = vor.u32 4788187, %v1192_v30  ;;  %v1279_v57 = vadd.s32 536870912, %v1278_v43  ;;  %v1334_v33 = vsel %vm1333_vm9, %v1332_v40, 0  ;;  %v9657_v26 = vadd.f32 %v8804_v47, %v9571_v17 }
 0x191   : > { %v280_v19 = vadd.f32 %v8804_v47, %v9576_v15  ;;  %v1336_v0 = vand.u32 31, %v1334_v33  ;;  %v9663_v34 = vmul.f32 %v8794_v39, %v8788_v37  ;;  %v1196_v63 = vcvt.s32.f32 %v1189_v42 }
 0x192   : > { %v1194_v46 = vand.u32 2147483647, %v1193_v3  ;;  %v9665_v56 = vshrl.u32 %v1279_v57, 30  ;;  %v9669_v24 = vmul.f32 %v8794_v39, %v8790_v38  ;;  %v1207_v12 = vadd.s32 3, %v1203_v41 }
 0x193   : > { %v1337_v14 = vsub.s32 32, %v1336_v0  ;;  %v364_v17 = vmul.f32 %v8807_v48, %v328_v7  ;;  %v1330_v25 = vor.u32 8388608, %v1329_v32  ;;  %v1339_v13 = vshll.u32 %v8606_v23, %v1336_v0 }
 0x194   : > { %v1197_v60 = vmul.f32 %v1196_v63, %v1194_v46  ;;  %v1281_v15 = vshll.u32 %v9665_v56, 30  ;;  %v1342_v6 = vshll.u32 %v14448_v49, %v1336_v0  ;;  %v1345_v10 = vshll.u32 %v14446_v51, %v1336_v0 }
 0x195   : > { %v1340_v37 = vshrl.u32 %v14448_v49, %v1337_v14  ;;  %v1343_v31 = vshrl.u32 %v14446_v51, %v1337_v14  ;;  %v1346_v18 = vshrl.u32 %v14450_v53, %v1337_v14  ;;  %v1349_v16 = vshrl.u32 %v14455_v55, %v1337_v14 }
 0x196   : > { %v1198_v38 = vxor.u32 2147483648, %v1197_v60  ;;  %v9678_v27 = vsub.s32 %v1278_v43, %v1281_v15  ;;  %v1335_v22 = vshrl.u32 %v1334_v33, 5  ;;  %v1348_v4 = vshll.u32 %v14450_v53, %v1336_v0  ;;  %v332_v15 = vpop.permute.xlu0 %331 }
 0x197   : > { %v1341_v61 = vor.u32 %v1340_v37, %v1339_v13  ;;  %v9683_v20 = vadd.f32 %v364_v17, %v280_v19  ;;  %v1344_v28 = vor.u32 %v1343_v31, %v1342_v6  ;;  %v1347_v40 = vor.u32 %v1346_v18, %v1345_v10 }
 0x198   : > { %v1199_v21 = vsel %vm1116_vm1, %v1198_v38, %v1197_v60  ;;  %v1284_v59 = vsub.s32 0, %v9678_v27  ;;  %v1350_v2 = vor.u32 %v1349_v16, %v1348_v4  ;;  %v1351_v11 = vshll.u32 %v14455_v55, %v1336_v0 }
 0x199   : > { %v1202_v5 = vsel %vm9646_vm10, %v9421_v29, %v1199_v21  ;;  %v1352_v36 = vshrl.u32 %v14453_v1, %v1337_v14  ;;  %v9693_v42 = vand.u32 3, %v1207_v12  ;;  %v9696_v43 = vshll.u32 %v1330_v25, 8 }
 0x19a   : > { %8332 = vcosq.f32 %v1202_v5  ;;  %v7783_v30 = vmin.u32 %v1284_v59, %v9678_v27  ;;  %v1338_v9 = vshrl.u32 %v8606_v23, %v1337_v14  ;;  %v1429_v3 = vand.u32 2139095040, %v9683_v20 }
 0x19b   : > { %8334 = vsinq.f32 %v1202_v5  ;;  %v1353_v32 = vor.u32 %v1352_v36, %v1351_v11  ;;  %vm1220_vm12 = vcmp.lt.s32.totalorder %v9499_v58, 0  ;;  %vm1354_vm11 = vcmp.lt.s32.totalorder %v1335_v22, 1 }
 0x19c   : > { %v1286_v52 = vclz %v7783_v30  ;;  %vm1355_vm13 = vcmp.lt.s32.totalorder %v1335_v22, 2  ;;  %vm1357_vm14 = vcmp.lt.s32.totalorder %v1335_v22, 4  ;;  %vm1356_vm15 = vcmp.lt.s32.totalorder %v1335_v22, 3 }
 0x19d   : > { %v1359_v41 = vsel %vm1357_vm14, %v1347_v40, 2102212464  ;;  %v1362_v57 = vsel %vm1354_vm11, %v1341_v61, %v1344_v28  ;;  %v1363_v33 = vsel %vm1357_vm14, %v1350_v2, 920167782  ;;  %vm1213_vm0 = vcmp.eq.s32.totalorder %v9693_v42, 2 }
 0x19e   : > { %v7784_v7 = vadd.s32 4294967294, %v1286_v52  ;;  %v1358_v19 = vsel %vm1354_vm11, %v1338_v9, %v1341_v61  ;;  %v1364_v0 = vsel %vm1356_vm15, %v1347_v40, %v1363_v33  ;;  %v1366_v46 = vsel %vm1354_vm11, %v1344_v28, %v1347_v40 }
 0x19f   : > { %vm9705_vm1 = vcmp.le.f32.partialorder %v1218_v54, 0.7853982  ;;  %v1360_v12 = vsel %vm1356_vm15, %v1344_v28, %v1359_v41  ;;  %v1365_v14 = vsel %vm1355_vm13, %v1362_v57, %v1364_v0  ;;  %v1367_v17 = vsel %vm1357_vm14, %v1353_v32, 1326507024 }
 0x1a0   : > { %v1430_v60 = vshrl.u32 %v1429_v3, 23  ;;  %vm1209_vm2 = vcmp.lt.s32.totalorder %v9693_v42, 2  ;;  %vm7785_vm3 = vcmp.lt.s32.totalorder %v7784_v7, 0  ;;  %v1368_v25 = vsel %vm1356_vm15, %v1350_v2, %v1367_v17 }
 0x1a1   : > { %v9714_v13 = vmul.u32.u64.low %v9696_v43, %v1365_v14  ;;  %v9715_v37 = vmul.u32.u64.high %v9696_v43, %v1365_v14, %v9714_v13  ;;  %vm1206_vm4 = vweird.f32 %v9421_v29  ;;  %v1289_v54 = vsel %vm7785_vm3, 0, %v7784_v7 }
 0x1a2   : > { %v1304_v6 = vsub.s32 4, %v9665_v56  ;;  %v1369_v31 = vsel %vm1355_vm13, %v1366_v46, %v1368_v25  ;;  %v7790_v18 = vadd.s32 4294967169, %v1430_v60  ;;  %v1274_v38 = vadd.s32 %v9624_v8, %v9622_v50 }
 0x1a3   : > { %v1290_v10 = vsub.s32 32, %v1289_v54  ;;  %v1294_v16 = vsub.s32 4294967266, %v1289_v54  ;;  %v365_v61 = vmul.f32 %v8807_v48, %v332_v15  ;;  %v1361_v4 = vsel %vm1355_vm13, %v1358_v19, %v1360_v12 }
 0x1a4   : > { %v9726_v21 = vmul.u32.u64.low %v9696_v43, %v1369_v31  ;;  %v9727_v59 = vmul.u32.u64.high %v9696_v43, %v1369_v31, %v9726_v21  ;;  %v1436_v28 = vadd.s32 1, %v7790_v18  ;;  %v8333_v40 = vpop.eup %8332  ;;  %v1291_v5 = vshll.u32 %v9678_v27, %v1289_v54 }
 0x1a5   : > { %v1292_v2 = vshrl.u32 %v1274_v38, %v1290_v10  ;;  %v1295_v11 = vadd.s32 127, %v1294_v16  ;;  %v1380_v36 = vadd.s32 1, %v9715_v37  ;;  %v8335_v30 = vpop.eup %8334  ;;  %v1214_v50 = vxor.u32 2147483648, %v8333_v40 }
 0x1a6   : > { %v1305_v8 = vsel %vm1220_vm12, %v1304_v6, %v9665_v56  ;;  %v1426_v22 = vand.u32 2147483647, %v9683_v20  ;;  %vm1437_vm5 = vcmp.gt.s32.totalorder %v1436_v28, 0  ;;  %v1211_v9 = vxor.u32 2147483648, %v8335_v30 }
 0x1a7   : > { %v1293_v32 = vor.u32 %v1292_v2, %v1291_v5  ;;  %v1296_v3 = vshll.u32 %v1295_v11, 23  ;;  %v1438_v52 = vsel %vm1437_vm5, %v1436_v28, 0  ;;  %vm1210_vm6 = vcmp.eq.s32.totalorder %v9693_v42, 0 }
 0x1a8   : > { %v1215_v27 = vsel %vm1213_vm0, %v1214_v50, %v8335_v30  ;;  %v1377_v41 = vmul.u32 %v9696_v43, %v1361_v4  ;;  %vm1379_vm7 = vc.u32 %v9727_v59, %v9714_v13  ;;  %v1212_v57 = vsel %vm1210_vm6, %v8333_v40, %v1211_v9 }
 0x1a9   : > { %v1297_v56 = vor.u32 4788187, %v1296_v3  ;;  %v1307_v33 = vsel %vm9705_vm1, 0, %v1305_v8  ;;  %v1381_v7 = vsel %vm1379_vm7, %v1380_v36, %v9715_v37  ;;  %v1216_v19 = vsel %vm1209_vm2, %v1212_v57, %v1215_v27 }
 0x1aa   : > { %v1382_v0 = vadd.s32 %v1381_v7, %v1377_v41  ;;  %v1433_v46 = vand.u32 8388607, %v1426_v22  ;;  %v1440_v12 = vand.u32 31, %v1438_v52  ;;  %v1217_v43 = vsel %vm1206_vm4, nan, %v1216_v19  ;;  %v336_v7 = vpop.permute.xlu1 %335 }
 0x1ab   : > { %v1298_v14 = vand.u32 2147483647, %v1297_v56  ;;  %v1300_v17 = vcvt.s32.f32 %v1293_v32  ;;  %v9751_v60 = vadd.f32 %v365_v61, %v9657_v26  ;;  %2057 = vst [vmem:[%s9106_s21 + $0xe0] sm:$0xff] %v1217_v43  ;;  %v1311_v15 = vadd.s32 3, %v1307_v33 }
 0x1ac   : > { %v1383_v25 = vadd.s32 536870912, %v1382_v0  ;;  %v9754_v37 = vshrl.u32 %v1438_v52, 5  ;;  %v1441_v42 = vsub.s32 32, %v1440_v12  ;;  %v1443_v6 = vshll.u32 %v8606_v23, %v1440_v12 }
 0x1ad   : > { %v1301_v54 = vmul.f32 %v1300_v17, %v1298_v14  ;;  %v1446_v31 = vshll.u32 %v14448_v49, %v1440_v12  ;;  %v1449_v18 = vshll.u32 %v14446_v51, %v1440_v12  ;;  %v1452_v26 = vshll.u32 %v14450_v53, %v1440_v12 }
 0x1ae   : > { %v1384_v29 = vshrl.u32 %v1383_v25, 30  ;;  %v1444_v38 = vshrl.u32 %v14448_v49, %v1441_v42  ;;  %v1447_v10 = vshrl.u32 %v14446_v51, %v1441_v42  ;;  %v1450_v61 = vshrl.u32 %v14450_v53, %v1441_v42 }
 0x1af   : > { %v1302_v16 = vxor.u32 2147483648, %v1301_v54  ;;  %v1453_v4 = vshrl.u32 %v14455_v55, %v1441_v42  ;;  %v1456_v21 = vshrl.u32 %v14453_v1, %v1441_v42  ;;  %v9765_v28 = vand.u32 3, %v1311_v15 }
 0x1b0   : > { %v1385_v40 = vshll.u32 %v1384_v29, 30  ;;  %v1445_v5 = vor.u32 %v1444_v38, %v1443_v6  ;;  %v1455_v2 = vshll.u32 %v14455_v55, %v1440_v12  ;;  %vm1324_vm8 = vcmp.lt.s32.totalorder %v9586_v62, 0 }
 0x1b1   : > { %v1303_v11 = vsel %vm1220_vm12, %v1302_v16, %v1301_v54  ;;  %v1448_v36 = vor.u32 %v1447_v10, %v1446_v31  ;;  %v1451_v30 = vor.u32 %v1450_v61, %v1449_v18  ;;  %v1454_v50 = vor.u32 %v1453_v4, %v1452_v26 }
 0x1b2   : > { %v1306_v8 = vsel %vm9705_vm1, %v9499_v58, %v1303_v11  ;;  %v9774_v9 = vsub.s32 %v1382_v0, %v1385_v40  ;;  %v1434_v32 = vor.u32 8388608, %v1433_v46  ;;  %v1457_v3 = vor.u32 %v1456_v21, %v1455_v2 }
 0x1b3   : > { %8336 = vcosq.f32 %v1306_v8  ;;  %vm1458_vm10 = vcmp.lt.s32.totalorder %v9754_v37, 1  ;;  %vm1459_vm9 = vcmp.lt.s32.totalorder %v9754_v37, 2  ;;  %vm1460_vm12 = vcmp.lt.s32.totalorder %v9754_v37, 3 }
 0x1b4   : > { %8338 = vsinq.f32 %v1306_v8  ;;  %vm9781_vm11 = vcmp.le.f32.partialorder %v1322_v35, 0.7853982  ;;  %v1388_v63 = vsub.s32 0, %v9774_v9  ;;  %v1442_v27 = vshrl.u32 %v8606_v23, %v1441_v42 }
 0x1b5   : > { %vm1461_vm13 = vcmp.lt.s32.totalorder %v9754_v37, 4  ;;  %v1408_v41 = vsub.s32 4, %v1384_v29  ;;  %v1466_v56 = vsel %vm1458_vm10, %v1445_v5, %v1448_v36  ;;  %v1470_v0 = vsel %vm1458_vm10, %v1448_v36, %v1451_v30 }
 0x1b6   : > { %v1463_v57 = vsel %vm1461_vm13, %v1451_v30, 2102212464  ;;  %v1467_v33 = vsel %vm1461_vm13, %v1454_v50, 920167782  ;;  %v7787_v19 = vmin.u32 %v1388_v63, %v9774_v9  ;;  %v1471_v46 = vsel %vm1461_vm13, %v1457_v3, 1326507024 }
 0x1b7   : > { %v1468_v35 = vsel %vm1460_vm12, %v1451_v30, %v1467_v33  ;;  %v1472_v43 = vsel %vm1460_vm12, %v1454_v50, %v1471_v46  ;;  %v1474_v14 = vshll.u32 %v1434_v32, 8  ;;  %v1533_v17 = vand.u32 2139095040, %v9751_v60 }
 0x1b8   : > { %v1469_v12 = vsel %vm1459_vm9, %v1466_v56, %v1468_v35  ;;  %v1390_v15 = vclz %v7787_v19  ;;  %v1462_v25 = vsel %vm1458_vm10, %v1442_v27, %v1445_v5  ;;  %v1464_v42 = vsel %vm1460_vm12, %v1448_v36, %v1463_v57  ;;  %v340_v35 = vpop.permute.xlu0 %339 }
 0x1b9   : > { %v366_v54 = vmul.f32 %v8807_v48, %v336_v7  ;;  %v1473_v6 = vsel %vm1459_vm9, %v1470_v0, %v1472_v43  ;;  %v9807_v31 = vmul.u32.u64.low %v1474_v14, %v1469_v12  ;;  %v9808_v18 = vmul.u32.u64.high %v1474_v14, %v1469_v12, %v9807_v31 }
 0x1ba   : > { %v1534_v38 = vshrl.u32 %v1533_v17, 23  ;;  %vm1310_vm14 = vweird.f32 %v9499_v58  ;;  %v7788_v10 = vadd.s32 4294967294, %v1390_v15  ;;  %v1409_v26 = vsel %vm1324_vm8, %v1408_v41, %v1384_v29 }
 0x1bb   : > { %v9814_v16 = vmul.u32.u64.low %v1474_v14, %v1473_v6  ;;  %v9815_v61 = vmul.u32.u64.high %v1474_v14, %v1473_v6, %v9814_v16  ;;  %vm1313_vm15 = vcmp.lt.s32.totalorder %v9765_v28, 2  ;;  %vm1314_vm0 = vcmp.eq.s32.totalorder %v9765_v28, 0 }
 0x1bc   : > { %v1465_v4 = vsel %vm1459_vm9, %v1462_v25, %v1464_v42  ;;  %v7794_v21 = vadd.s32 4294967169, %v1534_v38  ;;  %vm1317_vm1 = vcmp.eq.s32.totalorder %v9765_v28, 2  ;;  %v1378_v40 = vadd.s32 %v9714_v13, %v9727_v59 }
 0x1bd   : > { %vm7789_vm2 = vcmp.lt.s32.totalorder %v7788_v10, 0  ;;  %v1530_v5 = vand.u32 2147483647, %v9751_v60  ;;  %v8337_v29 = vpop.eup %8336  ;;  %v1411_v11 = vsel %vm9781_vm11, 0, %v1409_v26  ;;  %v1484_v36 = vadd.s32 1, %v9808_v18 }
 0x1be   : > { %v1393_v2 = vsel %vm7789_vm2, 0, %v7788_v10  ;;  %v1540_v30 = vadd.s32 1, %v7794_v21  ;;  %v8339_v50 = vpop.eup %8338  ;;  %v1318_v37 = vxor.u32 2147483648, %v8337_v29  ;;  %v1481_v3 = vmul.u32 %v1474_v14, %v1465_v4 }
 0x1bf   : > { %v1394_v8 = vsub.s32 32, %v1393_v2  ;;  %v1398_v32 = vsub.s32 4294967266, %v1393_v2  ;;  %v1315_v63 = vxor.u32 2147483648, %v8339_v50  ;;  %v1395_v27 = vshll.u32 %v9774_v9, %v1393_v2 }
 0x1c0   : > { %vm1483_vm3 = vc.u32 %v9815_v61, %v9807_v31  ;;  %vm1541_vm4 = vcmp.gt.s32.totalorder %v1540_v30, 0  ;;  %v1319_v13 = vsel %vm1317_vm1, %v1318_v37, %v8339_v50  ;;  %v1415_v33 = vadd.s32 3, %v1411_v11 }
 0x1c1   : > { %v1396_v59 = vshrl.u32 %v1378_v40, %v1394_v8  ;;  %v1399_v41 = vadd.s32 127, %v1398_v32  ;;  %v1485_v57 = vsel %vm1483_vm3, %v1484_v36, %v9808_v18  ;;  %v1316_v56 = vsel %vm1314_vm0, %v8337_v29, %v1315_v63 }
 0x1c2   : > { %v1486_v7 = vadd.s32 %v1485_v57, %v1481_v3  ;;  %v1542_v19 = vsel %vm1541_vm4, %v1540_v30, 0  ;;  %v1320_v9 = vsel %vm1313_vm15, %v1316_v56, %v1319_v13  ;;  %v1537_v12 = vand.u32 8388607, %v1530_v5 }
 0x1c3   : > { %v1397_v0 = vor.u32 %v1396_v59, %v1395_v27  ;;  %v1400_v46 = vshll.u32 %v1399_v41, 23  ;;  %v282_v43 = vadd.f32 %v8804_v47, %v9669_v24  ;;  %v1321_v14 = vsel %vm1310_vm14, nan, %v1320_v9 }
 0x1c4   : > { %v1487_v17 = vadd.s32 536870912, %v1486_v7  ;;  %v1544_v15 = vand.u32 31, %v1542_v19  ;;  %v283_v25 = vadd.f32 %v8804_v47, %v9663_v34  ;;  %v9848_v28 = vmul.f32 %v8794_v39, %v8800_v45  ;;  %2058 = vst [vmem:[%s9106_s21 + $0x100] sm:$0xff] %v1321_v14 }
 0x1c5   : > { %v1401_v42 = vor.u32 4788187, %v1400_v46  ;;  %v367_v6 = vmul.f32 %v8807_v48, %v340_v35  ;;  %v9852_v18 = vand.u32 3, %v1415_v33  ;;  %v9854_v10 = vadd.f32 %v366_v54, %v282_v43 }
 0x1c6   : > { %v1488_v38 = vshrl.u32 %v1487_v17, 30  ;;  %v1545_v24 = vsub.s32 32, %v1544_v15  ;;  %v1404_v26 = vcvt.s32.f32 %v1397_v0  ;;  %v1538_v16 = vor.u32 8388608, %v1537_v12 }
 0x1c7   : > { %v1402_v58 = vand.u32 2147483647, %v1401_v42  ;;  %v9856_v4 = vshrl.u32 %v1542_v19, 5  ;;  %v1547_v21 = vshll.u32 %v8606_v23, %v1544_v15  ;;  %v1550_v40 = vshll.u32 %v14448_v49, %v1544_v15 }
 0x1c8   : > { %v1489_v34 = vshll.u32 %v1488_v38, 30  ;;  %v1548_v45 = vshrl.u32 %v14448_v49, %v1545_v24  ;;  %v1551_v2 = vshrl.u32 %v14446_v51, %v1545_v24  ;;  %v1554_v11 = vshrl.u32 %v14450_v53, %v1545_v24 }
 0x1c9   : > { %v1405_v29 = vmul.f32 %v1404_v26, %v1402_v58  ;;  %v1557_v54 = vshrl.u32 %v14455_v55, %v1545_v24  ;;  %v1553_v30 = vshll.u32 %v14446_v51, %v1544_v15  ;;  %v1556_v50 = vshll.u32 %v14450_v53, %v1544_v15 }
 0x1ca   : > { %v9864_v36 = vsub.s32 %v1486_v7, %v1489_v34  ;;  %v1560_v37 = vshrl.u32 %v14453_v1, %v1545_v24  ;;  %v1549_v32 = vor.u32 %v1548_v45, %v1547_v21  ;;  %v1552_v3 = vor.u32 %v1551_v2, %v1550_v40 }
 0x1cb   : > { %v1406_v8 = vxor.u32 2147483648, %v1405_v29  ;;  %v9869_v63 = vadd.f32 %v367_v6, %v283_v25  ;;  %vm1428_vm5 = vcmp.lt.s32.totalorder %v9683_v20, 0  ;;  %v1555_v13 = vor.u32 %v1554_v11, %v1553_v30 }
 0x1cc   : > { %v1492_v27 = vsub.s32 0, %v9864_v36  ;;  %v1558_v59 = vor.u32 %v1557_v54, %v1556_v50  ;;  %v1559_v41 = vshll.u32 %v14455_v55, %v1544_v15  ;;  %vm1562_vm6 = vcmp.lt.s32.totalorder %v9856_v4, 1 }
 0x1cd   : > { %v1407_v57 = vsel %vm1324_vm8, %v1406_v8, %v1405_v29  ;;  %v1578_v56 = vshll.u32 %v1538_v16, 8  ;;  %v1634_v33 = vand.u32 2147483647, %v9854_v10  ;;  %vm1565_vm7 = vcmp.lt.s32.totalorder %v9856_v4, 4 }
 0x1ce   : > { %v1410_v7 = vsel %vm9781_vm11, %v9586_v62, %v1407_v57  ;;  %v7791_v19 = vmin.u32 %v1492_v27, %v9864_v36  ;;  %v1561_v35 = vor.u32 %v1560_v37, %v1559_v41  ;;  %v1546_v9 = vshrl.u32 %v8606_v23, %v1545_v24 }
 0x1cf   : > { %8340 = vcosq.f32 %v1410_v7  ;;  %v1570_v0 = vsel %vm1562_vm6, %v1549_v32, %v1552_v3  ;;  %v1571_v46 = vsel %vm1565_vm7, %v1558_v59, 920167782  ;;  %vm9890_vm8 = vcmp.le.f32.partialorder %v1426_v22, 0.7853982 }
 0x1d0   : > { %8342 = vsinq.f32 %v1410_v7  ;;  %v1494_v12 = vclz %v7791_v19  ;;  %vm1564_vm10 = vcmp.lt.s32.totalorder %v9856_v4, 3  ;;  %v1567_v43 = vsel %vm1565_vm7, %v1555_v13, 2102212464 }
 0x1d1   : > { %v1512_v14 = vsub.s32 4, %v1488_v38  ;;  %vm1563_vm9 = vcmp.lt.s32.totalorder %v9856_v4, 2  ;;  %v1572_v17 = vsel %vm1564_vm10, %v1555_v13, %v1571_v46  ;;  %v1574_v15 = vsel %vm1562_vm6, %v1552_v3, %v1555_v13 }
 0x1d2   : > { %v7792_v25 = vadd.s32 4294967294, %v1494_v12  ;;  %v1566_v22 = vsel %vm1562_vm6, %v1546_v9, %v1549_v32  ;;  %v1573_v42 = vsel %vm1563_vm9, %v1570_v0, %v1572_v17  ;;  %v1575_v6 = vsel %vm1565_vm7, %v1561_v35, 1326507024 }
 0x1d3   : > { %v1568_v24 = vsel %vm1564_vm10, %v1552_v3, %v1567_v43  ;;  %v1576_v58 = vsel %vm1564_vm10, %v1558_v59, %v1575_v6  ;;  %v9906_v26 = vmul.u32.u64.low %v1578_v56, %v1573_v42  ;;  %v9907_v16 = vmul.u32.u64.high %v1578_v56, %v1573_v42, %v9906_v26 }
 0x1d4   : > { %v1482_v34 = vadd.s32 %v9807_v31, %v9815_v61  ;;  %vm7793_vm12 = vcmp.lt.s32.totalorder %v7792_v25, 0  ;;  %v1577_v21 = vsel %vm1563_vm9, %v1574_v15, %v1576_v58  ;;  %v1637_v45 = vand.u32 2139095040, %v9854_v10 }
 0x1d5   : > { %v1497_v40 = vsel %vm7793_vm12, 0, %v7792_v25  ;;  %v1513_v29 = vsel %vm1428_vm5, %v1512_v14, %v1488_v38  ;;  %v9917_v2 = vmul.u32.u64.low %v1578_v56, %v1577_v21  ;;  %v9918_v11 = vmul.u32.u64.high %v1578_v56, %v1577_v21, %v9917_v2 }
 0x1d6   : > { %vm1414_vm11 = vweird.f32 %v9586_v62  ;;  %v1498_v54 = vsub.s32 32, %v1497_v40  ;;  %v1502_v30 = vsub.s32 4294967266, %v1497_v40  ;;  %v1569_v31 = vsel %vm1563_vm9, %v1566_v22, %v1568_v24 }
 0x1d7   : > { %v1638_v61 = vshrl.u32 %v1637_v45, 23  ;;  %vm1417_vm13 = vcmp.lt.s32.totalorder %v9852_v18, 2  ;;  %vm1421_vm14 = vcmp.eq.s32.totalorder %v9852_v18, 2  ;;  %v1499_v50 = vshll.u32 %v9864_v36, %v1497_v40 }
 0x1d8   : > { %v1588_v37 = vadd.s32 1, %v9907_v16  ;;  %v1500_v38 = vshrl.u32 %v1482_v34, %v1498_v54  ;;  %v1503_v8 = vadd.s32 127, %v1502_v30  ;;  %v1741_v3 = vand.u32 2139095040, %v9869_v63 }
 0x1d9   : > { %v7798_v32 = vadd.s32 4294967169, %v1638_v61  ;;  %v8341_v27 = vpop.eup %8340  ;;  %v1515_v13 = vsel %vm9890_vm8, 0, %v1513_v29  ;;  %v1585_v4 = vmul.u32 %v1578_v56, %v1569_v31  ;;  %vm1587_vm15 = vc.u32 %v9918_v11, %v9906_v26 }
 0x1da   : > { %v1641_v59 = vand.u32 8388607, %v1634_v33  ;;  %v8343_v41 = vpop.eup %8342  ;;  %v1422_v36 = vxor.u32 2147483648, %v8341_v27  ;;  %v1501_v57 = vor.u32 %v1500_v38, %v1499_v50  ;;  %v1504_v7 = vshll.u32 %v1503_v8, 23 }
 0x1db   : > { %v1589_v19 = vsel %vm1587_vm15, %v1588_v37, %v9907_v16  ;;  %v1419_v35 = vxor.u32 2147483648, %v8343_v41  ;;  %v1644_v0 = vadd.s32 1, %v7798_v32  ;;  %v1742_v46 = vshrl.u32 %v1741_v3, 23 }
 0x1dc   : > { %v1590_v9 = vadd.s32 %v1589_v19, %v1585_v4  ;;  %vm1418_vm0 = vcmp.eq.s32.totalorder %v9852_v18, 0  ;;  %v1423_v56 = vsel %vm1421_vm14, %v1422_v36, %v8343_v41  ;;  %v1505_v12 = vor.u32 4788187, %v1504_v7 }
 0x1dd   : > { %v1519_v43 = vadd.s32 3, %v1515_v13  ;;  %v1420_v14 = vsel %vm1418_vm0, %v8341_v27, %v1419_v35  ;;  %v1642_v15 = vor.u32 8388608, %v1641_v59  ;;  %vm1645_vm1 = vcmp.gt.s32.totalorder %v1644_v0, 0 }
 0x1de   : > { %v1591_v17 = vadd.s32 536870912, %v1590_v9  ;;  %v1424_v25 = vsel %vm1417_vm13, %v1420_v14, %v1423_v56  ;;  %v1506_v22 = vand.u32 2147483647, %v1505_v12  ;;  %v1508_v42 = vcvt.s32.f32 %v1501_v57 }
 0x1df   : > { %v1646_v6 = vsel %vm1645_vm1, %v1644_v0, 0  ;;  %v1425_v24 = vsel %vm1414_vm11, nan, %v1424_v25  ;;  %v7802_v34 = vadd.s32 4294967169, %v1742_v46  ;;  %v9947_v45 = vmul.f32 %v8794_v39, %v8798_v44 }
 0x1e0   : > { %v9942_v58 = vshrl.u32 %v1591_v17, 30  ;;  %v1648_v16 = vand.u32 31, %v1646_v6  ;;  %2059 = vst [vmem:[%s9106_s21 + $0x120] sm:$0xff] %v1425_v24  ;;  %v1509_v21 = vmul.f32 %v1508_v42, %v1506_v22  ;;  %v9951_v18 = vadd.f32 %v8804_v47, %v9848_v28 }
 0x1e1   : > { %v9954_v62 = vand.u32 3, %v1519_v43  ;;  %v9956_v54 = vshll.u32 %v1642_v15, 8  ;;  %v1738_v30 = vand.u32 2147483647, %v9869_v63  ;;  %v1647_v61 = vshrl.u32 %v1646_v6, 5 }
 0x1e2   : > { %v1593_v40 = vshll.u32 %v9942_v58, 30  ;;  %v1649_v29 = vsub.s32 32, %v1648_v16  ;;  %v1510_v2 = vxor.u32 2147483648, %v1509_v21  ;;  %v9962_v50 = vadd.s32 1, %v7802_v34 }
 0x1e3   : > { %v1651_v37 = vshll.u32 %v8606_v23, %v1648_v16  ;;  %v1654_v27 = vshll.u32 %v14448_v49, %v1648_v16  ;;  %v1657_v13 = vshll.u32 %v14446_v51, %v1648_v16  ;;  %vm1532_vm2 = vcmp.lt.s32.totalorder %v9751_v60, 0 }
 0x1e4   : > { %v9959_v31 = vsub.s32 %v1590_v9, %v1593_v40  ;;  %v1652_v44 = vshrl.u32 %v14448_v49, %v1649_v29  ;;  %v1511_v28 = vsel %vm1428_vm5, %v1510_v2, %v1509_v21  ;;  %v1655_v38 = vshrl.u32 %v14446_v51, %v1649_v29 }
 0x1e5   : > { %v1658_v8 = vshrl.u32 %v14450_v53, %v1649_v29  ;;  %v1514_v32 = vsel %vm9890_vm8, %v9683_v20, %v1511_v28  ;;  %v1660_v59 = vshll.u32 %v14450_v53, %v1648_v16  ;;  %v1661_v41 = vshrl.u32 %v14455_v55, %v1649_v29 }
 0x1e6   : > { %v1596_v3 = vsub.s32 0, %v9959_v31  ;;  %8344 = vcosq.f32 %v1514_v32  ;;  %v1653_v4 = vor.u32 %v1652_v44, %v1651_v37  ;;  %v1656_v57 = vor.u32 %v1655_v38, %v1654_v27 }
 0x1e7   : > { %8346 = vsinq.f32 %v1514_v32  ;;  %v1659_v52 = vor.u32 %v1658_v8, %v1657_v13  ;;  %v1650_v7 = vshrl.u32 %v8606_v23, %v1649_v29  ;;  %v1662_v19 = vor.u32 %v1661_v41, %v1660_v59 }
 0x1e8   : > { %v7795_v36 = vmin.u32 %v1596_v3, %v9959_v31  ;;  %v1663_v35 = vshll.u32 %v14455_v55, %v1648_v16  ;;  %v1664_v9 = vshrl.u32 %v14453_v1, %v1649_v29  ;;  %v1616_v46 = vsub.s32 4, %v9942_v58 }
 0x1e9   : > { %vm1666_vm3 = vcmp.lt.s32.totalorder %v1647_v61, 1  ;;  %vm1667_vm4 = vcmp.lt.s32.totalorder %v1647_v61, 2  ;;  %vm1525_vm5 = vcmp.eq.s32.totalorder %v9954_v62, 2  ;;  %vm9986_vm6 = vcmp.le.f32.partialorder %v1530_v5, 0.7853982 }
 0x1ea   : > { %v1598_v0 = vclz %v7795_v36  ;;  %v1665_v12 = vor.u32 %v1664_v9, %v1663_v35  ;;  %vm1668_vm7 = vcmp.lt.s32.totalorder %v1647_v61, 3  ;;  %vm1669_vm8 = vcmp.lt.s32.totalorder %v1647_v61, 4 }
 0x1eb   : > { %v1670_v43 = vsel %vm1666_vm3, %v1650_v7, %v1653_v4  ;;  %vm1522_vm10 = vcmp.eq.s32.totalorder %v9954_v62, 0  ;;  %v1671_v17 = vsel %vm1669_vm8, %v1659_v52, 2102212464  ;;  %v1674_v15 = vsel %vm1666_vm3, %v1653_v4, %v1656_v57 }
 0x1ec   : > { %v7796_v14 = vadd.s32 4294967294, %v1598_v0  ;;  %v1675_v25 = vsel %vm1669_vm8, %v1662_v19, 920167782  ;;  %vm1521_vm9 = vcmp.lt.s32.totalorder %v9954_v62, 2  ;;  %v1672_v22 = vsel %vm1668_vm7, %v1656_v57, %v1671_v17 }
 0x1ed   : > { %v1676_v5 = vsel %vm1668_vm7, %v1659_v52, %v1675_v25  ;;  %v1678_v42 = vsel %vm1666_vm3, %v1656_v57, %v1659_v52  ;;  %v1679_v6 = vsel %vm1669_vm8, %v1665_v12, 1326507024  ;;  %vm1518_vm12 = vweird.f32 %v9683_v20 }
 0x1ee   : > { %v1586_v24 = vadd.s32 %v9906_v26, %v9918_v11  ;;  %vm7797_vm11 = vcmp.lt.s32.totalorder %v7796_v14, 0  ;;  %v1677_v16 = vsel %vm1667_vm4, %v1674_v15, %v1676_v5  ;;  %v1680_v34 = vsel %vm1668_vm7, %v1662_v19, %v1679_v6 }
 0x1ef   : > { %v1601_v21 = vsel %vm7797_vm11, 0, %v7796_v14  ;;  %v1681_v40 = vsel %vm1667_vm4, %v1678_v42, %v1680_v34  ;;  %v10004_v29 = vmul.u32.u64.low %v9956_v54, %v1677_v16  ;;  %v10005_v2 = vmul.u32.u64.high %v9956_v54, %v1677_v16, %v10004_v29 }
 0x1f0   : > { %v1602_v44 = vsub.s32 32, %v1601_v21  ;;  %v1606_v28 = vsub.s32 4294967266, %v1601_v21  ;;  %v1617_v37 = vsel %vm1532_vm2, %v1616_v46, %v9942_v58  ;;  %v1673_v26 = vsel %vm1667_vm4, %v1670_v43, %v1672_v22  ;;  %v8345_v11 = vpop.eup %8344 }
 0x1f1   : > { %v1603_v38 = vshll.u32 %v9959_v31, %v1601_v21  ;;  %v10014_v8 = vmul.u32.u64.low %v9956_v54, %v1681_v40  ;;  %v10015_v32 = vmul.u32.u64.high %v9956_v54, %v1681_v40, %v10014_v8  ;;  %vm1749_vm13 = vcmp.gt.s32.totalorder %v9962_v50, 0  ;;  %v8347_v3 = vpop.eup %8346  ;;  %v344_v31 = vpop.permute.xlu1 %343 }
 0x1f2   : > { %v1526_v27 = vxor.u32 2147483648, %v8345_v11  ;;  %v1604_v13 = vshrl.u32 %v1586_v24, %v1602_v44  ;;  %v1607_v4 = vadd.s32 127, %v1606_v28  ;;  %v1750_v59 = vsel %vm1749_vm13, %v9962_v50, 0 }
 0x1f3   : > { %v1523_v41 = vxor.u32 2147483648, %v8347_v3  ;;  %v1692_v58 = vadd.s32 1, %v10005_v2  ;;  %v1745_v61 = vand.u32 8388607, %v1738_v30  ;;  %v1752_v36 = vand.u32 31, %v1750_v59 }
 0x1f4   : > { %v1527_v57 = vsel %vm1525_vm5, %v1526_v27, %v8347_v3  ;;  %v1605_v52 = vor.u32 %v1604_v13, %v1603_v38  ;;  %v1608_v7 = vshll.u32 %v1607_v4, 23  ;;  %v1619_v19 = vsel %vm9986_vm6, 0, %v1617_v37 }
 0x1f5   : > { %v1524_v50 = vsel %vm1522_vm10, %v8345_v11, %v1523_v41  ;;  %v1689_v35 = vmul.u32 %v9956_v54, %v1673_v26  ;;  %vm1691_vm14 = vc.u32 %v10015_v32, %v10004_v29  ;;  %v1753_v9 = vsub.s32 32, %v1752_v36 }
 0x1f6   : > { %v1528_v0 = vsel %vm1521_vm9, %v1524_v50, %v1527_v57  ;;  %v1609_v46 = vor.u32 4788187, %v1608_v7  ;;  %v1693_v12 = vsel %vm1691_vm14, %v1692_v58, %v10005_v2  ;;  %v368_v43 = vmul.f32 %v8807_v48, %v344_v31 }
 0x1f7   : > { %v1529_v14 = vsel %vm1518_vm12, nan, %v1528_v0  ;;  %v1623_v17 = vadd.s32 3, %v1619_v19  ;;  %v1694_v15 = vadd.s32 %v1693_v12, %v1689_v35  ;;  %v1746_v25 = vor.u32 8388608, %v1745_v61 }
 0x1f8   : > { %2060 = vst [vmem:[%s9106_s21 + $0x140] sm:$0xff] %v1529_v14  ;;  %v1610_v54 = vand.u32 2147483647, %v1609_v46  ;;  %v1612_v22 = vcvt.s32.f32 %v1605_v52  ;;  %v1756_v5 = vshrl.u32 %v14448_v49, %v1753_v9  ;;  %v1759_v42 = vshrl.u32 %v14446_v51, %v1753_v9 }
 0x1f9   : > { %v1695_v62 = vadd.s32 536870912, %v1694_v15  ;;  %v1751_v6 = vshrl.u32 %v1750_v59, 5  ;;  %v1755_v24 = vshll.u32 %v8606_v23, %v1752_v36  ;;  %v1762_v16 = vshrl.u32 %v14450_v53, %v1753_v9 }
 0x1fa   : > { %v1613_v34 = vmul.f32 %v1612_v22, %v1610_v54  ;;  %v1758_v20 = vshll.u32 %v14448_v49, %v1752_v36  ;;  %v1764_v21 = vshll.u32 %v14450_v53, %v1752_v36  ;;  %v1765_v40 = vshrl.u32 %v14455_v55, %v1753_v9 }
 0x1fb   : > { %v1696_v2 = vshrl.u32 %v1695_v62, 30  ;;  %v1757_v44 = vor.u32 %v1756_v5, %v1755_v24  ;;  %v1761_v28 = vshll.u32 %v14446_v51, %v1752_v36  ;;  %v1768_v37 = vshrl.u32 %v14453_v1, %v1753_v9 }
 0x1fc   : > { %v1614_v26 = vxor.u32 2147483648, %v1613_v34  ;;  %v1760_v11 = vor.u32 %v1759_v42, %v1758_v20  ;;  %v1766_v38 = vor.u32 %v1765_v40, %v1764_v21  ;;  %v1767_v8 = vshll.u32 %v14455_v55, %v1752_v36 }
 0x1fd   : > { %v10048_v3 = vand.u32 3, %v1623_v17  ;;  %v1697_v27 = vshll.u32 %v1696_v2, 30  ;;  %v1763_v13 = vor.u32 %v1762_v16, %v1761_v28  ;;  %v10050_v4 = vshll.u32 %v1746_v25, 8  ;;  %v348_v25 = vpop.permute.xlu0 %347 }
 0x1fe   : > { %v1615_v59 = vsel %vm1532_vm2, %v1614_v26, %v1613_v34  ;;  %v1754_v41 = vshrl.u32 %v8606_v23, %v1753_v9  ;;  %v1769_v58 = vor.u32 %v1768_v37, %v1767_v8  ;;  %v10056_v61 = vadd.f32 %v368_v43, %v9951_v18 }
 0x1ff   : > { %v1618_v31 = vsel %vm9986_vm6, %v9751_v60, %v1615_v59  ;;  %v10061_v36 = vsub.s32 %v1694_v15, %v1697_v27  ;;  %vm1770_vm15 = vcmp.lt.s32.totalorder %v1751_v6, 1  ;;  %vm1773_vm0 = vcmp.lt.s32.totalorder %v1751_v6, 4 }
 0x200   : > { %8348 = vcosq.f32 %v1618_v31  ;;  %vm1771_vm1 = vcmp.lt.s32.totalorder %v1751_v6, 2  ;;  %v1778_v57 = vsel %vm1770_vm15, %v1757_v44, %v1760_v11  ;;  %v1779_v52 = vsel %vm1773_vm0, %v1766_v38, 920167782 }
 0x201   : > { %8350 = vsinq.f32 %v1618_v31  ;;  %v1700_v7 = vsub.s32 0, %v10061_v36  ;;  %vm1772_vm2 = vcmp.lt.s32.totalorder %v1751_v6, 3  ;;  %v1775_v19 = vsel %vm1773_vm0, %v1763_v13, 2102212464 }
 0x202   : > { %v1720_v50 = vsub.s32 4, %v1696_v2  ;;  %v1780_v18 = vsel %vm1772_vm2, %v1763_v13, %v1779_v52  ;;  %v1782_v35 = vsel %vm1770_vm15, %v1760_v11, %v1763_v13  ;;  %v1783_v9 = vsel %vm1773_vm0, %v1769_v58, 1326507024 }
 0x203   : > { %v7799_v56 = vmin.u32 %v1700_v7, %v10061_v36  ;;  %v1774_v0 = vsel %vm1770_vm15, %v1754_v41, %v1757_v44  ;;  %v1781_v46 = vsel %vm1771_vm1, %v1778_v57, %v1780_v18  ;;  %v1784_v12 = vsel %vm1772_vm2, %v1766_v38, %v1783_v9 }
 0x204   : > { %v1776_v43 = vsel %vm1772_vm2, %v1760_v11, %v1775_v19  ;;  %v1785_v14 = vsel %vm1771_vm1, %v1782_v35, %v1784_v12  ;;  %v10068_v17 = vmul.u32.u64.low %v10050_v4, %v1781_v46  ;;  %v10069_v15 = vmul.u32.u64.high %v10050_v4, %v1781_v46, %v10068_v17 }
 0x205   : > { %v285_v54 = vadd.f32 %v8804_v47, %v9947_v45  ;;  %vm1636_vm3 = vcmp.lt.s32.totalorder %v9854_v10, 0  ;;  %v1702_v22 = vclz %v7799_v56  ;;  %v1845_v24 = vand.u32 2139095040, %v10056_v61 }
 0x206   : > { %v1721_v5 = vsel %vm1636_vm3, %v1720_v50, %v1696_v2  ;;  %v10078_v42 = vmul.u32.u64.low %v10050_v4, %v1785_v14  ;;  %v10079_v62 = vmul.u32.u64.high %v10050_v4, %v1785_v14, %v10078_v42  ;;  %vm10084_vm4 = vcmp.le.f32.partialorder %v1634_v33, 0.7853982 }
 0x207   : > { %v7800_v34 = vadd.s32 4294967294, %v1702_v22  ;;  %v1777_v45 = vsel %vm1771_vm1, %v1774_v0, %v1776_v43  ;;  %v369_v20 = vmul.f32 %v8807_v48, %v348_v25  ;;  %vm1626_vm5 = vcmp.eq.s32.totalorder %v10048_v3, 0 }
 0x208   : > { %vm1629_vm6 = vcmp.eq.s32.totalorder %v10048_v3, 2  ;;  %v1796_v21 = vadd.s32 1, %v10069_v15  ;;  %v1846_v40 = vshrl.u32 %v1845_v24, 23  ;;  %v1690_v2 = vadd.s32 %v10004_v29, %v10015_v32 }
 0x209   : > { %vm7801_vm7 = vcmp.lt.s32.totalorder %v7800_v34, 0  ;;  %v1723_v33 = vsel %vm10084_vm4, 0, %v1721_v5  ;;  %v1842_v44 = vand.u32 2147483647, %v10056_v61  ;;  %v1793_v37 = vmul.u32 %v10050_v4, %v1777_v45 }
 0x20a   : > { %v8349_v6 = vpop.eup %8348  ;;  %v1705_v28 = vsel %vm7801_vm7, 0, %v7800_v34  ;;  %vm1795_vm8 = vc.u32 %v10079_v62, %v10068_v17  ;;  %v7806_v26 = vadd.s32 4294967169, %v1846_v40  ;;  %v10101_v13 = vadd.f32 %v369_v20, %v285_v54 }
 0x20b   : > { %v8351_v11 = vpop.eup %8350  ;;  %v1630_v38 = vxor.u32 2147483648, %v8349_v6  ;;  %v1706_v8 = vsub.s32 32, %v1705_v28  ;;  %v1710_v27 = vsub.s32 4294967266, %v1705_v28  ;;  %v1707_v32 = vshll.u32 %v10061_v36, %v1705_v28 }
 0x20c   : > { %v1627_v29 = vxor.u32 2147483648, %v8351_v11  ;;  %v1797_v59 = vsel %vm1795_vm8, %v1796_v21, %v10069_v15  ;;  %v1852_v41 = vadd.s32 1, %v7806_v26  ;;  %vm1622_vm10 = vweird.f32 %v9751_v60 }
 0x20d   : > { %v1631_v4 = vsel %vm1629_vm6, %v1630_v38, %v8351_v11  ;;  %v1708_v58 = vshrl.u32 %v1690_v2, %v1706_v8  ;;  %v1711_v31 = vadd.s32 127, %v1710_v27  ;;  %v1798_v57 = vadd.s32 %v1797_v59, %v1793_v37 }
 0x20e   : > { %vm1625_vm9 = vcmp.lt.s32.totalorder %v10048_v3, 2  ;;  %v1628_v52 = vsel %vm1626_vm5, %v8349_v6, %v1627_v29  ;;  %vm1853_vm12 = vcmp.gt.s32.totalorder %v1852_v41, 0  ;;  %v1727_v35 = vadd.s32 3, %v1723_v33  ;;  %v10117_v3 = vpop.permute.xlu0 %2071 }
 0x20f   : > { %v1632_v7 = vsel %vm1625_vm9, %v1628_v52, %v1631_v4  ;;  %v1709_v36 = vor.u32 %v1708_v58, %v1707_v32  ;;  %v1712_v19 = vshll.u32 %v1711_v31, 23  ;;  %v1799_v50 = vadd.s32 536870912, %v1798_v57 }
 0x210   : > { %v1633_v18 = vsel %vm1622_vm10, nan, %v1632_v7  ;;  %v1854_v9 = vsel %vm1853_vm12, %v1852_v41, 0  ;;  %v1849_v60 = vand.u32 8388607, %v1842_v44  ;;  %v1949_v46 = vand.u32 2139095040, %v10101_v13 }
 0x211   : > { %2061 = vst [vmem:[%s9106_s21 + $0x160] sm:$0xff] %v1633_v18  ;;  %v1713_v56 = vor.u32 4788187, %v1712_v19  ;;  %v10112_v0 = vshrl.u32 %v1799_v50, 30  ;;  %v1856_v12 = vand.u32 31, %v1854_v9  ;;  %v1716_v14 = vcvt.s32.f32 %v1709_v36 }
 0x212   : > { %v10120_v25 = vand.u32 3, %v1727_v35  ;;  %v1850_v42 = vor.u32 8388608, %v1849_v60  ;;  %v1950_v24 = vshrl.u32 %v1949_v46, 23  ;;  %v10124_v34 = vshrl.u32 %v1854_v9, 5  ;;  %v10135_v38 = vpop.permute.xlu0 %2083 }
 0x213   : > { %v1714_v43 = vand.u32 2147483647, %v1713_v56  ;;  %v1801_v15 = vshll.u32 %v10112_v0, 30  ;;  %v1857_v54 = vsub.s32 32, %v1856_v12  ;;  %v1859_v45 = vshll.u32 %v8606_v23, %v1856_v12 }
 0x214   : > { %v1862_v33 = vshll.u32 %v14448_v49, %v1856_v12  ;;  %v1865_v37 = vshll.u32 %v14446_v51, %v1856_v12  ;;  %v1868_v26 = vshll.u32 %v14450_v53, %v1856_v12  ;;  %v1871_v32 = vshll.u32 %v14455_v55, %v1856_v12 }
 0x215   : > { %v1717_v22 = vmul.f32 %v1716_v14, %v1714_v43  ;;  %v10122_v5 = vsub.s32 %v1798_v57, %v1801_v15  ;;  %v1860_v20 = vshrl.u32 %v14448_v49, %v1857_v54  ;;  %v1863_v21 = vshrl.u32 %v14446_v51, %v1857_v54 }
 0x216   : > { %v1866_v6 = vshrl.u32 %v14450_v53, %v1857_v54  ;;  %v1869_v11 = vshrl.u32 %v14455_v55, %v1857_v54  ;;  %v1872_v58 = vshrl.u32 %v14453_v1, %v1857_v54  ;;  %v1794_v31 = vadd.s32 %v10068_v17, %v10079_v62  ;;  %v10155_v35 = vpop.permute.xlu0 %2091 }
 0x217   : > { %v1718_v40 = vxor.u32 2147483648, %v1717_v22  ;;  %v1804_v2 = vsub.s32 0, %v10122_v5  ;;  %v1861_v28 = vor.u32 %v1860_v20, %v1859_v45  ;;  %v1864_v29 = vor.u32 %v1863_v21, %v1862_v33 }
 0x218   : > { %v1867_v41 = vor.u32 %v1866_v6, %v1865_v37  ;;  %v1870_v4 = vor.u32 %v1869_v11, %v1868_v26  ;;  %v7810_v52 = vadd.s32 4294967169, %v1950_v24  ;;  %v1858_v7 = vshrl.u32 %v8606_v23, %v1857_v54 }
 0x219   : > { %v1719_v8 = vsel %vm1636_vm3, %v1718_v40, %v1717_v22  ;;  %v7803_v27 = vmin.u32 %v1804_v2, %v10122_v5  ;;  %v1873_v36 = vor.u32 %v1872_v58, %v1871_v32  ;;  %vm1874_vm11 = vcmp.lt.s32.totalorder %v10124_v34, 1 }
 0x21a   : > { %v1722_v59 = vsel %vm10084_vm4, %v9854_v10, %v1719_v8  ;;  %vm1876_vm13 = vcmp.lt.s32.totalorder %v10124_v34, 3  ;;  %vm1877_vm14 = vcmp.lt.s32.totalorder %v10124_v34, 4  ;;  %v1882_v16 = vsel %vm1874_vm11, %v1861_v28, %v1864_v29  ;;  %v10185_v37 = vpop.permute.xlu0 %2099 }
 0x21b   : > { %8352 = vcosq.f32 %v1722_v59  ;;  %v1806_v57 = vclz %v7803_v27  ;;  %v1879_v50 = vsel %vm1877_vm14, %v1867_v41, 2102212464  ;;  %v1883_v18 = vsel %vm1877_vm14, %v1870_v4, 920167782 }
 0x21c   : > { %8354 = vsinq.f32 %v1722_v59  ;;  %v1886_v17 = vsel %vm1874_vm11, %v1864_v29, %v1867_v41  ;;  %v1887_v62 = vsel %vm1877_vm14, %v1873_v36, 1326507024  ;;  %vm1740_vm15 = vcmp.lt.s32.totalorder %v9869_v63, 0 }
 0x21d   : > { %v7804_v19 = vadd.s32 4294967294, %v1806_v57  ;;  %vm1875_vm1 = vcmp.lt.s32.totalorder %v10124_v34, 2  ;;  %v1884_v9 = vsel %vm1876_vm13, %v1867_v41, %v1883_v18  ;;  %v1888_v56 = vsel %vm1876_vm13, %v1870_v4, %v1887_v62 }
 0x21e   : > { %v1885_v46 = vsel %vm1875_vm1, %v1882_v16, %v1884_v9  ;;  %v1889_v12 = vsel %vm1875_vm1, %v1886_v17, %v1888_v56  ;;  %v1890_v43 = vshll.u32 %v1850_v42, 8  ;;  %v1878_v54 = vsel %vm1874_vm11, %v1858_v7, %v1861_v28  ;;  %v10208_v62 = vpop.permute.xlu0 %2107 }
 0x21f   : > { %vm7805_vm0 = vcmp.lt.s32.totalorder %v7804_v19, 0  ;;  %v1880_v22 = vsel %vm1876_vm13, %v1864_v29, %v1879_v50  ;;  %vm1726_vm2 = vweird.f32 %v9854_v10  ;;  %v1956_v33 = vadd.s32 1, %v7810_v52 }
 0x220   : > { %v1809_v60 = vsel %vm7805_vm0, 0, %v7804_v19  ;;  %v10172_v24 = vmul.u32.u64.low %v1890_v43, %v1889_v12  ;;  %v10173_v45 = vmul.u32.u64.high %v1890_v43, %v1889_v12, %v10172_v24  ;;  %vm1729_vm3 = vcmp.lt.s32.totalorder %v10120_v25, 2 }
 0x221   : > { %v1810_v14 = vsub.s32 32, %v1809_v60  ;;  %v1814_v15 = vsub.s32 4294967266, %v1809_v60  ;;  %v10175_v20 = vmul.u32.u64.low %v1890_v43, %v1885_v46  ;;  %v10176_v21 = vmul.u32.u64.high %v1890_v43, %v1885_v46, %v10175_v20  ;;  %v10214_v46 = vpop.permute.xlu1 %2067 }
 0x222   : > { %v1811_v40 = vshll.u32 %v10122_v5, %v1809_v60  ;;  %vm1730_vm4 = vcmp.eq.s32.totalorder %v10120_v25, 0  ;;  %v1824_v6 = vsub.s32 4, %v10112_v0  ;;  %v1881_v28 = vsel %vm1875_vm1, %v1878_v54, %v1880_v22 }
 0x223   : > { %v1812_v42 = vshrl.u32 %v1794_v31, %v1810_v14  ;;  %v1815_v2 = vadd.s32 127, %v1814_v15  ;;  %vm1733_vm5 = vcmp.eq.s32.totalorder %v10120_v25, 2  ;;  %vm1957_vm6 = vcmp.gt.s32.totalorder %v1956_v33, 0 }
 0x224   : > { %vm1899_vm7 = vc.u32 %v10173_v45, %v10175_v20  ;;  %v1900_v29 = vadd.s32 1, %v10176_v21  ;;  %v1946_v32 = vand.u32 2147483647, %v10101_v13  ;;  %v1897_v41 = vmul.u32 %v1890_v43, %v1881_v28 }
 0x225   : > { %v8353_v26 = vpop.eup %8352  ;;  %v1813_v11 = vor.u32 %v1812_v42, %v1811_v40  ;;  %v1816_v8 = vshll.u32 %v1815_v2, 23  ;;  %v1958_v4 = vsel %vm1957_vm6, %v1956_v33, 0  ;;  %v1825_v31 = vsel %vm1740_vm15, %v1824_v6, %v10112_v0 }
 0x226   : > { %v8355_v5 = vpop.eup %8354  ;;  %v1734_v27 = vxor.u32 2147483648, %v8353_v26  ;;  %v1901_v57 = vsel %vm1899_vm7, %v1900_v29, %v10176_v21  ;;  %v1960_v52 = vand.u32 31, %v1958_v4  ;;  %vm10202_vm8 = vcmp.le.f32.partialorder %v1738_v30, 0.7853982 }
 0x227   : > { %v1731_v59 = vxor.u32 2147483648, %v8355_v5  ;;  %v1817_v34 = vor.u32 4788187, %v1816_v8  ;;  %v1820_v19 = vcvt.s32.f32 %v1813_v11  ;;  %v1902_v16 = vadd.s32 %v1901_v57, %v1897_v41 }
 0x228   : > { %v1735_v58 = vsel %vm1733_vm5, %v1734_v27, %v8355_v5  ;;  %v1953_v0 = vand.u32 8388607, %v1946_v32  ;;  %v1961_v17 = vsub.s32 32, %v1960_v52  ;;  %v1827_v25 = vsel %vm10202_vm8, 0, %v1825_v31  ;;  %v10235_v27 = vpop.permute.xlu0 %2115 }
 0x229   : > { %v1732_v7 = vsel %vm1730_vm4, %v8353_v26, %v1731_v59  ;;  %v1818_v36 = vand.u32 2147483647, %v1817_v34  ;;  %v1903_v60 = vadd.s32 536870912, %v1902_v16  ;;  %v1963_v30 = vshll.u32 %v8606_v23, %v1960_v52  ;;  %v10239_v34 = vpop.permute.xlu1 %2075 }
 0x22a   : > { %v1736_v50 = vsel %vm1729_vm3, %v1732_v7, %v1735_v58  ;;  %v1964_v12 = vshrl.u32 %v14448_v49, %v1961_v17  ;;  %v1966_v43 = vshll.u32 %v14448_v49, %v1960_v52  ;;  %v1967_v14 = vshrl.u32 %v14446_v51, %v1961_v17 }
 0x22b   : > { %v1737_v9 = vsel %vm1726_vm2, nan, %v1736_v50  ;;  %v1821_v56 = vmul.f32 %v1820_v19, %v1818_v36  ;;  %v10221_v54 = vshrl.u32 %v1903_v60, 30  ;;  %v1970_v10 = vshrl.u32 %v14450_v53, %v1961_v17 }
 0x22c   : > { %2062 = vst [vmem:[%s9106_s21 + $0x180] sm:$0xff] %v1737_v9  ;;  %v1973_v22 = vshrl.u32 %v14455_v55, %v1961_v17  ;;  %v1831_v24 = vadd.s32 3, %v1827_v25  ;;  %v1959_v21 = vshrl.u32 %v1958_v4, 5  ;;  %v1969_v40 = vshll.u32 %v14446_v51, %v1960_v52 }
 0x22d   : > { %v1822_v15 = vxor.u32 2147483648, %v1821_v56  ;;  %v1972_v42 = vshll.u32 %v14450_v53, %v1960_v52  ;;  %v1905_v33 = vshll.u32 %v10221_v54, 30  ;;  %v1965_v6 = vor.u32 %v1964_v12, %v1963_v30  ;;  %v2080_v60 = vpop.permute.xlu1 %2079 }
 0x22e   : > { %v1968_v28 = vor.u32 %v1967_v14, %v1966_v43  ;;  %v1975_v8 = vshll.u32 %v14455_v55, %v1960_v52  ;;  %v1976_v5 = vshrl.u32 %v14453_v1, %v1961_v17  ;;  %v1971_v59 = vor.u32 %v1970_v10, %v1969_v40 }
 0x22f   : > { %v1823_v2 = vsel %vm1740_vm15, %v1822_v15, %v1821_v56  ;;  %v1974_v11 = vor.u32 %v1973_v22, %v1972_v42  ;;  %v10237_v29 = vsub.s32 %v1902_v16, %v1905_v33  ;;  %v1954_v41 = vor.u32 8388608, %v1953_v0  ;;  %v10248_v56 = vpop.permute.xlu0 %2123 }
 0x230   : > { %v1826_v26 = vsel %vm10202_vm8, %v9869_v63, %v1823_v2  ;;  %v1977_v4 = vor.u32 %v1976_v5, %v1975_v8  ;;  %v1832_v58 = vand.u32 3, %v1831_v24  ;;  %vm1978_vm10 = vcmp.lt.s32.totalorder %v1959_v21, 1 }
 0x231   : > { %8356 = vcosq.f32 %v1826_v26  ;;  %v1908_v31 = vsub.s32 0, %v10237_v29  ;;  %vm1981_vm9 = vcmp.lt.s32.totalorder %v1959_v21, 4  ;;  %v1962_v57 = vshrl.u32 %v8606_v23, %v1961_v17 }
 0x232   : > { %8358 = vsinq.f32 %v1826_v26  ;;  %vm1980_vm12 = vcmp.lt.s32.totalorder %v1959_v21, 3  ;;  %v1986_v52 = vsel %vm1978_vm10, %v1965_v6, %v1968_v28  ;;  %v1987_v7 = vsel %vm1981_vm9, %v1974_v11, 920167782 }
 0x233   : > { %v7807_v36 = vmin.u32 %v1908_v31, %v10237_v29  ;;  %vm1979_vm11 = vcmp.lt.s32.totalorder %v1959_v21, 2  ;;  %v1983_v19 = vsel %vm1981_vm9, %v1971_v59, 2102212464  ;;  %v1988_v16 = vsel %vm1980_vm12, %v1971_v59, %v1987_v7 }
 0x234   : > { %v1989_v50 = vsel %vm1979_vm11, %v1986_v52, %v1988_v16  ;;  %v1990_v18 = vsel %vm1978_vm10, %v1968_v28, %v1971_v59  ;;  %v1991_v0 = vsel %vm1981_vm9, %v1977_v4, 1326507024  ;;  %v1994_v9 = vshll.u32 %v1954_v41, 8  ;;  %v10266_v4 = vpop.permute.xlu1 %2087 }
 0x235   : > { %v1910_v25 = vclz %v7807_v36  ;;  %v1982_v17 = vsel %vm1978_vm10, %v1962_v57, %v1965_v6  ;;  %v1984_v30 = vsel %vm1980_vm12, %v1968_v28, %v1983_v19  ;;  %v1992_v12 = vsel %vm1980_vm12, %v1974_v11, %v1991_v0  ;;  %v2164_v11 = vpop.permute.xlu0 %2163 }
 0x236   : > { %v10253_v43 = vmul.u32.u64.low %v1994_v9, %v1989_v50  ;;  %v10254_v14 = vmul.u32.u64.high %v1994_v9, %v1989_v50, %v10253_v43  ;;  %v1993_v10 = vsel %vm1979_vm11, %v1990_v18, %v1992_v12  ;;  %vm1833_vm13 = vcmp.lt.s32.totalorder %v1832_v58, 2 }
 0x237   : > { %v7808_v15 = vadd.s32 4294967294, %v1910_v25  ;;  %v10258_v22 = vmul.u32.u64.low %v1994_v9, %v1993_v10  ;;  %v10259_v24 = vmul.u32.u64.high %v1994_v9, %v1993_v10, %v10258_v22  ;;  %vm1834_vm14 = vcmp.eq.s32.totalorder %v1832_v58, 0  ;;  %v8577_v10 = vld [vmem:[%s8643_s15] sm:$0xff] }
 0x238   : > { %vm1837_vm15 = vcmp.eq.s32.totalorder %v1832_v58, 2  ;;  %v1985_v42 = vsel %vm1979_vm11, %v1982_v17, %v1984_v30  ;;  %v1898_v6 = vadd.s32 %v10175_v20, %v10173_v45  ;;  %v2004_v26 = vadd.s32 1, %v10254_v14  ;;  %v10283_v17 = vpop.permute.xlu1 %2095 }
 0x239   : > { %vm7809_vm0 = vcmp.lt.s32.totalorder %v7808_v15, 0  ;;  %v1928_v41 = vsub.s32 4, %v10221_v54  ;;  %v2001_v57 = vmul.u32 %v1994_v9, %v1985_v42  ;;  %vm2003_vm1 = vc.u32 %v10259_v24, %v10253_v43  ;;  %v2176_v9 = vpop.permute.xlu0 %2175 }
 0x23a   : > { %v1913_v28 = vsel %vm7809_vm0, 0, %v7808_v15  ;;  %v2005_v7 = vsel %vm2003_vm1, %v2004_v26, %v10254_v14  ;;  %vm1830_vm2 = vweird.f32 %v9869_v63  ;;  %v2130_v16 = vmul.f32 %v10214_v46, %v8794_v39  ;;  %v8576_v14 = vld [vmem:[%s8643_s15 + $0x8] sm:$0xff] }
 0x23b   : > { %v8357_v40 = vpop.eup %8356  ;;  %v1914_v5 = vsub.s32 32, %v1913_v28  ;;  %v1918_v59 = vsub.s32 4294967266, %v1913_v28  ;;  %v1915_v21 = vshll.u32 %v10237_v29, %v1913_v28  ;;  %v2006_v19 = vadd.s32 %v2005_v7, %v2001_v57 }
 0x23c   : > { %v8359_v2 = vpop.eup %8358  ;;  %v1838_v33 = vxor.u32 2147483648, %v8357_v40  ;;  %vm1844_vm3 = vcmp.lt.s32.totalorder %v10056_v61, 0  ;;  %v2133_v58 = vmul.f32 %v2080_v60, %v8794_v39  ;;  %v8613_v46 = vmov 7  }
 0x23d   : > { %v1835_v8 = vxor.u32 2147483648, %v8359_v2  ;;  %v1916_v20 = vshrl.u32 %v1898_v6, %v1914_v5  ;;  %v1919_v52 = vadd.s32 127, %v1918_v59  ;;  %v2007_v0 = vadd.s32 536870912, %v2006_v19  ;;  %8303 = vset.pattern.permute.xlu0 %v8613_v46  ;;  %8302 = vset.pattern.permute.xlu1 %v8613_v46  ;;  %v8579_v5 = vld [vmem:[%s8643_s15 + $0x10] sm:$0xff] }
 0x23e   : > { %v1839_v31 = vsel %vm1837_vm15, %v1838_v33, %v8359_v2  ;;  %v1929_v63 = vsel %vm1844_vm3, %v1928_v41, %v10221_v54  ;;  %v2146_v12 = vadd.f32 %v2130_v16, %v8804_v47  ;;  %5911 = vperm.xlu0 %8303, %v8576_v14   ;;  %v2226_v15 = vmul.f32 %v2164_v11, %v8807_v48  ;;  %v8583_v54 = vld [vmem:[%s8643_s15 + $0x28] sm:$0xff] }
 0x23f   : > { %v1836_v45 = vsel %vm1834_vm14, %v8357_v40, %v1835_v8  ;;  %v1917_v29 = vor.u32 %v1916_v20, %v1915_v21  ;;  %v1920_v18 = vshll.u32 %v1919_v52, 23  ;;  %v2008_v30 = vshrl.u32 %v2007_v0, 30  ;;  %5907 = vperm.xlu1 %8302, %v8577_v10   ;;  %v8578_v8 = vld [vmem:[%s8643_s15 + $0x20] sm:$0xff]  ;;  %v8581_v0 = vld [vmem:[%s8643_s15 + $0x18] sm:$0xff] }
 0x240   : > { %v1840_v36 = vsel %vm1833_vm13, %v1836_v45, %v1839_v31  ;;  %vm10291_vm4 = vcmp.le.f32.partialorder %v1842_v44, 0.7853982  ;;  %v2229_v40 = vmul.f32 %v2176_v9, %v8807_v48  ;;  %v10298_v33 = vadd.f32 %v2226_v15, %v2146_v12  ;;  %v10306_v31 = vpop.permute.xlu1 %2103  ;;  %v8582_v10 = vld [vmem:[%s8643_s15 + $0x40] sm:$0xff] }
 0x241   : > { %v1841_v50 = vsel %vm1830_vm2, nan, %v1840_v36  ;;  %v1921_v25 = vor.u32 4788187, %v1920_v18  ;;  %v1924_v22 = vcvt.s32.f32 %v1917_v29  ;;  %v1931_v42 = vsel %vm10291_vm4, 0, %v1929_v63  ;;  %v8580_v18 = vld [vmem:[%s8643_s15 + $0x30] sm:$0xff] }
 0x242   : > { %2063 = vst [vmem:[%s9106_s21 + $0x1a0] sm:$0xff] %v1841_v50  ;;  %v2009_v2 = vshll.u32 %v2008_v30, 30  ;;  %v2032_v28 = vsub.s32 4, %v2008_v30  ;;  %v2149_v26 = vadd.f32 %v2133_v58, %v8804_v47  ;;  %v2258_v44 = vand.u32 2147483647, %v10298_v33  ;;  %5923 = vperm.xlu0 %8303, %v8578_v8  }
 0x243   : > { %v1922_v60 = vand.u32 2147483647, %v1921_v25  ;;  %5915 = vperm.xlu1 %8302, %v8579_v5   ;;  %v1935_v41 = vadd.s32 3, %v1931_v42  ;;  %v2261_v21 = vand.u32 2139095040, %v10298_v33  ;;  %vm1948_vm5 = vcmp.lt.s32.totalorder %v10101_v13, 0 }
 0x244   : > { %v10301_v11 = vsub.s32 %v2006_v19, %v2009_v2  ;;  %v10309_v57 = vadd.f32 %v2229_v40, %v2149_v26  ;;  %v2033_v52 = vsel %vm1948_vm5, %v2032_v28, %v2008_v30  ;;  %v2265_v36 = vand.u32 8388607, %v2258_v44  ;;  %v10338_v46 = vpop.permute.xlu1 %2111 }
 0x245   : > { %v1925_v6 = vmul.f32 %v1924_v22, %v1922_v60  ;;  %v2262_v7 = vshrl.u32 %v2261_v21, 23  ;;  %vm10324_vm6 = vcmp.le.f32.partialorder %v1946_v32, 0.7853982  ;;  %v2131_v29 = vmul.f32 %v10117_v3, %v8794_v39  ;;  %v8585_v21 = vld [vmem:[%s8643_s15 + $0x38] sm:$0xff] }
 0x246   : > { %v2012_v45 = vsub.s32 0, %v10301_v11  ;;  %5931 = vperm.xlu0 %8303, %v8580_v18   ;;  %v10333_v9 = vand.u32 3, %v1935_v41  ;;  %v2573_v32 = vand.u32 2139095040, %v10309_v57  ;;  %v2035_v58 = vsel %vm10324_vm6, 0, %v2033_v52  ;;  %v8584_v41 = vld [vmem:[%s8643_s15 + $0x50] sm:$0xff] }
 0x247   : > { %v1926_v59 = vxor.u32 2147483648, %v1925_v6  ;;  %5919 = vperm.xlu1 %8302, %v8581_v0   ;;  %v7814_v25 = vadd.s32 4294967169, %v2262_v7  ;;  %v2266_v3 = vor.u32 8388608, %v2265_v36  ;;  %v2570_v12 = vand.u32 2147483647, %v10309_v57 }
 0x248   : > { %v7811_v50 = vmin.u32 %v2012_v45, %v10301_v11  ;;  %v2574_v14 = vshrl.u32 %v2573_v32, 23  ;;  %vm1941_vm7 = vcmp.eq.s32.totalorder %v10333_v9, 2  ;;  %v10345_v60 = vadd.f32 %v2131_v29, %v8804_v47 }
 0x249   : > { %v1927_v20 = vsel %vm1844_vm3, %v1926_v59, %v1925_v6  ;;  %v2268_v30 = vadd.s32 1, %v7814_v25  ;;  %vm1938_vm10 = vcmp.eq.s32.totalorder %v10333_v9, 0  ;;  %v2002_v40 = vadd.s32 %v10253_v43, %v10259_v24 }
 0x24a   : > { %v1930_v19 = vsel %vm10291_vm4, %v10056_v61, %v1927_v20  ;;  %v2014_v63 = vclz %v7811_v50  ;;  %5939 = vperm.xlu0 %8303, %v8582_v10   ;;  %v7826_v22 = vadd.s32 4294967169, %v2574_v14  ;;  %v10350_v42 = vadd.s32 3, %v2035_v58  ;;  %v10367_v20 = vpop.permute.xlu1 %2119  ;;  %v8586_v10 = vld [vmem:[%s8643_s15 + $0x60] sm:$0xff] }
 0x24b   : > { %8360 = vcosq.f32 %v1930_v19  ;;  %5927 = vperm.xlu1 %8302, %v8583_v54   ;;  %vm2269_vm8 = vcmp.gt.s32.totalorder %v2268_v30, 0  ;;  %vm1937_vm12 = vcmp.lt.s32.totalorder %v10333_v9, 2  ;;  %v10353_v26 = vshll.u32 %v2266_v3, 8  ;;  %v8587_v54 = vld [vmem:[%s8643_s15 + $0x48] sm:$0xff] }
 0x24c   : > { %8362 = vsinq.f32 %v1930_v19  ;;  %v7812_v15 = vadd.s32 4294967294, %v2014_v63  ;;  %v2270_v2 = vsel %vm2269_vm8, %v2268_v30, 0  ;;  %v10357_v8 = vand.u32 8388607, %v2570_v12 }
 0x24d   : > { %v2272_v28 = vand.u32 31, %v2270_v2  ;;  %vm1934_vm11 = vweird.f32 %v10056_v61  ;;  %v10360_v43 = vshrl.u32 %v2270_v2, 5  ;;  %v10362_v24 = vadd.s32 1, %v7826_v22 }
 0x24e   : > { %vm7813_vm9 = vcmp.lt.s32.totalorder %v7812_v15, 0  ;;  %5947 = vperm.xlu0 %8303, %v8584_v41   ;;  %vm2038_vm4 = vweird.f32 %v10101_v13 }
 0x24f   : > { %v2017_v6 = vsel %vm7813_vm9, 0, %v7812_v15  ;;  %5935 = vperm.xlu1 %8302, %v8585_v21   ;;  %v2273_v52 = vsub.s32 32, %v2272_v28  ;;  %v2275_v7 = vshll.u32 %v8606_v23, %v2272_v28  ;;  %v2278_v36 = vshll.u32 %v14448_v49, %v2272_v28 }
 0x250   : > { %v2018_v5 = vsub.s32 32, %v2017_v6  ;;  %v2022_v59 = vsub.s32 4294967266, %v2017_v6  ;;  %v2019_v45 = vshll.u32 %v10301_v11, %v2017_v6  ;;  %v2281_v29 = vshll.u32 %v14446_v51, %v2272_v28 }
 0x251   : > { %v2284_v18 = vshll.u32 %v14450_v53, %v2272_v28  ;;  %v2276_v25 = vshrl.u32 %v14448_v49, %v2273_v52  ;;  %v2279_v11 = vshrl.u32 %v14446_v51, %v2273_v52  ;;  %v2282_v32 = vshrl.u32 %v14450_v53, %v2273_v52 }
 0x252   : > { %v2020_v19 = vshrl.u32 %v2002_v40, %v2018_v5  ;;  %v2023_v50 = vadd.s32 127, %v2022_v59  ;;  %v2287_v63 = vshll.u32 %v14455_v55, %v2272_v28  ;;  %v2285_v15 = vshrl.u32 %v14455_v55, %v2273_v52  ;;  %5955 = vperm.xlu0 %8303, %v8586_v10  }
 0x253   : > { %5943 = vperm.xlu1 %8302, %v8587_v54   ;;  %v2274_v40 = vshrl.u32 %v8606_v23, %v2273_v52  ;;  %v2277_v2 = vor.u32 %v2276_v25, %v2275_v7  ;;  %v2283_v6 = vor.u32 %v2282_v32, %v2281_v29  ;;  %v2280_v59 = vor.u32 %v2279_v11, %v2278_v36  ;;  %v8588_v36 = vld [vmem:[%s8643_s15 + $0x70] sm:$0xff] }
 0x254   : > { %v2021_v30 = vor.u32 %v2020_v19, %v2019_v45  ;;  %v2024_v14 = vshll.u32 %v2023_v50, 23  ;;  %v2286_v41 = vor.u32 %v2285_v15, %v2284_v18  ;;  %v2288_v19 = vshrl.u32 %v14453_v1, %v2273_v52  ;;  %v10387_v50 = vpop.permute.xlu1 %2127  ;;  %v8589_v18 = vld [vmem:[%s8643_s15 + $0x58] sm:$0xff] }
 0x255   : > { %v8361_v0 = vpop.eup %8360  ;;  %vm2290_vm13 = vcmp.lt.s32.totalorder %v10360_v43, 1  ;;  %vm2292_vm14 = vcmp.lt.s32.totalorder %v10360_v43, 3  ;;  %vm2293_vm15 = vcmp.lt.s32.totalorder %v10360_v43, 4  ;;  %vm2291_vm0 = vcmp.lt.s32.totalorder %v10360_v43, 2 }
 0x256   : > { %v8363_v58 = vpop.eup %8362  ;;  %v1942_v3 = vxor.u32 2147483648, %v8361_v0  ;;  %v2025_v5 = vor.u32 4788187, %v2024_v14  ;;  %v2028_v45 = vcvt.s32.f32 %v2021_v30  ;;  %5963 = vperm.xlu0 %8303, %v8588_v36   ;;  %v2289_v52 = vor.u32 %v2288_v19, %v2287_v63 }
 0x257   : > { %v1939_v22 = vxor.u32 2147483648, %v8363_v58  ;;  %5951 = vperm.xlu1 %8302, %v8589_v18   ;;  %v2294_v25 = vsel %vm2290_vm13, %v2274_v40, %v2277_v2  ;;  %v2295_v9 = vsel %vm2293_vm15, %v2283_v6, 2102212464  ;;  %v2299_v61 = vsel %vm2293_vm15, %v2286_v41, 920167782  ;;  %v8591_v18 = vld [vmem:[%s8643_s15 + $0x78] sm:$0xff] }
 0x258   : > { %v1943_v28 = vsel %vm1941_vm7, %v1942_v3, %v8363_v58  ;;  %v2026_v29 = vand.u32 2147483647, %v2025_v5  ;;  %v2296_v32 = vsel %vm2292_vm14, %v2280_v59, %v2295_v9  ;;  %v2298_v58 = vsel %vm2290_vm13, %v2277_v2, %v2280_v59 }
 0x259   : > { %v1940_v21 = vsel %vm1938_vm10, %v8361_v0, %v1939_v22  ;;  %v2300_v63 = vsel %vm2292_vm14, %v2283_v6, %v2299_v61  ;;  %v2302_v3 = vsel %vm2290_vm13, %v2280_v59, %v2283_v6  ;;  %v2303_v30 = vsel %vm2293_vm15, %v2289_v52, 1326507024  ;;  %v8590_v22 = vld [vmem:[%s8643_s15 + $0x68] sm:$0xff]  ;;  %v2168_v6 = vpop.permute.xlu1 %2167 }
 0x25a   : > { %v1944_v7 = vsel %vm1937_vm12, %v1940_v21, %v1943_v28  ;;  %v2029_v11 = vmul.f32 %v2028_v45, %v2026_v29  ;;  %v2297_v15 = vsel %vm2291_vm0, %v2294_v25, %v2296_v32  ;;  %v2301_v10 = vsel %vm2291_vm0, %v2298_v58, %v2300_v63 }
 0x25b   : > { %v1945_v0 = vsel %vm1934_vm11, nan, %v1944_v7  ;;  %v2304_v54 = vsel %vm2292_vm14, %v2286_v41, %v2303_v30  ;;  %5959 = vperm.xlu1 %8302, %v8590_v22   ;;  %v10419_v2 = vmul.u32.u64.low %v10353_v26, %v2301_v10  ;;  %v10420_v28 = vmul.u32.u64.high %v10353_v26, %v2301_v10, %v10419_v2 }
 0x25c   : > { %2064 = vst [vmem:[%s9106_s21 + $0x1c0] sm:$0xff] %v1945_v0  ;;  %v2030_v14 = vxor.u32 2147483648, %v2029_v11  ;;  %v2305_v40 = vsel %vm2291_vm0, %v2302_v3, %v2304_v54  ;;  %vm2581_vm1 = vcmp.gt.s32.totalorder %v10362_v24, 0  ;;  %v10436_v45 = vmul.f32 %v10239_v34, %v8794_v39 }
 0x25d   : > { %v10427_v59 = vmul.u32.u64.low %v10353_v26, %v2305_v40  ;;  %v10428_v21 = vmul.u32.u64.high %v10353_v26, %v2305_v40, %v10427_v59  ;;  %v2582_v43 = vsel %vm2581_vm1, %v10362_v24, 0  ;;  %v10440_v19 = vmul.f32 %v10135_v38, %v8794_v39 }
 0x25e   : > { %v2031_v5 = vsel %vm1948_vm5, %v2030_v14, %v2029_v11  ;;  %v2584_v7 = vand.u32 31, %v2582_v43  ;;  %v10443_v29 = vand.u32 3, %v10350_v42  ;;  %v2578_v36 = vor.u32 8388608, %v10357_v8 }
 0x25f   : > { %v2034_v41 = vsel %vm10324_vm6, %v10101_v13, %v2031_v5  ;;  %v2227_v24 = vmul.f32 %v2168_v6, %v8807_v48  ;;  %5967 = vperm.xlu1 %8302, %v8591_v18   ;;  %v2313_v16 = vmul.u32 %v10353_v26, %v2297_v15  ;;  %v2316_v34 = vadd.s32 1, %v10420_v28 }
 0x260   : > { %8364 = vcosq.f32 %v2034_v41  ;;  %v2585_v0 = vsub.s32 32, %v2584_v7  ;;  %vm2315_vm2 = vc.u32 %v10428_v21, %v10419_v2  ;;  %v10452_v38 = vshrl.u32 %v2582_v43, 5 }
 0x261   : > { %8366 = vsinq.f32 %v2034_v41  ;;  %v2587_v42 = vshll.u32 %v8606_v23, %v2584_v7  ;;  %v2590_v52 = vshll.u32 %v14448_v49, %v2584_v7  ;;  %v2317_v8 = vsel %vm2315_vm2, %v2316_v34, %v10420_v28 }
 0x262   : > { %v2588_v25 = vshrl.u32 %v14448_v49, %v2585_v0  ;;  %v2591_v9 = vshrl.u32 %v14446_v51, %v2585_v0  ;;  %v2593_v26 = vshll.u32 %v14446_v51, %v2584_v7  ;;  %v2318_v11 = vadd.s32 %v2317_v8, %v2313_v16 }
 0x263   : > { %v2594_v32 = vshrl.u32 %v14450_v53, %v2585_v0  ;;  %v2596_v58 = vshll.u32 %v14450_v53, %v2584_v7  ;;  %v2597_v61 = vshrl.u32 %v14455_v55, %v2585_v0  ;;  %v2599_v30 = vshll.u32 %v14455_v55, %v2584_v7 }
 0x264   : > { %v2589_v63 = vor.u32 %v2588_v25, %v2587_v42  ;;  %v2592_v3 = vor.u32 %v2591_v9, %v2590_v52  ;;  %v2600_v14 = vshrl.u32 %v14453_v1, %v2585_v0  ;;  %vm2041_vm3 = vcmp.lt.s32.totalorder %v10443_v29, 2 }
 0x265   : > { %v2319_v15 = vadd.s32 536870912, %v2318_v11  ;;  %v2595_v10 = vor.u32 %v2594_v32, %v2593_v26  ;;  %v2598_v54 = vor.u32 %v2597_v61, %v2596_v58  ;;  %v10467_v22 = vadd.f32 %v2227_v24, %v10345_v60 }
 0x266   : > { %vm2042_vm5 = vcmp.eq.s32.totalorder %v10443_v29, 0  ;;  %vm2045_vm6 = vcmp.eq.s32.totalorder %v10443_v29, 2  ;;  %v2601_v40 = vor.u32 %v2600_v14, %v2599_v30  ;;  %v2618_v28 = vshll.u32 %v2578_v36, 8 }
 0x267   : > { %v2320_v6 = vshrl.u32 %v2319_v15, 30  ;;  %vm2602_vm7 = vcmp.lt.s32.totalorder %v10452_v38, 1  ;;  %vm2604_vm8 = vcmp.lt.s32.totalorder %v10452_v38, 3  ;;  %vm2605_vm10 = vcmp.lt.s32.totalorder %v10452_v38, 4 }
 0x268   : > { %v2610_v5 = vsel %vm2602_vm7, %v2589_v63, %v2592_v3  ;;  %v2611_v60 = vsel %vm2605_vm10, %v2598_v54, 920167782  ;;  %v2614_v59 = vsel %vm2602_vm7, %v2592_v3, %v2595_v10  ;;  %v2615_v43 = vsel %vm2605_vm10, %v2601_v40, 1326507024 }
 0x269   : > { %v2321_v7 = vshll.u32 %v2320_v6, 30  ;;  %v2586_v24 = vshrl.u32 %v8606_v23, %v2585_v0  ;;  %v2612_v36 = vsel %vm2604_vm8, %v2595_v10, %v2611_v60  ;;  %v2365_v18 = vand.u32 2139095040, %v10467_v22 }
 0x26a   : > { %v8365_v41 = vpop.eup %8364  ;;  %vm2603_vm9 = vcmp.lt.s32.totalorder %v10452_v38, 2  ;;  %v2607_v42 = vsel %vm2605_vm10, %v2595_v10, 2102212464  ;;  %v2616_v52 = vsel %vm2604_vm8, %v2598_v54, %v2615_v43  ;;  %v2344_v54 = vsub.s32 4, %v2320_v6 }
 0x26b   : > { %v8367_v16 = vpop.eup %8366  ;;  %v2046_v34 = vxor.u32 2147483648, %v8365_v41  ;;  %v10486_v25 = vsub.s32 %v2318_v11, %v2321_v7  ;;  %v2613_v0 = vsel %vm2603_vm9, %v2610_v5, %v2612_v36  ;;  %v2617_v9 = vsel %vm2603_vm9, %v2614_v59, %v2616_v52  ;;  %v2184_v7 = vpop.permute.xlu0 %2183 }
 0x26c   : > { %v2043_v8 = vxor.u32 2147483648, %v8367_v16  ;;  %v2606_v32 = vsel %vm2602_vm7, %v2586_v24, %v2589_v63  ;;  %v10496_v58 = vmul.u32.u64.low %v2618_v28, %v2617_v9  ;;  %v10497_v61 = vmul.u32.u64.high %v2618_v28, %v2617_v9, %v10496_v58 }
 0x26d   : > { %v2047_v26 = vsel %vm2045_vm6, %v2046_v34, %v8367_v16  ;;  %v2324_v30 = vsub.s32 0, %v10486_v25  ;;  %v2608_v14 = vsel %vm2604_vm8, %v2592_v3, %v2607_v42  ;;  %v2366_v15 = vshrl.u32 %v2365_v18, 23 }
 0x26e   : > { %v2044_v11 = vsel %vm2042_vm5, %v8365_v41, %v2043_v8  ;;  %v10506_v40 = vmul.u32.u64.low %v2618_v28, %v2613_v0  ;;  %v10507_v5 = vmul.u32.u64.high %v2618_v28, %v2613_v0, %v10506_v40  ;;  %v10516_v43 = vadd.f32 %v10436_v45, %v8804_v47 }
 0x26f   : > { %v2048_v10 = vsel %vm2041_vm3, %v2044_v11, %v2047_v26  ;;  %v7815_v60 = vmin.u32 %v2324_v30, %v10486_v25  ;;  %v7818_v59 = vadd.s32 4294967169, %v2366_v15  ;;  %v2609_v29 = vsel %vm2603_vm9, %v2606_v32, %v2608_v14 }
 0x270   : > { %v2049_v63 = vsel %vm2038_vm4, nan, %v2048_v10  ;;  %v2362_v3 = vand.u32 2147483647, %v10467_v22  ;;  %v10523_v41 = vadd.f32 %v10440_v19, %v8804_v47  ;;  %vm2260_vm12 = vcmp.lt.s32.totalorder %v10298_v33, 0 }
 0x271   : > { %2065 = vst [vmem:[%s9106_s21 + $0x1e0] sm:$0xff] %v2049_v63  ;;  %v2326_v13 = vclz %v7815_v60  ;;  %vm2627_vm11 = vc.u32 %v10497_v61, %v10506_v40  ;;  %v2135_v45 = vmul.f32 %v10266_v4, %v8794_v39  ;;  %v2345_v38 = vsel %vm2260_vm12, %v2344_v54, %v2320_v6 }
 0x272   : > { %v2628_v24 = vadd.s32 1, %v10507_v5  ;;  %v2372_v36 = vadd.s32 1, %v7818_v59  ;;  %v10535_v19 = vmul.f32 %v10155_v35, %v8794_v39  ;;  %vm10539_vm13 = vcmp.le.f32.partialorder %v2258_v44, 0.7853982 }
 0x273   : > { %v7816_v16 = vadd.s32 4294967294, %v2326_v13  ;;  %v2625_v34 = vmul.u32 %v2618_v28, %v2609_v29  ;;  %v2369_v6 = vand.u32 8388607, %v2362_v3  ;;  %v2231_v42 = vmul.f32 %v2184_v7, %v8807_v48 }
 0x274   : > { %v2629_v4 = vsel %vm2627_vm11, %v2628_v24, %v10507_v5  ;;  %vm2373_vm14 = vcmp.gt.s32.totalorder %v2372_v36, 0  ;;  %v2347_v35 = vsel %vm10539_vm13, 0, %v2345_v38  ;;  %v2151_v44 = vadd.f32 %v2135_v45, %v8804_v47 }
 0x275   : > { %vm7817_vm15 = vcmp.lt.s32.totalorder %v7816_v16, 0  ;;  %v2630_v52 = vadd.s32 %v2629_v4, %v2625_v34  ;;  %v2374_v8 = vsel %vm2373_vm14, %v2372_v36, 0  ;;  %v10552_v0 = vmul.f32 %v10283_v17, %v8794_v39 }
 0x276   : > { %v2329_v28 = vsel %vm7817_vm15, 0, %v7816_v16  ;;  %v2376_v9 = vand.u32 31, %v2374_v8  ;;  %v2314_v26 = vadd.s32 %v10419_v2, %v10428_v21  ;;  %v10556_v30 = vadd.s32 3, %v2347_v35 }
 0x277   : > { %v2330_v32 = vsub.s32 32, %v2329_v28  ;;  %v2334_v58 = vsub.s32 4294967266, %v2329_v28  ;;  %v2631_v11 = vadd.s32 536870912, %v2630_v52  ;;  %v2370_v14 = vor.u32 8388608, %v2369_v6 }
 0x278   : > { %v2377_v15 = vsub.s32 32, %v2376_v9  ;;  %v10558_v10 = vadd.f32 %v2231_v42, %v2151_v44  ;;  %v2331_v54 = vshll.u32 %v10486_v25, %v2329_v28  ;;  %v2379_v60 = vshll.u32 %v8606_v23, %v2376_v9 }
 0x279   : > { %v2332_v5 = vshrl.u32 %v2314_v26, %v2330_v32  ;;  %v2335_v63 = vadd.s32 127, %v2334_v58  ;;  %v2632_v17 = vshrl.u32 %v2631_v11, 30  ;;  %v2382_v45 = vshll.u32 %v14448_v49, %v2376_v9 }
 0x27a   : > { %v2380_v59 = vshrl.u32 %v14448_v49, %v2377_v15  ;;  %v2383_v2 = vshrl.u32 %v14446_v51, %v2377_v15  ;;  %v2386_v21 = vshrl.u32 %v14450_v53, %v2377_v15  ;;  %v2375_v38 = vshrl.u32 %v2374_v8, 5 }
 0x27b   : > { %v2333_v29 = vor.u32 %v2332_v5, %v2331_v54  ;;  %v2336_v13 = vshll.u32 %v2335_v63, 23  ;;  %v2633_v7 = vshll.u32 %v2632_v17, 30  ;;  %v2385_v24 = vshll.u32 %v14446_v51, %v2376_v9 }
 0x27c   : > { %v2388_v25 = vshll.u32 %v14450_v53, %v2376_v9  ;;  %v2389_v36 = vshrl.u32 %v14455_v55, %v2377_v15  ;;  %v2381_v4 = vor.u32 %v2380_v59, %v2379_v60  ;;  %v2384_v6 = vor.u32 %v2383_v2, %v2382_v45 }
 0x27d   : > { %v2337_v16 = vor.u32 4788187, %v2336_v13  ;;  %v10569_v34 = vsub.s32 %v2630_v52, %v2633_v7  ;;  %vm2572_vm0 = vcmp.lt.s32.totalorder %v10309_v57, 0  ;;  %v2387_v42 = vor.u32 %v2386_v21, %v2385_v24 }
 0x27e   : > { %v2390_v35 = vor.u32 %v2389_v36, %v2388_v25  ;;  %v2391_v44 = vshll.u32 %v14455_v55, %v2376_v9  ;;  %v2392_v28 = vshrl.u32 %v14453_v1, %v2377_v15  ;;  %v2340_v26 = vcvt.s32.f32 %v2333_v29 }
 0x27f   : > { %v2338_v8 = vand.u32 2147483647, %v2337_v16  ;;  %v2626_v32 = vadd.s32 %v10506_v40, %v10497_v61  ;;  %v2636_v58 = vsub.s32 0, %v10569_v34  ;;  %v2378_v52 = vshrl.u32 %v8606_v23, %v2377_v15 }
 0x280   : > { %v2393_v11 = vor.u32 %v2392_v28, %v2391_v44  ;;  %v2410_v54 = vshll.u32 %v2370_v14, 8  ;;  %v2781_v5 = vand.u32 2139095040, %v10558_v10  ;;  %vm2394_vm1 = vcmp.lt.s32.totalorder %v2375_v38, 1 }
 0x281   : > { %v2341_v63 = vmul.f32 %v2340_v26, %v2338_v8  ;;  %v7827_v60 = vmin.u32 %v2636_v58, %v10569_v34  ;;  %vm2397_vm2 = vcmp.lt.s32.totalorder %v2375_v38, 4  ;;  %v2656_v9 = vsub.s32 4, %v2632_v17  ;;  %v2172_v8 = vpop.permute.xlu1 %2171 }
 0x282   : > { %v2399_v59 = vsel %vm2397_vm2, %v2387_v42, 2102212464  ;;  %v2402_v2 = vsel %vm2394_vm1, %v2381_v4, %v2384_v6  ;;  %v2403_v21 = vsel %vm2397_vm2, %v2390_v35, 920167782  ;;  %vm2395_vm3 = vcmp.lt.s32.totalorder %v2375_v38, 2 }
 0x283   : > { %v2342_v29 = vxor.u32 2147483648, %v2341_v63  ;;  %v2638_v13 = vclz %v7827_v60  ;;  %vm2396_vm4 = vcmp.lt.s32.totalorder %v2375_v38, 3  ;;  %v2398_v61 = vsel %vm2394_vm1, %v2378_v52, %v2381_v4 }
 0x284   : > { %v2404_v40 = vsel %vm2396_vm4, %v2387_v42, %v2403_v21  ;;  %v2406_v15 = vsel %vm2394_vm1, %v2384_v6, %v2387_v42  ;;  %v2407_v7 = vsel %vm2397_vm2, %v2393_v11, 1326507024  ;;  %v2400_v24 = vsel %vm2396_vm4, %v2384_v6, %v2399_v59 }
 0x285   : > { %v2343_v14 = vsel %vm2260_vm12, %v2342_v29, %v2341_v63  ;;  %v7828_v45 = vadd.s32 4294967294, %v2638_v13  ;;  %v2405_v25 = vsel %vm2395_vm3, %v2402_v2, %v2404_v40  ;;  %v2408_v16 = vsel %vm2396_vm4, %v2390_v35, %v2407_v7 }
 0x286   : > { %v2346_v36 = vsel %vm10539_vm13, %v10298_v33, %v2343_v14  ;;  %v10586_v44 = vmul.u32.u64.low %v2410_v54, %v2405_v25  ;;  %v10587_v28 = vmul.u32.u64.high %v2410_v54, %v2405_v25, %v10586_v44  ;;  %v2657_v4 = vsel %vm2572_vm0, %v2656_v9, %v2632_v17  ;;  %v2192_v14 = vpop.permute.xlu0 %2191 }
 0x287   : > { %8368 = vcosq.f32 %v2346_v36  ;;  %vm7829_vm5 = vcmp.lt.s32.totalorder %v7828_v45, 0  ;;  %v2409_v42 = vsel %vm2395_vm3, %v2406_v15, %v2408_v16  ;;  %v2401_v35 = vsel %vm2395_vm3, %v2398_v61, %v2400_v24 }
 0x288   : > { %8370 = vsinq.f32 %v2346_v36  ;;  %v2641_v6 = vsel %vm7829_vm5, 0, %v7828_v45  ;;  %v10592_v26 = vmul.u32.u64.low %v2410_v54, %v2409_v42  ;;  %v10593_v58 = vmul.u32.u64.high %v2410_v54, %v2409_v42, %v10592_v26 }
 0x289   : > { %v2642_v52 = vsub.s32 32, %v2641_v6  ;;  %v2646_v18 = vsub.s32 4294967266, %v2641_v6  ;;  %v2782_v11 = vshrl.u32 %v2781_v5, 23  ;;  %v2352_v63 = vand.u32 3, %v10556_v30 }
 0x28a   : > { %vm10599_vm6 = vcmp.le.f32.partialorder %v2570_v12, 0.7853982  ;;  %v2420_v17 = vadd.s32 1, %v10587_v28  ;;  %v2228_v9 = vmul.f32 %v2172_v8, %v8807_v48  ;;  %v2643_v59 = vshll.u32 %v10569_v34, %v2641_v6 }
 0x28b   : > { %v2644_v2 = vshrl.u32 %v2626_v32, %v2642_v52  ;;  %v2647_v21 = vadd.s32 127, %v2646_v18  ;;  %v7834_v29 = vadd.s32 4294967169, %v2782_v11  ;;  %v2659_v38 = vsel %vm10599_vm6, 0, %v2657_v4 }
 0x28c   : > { %v2417_v5 = vmul.u32 %v2410_v54, %v2401_v35  ;;  %vm2419_vm7 = vc.u32 %v10593_v58, %v10586_v44  ;;  %v2778_v12 = vand.u32 2147483647, %v10558_v10  ;;  %v10613_v15 = vadd.f32 %v10552_v0, %v8804_v47 }
 0x28d   : > { %v2645_v30 = vor.u32 %v2644_v2, %v2643_v59  ;;  %v2648_v13 = vshll.u32 %v2647_v21, 23  ;;  %v2421_v61 = vsel %vm2419_vm7, %v2420_v17, %v10587_v28  ;;  %v2788_v40 = vadd.s32 1, %v7834_v29 }
 0x28e   : > { %vm2350_vm8 = vweird.f32 %v10298_v33  ;;  %v2422_v34 = vadd.s32 %v2421_v61, %v2417_v5  ;;  %v10617_v32 = vadd.f32 %v2228_v9, %v10516_v43  ;;  %vm2353_vm10 = vcmp.lt.s32.totalorder %v2352_v63, 2 }
 0x28f   : > { %v2649_v54 = vor.u32 4788187, %v2648_v13  ;;  %v2663_v7 = vadd.s32 3, %v2659_v38  ;;  %vm2789_vm9 = vcmp.gt.s32.totalorder %v2788_v40, 0  ;;  %vm2354_vm12 = vcmp.eq.s32.totalorder %v2352_v63, 0 }
 0x290   : > { %vm2357_vm11 = vcmp.eq.s32.totalorder %v2352_v63, 2  ;;  %v2423_v45 = vadd.s32 536870912, %v2422_v34  ;;  %v2790_v24 = vsel %vm2789_vm9, %v2788_v40, 0  ;;  %v2652_v16 = vcvt.s32.f32 %v2645_v30 }
 0x291   : > { %v8369_v25 = vpop.eup %8368  ;;  %v2650_v36 = vand.u32 2147483647, %v2649_v54  ;;  %v2785_v0 = vand.u32 8388607, %v2778_v12  ;;  %v2792_v28 = vand.u32 31, %v2790_v24  ;;  %v2469_v8 = vand.u32 2139095040, %v10617_v32 }
 0x292   : > { %v8371_v4 = vpop.eup %8370  ;;  %v2358_v42 = vxor.u32 2147483648, %v8369_v25  ;;  %v2424_v43 = vshrl.u32 %v2423_v45, 30  ;;  %v10623_v6 = vmul.f32 %v2192_v14, %v8807_v48  ;;  %v10625_v18 = vand.u32 3, %v2663_v7 }
 0x293   : > { %v2355_v26 = vxor.u32 2147483648, %v8371_v4  ;;  %v2653_v52 = vmul.f32 %v2652_v16, %v2650_v36  ;;  %v2793_v35 = vsub.s32 32, %v2792_v28  ;;  %vm2364_vm13 = vcmp.lt.s32.totalorder %v10467_v22, 0 }
 0x294   : > { %v2359_v11 = vsel %vm2357_vm11, %v2358_v42, %v8371_v4  ;;  %v10630_v17 = vadd.s32 %v10586_v44, %v10593_v58  ;;  %v2425_v9 = vshll.u32 %v2424_v43, 30  ;;  %v2466_v59 = vand.u32 2147483647, %v10617_v32 }
 0x295   : > { %v2356_v2 = vsel %vm2354_vm12, %v8369_v25, %v2355_v26  ;;  %v2654_v21 = vxor.u32 2147483648, %v2653_v52  ;;  %v2786_v29 = vor.u32 8388608, %v2785_v0  ;;  %v2796_v38 = vshrl.u32 %v14448_v49, %v2793_v35 }
 0x296   : > { %v2360_v5 = vsel %vm2353_vm10, %v2356_v2, %v2359_v11  ;;  %v10636_v30 = vsub.s32 %v2422_v34, %v2425_v9  ;;  %v2799_v13 = vshrl.u32 %v14446_v51, %v2793_v35  ;;  %v2470_v61 = vshrl.u32 %v2469_v8, 23 }
 0x297   : > { %v2361_v44 = vsel %vm2350_vm8, nan, %v2360_v5  ;;  %v2655_v58 = vsel %vm2572_vm0, %v2654_v21, %v2653_v52  ;;  %v10643_v40 = vshrl.u32 %v2790_v24, 5  ;;  %v2795_v54 = vshll.u32 %v8606_v23, %v2792_v28 }
 0x298   : > { %3922 = vst [vmem:[%s9106_s21 + $0x8] sm:$0xff] %v2361_v44  ;;  %v2658_v63 = vsel %vm10599_vm6, %v10309_v57, %v2655_v58  ;;  %v2428_v34 = vsub.s32 0, %v10636_v30  ;;  %v2448_v7 = vsub.s32 4, %v2424_v43  ;;  %v2798_v14 = vshll.u32 %v14448_v49, %v2792_v28 }
 0x299   : > { %8372 = vcosq.f32 %v2658_v63  ;;  %v2797_v33 = vor.u32 %v2796_v38, %v2795_v54  ;;  %v2801_v45 = vshll.u32 %v14446_v51, %v2792_v28  ;;  %v2802_v25 = vshrl.u32 %v14450_v53, %v2793_v35 }
 0x29a   : > { %8374 = vsinq.f32 %v2658_v63  ;;  %v7819_v24 = vmin.u32 %v2428_v34, %v10636_v30  ;;  %v2800_v36 = vor.u32 %v2799_v13, %v2798_v14  ;;  %v2805_v16 = vshrl.u32 %v14455_v55, %v2793_v35 }
 0x29b   : > { %v2803_v0 = vor.u32 %v2802_v25, %v2801_v45  ;;  %v2804_v60 = vshll.u32 %v14450_v53, %v2792_v28  ;;  %v2807_v4 = vshll.u32 %v14455_v55, %v2792_v28  ;;  %v2808_v42 = vshrl.u32 %v14453_v1, %v2793_v35 }
 0x29c   : > { %v2430_v8 = vclz %v7819_v24  ;;  %v2794_v26 = vshrl.u32 %v8606_v23, %v2793_v35  ;;  %v10660_v52 = vshll.u32 %v2786_v29, 8  ;;  %v7822_v11 = vadd.s32 4294967169, %v2470_v61 }
 0x29d   : > { %vm2669_vm14 = vcmp.eq.s32.totalorder %v10625_v18, 2  ;;  %v10665_v9 = vsel %vm2364_vm13, %v2448_v7, %v2424_v43  ;;  %v2806_v2 = vor.u32 %v2805_v16, %v2804_v60  ;;  %v2809_v21 = vor.u32 %v2808_v42, %v2807_v4 }
 0x29e   : > { %vm2810_vm15 = vcmp.lt.s32.totalorder %v10643_v40, 1  ;;  %vm2666_vm0 = vcmp.eq.s32.totalorder %v10625_v18, 0  ;;  %vm10671_vm1 = vcmp.le.f32.partialorder %v2362_v3, 0.7853982  ;;  %v7820_v35 = vadd.s32 4294967294, %v2430_v8 }
 0x29f   : > { %vm2812_vm2 = vcmp.lt.s32.totalorder %v10643_v40, 3  ;;  %vm2813_vm3 = vcmp.lt.s32.totalorder %v10643_v40, 4  ;;  %v2818_v43 = vsel %vm2810_vm15, %v2797_v33, %v2800_v36  ;;  %vm2665_vm4 = vcmp.lt.s32.totalorder %v10625_v18, 2 }
 0x2a0   : > { %v2815_v29 = vsel %vm2813_vm3, %v2803_v0, 2102212464  ;;  %v2819_v38 = vsel %vm2813_vm3, %v2806_v2, 920167782  ;;  %v2822_v5 = vsel %vm2810_vm15, %v2800_v36, %v2803_v0  ;;  %v2823_v13 = vsel %vm2813_vm3, %v2809_v21, 1326507024 }
 0x2a1   : > { %vm2662_vm5 = vweird.f32 %v10309_v57  ;;  %vm7821_vm6 = vcmp.lt.s32.totalorder %v7820_v35, 0  ;;  %vm2811_vm7 = vcmp.lt.s32.totalorder %v10643_v40, 2  ;;  %v2820_v3 = vsel %vm2812_vm2, %v2803_v0, %v2819_v38 }
 0x2a2   : > { %v2824_v61 = vsel %vm2812_vm2, %v2806_v2, %v2823_v13  ;;  %v2433_v44 = vsel %vm7821_vm6, 0, %v7820_v35  ;;  %v2814_v58 = vsel %vm2810_vm15, %v2794_v26, %v2797_v33  ;;  %v2821_v54 = vsel %vm2811_vm7, %v2818_v43, %v2820_v3 }
 0x2a3   : > { %v2825_v63 = vsel %vm2811_vm7, %v2822_v5, %v2824_v61  ;;  %v2434_v34 = vsub.s32 32, %v2433_v44  ;;  %v2435_v7 = vshll.u32 %v10636_v30, %v2433_v44  ;;  %v2438_v14 = vsub.s32 4294967266, %v2433_v44  ;;  %v8373_v25 = vpop.eup %8372 }
 0x2a4   : > { %v2816_v45 = vsel %vm2812_vm2, %v2800_v36, %v2815_v29  ;;  %v10698_v24 = vmul.u32.u64.low %v10660_v52, %v2825_v63  ;;  %v10699_v16 = vmul.u32.u64.high %v10660_v52, %v2825_v63, %v10698_v24  ;;  %v8375_v60 = vpop.eup %8374  ;;  %v2670_v4 = vxor.u32 2147483648, %v8373_v25 }
 0x2a5   : > { %v10702_v33 = vmul.u32.u64.low %v10660_v52, %v2821_v54  ;;  %v10703_v0 = vmul.u32.u64.high %v10660_v52, %v2821_v54, %v10702_v33  ;;  %v2436_v42 = vshrl.u32 %v10630_v17, %v2434_v34  ;;  %v2439_v8 = vadd.s32 127, %v2438_v14 }
 0x2a6   : > { %v2476_v30 = vadd.s32 1, %v7822_v11  ;;  %v2667_v26 = vxor.u32 2147483648, %v8375_v60  ;;  %v2817_v36 = vsel %vm2811_vm7, %v2814_v58, %v2816_v45  ;;  %v2473_v2 = vand.u32 8388607, %v2466_v59 }
 0x2a7   : > { %v10713_v21 = vadd.f32 %v10623_v6, %v10613_v15  ;;  %v2671_v35 = vsel %vm2669_vm14, %v2670_v4, %v8375_v60  ;;  %v2437_v43 = vor.u32 %v2436_v42, %v2435_v7  ;;  %v2440_v29 = vshll.u32 %v2439_v8, 23 }
 0x2a8   : > { %vm2477_vm8 = vcmp.gt.s32.totalorder %v2476_v30, 0  ;;  %v2668_v17 = vsel %vm2666_vm0, %v8373_v25, %v2667_v26  ;;  %v2451_v40 = vsel %vm10671_vm1, 0, %v10665_v9  ;;  %vm2835_vm10 = vc.u32 %v10699_v16, %v10702_v33 }
 0x2a9   : > { %v2836_v15 = vadd.s32 1, %v10703_v0  ;;  %v2672_v6 = vsel %vm2665_vm4, %v2668_v17, %v2671_v35  ;;  %v2441_v11 = vor.u32 4788187, %v2440_v29  ;;  %v2833_v38 = vmul.u32 %v10660_v52, %v2817_v36 }
 0x2aa   : > { %v2478_v5 = vsel %vm2477_vm8, %v2476_v30, 0  ;;  %v10730_v13 = vmul.f32 %v10185_v37, %v8794_v39  ;;  %v2673_v3 = vsel %vm2662_vm5, nan, %v2672_v6  ;;  %v2139_v44 = vmul.f32 %v10306_v31, %v8794_v39 }
 0x2ab   : > { %v2837_v9 = vsel %vm2835_vm10, %v2836_v15, %v10703_v0  ;;  %v2480_v61 = vand.u32 31, %v2478_v5  ;;  %3925 = vst [vmem:[%s9106_s21 + $0x68] sm:$0xff] %v2673_v3  ;;  %v2442_v18 = vand.u32 2147483647, %v2441_v11  ;;  %v2444_v58 = vcvt.s32.f32 %v2437_v43 }
 0x2ac   : > { %v2838_v54 = vadd.s32 %v2837_v9, %v2833_v38  ;;  %v2455_v63 = vadd.s32 3, %v2451_v40  ;;  %v2474_v52 = vor.u32 8388608, %v2473_v2  ;;  %v2989_v7 = vand.u32 2139095040, %v10713_v21 }
 0x2ad   : > { %v2481_v34 = vsub.s32 32, %v2480_v61  ;;  %v2445_v37 = vmul.f32 %v2444_v58, %v2442_v18  ;;  %v2483_v57 = vshll.u32 %v8606_v23, %v2480_v61  ;;  %v2486_v45 = vshll.u32 %v14448_v49, %v2480_v61 }
 0x2ae   : > { %v2839_v14 = vadd.s32 536870912, %v2838_v54  ;;  %v2489_v31 = vshll.u32 %v14446_v51, %v2480_v61  ;;  %v2479_v30 = vshrl.u32 %v2478_v5, 5  ;;  %v2492_v36 = vshll.u32 %v14450_v53, %v2480_v61 }
 0x2af   : > { %v2484_v25 = vshrl.u32 %v14448_v49, %v2481_v34  ;;  %v2487_v24 = vshrl.u32 %v14446_v51, %v2481_v34  ;;  %v2490_v0 = vshrl.u32 %v14450_v53, %v2481_v34  ;;  %v2446_v60 = vxor.u32 2147483648, %v2445_v37 }
 0x2b0   : > { %v10745_v4 = vshrl.u32 %v2839_v14, 30  ;;  %v2493_v42 = vshrl.u32 %v14455_v55, %v2481_v34  ;;  %v2496_v8 = vshrl.u32 %v14453_v1, %v2481_v34  ;;  %v2495_v2 = vshll.u32 %v14455_v55, %v2480_v61 }
 0x2b1   : > { %v2485_v26 = vor.u32 %v2484_v25, %v2483_v57  ;;  %v2447_v35 = vsel %vm2364_vm13, %v2446_v60, %v2445_v37  ;;  %v2488_v29 = vor.u32 %v2487_v24, %v2486_v45  ;;  %v2491_v17 = vor.u32 %v2490_v0, %v2489_v31 }
 0x2b2   : > { %v2841_v43 = vshll.u32 %v10745_v4, 30  ;;  %v2450_v40 = vsel %vm10671_vm1, %v10467_v22, %v2447_v35  ;;  %v2494_v15 = vor.u32 %v2493_v42, %v2492_v36  ;;  %v2497_v6 = vor.u32 %v2496_v8, %v2495_v2 }
 0x2b3   : > { %v10757_v11 = vshll.u32 %v2474_v52, 8  ;;  %8376 = vcosq.f32 %v2450_v40  ;;  %v10759_v38 = vand.u32 3, %v2455_v63  ;;  %v2990_v3 = vshrl.u32 %v2989_v7, 23 }
 0x2b4   : > { %v10761_v5 = vsub.s32 %v2838_v54, %v2841_v43  ;;  %8378 = vsinq.f32 %v2450_v40  ;;  %v2482_v9 = vshrl.u32 %v8606_v23, %v2481_v34  ;;  %vm2498_vm9 = vcmp.lt.s32.totalorder %v2479_v30, 1 }
 0x2b5   : > { %vm2501_vm12 = vcmp.lt.s32.totalorder %v2479_v30, 4  ;;  %vm2499_vm11 = vcmp.lt.s32.totalorder %v2479_v30, 2  ;;  %v2506_v18 = vsel %vm2498_vm9, %v2485_v26, %v2488_v29  ;;  %vm2500_vm13 = vcmp.lt.s32.totalorder %v2479_v30, 3 }
 0x2b6   : > { %v2844_v61 = vsub.s32 0, %v10761_v5  ;;  %v2503_v28 = vsel %vm2501_vm12, %v2491_v17, 2102212464  ;;  %v2507_v58 = vsel %vm2501_vm12, %v2494_v15, 920167782  ;;  %v2510_v52 = vsel %vm2498_vm9, %v2488_v29, %v2491_v17 }
 0x2b7   : > { %v2511_v37 = vsel %vm2501_vm12, %v2497_v6, 1326507024  ;;  %v2502_v14 = vsel %vm2498_vm9, %v2482_v9, %v2485_v26  ;;  %v2508_v54 = vsel %vm2500_vm13, %v2491_v17, %v2507_v58  ;;  %v2504_v7 = vsel %vm2500_vm13, %v2488_v29, %v2503_v28 }
 0x2b8   : > { %v7835_v63 = vmin.u32 %v2844_v61, %v10761_v5  ;;  %v2512_v57 = vsel %vm2500_vm13, %v2494_v15, %v2511_v37  ;;  %v2509_v45 = vsel %vm2499_vm11, %v2506_v18, %v2508_v54  ;;  %v7842_v25 = vadd.s32 4294967169, %v2990_v3  ;;  %v2180_v37 = vpop.permute.xlu1 %2179 }
 0x2b9   : > { %v2513_v34 = vsel %vm2499_vm11, %v2510_v52, %v2512_v57  ;;  %v10770_v24 = vadd.f32 %v10535_v19, %v8804_v47  ;;  %v10773_v31 = vadd.f32 %v2139_v44, %v8804_v47  ;;  %v2864_v60 = vsub.s32 4, %v10745_v4 }
 0x2ba   : > { %v2846_v0 = vclz %v7835_v63  ;;  %v10777_v42 = vmul.u32.u64.low %v10757_v11, %v2513_v34  ;;  %v10778_v8 = vmul.u32.u64.high %v10757_v11, %v2513_v34, %v10777_v42  ;;  %vm2454_vm14 = vweird.f32 %v10467_v22  ;;  %v2200_v63 = vpop.permute.xlu0 %2199 }
 0x2bb   : > { %v10781_v26 = vmul.u32.u64.low %v10757_v11, %v2509_v45  ;;  %v10782_v36 = vmul.u32.u64.high %v10757_v11, %v2509_v45, %v10781_v26  ;;  %v2505_v19 = vsel %vm2499_vm11, %v2502_v14, %v2504_v7  ;;  %v2996_v35 = vadd.s32 1, %v7842_v25 }
 0x2bc   : > { %v7836_v2 = vadd.s32 4294967294, %v2846_v0  ;;  %vm2457_vm15 = vcmp.lt.s32.totalorder %v10759_v38, 2  ;;  %vm2458_vm0 = vcmp.eq.s32.totalorder %v10759_v38, 0  ;;  %vm2780_vm1 = vcmp.lt.s32.totalorder %v10558_v10, 0 }
 0x2bd   : > { %v2986_v44 = vand.u32 2147483647, %v10713_v21  ;;  %v8377_v43 = vpop.eup %8376  ;;  %vm2461_vm2 = vcmp.eq.s32.totalorder %v10759_v38, 2  ;;  %v2834_v29 = vadd.s32 %v10702_v33, %v10699_v16  ;;  %vm2997_vm4 = vcmp.gt.s32.totalorder %v2996_v35, 0 }
 0x2be   : > { %vm7837_vm3 = vcmp.lt.s32.totalorder %v7836_v2, 0  ;;  %v8379_v17 = vpop.eup %8378  ;;  %v2462_v30 = vxor.u32 2147483648, %v8377_v43  ;;  %v2865_v15 = vsel %vm2780_vm1, %v2864_v60, %v10745_v4  ;;  %v2521_v6 = vmul.u32 %v10757_v11, %v2505_v19 }
 0x2bf   : > { %v2849_v40 = vsel %vm7837_vm3, 0, %v7836_v2  ;;  %v2459_v3 = vxor.u32 2147483648, %v8379_v17  ;;  %vm2523_vm5 = vc.u32 %v10778_v8, %v10781_v26  ;;  %v2524_v16 = vadd.s32 1, %v10782_v36 }
 0x2c0   : > { %v2850_v9 = vsub.s32 32, %v2849_v40  ;;  %v2854_v61 = vsub.s32 4294967266, %v2849_v40  ;;  %v2463_v28 = vsel %vm2461_vm2, %v2462_v30, %v8379_v17  ;;  %v2993_v33 = vand.u32 8388607, %v2986_v44 }
 0x2c1   : > { %v2998_v18 = vsel %vm2997_vm4, %v2996_v35, 0  ;;  %v2460_v58 = vsel %vm2458_vm0, %v8377_v43, %v2459_v3  ;;  %v2851_v4 = vshll.u32 %v10761_v5, %v2849_v40  ;;  %vm10810_vm6 = vcmp.le.f32.partialorder %v2778_v12, 0.7853982 }
 0x2c2   : > { %v2852_v11 = vshrl.u32 %v2834_v29, %v2850_v9  ;;  %v2855_v52 = vadd.s32 127, %v2854_v61  ;;  %v2464_v14 = vsel %vm2457_vm15, %v2460_v58, %v2463_v28  ;;  %v2525_v57 = vsel %vm2523_vm5, %v2524_v16, %v10782_v36 }
 0x2c3   : > { %v3000_v7 = vand.u32 31, %v2998_v18  ;;  %v2465_v45 = vsel %vm2454_vm14, nan, %v2464_v14  ;;  %v2526_v25 = vadd.s32 %v2525_v57, %v2521_v6  ;;  %v2867_v38 = vsel %vm10810_vm6, 0, %v2865_v15 }
 0x2c4   : > { %v2853_v5 = vor.u32 %v2852_v11, %v2851_v4  ;;  %v2856_v34 = vshll.u32 %v2855_v52, 23  ;;  %3923 = vst [vmem:[%s9106_s21 + $0x28] sm:$0xff] %v2465_v45  ;;  %v2230_v60 = vmul.f32 %v2180_v37, %v8807_v48  ;;  %v2235_v12 = vmul.f32 %v2200_v63, %v8807_v48 }
 0x2c5   : > { %v3001_v0 = vsub.s32 32, %v3000_v7  ;;  %v2527_v2 = vadd.s32 536870912, %v2526_v25  ;;  %v2994_v19 = vor.u32 8388608, %v2993_v33  ;;  %v3003_v36 = vshll.u32 %v8606_v23, %v3000_v7 }
 0x2c6   : > { %v2857_v42 = vor.u32 4788187, %v2856_v34  ;;  %v3006_v35 = vshll.u32 %v14448_v49, %v3000_v7  ;;  %v2860_v30 = vcvt.s32.f32 %v2853_v5  ;;  %v2999_v6 = vshrl.u32 %v2998_v18, 5 }
 0x2c7   : > { %v3004_v22 = vshrl.u32 %v14448_v49, %v3001_v0  ;;  %v3007_v43 = vshrl.u32 %v14446_v51, %v3001_v0  ;;  %v3010_v29 = vshrl.u32 %v14450_v53, %v3001_v0  ;;  %v2528_v40 = vshrl.u32 %v2527_v2, 30 }
 0x2c8   : > { %v2858_v17 = vand.u32 2147483647, %v2857_v42  ;;  %v3013_v15 = vshrl.u32 %v14455_v55, %v3001_v0  ;;  %v3009_v3 = vshll.u32 %v14446_v51, %v3000_v7  ;;  %v3012_v9 = vshll.u32 %v14450_v53, %v3000_v7 }
 0x2c9   : > { %v3016_v61 = vshrl.u32 %v14453_v1, %v3001_v0  ;;  %v2529_v16 = vshll.u32 %v2528_v40, 30  ;;  %v3005_v33 = vor.u32 %v3004_v22, %v3003_v36  ;;  %v3008_v58 = vor.u32 %v3007_v43, %v3006_v35 }
 0x2ca   : > { %v2861_v28 = vmul.f32 %v2860_v30, %v2858_v17  ;;  %v2871_v4 = vadd.s32 3, %v2867_v38  ;;  %vm2468_vm7 = vcmp.lt.s32.totalorder %v10617_v32, 0  ;;  %v3011_v11 = vor.u32 %v3010_v29, %v3009_v3 }
 0x2cb   : > { %v3014_v52 = vor.u32 %v3013_v15, %v3012_v9  ;;  %v3015_v37 = vshll.u32 %v14455_v55, %v3000_v7  ;;  %v10833_v14 = vsub.s32 %v2526_v25, %v2529_v16  ;;  %v10835_v18 = vshll.u32 %v2994_v19, 8 }
 0x2cc   : > { %v2862_v63 = vxor.u32 2147483648, %v2861_v28  ;;  %v10838_v57 = vadd.f32 %v2230_v60, %v10523_v41  ;;  %v2552_v45 = vsub.s32 4, %v2528_v40  ;;  %v3002_v5 = vshrl.u32 %v8606_v23, %v3001_v0 }
 0x2cd   : > { %v3017_v34 = vor.u32 %v3016_v61, %v3015_v37  ;;  %vm3018_vm8 = vcmp.lt.s32.totalorder %v2999_v6, 1  ;;  %v2532_v42 = vsub.s32 0, %v10833_v14  ;;  %vm3021_vm10 = vcmp.lt.s32.totalorder %v2999_v6, 4 }
 0x2ce   : > { %v2863_v38 = vsel %vm2780_vm1, %v2862_v63, %v2861_v28  ;;  %v3026_v7 = vsel %vm3018_vm8, %v3005_v33, %v3008_v58  ;;  %vm3020_vm9 = vcmp.lt.s32.totalorder %v2999_v6, 3  ;;  %v3023_v41 = vsel %vm3021_vm10, %v3011_v11, 2102212464 }
 0x2cf   : > { %v2866_v25 = vsel %vm10810_vm6, %v10558_v10, %v2863_v38  ;;  %v3027_v60 = vsel %vm3021_vm10, %v3014_v52, 920167782  ;;  %v7823_v0 = vmin.u32 %v2532_v42, %v10833_v14  ;;  %vm3019_vm12 = vcmp.lt.s32.totalorder %v2999_v6, 2 }
 0x2d0   : > { %8380 = vcosq.f32 %v2866_v25  ;;  %v3028_v2 = vsel %vm3020_vm9, %v3011_v11, %v3027_v60  ;;  %v3030_v36 = vsel %vm3018_vm8, %v3008_v58, %v3011_v11  ;;  %v3031_v22 = vsel %vm3021_vm10, %v3017_v34, 1326507024 }
 0x2d1   : > { %8382 = vsinq.f32 %v2866_v25  ;;  %v3029_v19 = vsel %vm3019_vm12, %v3026_v7, %v3028_v2  ;;  %v2872_v35 = vand.u32 3, %v2871_v4  ;;  %v2534_v43 = vclz %v7823_v0 }
 0x2d2   : > { %v3022_v29 = vsel %vm3018_vm8, %v3002_v5, %v3005_v33  ;;  %v3024_v54 = vsel %vm3020_vm9, %v3008_v58, %v3023_v41  ;;  %v3032_v17 = vsel %vm3020_vm9, %v3014_v52, %v3031_v22  ;;  %v10858_v3 = vadd.f32 %v2235_v12, %v10773_v31 }
 0x2d3   : > { %v10853_v30 = vmul.u32.u64.low %v10835_v18, %v3029_v19  ;;  %v10854_v15 = vmul.u32.u64.high %v10835_v18, %v3029_v19, %v10853_v30  ;;  %v7824_v9 = vadd.s32 4294967294, %v2534_v43  ;;  %v2553_v61 = vsel %vm2468_vm7, %v2552_v45, %v2528_v40 }
 0x2d4   : > { %v3033_v28 = vsel %vm3019_vm12, %v3030_v36, %v3032_v17  ;;  %v2677_v16 = vand.u32 2139095040, %v10838_v57  ;;  %v3025_v33 = vsel %vm3019_vm12, %v3022_v29, %v3024_v54  ;;  %v2674_v11 = vand.u32 2147483647, %v10838_v57 }
 0x2d5   : > { %v10866_v58 = vmul.u32.u64.low %v10835_v18, %v3033_v28  ;;  %v10867_v4 = vmul.u32.u64.high %v10835_v18, %v3033_v28, %v10866_v58  ;;  %vm2873_vm11 = vcmp.lt.s32.totalorder %v2872_v35, 2  ;;  %vm10872_vm13 = vcmp.le.f32.partialorder %v2466_v59, 0.7853982 }
 0x2d6   : > { %vm7825_vm14 = vcmp.lt.s32.totalorder %v7824_v9, 0  ;;  %v2678_v12 = vshrl.u32 %v2677_v16, 23  ;;  %v2522_v40 = vadd.s32 %v10781_v26, %v10778_v8  ;;  %v2555_v52 = vsel %vm10872_vm13, 0, %v2553_v61 }
 0x2d7   : > { %v2537_v6 = vsel %vm7825_vm14, 0, %v7824_v9  ;;  %v3044_v37 = vadd.s32 1, %v10854_v15  ;;  %v3041_v5 = vmul.u32 %v10835_v18, %v3025_v33  ;;  %vm3043_vm15 = vc.u32 %v10867_v4, %v10853_v30 }
 0x2d8   : > { %v2538_v63 = vsub.s32 32, %v2537_v6  ;;  %v2542_v45 = vsub.s32 4294967266, %v2537_v6  ;;  %v7830_v34 = vadd.s32 4294967169, %v2678_v12  ;;  %v2539_v59 = vshll.u32 %v10833_v14, %v2537_v6 }
 0x2d9   : > { %v2681_v38 = vand.u32 8388607, %v2674_v11  ;;  %v3197_v8 = vand.u32 2139095040, %v10858_v3  ;;  %v3045_v25 = vsel %vm3043_vm15, %v3044_v37, %v10854_v15  ;;  %vm2874_vm0 = vcmp.eq.s32.totalorder %v2872_v35, 0  ;;  %v2188_v15 = vpop.permute.xlu1 %2187 }
 0x2da   : > { %v8381_v26 = vpop.eup %8380  ;;  %v2540_v42 = vshrl.u32 %v2522_v40, %v2538_v63  ;;  %v2543_v7 = vadd.s32 127, %v2542_v45  ;;  %v2684_v41 = vadd.s32 1, %v7830_v34  ;;  %vm2877_vm1 = vcmp.eq.s32.totalorder %v2872_v35, 2 }
 0x2db   : > { %v8383_v60 = vpop.eup %8382  ;;  %v2878_v18 = vxor.u32 2147483648, %v8381_v26  ;;  %v3046_v0 = vadd.s32 %v3045_v25, %v3041_v5  ;;  %v2559_v22 = vadd.s32 3, %v2555_v52  ;;  %v2682_v9 = vor.u32 8388608, %v2681_v38 }
 0x2dc   : > { %v2875_v14 = vxor.u32 2147483648, %v8383_v60  ;;  %v2541_v2 = vor.u32 %v2540_v42, %v2539_v59  ;;  %v2544_v19 = vshll.u32 %v2543_v7, 23  ;;  %vm2685_vm2 = vcmp.gt.s32.totalorder %v2684_v41, 0 }
 0x2dd   : > { %v2879_v36 = vsel %vm2877_vm1, %v2878_v18, %v8383_v60  ;;  %v3047_v43 = vadd.s32 536870912, %v3046_v0  ;;  %v2686_v29 = vsel %vm2685_vm2, %v2684_v41, 0  ;;  %v3198_v61 = vshrl.u32 %v3197_v8, 23 }
 0x2de   : > { %v2876_v54 = vsel %vm2874_vm0, %v8381_v26, %v2875_v14  ;;  %v2545_v17 = vor.u32 4788187, %v2544_v19  ;;  %vm2870_vm3 = vweird.f32 %v10558_v10  ;;  %v2688_v33 = vand.u32 31, %v2686_v29 }
 0x2df   : > { %v2880_v28 = vsel %vm2873_vm11, %v2876_v54, %v2879_v36  ;;  %v3048_v16 = vshrl.u32 %v3047_v43, 30  ;;  %v10893_v58 = vmul.f32 %v10338_v46, %v8794_v39  ;;  %v2548_v6 = vcvt.s32.f32 %v2541_v2 }
 0x2e0   : > { %v2881_v12 = vsel %vm2870_vm3, nan, %v2880_v28  ;;  %v2546_v40 = vand.u32 2147483647, %v2545_v17  ;;  %v10896_v52 = vand.u32 3, %v2559_v22  ;;  %vm2988_vm4 = vcmp.lt.s32.totalorder %v10713_v21, 0 }
 0x2e1   : > { %3927 = vst [vmem:[%s9106_s21 + $0xa8] sm:$0xff] %v2881_v12  ;;  %v3049_v37 = vshll.u32 %v3048_v16, 30  ;;  %v2689_v63 = vsub.s32 32, %v2688_v33  ;;  %v10900_v10 = vmul.f32 %v2188_v15, %v8807_v48  ;;  %v10902_v45 = vshll.u32 %v2682_v9, 8 }
 0x2e2   : > { %v2549_v35 = vmul.f32 %v2548_v6, %v2546_v40  ;;  %v3194_v5 = vand.u32 2147483647, %v10858_v3  ;;  %v7850_v46 = vadd.s32 4294967169, %v3198_v61  ;;  %v2687_v59 = vshrl.u32 %v2686_v29, 5 }
 0x2e3   : > { %v10905_v34 = vsub.s32 %v3046_v0, %v3049_v37  ;;  %v2691_v38 = vshll.u32 %v8606_v23, %v2688_v33  ;;  %v2692_v8 = vshrl.u32 %v14448_v49, %v2689_v63  ;;  %v2695_v42 = vshrl.u32 %v14446_v51, %v2689_v63 }
 0x2e4   : > { %v2550_v26 = vxor.u32 2147483648, %v2549_v35  ;;  %v2697_v7 = vshll.u32 %v14446_v51, %v2688_v33  ;;  %v2698_v25 = vshrl.u32 %v14450_v53, %v2689_v63  ;;  %v2694_v60 = vshll.u32 %v14448_v49, %v2688_v33 }
 0x2e5   : > { %v3052_v41 = vsub.s32 0, %v10905_v34  ;;  %v2700_v18 = vshll.u32 %v14450_v53, %v2688_v33  ;;  %v2701_v0 = vshrl.u32 %v14455_v55, %v2689_v63  ;;  %v3072_v2 = vsub.s32 4, %v3048_v16 }
 0x2e6   : > { %v2551_v14 = vsel %vm2468_vm7, %v2550_v26, %v2549_v35  ;;  %v2693_v19 = vor.u32 %v2692_v8, %v2691_v38  ;;  %v2699_v36 = vor.u32 %v2698_v25, %v2697_v7  ;;  %vm10923_vm5 = vcmp.le.f32.partialorder %v2986_v44, 0.7853982 }
 0x2e7   : > { %v2554_v22 = vsel %vm10872_vm13, %v10617_v32, %v2551_v14  ;;  %v7843_v29 = vmin.u32 %v3052_v41, %v10905_v34  ;;  %v2696_v54 = vor.u32 %v2695_v42, %v2694_v60  ;;  %v2702_v17 = vor.u32 %v2701_v0, %v2700_v18 }
 0x2e8   : > { %8384 = vcosq.f32 %v2554_v22  ;;  %v2703_v9 = vshll.u32 %v14455_v55, %v2688_v33  ;;  %v2704_v61 = vshrl.u32 %v14453_v1, %v2689_v63  ;;  %vm2706_vm6 = vcmp.lt.s32.totalorder %v2687_v59, 1 }
 0x2e9   : > { %8386 = vsinq.f32 %v2554_v22  ;;  %v3054_v15 = vclz %v7843_v29  ;;  %vm2707_vm7 = vcmp.lt.s32.totalorder %v2687_v59, 2  ;;  %vm2709_vm8 = vcmp.lt.s32.totalorder %v2687_v59, 4 }
 0x2ea   : > { %v3073_v44 = vsel %vm2988_vm4, %v3072_v2, %v3048_v16  ;;  %v2690_v31 = vshrl.u32 %v8606_v23, %v2689_v63  ;;  %v2705_v28 = vor.u32 %v2704_v61, %v2703_v9  ;;  %v2711_v12 = vsel %vm2709_vm8, %v2699_v36, 2102212464 }
 0x2eb   : > { %v7844_v40 = vadd.s32 4294967294, %v3054_v15  ;;  %vm2708_vm10 = vcmp.lt.s32.totalorder %v2687_v59, 3  ;;  %v2714_v6 = vsel %vm2706_vm6, %v2693_v19, %v2696_v54  ;;  %v2715_v37 = vsel %vm2709_vm8, %v2702_v17, 920167782 }
 0x2ec   : > { %v2710_v35 = vsel %vm2706_vm6, %v2690_v31, %v2693_v19  ;;  %v2716_v33 = vsel %vm2708_vm10, %v2699_v36, %v2715_v37  ;;  %v2718_v38 = vsel %vm2706_vm6, %v2696_v54, %v2699_v36  ;;  %v2719_v8 = vsel %vm2709_vm8, %v2705_v28, 1326507024 }
 0x2ed   : > { %vm7845_vm9 = vcmp.lt.s32.totalorder %v7844_v40, 0  ;;  %v2712_v26 = vsel %vm2708_vm10, %v2696_v54, %v2711_v12  ;;  %v2717_v42 = vsel %vm2707_vm7, %v2714_v6, %v2716_v33  ;;  %v2720_v7 = vsel %vm2708_vm10, %v2702_v17, %v2719_v8 }
 0x2ee   : > { %v3057_v25 = vsel %vm7845_vm9, 0, %v7844_v40  ;;  %v2721_v16 = vsel %vm2707_vm7, %v2718_v38, %v2720_v7  ;;  %v10936_v63 = vmul.u32.u64.low %v10902_v45, %v2717_v42  ;;  %v10937_v41 = vmul.u32.u64.high %v10902_v45, %v2717_v42, %v10936_v63 }
 0x2ef   : > { %vm2558_vm12 = vweird.f32 %v10617_v32  ;;  %v3042_v60 = vadd.s32 %v10853_v30, %v10867_v4  ;;  %v3058_v18 = vsub.s32 32, %v3057_v25  ;;  %v3062_v0 = vsub.s32 4294967266, %v3057_v25 }
 0x2f0   : > { %v3204_v14 = vadd.s32 1, %v7850_v46  ;;  %v3075_v2 = vsel %vm10923_vm5, 0, %v3073_v44  ;;  %v2713_v19 = vsel %vm2707_vm7, %v2710_v35, %v2712_v26  ;;  %v3059_v29 = vshll.u32 %v10905_v34, %v3057_v25 }
 0x2f1   : > { %v10947_v36 = vmul.u32.u64.low %v10902_v45, %v2721_v16  ;;  %v10948_v22 = vmul.u32.u64.high %v10902_v45, %v2721_v16, %v10947_v36  ;;  %v3060_v54 = vshrl.u32 %v3042_v60, %v3058_v18  ;;  %v3063_v17 = vadd.s32 127, %v3062_v0 }
 0x2f2   : > { %vm3205_vm11 = vcmp.gt.s32.totalorder %v3204_v14, 0  ;;  %v8385_v9 = vpop.eup %8384  ;;  %vm2565_vm13 = vcmp.eq.s32.totalorder %v10896_v52, 2  ;;  %v2732_v30 = vadd.s32 1, %v10937_v41  ;;  %v3201_v4 = vand.u32 8388607, %v3194_v5 }
 0x2f3   : > { %v3206_v46 = vsel %vm3205_vm11, %v3204_v14, 0  ;;  %v8387_v59 = vpop.eup %8386  ;;  %v2566_v61 = vxor.u32 2147483648, %v8385_v9  ;;  %v3061_v15 = vor.u32 %v3060_v54, %v3059_v29  ;;  %v3064_v44 = vshll.u32 %v3063_v17, 23 }
 0x2f4   : > { %v3079_v31 = vadd.s32 3, %v3075_v2  ;;  %v2563_v28 = vxor.u32 2147483648, %v8387_v59  ;;  %v2729_v34 = vmul.u32 %v10902_v45, %v2713_v19  ;;  %vm2731_vm14 = vc.u32 %v10948_v22, %v10936_v63 }
 0x2f5   : > { %v3208_v12 = vand.u32 31, %v3206_v46  ;;  %vm2562_vm15 = vcmp.eq.s32.totalorder %v10896_v52, 0  ;;  %v2567_v40 = vsel %vm2565_vm13, %v2566_v61, %v8387_v59  ;;  %v3065_v6 = vor.u32 4788187, %v3064_v44 }
 0x2f6   : > { %v2733_v37 = vsel %vm2731_vm14, %v2732_v30, %v10937_v41  ;;  %vm2561_vm0 = vcmp.lt.s32.totalorder %v10896_v52, 2  ;;  %v2564_v35 = vsel %vm2562_vm15, %v8385_v9, %v2563_v28  ;;  %v3068_v42 = vcvt.s32.f32 %v3061_v15 }
 0x2f7   : > { %v2734_v33 = vadd.s32 %v2733_v37, %v2729_v34  ;;  %v3209_v38 = vsub.s32 32, %v3208_v12  ;;  %v2568_v8 = vsel %vm2561_vm0, %v2564_v35, %v2567_v40  ;;  %v3066_v26 = vand.u32 2147483647, %v3065_v6 }
 0x2f8   : > { %v3202_v45 = vor.u32 8388608, %v3201_v4  ;;  %v2569_v7 = vsel %vm2558_vm12, nan, %v2568_v8  ;;  %v10963_v25 = vand.u32 3, %v3079_v31  ;;  %v3207_v60 = vshrl.u32 %v3206_v46, 5  ;;  %v2208_v8 = vpop.permute.xlu0 %2207 }
 0x2f9   : > { %v2735_v16 = vadd.s32 536870912, %v2734_v33  ;;  %3924 = vst [vmem:[%s9106_s21 + $0x48] sm:$0xff] %v2569_v7  ;;  %v3069_v18 = vmul.f32 %v3068_v42, %v3066_v26  ;;  %v3212_v41 = vshrl.u32 %v14448_v49, %v3209_v38  ;;  %v3215_v52 = vshrl.u32 %v14446_v51, %v3209_v38 }
 0x2fa   : > { %v3218_v0 = vshrl.u32 %v14450_v53, %v3209_v38  ;;  %v3211_v2 = vshll.u32 %v8606_v23, %v3208_v12  ;;  %v3217_v19 = vshll.u32 %v14446_v51, %v3208_v12  ;;  %v3221_v32 = vshrl.u32 %v14455_v55, %v3209_v38 }
 0x2fb   : > { %v2736_v14 = vshrl.u32 %v2735_v16, 30  ;;  %v3070_v36 = vxor.u32 2147483648, %v3069_v18  ;;  %v3214_v29 = vshll.u32 %v14448_v49, %v3208_v12  ;;  %v3220_v54 = vshll.u32 %v14450_v53, %v3208_v12 }
 0x2fc   : > { %v3224_v17 = vshrl.u32 %v14453_v1, %v3209_v38  ;;  %v3219_v30 = vor.u32 %v3218_v0, %v3217_v19  ;;  %v3223_v4 = vshll.u32 %v14455_v55, %v3208_v12  ;;  %v10976_v46 = vshll.u32 %v3202_v45, 8 }
 0x2fd   : > { %v2737_v9 = vshll.u32 %v2736_v14, 30  ;;  %v3071_v59 = vsel %vm2988_vm4, %v3070_v36, %v3069_v18  ;;  %v3213_v61 = vor.u32 %v3212_v41, %v3211_v2  ;;  %v3216_v15 = vor.u32 %v3215_v52, %v3214_v29 }
 0x2fe   : > { %v3222_v44 = vor.u32 %v3221_v32, %v3220_v54  ;;  %v3074_v31 = vsel %vm10923_vm5, %v10713_v21, %v3071_v59  ;;  %v3225_v34 = vor.u32 %v3224_v17, %v3223_v4  ;;  %v10987_v40 = vadd.f32 %v10900_v10, %v10770_v24 }
 0x2ff   : > { %v10983_v28 = vsub.s32 %v2734_v33, %v2737_v9  ;;  %8388 = vcosq.f32 %v3074_v31  ;;  %v2760_v12 = vsub.s32 4, %v2736_v14  ;;  %v3210_v6 = vshrl.u32 %v8606_v23, %v3209_v38 }
 0x300   : > { %vm3229_vm1 = vcmp.lt.s32.totalorder %v3207_v60, 4  ;;  %8390 = vsinq.f32 %v3074_v31  ;;  %vm3226_vm2 = vcmp.lt.s32.totalorder %v3207_v60, 1  ;;  %vm3227_vm3 = vcmp.lt.s32.totalorder %v3207_v60, 2 }
 0x301   : > { %v2740_v37 = vsub.s32 0, %v10983_v28  ;;  %v3231_v35 = vsel %vm3229_vm1, %v3219_v30, 2102212464  ;;  %vm3228_vm4 = vcmp.lt.s32.totalorder %v3207_v60, 3  ;;  %v3234_v43 = vsel %vm3226_vm2, %v3213_v61, %v3216_v15 }
 0x302   : > { %v3235_v33 = vsel %vm3229_vm1, %v3222_v44, 920167782  ;;  %v3238_v24 = vsel %vm3226_vm2, %v3216_v15, %v3219_v30  ;;  %v3239_v10 = vsel %vm3229_vm1, %v3225_v34, 1326507024  ;;  %v3230_v45 = vsel %vm3226_vm2, %v3210_v6, %v3213_v61 }
 0x303   : > { %v7831_v26 = vmin.u32 %v2740_v37, %v10983_v28  ;;  %v3236_v42 = vsel %vm3228_vm4, %v3219_v30, %v3235_v33  ;;  %v3232_v7 = vsel %vm3228_vm4, %v3216_v15, %v3231_v35  ;;  %v3240_v16 = vsel %vm3228_vm4, %v3222_v44, %v3239_v10  ;;  %v2196_v37 = vpop.permute.xlu1 %2195 }
 0x304   : > { %v3237_v38 = vsel %vm3227_vm3, %v3234_v43, %v3236_v42  ;;  %v2157_v18 = vadd.f32 %v10893_v58, %v8804_v47  ;;  %vm2676_vm5 = vcmp.lt.s32.totalorder %v10838_v57, 0  ;;  %v2237_v52 = vmul.f32 %v2208_v8, %v8807_v48 }
 0x305   : > { %v2742_v41 = vclz %v7831_v26  ;;  %v2761_v0 = vsel %vm2676_vm5, %v2760_v12, %v2736_v14  ;;  %v3241_v2 = vsel %vm3227_vm3, %v3238_v24, %v3240_v16  ;;  %vm3078_vm6 = vweird.f32 %v10713_v21 }
 0x306   : > { %v11001_v19 = vmul.u32.u64.low %v10976_v46, %v3237_v38  ;;  %v11002_v32 = vmul.u32.u64.high %v10976_v46, %v3237_v38, %v11001_v19  ;;  %v3233_v58 = vsel %vm3227_vm3, %v3230_v45, %v3232_v7  ;;  %vm3081_vm7 = vcmp.lt.s32.totalorder %v10963_v25, 2 }
 0x307   : > { %v7832_v36 = vadd.s32 4294967294, %v2742_v41  ;;  %v11008_v29 = vmul.u32.u64.low %v10976_v46, %v3241_v2  ;;  %v11009_v54 = vmul.u32.u64.high %v10976_v46, %v3241_v2, %v11008_v29  ;;  %vm3082_vm8 = vcmp.eq.s32.totalorder %v10963_v25, 0 }
 0x308   : > { %vm11015_vm10 = vcmp.le.f32.partialorder %v2674_v11, 0.7853982  ;;  %v2885_v17 = vand.u32 2139095040, %v10987_v40  ;;  %vm3085_vm9 = vcmp.eq.s32.totalorder %v10963_v25, 2  ;;  %v2730_v60 = vadd.s32 %v10936_v63, %v10948_v22 }
 0x309   : > { %vm7833_vm12 = vcmp.lt.s32.totalorder %v7832_v36, 0  ;;  %v2763_v9 = vsel %vm11015_vm10, 0, %v2761_v0  ;;  %v8389_v30 = vpop.eup %8388  ;;  %v3249_v59 = vmul.u32 %v10976_v46, %v3233_v58  ;;  %v3252_v11 = vadd.s32 1, %v11002_v32 }
 0x30a   : > { %v2745_v4 = vsel %vm7833_vm12, 0, %v7832_v36  ;;  %v2886_v61 = vshrl.u32 %v2885_v17, 23  ;;  %v8391_v15 = vpop.eup %8390  ;;  %v3086_v44 = vxor.u32 2147483648, %v8389_v30  ;;  %v2882_v12 = vand.u32 2147483647, %v10987_v40 }
 0x30b   : > { %v2746_v31 = vsub.s32 32, %v2745_v4  ;;  %v2750_v34 = vsub.s32 4294967266, %v2745_v4  ;;  %v3083_v6 = vxor.u32 2147483648, %v8391_v15  ;;  %v2747_v63 = vshll.u32 %v10983_v28, %v2745_v4 }
 0x30c   : > { %vm3251_vm11 = vc.u32 %v11009_v54, %v11001_v19  ;;  %v7838_v22 = vadd.s32 4294967169, %v2886_v61  ;;  %v3087_v46 = vsel %vm3085_vm9, %v3086_v44, %v8391_v15  ;;  %v11036_v24 = vadd.f32 %v2237_v52, %v2157_v18 }
 0x30d   : > { %v2748_v35 = vshrl.u32 %v2730_v60, %v2746_v31  ;;  %v2751_v43 = vadd.s32 127, %v2750_v34  ;;  %v3253_v33 = vsel %vm3251_vm11, %v3252_v11, %v11002_v32  ;;  %v3084_v8 = vsel %vm3082_vm8, %v8389_v30, %v3083_v6 }
 0x30e   : > { %v3254_v26 = vadd.s32 %v3253_v33, %v3249_v59  ;;  %v2892_v42 = vadd.s32 1, %v7838_v22  ;;  %v3088_v28 = vsel %vm3081_vm7, %v3084_v8, %v3087_v46  ;;  %v2234_v7 = vmul.f32 %v2196_v37, %v8807_v48 }
 0x30f   : > { %v2749_v10 = vor.u32 %v2748_v35, %v2747_v63  ;;  %v2752_v45 = vshll.u32 %v2751_v43, 23  ;;  %v3089_v38 = vsel %vm3078_vm6, nan, %v3088_v28  ;;  %v2767_v16 = vadd.s32 3, %v2763_v9 }
 0x310   : > { %v3255_v41 = vadd.s32 536870912, %v3254_v26  ;;  %vm2893_vm13 = vcmp.gt.s32.totalorder %v2892_v42, 0  ;;  %3929 = vst [vmem:[%s9106_s21 + $0xe8] sm:$0xff] %v3089_v38  ;;  %v2889_v2 = vand.u32 8388607, %v2882_v12  ;;  %v2154_v25 = vadd.f32 %v10730_v13, %v8804_v47 }
 0x311   : > { %v2753_v0 = vor.u32 4788187, %v2752_v45  ;;  %v2894_v18 = vsel %vm2893_vm13, %v2892_v42, 0  ;;  %v3405_v36 = vand.u32 2139095040, %v11036_v24  ;;  %v11051_v21 = vmul.f32 %v10208_v62, %v8794_v39 }
 0x312   : > { %v3256_v52 = vshrl.u32 %v3255_v41, 30  ;;  %v2896_v32 = vand.u32 31, %v2894_v18  ;;  %v11055_v58 = vmul.f32 %v10235_v27, %v8794_v39  ;;  %v2756_v17 = vcvt.s32.f32 %v2749_v10 }
 0x313   : > { %v2754_v29 = vand.u32 2147483647, %v2753_v0  ;;  %v11057_v60 = vand.u32 3, %v2767_v16  ;;  %vm3196_vm14 = vcmp.lt.s32.totalorder %v10858_v3, 0  ;;  %v11060_v30 = vadd.f32 %v2234_v7, %v2154_v25 }
 0x314   : > { %v3257_v9 = vshll.u32 %v3256_v52, 30  ;;  %v2897_v13 = vsub.s32 32, %v2896_v32  ;;  %v3250_v59 = vadd.s32 %v11001_v19, %v11009_v54  ;;  %v2890_v62 = vor.u32 8388608, %v2889_v2 }
 0x315   : > { %v2757_v4 = vmul.f32 %v2756_v17, %v2754_v29  ;;  %v3402_v11 = vand.u32 2147483647, %v11036_v24  ;;  %v11067_v27 = vshrl.u32 %v2894_v18, 5  ;;  %v3406_v44 = vshrl.u32 %v3405_v36, 23 }
 0x316   : > { %v11065_v61 = vsub.s32 %v3254_v26, %v3257_v9  ;;  %v2900_v15 = vshrl.u32 %v14448_v49, %v2897_v13  ;;  %v2899_v34 = vshll.u32 %v8606_v23, %v2896_v32  ;;  %v2903_v6 = vshrl.u32 %v14446_v51, %v2897_v13 }
 0x317   : > { %v2758_v31 = vxor.u32 2147483648, %v2757_v4  ;;  %v2906_v63 = vshrl.u32 %v14450_v53, %v2897_v13  ;;  %v2902_v19 = vshll.u32 %v14448_v49, %v2896_v32  ;;  %v2905_v54 = vshll.u32 %v14446_v51, %v2896_v32 }
 0x318   : > { %v3260_v22 = vsub.s32 0, %v11065_v61  ;;  %v2909_v37 = vshrl.u32 %v14455_v55, %v2897_v13  ;;  %v3280_v35 = vsub.s32 4, %v3256_v52  ;;  %v2901_v43 = vor.u32 %v2900_v15, %v2899_v34 }
 0x319   : > { %v2759_v46 = vsel %vm2676_vm5, %v2758_v31, %v2757_v4  ;;  %v2908_v33 = vshll.u32 %v14450_v53, %v2896_v32  ;;  %v2904_v42 = vor.u32 %v2903_v6, %v2902_v19  ;;  %v2907_v28 = vor.u32 %v2906_v63, %v2905_v54 }
 0x31a   : > { %v2762_v8 = vsel %vm11015_vm10, %v10838_v57, %v2759_v46  ;;  %v7851_v26 = vmin.u32 %v3260_v22, %v11065_v61  ;;  %v2911_v45 = vshll.u32 %v14455_v55, %v2896_v32  ;;  %v2912_v7 = vshrl.u32 %v14453_v1, %v2897_v13 }
 0x31b   : > { %8392 = vcosq.f32 %v2762_v8  ;;  %v2910_v10 = vor.u32 %v2909_v37, %v2908_v33  ;;  %v2930_v16 = vshll.u32 %v2890_v62, 8  ;;  %v7858_v41 = vadd.s32 4294967169, %v3406_v44 }
 0x31c   : > { %8394 = vsinq.f32 %v2762_v8  ;;  %v3262_v38 = vclz %v7851_v26  ;;  %v3281_v0 = vsel %vm3196_vm14, %v3280_v35, %v3256_v52  ;;  %v2898_v14 = vshrl.u32 %v8606_v23, %v2897_v13 }
 0x31d   : > { %v2913_v2 = vor.u32 %v2912_v7, %v2911_v45  ;;  %vm2914_vm15 = vcmp.lt.s32.totalorder %v11067_v27, 1  ;;  %vm11092_vm0 = vcmp.le.f32.partialorder %v3194_v5, 0.7853982  ;;  %vm2916_vm1 = vcmp.lt.s32.totalorder %v11067_v27, 3 }
 0x31e   : > { %v7852_v25 = vadd.s32 4294967294, %v3262_v38  ;;  %vm2917_vm2 = vcmp.lt.s32.totalorder %v11067_v27, 4  ;;  %v2922_v32 = vsel %vm2914_vm15, %v2901_v43, %v2904_v42  ;;  %v2926_v52 = vsel %vm2914_vm15, %v2904_v42, %v2907_v28 }
 0x31f   : > { %v2919_v36 = vsel %vm2917_vm2, %v2907_v28, 2102212464  ;;  %v2923_v29 = vsel %vm2917_vm2, %v2910_v10, 920167782  ;;  %v2927_v17 = vsel %vm2917_vm2, %v2913_v2, 1326507024  ;;  %v2918_v4 = vsel %vm2914_vm15, %v2898_v14, %v2901_v43 }
 0x320   : > { %vm7853_vm3 = vcmp.lt.s32.totalorder %v7852_v25, 0  ;;  %vm2915_vm4 = vcmp.lt.s32.totalorder %v11067_v27, 2  ;;  %v2924_v9 = vsel %vm2916_vm1, %v2907_v28, %v2923_v29  ;;  %v2928_v5 = vsel %vm2916_vm1, %v2910_v10, %v2927_v17 }
 0x321   : > { %v3265_v13 = vsel %vm7853_vm3, 0, %v7852_v25  ;;  %v2925_v62 = vsel %vm2915_vm4, %v2922_v32, %v2924_v9  ;;  %v2929_v15 = vsel %vm2915_vm4, %v2926_v52, %v2928_v5  ;;  %vm2766_vm5 = vweird.f32 %v10838_v57 }
 0x322   : > { %v3266_v44 = vsub.s32 32, %v3265_v13  ;;  %v3270_v31 = vsub.s32 4294967266, %v3265_v13  ;;  %v2920_v34 = vsel %vm2916_vm1, %v2904_v42, %v2919_v36  ;;  %v3412_v6 = vadd.s32 1, %v7858_v41 }
 0x323   : > { %v11110_v63 = vmul.u32.u64.low %v2930_v16, %v2929_v15  ;;  %v11111_v22 = vmul.u32.u64.high %v2930_v16, %v2929_v15, %v11110_v63  ;;  %v11113_v19 = vmul.u32.u64.low %v2930_v16, %v2925_v62  ;;  %v11114_v54 = vmul.u32.u64.high %v2930_v16, %v2925_v62, %v11113_v19 }
 0x324   : > { %v3267_v37 = vshll.u32 %v11065_v61, %v3265_v13  ;;  %v3268_v46 = vshrl.u32 %v3250_v59, %v3266_v44  ;;  %v3271_v35 = vadd.s32 127, %v3270_v31  ;;  %vm3413_vm6 = vcmp.gt.s32.totalorder %v3412_v6, 0 }
 0x325   : > { %v8393_v43 = vpop.eup %8392  ;;  %vm2770_vm7 = vcmp.eq.s32.totalorder %v11057_v60, 0  ;;  %vm2773_vm8 = vcmp.eq.s32.totalorder %v11057_v60, 2  ;;  %v2921_v33 = vsel %vm2915_vm4, %v2918_v4, %v2920_v34  ;;  %v3414_v8 = vsel %vm3413_vm6, %v3412_v6, 0 }
 0x326   : > { %v8395_v26 = vpop.eup %8394  ;;  %v2774_v42 = vxor.u32 2147483648, %v8393_v43  ;;  %v3269_v28 = vor.u32 %v3268_v46, %v3267_v37  ;;  %v3272_v10 = vshll.u32 %v3271_v35, 23  ;;  %v3409_v45 = vand.u32 8388607, %v3402_v11 }
 0x327   : > { %v2771_v61 = vxor.u32 2147483648, %v8395_v26  ;;  %v3283_v59 = vsel %vm11092_vm0, 0, %v3281_v0  ;;  %vm2939_vm10 = vc.u32 %v11111_v22, %v11113_v19  ;;  %v2940_v7 = vadd.s32 1, %v11114_v54 }
 0x328   : > { %v2775_v38 = vsel %vm2773_vm8, %v2774_v42, %v8395_v26  ;;  %v3273_v27 = vor.u32 4788187, %v3272_v10  ;;  %v2937_v41 = vmul.u32 %v2930_v16, %v2921_v33  ;;  %v3416_v14 = vand.u32 31, %v3414_v8 }
 0x329   : > { %vm2769_vm9 = vcmp.lt.s32.totalorder %v11057_v60, 2  ;;  %v2772_v2 = vsel %vm2770_vm7, %v8393_v43, %v2771_v61  ;;  %v3276_v25 = vcvt.s32.f32 %v3269_v28  ;;  %v2941_v32 = vsel %vm2939_vm10, %v2940_v7, %v11114_v54 }
 0x32a   : > { %v2776_v36 = vsel %vm2769_vm9, %v2772_v2, %v2775_v38  ;;  %v3274_v0 = vand.u32 2147483647, %v3273_v27  ;;  %v2942_v29 = vadd.s32 %v2941_v32, %v2937_v41  ;;  %v3417_v52 = vsub.s32 32, %v3416_v14 }
 0x32b   : > { %v2777_v17 = vsel %vm2766_vm5, nan, %v2776_v36  ;;  %v3287_v9 = vadd.s32 3, %v3283_v59  ;;  %v3410_v5 = vor.u32 8388608, %v3409_v45  ;;  %v11135_v13 = vshrl.u32 %v3414_v8, 5 }
 0x32c   : > { %3926 = vst [vmem:[%s9106_s21 + $0x88] sm:$0xff] %v2777_v17  ;;  %v3277_v16 = vmul.f32 %v3276_v25, %v3274_v0  ;;  %v2943_v4 = vadd.s32 536870912, %v2942_v29  ;;  %v3419_v60 = vshll.u32 %v8606_v23, %v3416_v14  ;;  %v3420_v62 = vshrl.u32 %v14448_v49, %v3417_v52 }
 0x32d   : > { %v3422_v15 = vshll.u32 %v14448_v49, %v3416_v14  ;;  %v3423_v44 = vshrl.u32 %v14446_v51, %v3417_v52  ;;  %v3426_v31 = vshrl.u32 %v14450_v53, %v3417_v52  ;;  %v3429_v57 = vshrl.u32 %v14455_v55, %v3417_v52 }
 0x32e   : > { %v3278_v34 = vxor.u32 2147483648, %v3277_v16  ;;  %v2944_v6 = vshrl.u32 %v2943_v4, 30  ;;  %v3425_v63 = vshll.u32 %v14446_v51, %v3416_v14  ;;  %v3428_v54 = vshll.u32 %v14450_v53, %v3416_v14 }
 0x32f   : > { %v3421_v37 = vor.u32 %v3420_v62, %v3419_v60  ;;  %v3424_v46 = vor.u32 %v3423_v44, %v3422_v15  ;;  %v3431_v35 = vshll.u32 %v14455_v55, %v3416_v14  ;;  %v3432_v43 = vshrl.u32 %v14453_v1, %v3417_v52 }
 0x330   : > { %v3279_v33 = vsel %vm3196_vm14, %v3278_v34, %v3277_v16  ;;  %v11150_v8 = vand.u32 3, %v3287_v9  ;;  %v2945_v26 = vshll.u32 %v2944_v6, 30  ;;  %v3430_v42 = vor.u32 %v3429_v57, %v3428_v54 }
 0x331   : > { %v3282_v28 = vsel %vm11092_vm0, %v10858_v3, %v3279_v33  ;;  %v3427_v10 = vor.u32 %v3426_v31, %v3425_v63  ;;  %v3433_v45 = vor.u32 %v3432_v43, %v3431_v35  ;;  %v11155_v61 = vshll.u32 %v3410_v5, 8 }
 0x332   : > { %8396 = vcosq.f32 %v3282_v28  ;;  %v11157_v59 = vsub.s32 %v2942_v29, %v2945_v26  ;;  %vm3434_vm12 = vcmp.lt.s32.totalorder %v11135_v13, 1  ;;  %v3093_v7 = vand.u32 2139095040, %v11060_v30 }
 0x333   : > { %8398 = vsinq.f32 %v3282_v28  ;;  %vm3435_vm11 = vcmp.lt.s32.totalorder %v11135_v13, 2  ;;  %vm3437_vm13 = vcmp.lt.s32.totalorder %v11135_v13, 4  ;;  %v3442_v18 = vsel %vm3434_vm12, %v3421_v37, %v3424_v46 }
 0x334   : > { %v2948_v38 = vsub.s32 0, %v11157_v59  ;;  %v3418_v27 = vshrl.u32 %v8606_v23, %v3417_v52  ;;  %vm3436_vm14 = vcmp.lt.s32.totalorder %v11135_v13, 3  ;;  %v3443_v41 = vsel %vm3437_vm13, %v3430_v42, 920167782 }
 0x335   : > { %v3439_v14 = vsel %vm3437_vm13, %v3427_v10, 2102212464  ;;  %v3444_v2 = vsel %vm3436_vm14, %v3427_v10, %v3443_v41  ;;  %v3446_v25 = vsel %vm3434_vm12, %v3424_v46, %v3427_v10  ;;  %v3447_v32 = vsel %vm3437_vm13, %v3433_v45, 1326507024 }
 0x336   : > { %v7839_v36 = vmin.u32 %v2948_v38, %v11157_v59  ;;  %v2968_v0 = vsub.s32 4, %v2944_v6  ;;  %v3445_v29 = vsel %vm3435_vm11, %v3442_v18, %v3444_v2  ;;  %v3448_v52 = vsel %vm3436_vm14, %v3430_v42, %v3447_v32 }
 0x337   : > { %v3449_v17 = vsel %vm3435_vm11, %v3446_v25, %v3448_v52  ;;  %v11180_v9 = vmul.u32.u64.low %v11155_v61, %v3445_v29  ;;  %v11181_v5 = vmul.u32.u64.high %v11155_v61, %v3445_v29, %v11180_v9  ;;  %v3094_v16 = vshrl.u32 %v3093_v7, 23 }
 0x338   : > { %v2143_v4 = vmul.f32 %v10367_v20, %v8794_v39  ;;  %v2950_v60 = vclz %v7839_v36  ;;  %v3438_v62 = vsel %vm3434_vm12, %v3418_v27, %v3421_v37  ;;  %v3440_v15 = vsel %vm3436_vm14, %v3424_v46, %v3439_v14  ;;  %v2216_v14 = vpop.permute.xlu0 %2215 }
 0x339   : > { %vm3286_vm15 = vweird.f32 %v10858_v3  ;;  %vm2884_vm0 = vcmp.lt.s32.totalorder %v10987_v40, 0  ;;  %v11193_v44 = vmul.u32.u64.low %v11155_v61, %v3449_v17  ;;  %v11194_v31 = vmul.u32.u64.high %v11155_v61, %v3449_v17, %v11193_v44 }
 0x33a   : > { %v7846_v57 = vadd.s32 4294967169, %v3094_v16  ;;  %vm11198_vm1 = vcmp.le.f32.partialorder %v2882_v12, 0.7853982  ;;  %v7840_v34 = vadd.s32 4294967294, %v2950_v60  ;;  %v2969_v63 = vsel %vm2884_vm0, %v2968_v0, %v2944_v6 }
 0x33b   : > { %v3090_v54 = vand.u32 2147483647, %v11060_v30  ;;  %vm3289_vm2 = vcmp.lt.s32.totalorder %v11150_v8, 2  ;;  %v3441_v37 = vsel %vm3435_vm11, %v3438_v62, %v3440_v15  ;;  %v3460_v46 = vadd.s32 1, %v11181_v5 }
 0x33c   : > { %v3100_v35 = vadd.s32 1, %v7846_v57  ;;  %v8397_v43 = vpop.eup %8396  ;;  %vm3290_vm3 = vcmp.eq.s32.totalorder %v11150_v8, 0  ;;  %vm3293_vm4 = vcmp.eq.s32.totalorder %v11150_v8, 2  ;;  %v2938_v12 = vadd.s32 %v11113_v19, %v11111_v22 }
 0x33d   : > { %vm7841_vm5 = vcmp.lt.s32.totalorder %v7840_v34, 0  ;;  %v8399_v6 = vpop.eup %8398  ;;  %v3294_v33 = vxor.u32 2147483648, %v8397_v43  ;;  %v2971_v42 = vsel %vm11198_vm1, 0, %v2969_v63  ;;  %vm3459_vm6 = vc.u32 %v11194_v31, %v11180_v9 }
 0x33e   : > { %v2953_v26 = vsel %vm7841_vm5, 0, %v7840_v34  ;;  %v3291_v13 = vxor.u32 2147483648, %v8399_v6  ;;  %v3457_v45 = vmul.u32 %v11155_v61, %v3441_v37  ;;  %v3461_v22 = vsel %vm3459_vm6, %v3460_v46, %v11181_v5 }
 0x33f   : > { %v2954_v28 = vsub.s32 32, %v2953_v26  ;;  %v2958_v10 = vsub.s32 4294967266, %v2953_v26  ;;  %v3295_v7 = vsel %vm3293_vm4, %v3294_v33, %v8399_v6  ;;  %v2955_v18 = vshll.u32 %v11157_v59, %v2953_v26 }
 0x340   : > { %vm3101_vm7 = vcmp.gt.s32.totalorder %v3100_v35, 0  ;;  %v3292_v19 = vsel %vm3290_vm3, %v8397_v43, %v3291_v13  ;;  %v3462_v41 = vadd.s32 %v3461_v22, %v3457_v45  ;;  %v2975_v25 = vadd.s32 3, %v2971_v42 }
 0x341   : > { %v2956_v38 = vshrl.u32 %v2938_v12, %v2954_v28  ;;  %v2959_v27 = vadd.s32 127, %v2958_v10  ;;  %v3296_v2 = vsel %vm3289_vm2, %v3292_v19, %v3295_v7  ;;  %v3097_v61 = vand.u32 8388607, %v3090_v54 }
 0x342   : > { %v3102_v32 = vsel %vm3101_vm7, %v3100_v35, 0  ;;  %v3297_v59 = vsel %vm3286_vm15, nan, %v3296_v2  ;;  %v3463_v29 = vadd.s32 536870912, %v3462_v41  ;;  %v2239_v17 = vmul.f32 %v2216_v14, %v8807_v48 }
 0x343   : > { %v2957_v36 = vor.u32 %v2956_v38, %v2955_v18  ;;  %v2960_v0 = vshll.u32 %v2959_v27, 23  ;;  %3931 = vst [vmem:[%s9106_s21 + $0x128] sm:$0xff] %v3297_v59  ;;  %v3104_v52 = vand.u32 31, %v3102_v32  ;;  %v11232_v5 = vadd.f32 %v11051_v21, %v8804_v47 }
 0x344   : > { %v11236_v8 = vadd.f32 %v11055_v58, %v8804_v47  ;;  %v11238_v60 = vshrl.u32 %v3463_v29, 30  ;;  %v2159_v3 = vadd.f32 %v2143_v4, %v8804_v47  ;;  %v11243_v62 = vmul.f32 %v10387_v50, %v8794_v39 }
 0x345   : > { %v2961_v16 = vor.u32 4788187, %v2960_v0  ;;  %v3098_v15 = vor.u32 8388608, %v3097_v61  ;;  %v3105_v44 = vsub.s32 32, %v3104_v52  ;;  %v2964_v34 = vcvt.s32.f32 %v2957_v36 }
 0x346   : > { %v11245_v63 = vand.u32 3, %v2975_v25  ;;  %v3465_v21 = vshll.u32 %v11238_v60, 30  ;;  %v11251_v35 = vadd.f32 %v2239_v17, %v2159_v3  ;;  %v3107_v50 = vshll.u32 %v8606_v23, %v3104_v52 }
 0x347   : > { %v2962_v57 = vand.u32 2147483647, %v2961_v16  ;;  %v3108_v58 = vshrl.u32 %v14448_v49, %v3105_v44  ;;  %v3111_v37 = vshrl.u32 %v14446_v51, %v3105_v44  ;;  %v3114_v46 = vshrl.u32 %v14450_v53, %v3105_v44 }
 0x348   : > { %v11253_v43 = vsub.s32 %v3462_v41, %v3465_v21  ;;  %v3117_v12 = vshrl.u32 %v14455_v55, %v3105_v44  ;;  %v3103_v6 = vshrl.u32 %v3102_v32, 5  ;;  %v3110_v33 = vshll.u32 %v14448_v49, %v3104_v52 }
 0x349   : > { %v2965_v4 = vmul.f32 %v2964_v34, %v2962_v57  ;;  %v3113_v26 = vshll.u32 %v14446_v51, %v3104_v52  ;;  %v11259_v42 = vshll.u32 %v3098_v15, 8  ;;  %v3109_v10 = vor.u32 %v3108_v58, %v3107_v50 }
 0x34a   : > { %v3468_v28 = vsub.s32 0, %v11253_v43  ;;  %v3116_v45 = vshll.u32 %v14450_v53, %v3104_v52  ;;  %v3112_v7 = vor.u32 %v3111_v37, %v3110_v33  ;;  %v3119_v22 = vshll.u32 %v14455_v55, %v3104_v52 }
 0x34b   : > { %v2966_v13 = vxor.u32 2147483648, %v2965_v4  ;;  %v3115_v18 = vor.u32 %v3114_v46, %v3113_v26  ;;  %v3120_v19 = vshrl.u32 %v14453_v1, %v3105_v44  ;;  %v3613_v14 = vand.u32 2139095040, %v11251_v35  ;;  %v2204_v26 = vpop.permute.xlu1 %2203 }
 0x34c   : > { %v7859_v27 = vmin.u32 %v3468_v28, %v11253_v43  ;;  %v3118_v41 = vor.u32 %v3117_v12, %v3116_v45  ;;  %v3488_v25 = vsub.s32 4, %v11238_v60  ;;  %v3106_v61 = vshrl.u32 %v8606_v23, %v3105_v44 }
 0x34d   : > { %v2967_v38 = vsel %vm2884_vm0, %v2966_v13, %v2965_v4  ;;  %v3121_v32 = vor.u32 %v3120_v19, %v3119_v22  ;;  %vm3404_vm8 = vcmp.lt.s32.totalorder %v11036_v24, 0  ;;  %vm3122_vm10 = vcmp.lt.s32.totalorder %v3103_v6, 1 }
 0x34e   : > { %v2970_v2 = vsel %vm11198_vm1, %v10987_v40, %v2967_v38  ;;  %v3470_v59 = vclz %v7859_v27  ;;  %vm3125_vm9 = vcmp.lt.s32.totalorder %v3103_v6, 4  ;;  %vm3123_vm12 = vcmp.lt.s32.totalorder %v3103_v6, 2 }
 0x34f   : > { %8400 = vcosq.f32 %v2970_v2  ;;  %v3127_v36 = vsel %vm3125_vm9, %v3115_v18, 2102212464  ;;  %v3130_v0 = vsel %vm3122_vm10, %v3109_v10, %v3112_v7  ;;  %vm3124_vm11 = vcmp.lt.s32.totalorder %v3103_v6, 3 }
 0x350   : > { %8402 = vsinq.f32 %v2970_v2  ;;  %v7860_v29 = vadd.s32 4294967294, %v3470_v59  ;;  %v3131_v52 = vsel %vm3125_vm9, %v3118_v41, 920167782  ;;  %v3134_v20 = vsel %vm3122_vm10, %v3112_v7, %v3115_v18 }
 0x351   : > { %vm11277_vm13 = vcmp.le.f32.partialorder %v3402_v11, 0.7853982  ;;  %v3126_v16 = vsel %vm3122_vm10, %v3106_v61, %v3109_v10  ;;  %v3132_v3 = vsel %vm3124_vm11, %v3115_v18, %v3131_v52  ;;  %v3135_v15 = vsel %vm3125_vm9, %v3121_v32, 1326507024 }
 0x352   : > { %v3614_v44 = vshrl.u32 %v3613_v14, 23  ;;  %vm7861_vm14 = vcmp.lt.s32.totalorder %v7860_v29, 0  ;;  %v3128_v57 = vsel %vm3124_vm11, %v3112_v7, %v3127_v36  ;;  %v3133_v34 = vsel %vm3123_vm12, %v3130_v0, %v3132_v3 }
 0x353   : > { %v3136_v21 = vsel %vm3124_vm11, %v3118_v41, %v3135_v15  ;;  %v3473_v58 = vsel %vm7861_vm14, 0, %v7860_v29  ;;  %v11284_v46 = vmul.u32.u64.low %v11259_v42, %v3133_v34  ;;  %v11285_v4 = vmul.u32.u64.high %v11259_v42, %v3133_v34, %v11284_v46 }
 0x354   : > { %v3137_v37 = vsel %vm3123_vm12, %v3134_v20, %v3136_v21  ;;  %vm2977_vm15 = vcmp.lt.s32.totalorder %v11245_v63, 2  ;;  %v3458_v11 = vadd.s32 %v11180_v9, %v11194_v31  ;;  %v3474_v50 = vsub.s32 32, %v3473_v58 }
 0x355   : > { %v3478_v12 = vsub.s32 4294967266, %v3473_v58  ;;  %v7866_v33 = vadd.s32 4294967169, %v3614_v44  ;;  %vm2974_vm0 = vweird.f32 %v10987_v40  ;;  %vm2978_vm1 = vcmp.eq.s32.totalorder %v11245_v63, 0 }
 0x356   : > { %v3129_v13 = vsel %vm3123_vm12, %v3126_v16, %v3128_v57  ;;  %v11295_v28 = vmul.u32.u64.low %v11259_v42, %v3137_v37  ;;  %v11296_v10 = vmul.u32.u64.high %v11259_v42, %v3137_v37, %v11295_v28  ;;  %v3475_v45 = vshll.u32 %v11253_v43, %v3473_v58 }
 0x357   : > { %v3476_v7 = vshrl.u32 %v3458_v11, %v3474_v50  ;;  %v3479_v18 = vadd.s32 127, %v3478_v12  ;;  %v3620_v22 = vadd.s32 1, %v7866_v33  ;;  %vm2981_vm2 = vcmp.eq.s32.totalorder %v11245_v63, 2 }
 0x358   : > { %v3489_v9 = vsel %vm3404_vm8, %v3488_v25, %v11238_v60  ;;  %v3148_v31 = vadd.s32 1, %v11285_v4  ;;  %v2236_v6 = vmul.f32 %v2204_v26, %v8807_v48  ;;  %v3610_v41 = vand.u32 2147483647, %v11251_v35 }
 0x359   : > { %v8401_v19 = vpop.eup %8400  ;;  %v3477_v38 = vor.u32 %v3476_v7, %v3475_v45  ;;  %v3480_v27 = vshll.u32 %v3479_v18, 23  ;;  %vm3621_vm3 = vcmp.gt.s32.totalorder %v3620_v22, 0  ;;  %v3145_v2 = vmul.u32 %v11259_v42, %v3129_v13 }
 0x35a   : > { %v8403_v43 = vpop.eup %8402  ;;  %v2982_v14 = vxor.u32 2147483648, %v8401_v19  ;;  %vm3147_vm4 = vc.u32 %v11296_v10, %v11284_v46  ;;  %v3622_v61 = vsel %vm3621_vm3, %v3620_v22, 0  ;;  %v3491_v25 = vsel %vm11277_vm13, 0, %v3489_v9 }
 0x35b   : > { %v2979_v32 = vxor.u32 2147483648, %v8403_v43  ;;  %v3481_v60 = vor.u32 4788187, %v3480_v27  ;;  %v3149_v59 = vsel %vm3147_vm4, %v3148_v31, %v11285_v4  ;;  %v3624_v29 = vand.u32 31, %v3622_v61 }
 0x35c   : > { %v2983_v36 = vsel %vm2981_vm2, %v2982_v14, %v8403_v43  ;;  %v3150_v0 = vadd.s32 %v3149_v59, %v3145_v2  ;;  %v11315_v52 = vadd.f32 %v2236_v6, %v11232_v5  ;;  %v3484_v16 = vcvt.s32.f32 %v3477_v38 }
 0x35d   : > { %v2980_v42 = vsel %vm2978_vm1, %v8401_v19, %v2979_v32  ;;  %v3482_v20 = vand.u32 2147483647, %v3481_v60  ;;  %v3617_v3 = vand.u32 8388607, %v3610_v41  ;;  %v3495_v44 = vadd.s32 3, %v3491_v25 }
 0x35e   : > { %v2984_v15 = vsel %vm2977_vm15, %v2980_v42, %v2983_v36  ;;  %v3151_v57 = vadd.s32 536870912, %v3150_v0  ;;  %v3625_v34 = vsub.s32 32, %v3624_v29  ;;  %v3627_v5 = vshll.u32 %v8606_v23, %v3624_v29 }
 0x35f   : > { %v2985_v21 = vsel %vm2974_vm0, nan, %v2984_v15  ;;  %v3485_v58 = vmul.f32 %v3484_v16, %v3482_v20  ;;  %v3630_v37 = vshll.u32 %v14448_v49, %v3624_v29  ;;  %v3633_v63 = vshll.u32 %v14446_v51, %v3624_v29 }
 0x360   : > { %3928 = vst [vmem:[%s9106_s21 + $0xc8] sm:$0xff] %v2985_v21  ;;  %v11328_v4 = vshrl.u32 %v3151_v57, 30  ;;  %v3628_v11 = vshrl.u32 %v14448_v49, %v3625_v34  ;;  %v3631_v50 = vshrl.u32 %v14446_v51, %v3625_v34  ;;  %v3634_v33 = vshrl.u32 %v14450_v53, %v3625_v34 }
 0x361   : > { %v3486_v12 = vxor.u32 2147483648, %v3485_v58  ;;  %v3636_v40 = vshll.u32 %v14450_v53, %v3624_v29  ;;  %v3637_v26 = vshrl.u32 %v14455_v55, %v3625_v34  ;;  %v3623_v28 = vshrl.u32 %v3622_v61, 5 }
 0x362   : > { %v3153_v13 = vshll.u32 %v11328_v4, 30  ;;  %v3629_v45 = vor.u32 %v3628_v11, %v3627_v5  ;;  %v3301_v7 = vand.u32 2139095040, %v11315_v52  ;;  %v3632_v22 = vor.u32 %v3631_v50, %v3630_v37 }
 0x363   : > { %v3487_v18 = vsel %vm3404_vm8, %v3486_v12, %v3485_v58  ;;  %v3635_v9 = vor.u32 %v3634_v33, %v3633_v63  ;;  %v3638_v31 = vor.u32 %v3637_v26, %v3636_v40  ;;  %v3639_v38 = vshll.u32 %v14455_v55, %v3624_v29 }
 0x364   : > { %v3490_v6 = vsel %vm11277_vm13, %v11036_v24, %v3487_v18  ;;  %v11343_v19 = vsub.s32 %v3150_v0, %v3153_v13  ;;  %v3640_v27 = vshrl.u32 %v14453_v1, %v3625_v34  ;;  %v11347_v43 = vand.u32 3, %v3495_v44 }
 0x365   : > { %8404 = vcosq.f32 %v3490_v6  ;;  %v3618_v14 = vor.u32 8388608, %v3617_v3  ;;  %v3298_v2 = vand.u32 2147483647, %v11315_v52  ;;  %vm3092_vm5 = vcmp.lt.s32.totalorder %v11060_v30, 0 }
 0x366   : > { %8406 = vsinq.f32 %v3490_v6  ;;  %v3156_v61 = vsub.s32 0, %v11343_v19  ;;  %v3641_v32 = vor.u32 %v3640_v27, %v3639_v38  ;;  %v3302_v17 = vshrl.u32 %v3301_v7, 23 }
 0x367   : > { %v3626_v60 = vshrl.u32 %v8606_v23, %v3625_v34  ;;  %vm3642_vm6 = vcmp.lt.s32.totalorder %v3623_v28, 1  ;;  %vm3644_vm7 = vcmp.lt.s32.totalorder %v3623_v28, 3  ;;  %vm3645_vm8 = vcmp.lt.s32.totalorder %v3623_v28, 4 }
 0x368   : > { %v7847_v25 = vmin.u32 %v3156_v61, %v11343_v19  ;;  %v3647_v59 = vsel %vm3645_vm8, %v3635_v9, 2102212464  ;;  %v3650_v36 = vsel %vm3642_vm6, %v3629_v45, %v3632_v22  ;;  %v3651_v0 = vsel %vm3645_vm8, %v3638_v31, 920167782 }
 0x369   : > { %v3652_v29 = vsel %vm3644_vm7, %v3635_v9, %v3651_v0  ;;  %v3654_v42 = vsel %vm3642_vm6, %v3632_v22, %v3635_v9  ;;  %v3655_v20 = vsel %vm3645_vm8, %v3641_v32, 1326507024  ;;  %v3658_v16 = vshll.u32 %v3618_v14, 8 }
 0x36a   : > { %vm11357_vm10 = vcmp.le.f32.partialorder %v3090_v54, 0.7853982  ;;  %v3158_v15 = vclz %v7847_v25  ;;  %vm3643_vm9 = vcmp.lt.s32.totalorder %v3623_v28, 2  ;;  %v3646_v44 = vsel %vm3642_vm6, %v3626_v60, %v3629_v45  ;;  %v2224_v25 = vpop.permute.xlu0 %2223 }
 0x36b   : > { %v3648_v57 = vsel %vm3644_vm7, %v3632_v22, %v3647_v59  ;;  %vm3497_vm12 = vcmp.lt.s32.totalorder %v11347_v43, 2  ;;  %v3176_v34 = vsub.s32 4, %v11328_v4  ;;  %v3653_v21 = vsel %vm3643_vm9, %v3650_v36, %v3652_v29 }
 0x36c   : > { %v3656_v58 = vsel %vm3644_vm7, %v3638_v31, %v3655_v20  ;;  %v7854_v5 = vadd.s32 4294967169, %v3302_v17  ;;  %vm3494_vm11 = vweird.f32 %v11036_v24  ;;  %v7848_v37 = vadd.s32 4294967294, %v3158_v15 }
 0x36d   : > { %v3657_v54 = vsel %vm3643_vm9, %v3654_v42, %v3656_v58  ;;  %v11366_v11 = vmul.u32.u64.low %v3658_v16, %v3653_v21  ;;  %v11367_v50 = vmul.u32.u64.high %v3658_v16, %v3653_v21, %v11366_v11  ;;  %v3649_v63 = vsel %vm3643_vm9, %v3646_v44, %v3648_v57 }
 0x36e   : > { %v11370_v12 = vmul.u32.u64.low %v3658_v16, %v3657_v54  ;;  %v11371_v33 = vmul.u32.u64.high %v3658_v16, %v3657_v54, %v11370_v12  ;;  %v3308_v40 = vadd.s32 1, %v7854_v5  ;;  %vm3498_vm13 = vcmp.eq.s32.totalorder %v11347_v43, 0 }
 0x36f   : > { %vm3501_vm14 = vcmp.eq.s32.totalorder %v11347_v43, 2  ;;  %vm7849_vm15 = vcmp.lt.s32.totalorder %v7848_v37, 0  ;;  %v3305_v26 = vand.u32 8388607, %v3298_v2  ;;  %v8405_v13 = vpop.eup %8404  ;;  %v3146_v28 = vadd.s32 %v11284_v46, %v11296_v10 }
 0x370   : > { %v3161_v45 = vsel %vm7849_vm15, 0, %v7848_v37  ;;  %v3177_v7 = vsel %vm3092_vm5, %v3176_v34, %v11328_v4  ;;  %vm3309_vm0 = vcmp.gt.s32.totalorder %v3308_v40, 0  ;;  %v8407_v18 = vpop.eup %8406  ;;  %v3502_v22 = vxor.u32 2147483648, %v8405_v13 }
 0x371   : > { %v3162_v9 = vsub.s32 32, %v3161_v45  ;;  %v3166_v31 = vsub.s32 4294967266, %v3161_v45  ;;  %v3665_v6 = vmul.u32 %v3658_v16, %v3649_v63  ;;  %v3499_v38 = vxor.u32 2147483648, %v8407_v18 }
 0x372   : > { %v3163_v27 = vshll.u32 %v11343_v19, %v3161_v45  ;;  %vm3667_vm1 = vc.u32 %v11371_v33, %v11366_v11  ;;  %v3668_v14 = vadd.s32 1, %v11367_v50  ;;  %v3503_v46 = vsel %vm3501_vm14, %v3502_v22, %v8407_v18 }
 0x373   : > { %v3164_v10 = vshrl.u32 %v3146_v28, %v3162_v9  ;;  %v3167_v4 = vadd.s32 127, %v3166_v31  ;;  %v3310_v61 = vsel %vm3309_vm0, %v3308_v40, 0  ;;  %v3500_v32 = vsel %vm3498_vm13, %v8405_v13, %v3499_v38 }
 0x374   : > { %v3179_v17 = vsel %vm11357_vm10, 0, %v3177_v7  ;;  %v3669_v19 = vsel %vm3667_vm1, %v3668_v14, %v11367_v50  ;;  %v3312_v60 = vand.u32 31, %v3310_v61  ;;  %v3504_v59 = vsel %vm3497_vm12, %v3500_v32, %v3503_v46 }
 0x375   : > { %v3165_v36 = vor.u32 %v3164_v10, %v3163_v27  ;;  %v3168_v0 = vshll.u32 %v3167_v4, 23  ;;  %v3670_v29 = vadd.s32 %v3669_v19, %v3665_v6  ;;  %v2161_v42 = vadd.f32 %v11243_v62, %v8804_v47 }
 0x376   : > { %v3505_v20 = vsel %vm3494_vm11, nan, %v3504_v59  ;;  %v3306_v16 = vor.u32 8388608, %v3305_v26  ;;  %v3313_v15 = vsub.s32 32, %v3312_v60  ;;  %v3183_v57 = vadd.s32 3, %v3179_v17 }
 0x377   : > { %3933 = vst [vmem:[%s9106_s21 + $0x168] sm:$0xff] %v3505_v20  ;;  %v3169_v44 = vor.u32 4788187, %v3168_v0  ;;  %v3671_v34 = vadd.s32 536870912, %v3670_v29  ;;  %v2241_v21 = vmul.f32 %v2224_v25, %v8807_v48  ;;  %v3172_v58 = vcvt.s32.f32 %v3165_v36  ;;  %v2212_v20 = vpop.permute.xlu1 %2211 }
 0x378   : > { %v3315_v43 = vshll.u32 %v8606_v23, %v3312_v60  ;;  %v3316_v5 = vshrl.u32 %v14448_v49, %v3313_v15  ;;  %v3319_v37 = vshrl.u32 %v14446_v51, %v3313_v15  ;;  %v3322_v24 = vshrl.u32 %v14450_v53, %v3313_v15 }
 0x379   : > { %v3170_v54 = vand.u32 2147483647, %v3169_v44  ;;  %v3672_v62 = vshrl.u32 %v3671_v34, 30  ;;  %v3325_v50 = vshrl.u32 %v14455_v55, %v3313_v15  ;;  %v3311_v63 = vshrl.u32 %v3310_v61, 5 }
 0x37a   : > { %v3318_v12 = vshll.u32 %v14448_v49, %v3312_v60  ;;  %v3324_v40 = vshll.u32 %v14450_v53, %v3312_v60  ;;  %v11408_v26 = vshll.u32 %v3306_v16, 8  ;;  %v3317_v45 = vor.u32 %v3316_v5, %v3315_v43 }
 0x37b   : > { %v3173_v13 = vmul.f32 %v3172_v58, %v3170_v54  ;;  %v3673_v28 = vshll.u32 %v3672_v62, 30  ;;  %v3321_v7 = vshll.u32 %v14446_v51, %v3312_v60  ;;  %v3327_v9 = vshll.u32 %v14455_v55, %v3312_v60 }
 0x37c   : > { %v3320_v18 = vor.u32 %v3319_v37, %v3318_v12  ;;  %v3326_v22 = vor.u32 %v3325_v50, %v3324_v40  ;;  %v3328_v31 = vshrl.u32 %v14453_v1, %v3313_v15  ;;  %v11415_v14 = vadd.f32 %v2241_v21, %v2161_v42 }
 0x37d   : > { %v3174_v6 = vxor.u32 2147483648, %v3173_v13  ;;  %v11413_v38 = vsub.s32 %v3670_v29, %v3673_v28  ;;  %v3323_v27 = vor.u32 %v3322_v24, %v3321_v7  ;;  %v3696_v46 = vsub.s32 4, %v3672_v62 }
 0x37e   : > { %v3314_v10 = vshrl.u32 %v8606_v23, %v3313_v15  ;;  %v3329_v4 = vor.u32 %v3328_v31, %v3327_v9  ;;  %vm3330_vm2 = vcmp.lt.s32.totalorder %v3311_v63, 1  ;;  %vm3331_vm3 = vcmp.lt.s32.totalorder %v3311_v63, 2 }
 0x37f   : > { %v3175_v61 = vsel %vm3092_vm5, %v3174_v6, %v3173_v13  ;;  %v3676_v32 = vsub.s32 0, %v11413_v38  ;;  %vm3333_vm4 = vcmp.lt.s32.totalorder %v3311_v63, 4  ;;  %vm3332_vm6 = vcmp.lt.s32.totalorder %v3311_v63, 3 }
 0x380   : > { %v3178_v17 = vsel %vm11357_vm10, %v11060_v30, %v3175_v61  ;;  %v3338_v19 = vsel %vm3330_vm2, %v3317_v45, %v3320_v18  ;;  %v3339_v60 = vsel %vm3333_vm4, %v3326_v22, 920167782  ;;  %v3335_v59 = vsel %vm3333_vm4, %v3323_v27, 2102212464 }
 0x381   : > { %8408 = vcosq.f32 %v3178_v17  ;;  %v7867_v25 = vmin.u32 %v3676_v32, %v11413_v38  ;;  %v3340_v36 = vsel %vm3332_vm6, %v3323_v27, %v3339_v60  ;;  %v3342_v29 = vsel %vm3330_vm2, %v3320_v18, %v3323_v27 }
 0x382   : > { %8410 = vsinq.f32 %v3178_v17  ;;  %v3341_v0 = vsel %vm3331_vm3, %v3338_v19, %v3340_v36  ;;  %v3343_v42 = vsel %vm3333_vm4, %v3329_v4, 1326507024  ;;  %v2144_v3 = vmul.f32 %v10248_v56, %v8794_v39 }
 0x383   : > { %v3184_v16 = vand.u32 3, %v3183_v57  ;;  %v3678_v15 = vclz %v7867_v25  ;;  %v3334_v44 = vsel %vm3330_vm2, %v3314_v10, %v3317_v45  ;;  %v3336_v34 = vsel %vm3332_vm6, %v3320_v18, %v3335_v59 }
 0x384   : > { %v3344_v21 = vsel %vm3332_vm6, %v3326_v22, %v3343_v42  ;;  %v11435_v58 = vmul.u32.u64.low %v11408_v26, %v3341_v0  ;;  %v11436_v43 = vmul.u32.u64.high %v11408_v26, %v3341_v0, %v11435_v58  ;;  %vm3612_vm5 = vcmp.lt.s32.totalorder %v11251_v35, 0 }
 0x385   : > { %v7868_v5 = vadd.s32 4294967294, %v3678_v15  ;;  %v3345_v37 = vsel %vm3331_vm3, %v3342_v29, %v3344_v21  ;;  %v2238_v56 = vmul.f32 %v2212_v20, %v8807_v48  ;;  %v3697_v57 = vsel %vm3612_vm5, %v3696_v46, %v3672_v62 }
 0x386   : > { %v11445_v54 = vmul.u32.u64.low %v11408_v26, %v3345_v37  ;;  %v11446_v24 = vmul.u32.u64.high %v11408_v26, %v3345_v37, %v11445_v54  ;;  %v3821_v50 = vand.u32 2139095040, %v11415_v14  ;;  %vm3185_vm7 = vcmp.lt.s32.totalorder %v3184_v16, 2 }
 0x387   : > { %vm11451_vm8 = vcmp.le.f32.partialorder %v3610_v41, 0.7853982  ;;  %vm7869_vm10 = vcmp.lt.s32.totalorder %v7868_v5, 0  ;;  %v3337_v40 = vsel %vm3331_vm3, %v3334_v44, %v3336_v34  ;;  %vm3182_vm9 = vweird.f32 %v11060_v30 }
 0x388   : > { %vm3186_vm12 = vcmp.eq.s32.totalorder %v3184_v16, 0  ;;  %v3681_v62 = vsel %vm7869_vm10, 0, %v7868_v5  ;;  %v3356_v13 = vadd.s32 1, %v11436_v43  ;;  %v3822_v28 = vshrl.u32 %v3821_v50, 23 }
 0x389   : > { %v3666_v45 = vadd.s32 %v11366_v11, %v11371_v33  ;;  %v3682_v7 = vsub.s32 32, %v3681_v62  ;;  %v3686_v18 = vsub.s32 4294967266, %v3681_v62  ;;  %v3699_v41 = vsel %vm11451_vm8, 0, %v3697_v57 }
 0x38a   : > { %v3353_v22 = vmul.u32 %v11408_v26, %v3337_v40  ;;  %vm3355_vm11 = vc.u32 %v11446_v24, %v11435_v58  ;;  %v3818_v63 = vand.u32 2147483647, %v11415_v14  ;;  %v7874_v9 = vadd.s32 4294967169, %v3822_v28 }
 0x38b   : > { %v8409_v31 = vpop.eup %8408  ;;  %v3683_v6 = vshll.u32 %v11413_v38, %v3681_v62  ;;  %v3684_v27 = vshrl.u32 %v3666_v45, %v3682_v7  ;;  %v3687_v46 = vadd.s32 127, %v3686_v18  ;;  %v3357_v11 = vsel %vm3355_vm11, %v3356_v13, %v11436_v43 }
 0x38c   : > { %v8411_v33 = vpop.eup %8410  ;;  %v3190_v10 = vxor.u32 2147483648, %v8409_v31  ;;  %v3358_v4 = vadd.s32 %v3357_v11, %v3353_v22  ;;  %v3828_v61 = vadd.s32 1, %v7874_v9  ;;  %v11469_v32 = vadd.f32 %v2238_v56, %v11236_v8 }
 0x38d   : > { %v3187_v26 = vxor.u32 2147483648, %v8411_v33  ;;  %vm3189_vm13 = vcmp.eq.s32.totalorder %v3184_v16, 2  ;;  %v3685_v17 = vor.u32 %v3684_v27, %v3683_v6  ;;  %v3688_v19 = vshll.u32 %v3687_v46, 23 }
 0x38e   : > { %v3191_v60 = vsel %vm3189_vm13, %v3190_v10, %v8411_v33  ;;  %v3703_v25 = vadd.s32 3, %v3699_v41  ;;  %v3359_v59 = vadd.s32 536870912, %v3358_v4  ;;  %vm3829_vm14 = vcmp.gt.s32.totalorder %v3828_v61, 0 }
 0x38f   : > { %v3188_v38 = vsel %vm3186_vm12, %v8409_v31, %v3187_v26  ;;  %v3689_v36 = vor.u32 4788187, %v3688_v19  ;;  %v3825_v0 = vand.u32 8388607, %v3818_v63  ;;  %v3830_v29 = vsel %vm3829_vm14, %v3828_v61, 0 }
 0x390   : > { %v3192_v42 = vsel %vm3185_vm7, %v3188_v38, %v3191_v60  ;;  %v3360_v8 = vshrl.u32 %v3359_v59, 30  ;;  %v3832_v20 = vand.u32 31, %v3830_v29  ;;  %v3509_v15 = vand.u32 2139095040, %v11469_v32 }
 0x391   : > { %v11477_v44 = vadd.f32 %v2144_v3, %v8804_v47  ;;  %v3193_v34 = vsel %vm3182_vm9, nan, %v3192_v42  ;;  %v3690_v21 = vand.u32 2147483647, %v3689_v36  ;;  %v3692_v43 = vcvt.s32.f32 %v3685_v17 }
 0x392   : > { %3930 = vst [vmem:[%s9106_s21 + $0x108] sm:$0xff] %v3193_v34  ;;  %v11482_v5 = vand.u32 3, %v3703_v25  ;;  %vm3300_vm15 = vcmp.lt.s32.totalorder %v11315_v52, 0  ;;  %v3361_v37 = vshll.u32 %v3360_v8, 30  ;;  %v3833_v16 = vsub.s32 32, %v3832_v20 }
 0x393   : > { %v3693_v56 = vmul.f32 %v3692_v43, %v3690_v21  ;;  %v3354_v57 = vadd.s32 %v11435_v58, %v11446_v24  ;;  %v3826_v54 = vor.u32 8388608, %v3825_v0  ;;  %v3506_v3 = vand.u32 2147483647, %v11469_v32 }
 0x394   : > { %v11488_v50 = vsub.s32 %v3358_v4, %v3361_v37  ;;  %v11490_v30 = vshrl.u32 %v3830_v29, 5  ;;  %v3836_v40 = vshrl.u32 %v14448_v49, %v3833_v16  ;;  %v3510_v62 = vshrl.u32 %v3509_v15, 23 }
 0x395   : > { %v3694_v13 = vxor.u32 2147483648, %v3693_v56  ;;  %v3835_v28 = vshll.u32 %v8606_v23, %v3832_v20  ;;  %v3839_v45 = vshrl.u32 %v14446_v51, %v3833_v16  ;;  %v3842_v7 = vshrl.u32 %v14450_v53, %v3833_v16 }
 0x396   : > { %v3364_v18 = vsub.s32 0, %v11488_v50  ;;  %v3838_v58 = vshll.u32 %v14448_v49, %v3832_v20  ;;  %v3841_v24 = vshll.u32 %v14446_v51, %v3832_v20  ;;  %v3845_v41 = vshrl.u32 %v14455_v55, %v3833_v16 }
 0x397   : > { %v3695_v22 = vsel %vm3612_vm5, %v3694_v13, %v3693_v56  ;;  %v3384_v9 = vsub.s32 4, %v3360_v8  ;;  %v3837_v31 = vor.u32 %v3836_v40, %v3835_v28  ;;  %v3844_v6 = vshll.u32 %v14450_v53, %v3832_v20 }
 0x398   : > { %v3698_v27 = vsel %vm11451_vm8, %v11251_v35, %v3695_v22  ;;  %v7855_v46 = vmin.u32 %v3364_v18, %v11488_v50  ;;  %v3840_v11 = vor.u32 %v3839_v45, %v3838_v58  ;;  %v3843_v33 = vor.u32 %v3842_v7, %v3841_v24 }
 0x399   : > { %8412 = vcosq.f32 %v3698_v27  ;;  %v3846_v10 = vor.u32 %v3845_v41, %v3844_v6  ;;  %v3847_v4 = vshll.u32 %v14455_v55, %v3832_v20  ;;  %v3848_v61 = vshrl.u32 %v14453_v1, %v3833_v16  ;;  %v11529_v20 = vpop.permute.xlu1 %2219 }
 0x39a   : > { %8414 = vsinq.f32 %v3698_v27  ;;  %v3366_v26 = vclz %v7855_v46  ;;  %v11509_v17 = vshll.u32 %v3826_v54, 8  ;;  %v7862_v19 = vadd.s32 4294967169, %v3510_v62 }
 0x39b   : > { %v11513_v60 = vsel %vm3300_vm15, %v3384_v9, %v3360_v8  ;;  %v3834_v12 = vshrl.u32 %v8606_v23, %v3833_v16  ;;  %v3849_v25 = vor.u32 %v3848_v61, %v3847_v4  ;;  %vm3850_vm0 = vcmp.lt.s32.totalorder %v11490_v30, 1 }
 0x39c   : > { %vm11519_vm1 = vcmp.le.f32.partialorder %v3298_v2, 0.7853982  ;;  %v7856_v38 = vadd.s32 4294967294, %v3366_v26  ;;  %vm3852_vm2 = vcmp.lt.s32.totalorder %v11490_v30, 3  ;;  %vm3853_vm3 = vcmp.lt.s32.totalorder %v11490_v30, 4 }
 0x39d   : > { %v3858_v36 = vsel %vm3850_vm0, %v3837_v31, %v3840_v11  ;;  %v3855_v0 = vsel %vm3853_vm3, %v3843_v33, 2102212464  ;;  %v3859_v29 = vsel %vm3853_vm3, %v3846_v10, 920167782  ;;  %v3862_v42 = vsel %vm3850_vm0, %v3840_v11, %v3843_v33 }
 0x39e   : > { %v3863_v8 = vsel %vm3853_vm3, %v3849_v25, 1326507024  ;;  %vm7857_vm4 = vcmp.lt.s32.totalorder %v7856_v38, 0  ;;  %vm3851_vm6 = vcmp.lt.s32.totalorder %v11490_v30, 2  ;;  %v3860_v2 = vsel %vm3852_vm2, %v3843_v33, %v3859_v29 }
 0x39f   : > { %v3864_v15 = vsel %vm3852_vm2, %v3846_v10, %v3863_v8  ;;  %vm3705_vm5 = vcmp.lt.s32.totalorder %v11482_v5, 2  ;;  %v3369_v34 = vsel %vm7857_vm4, 0, %v7856_v38  ;;  %v3854_v21 = vsel %vm3850_vm0, %v3834_v12, %v3837_v31  ;;  %v11561_v31 = vpop.permute.xlu1 %3939 }
 0x3a0   : > { %v3861_v43 = vsel %vm3851_vm6, %v3858_v36, %v3860_v2  ;;  %v3865_v37 = vsel %vm3851_vm6, %v3862_v42, %v3864_v15  ;;  %vm3702_vm7 = vweird.f32 %v11251_v35  ;;  %v3370_v16 = vsub.s32 32, %v3369_v34 }
 0x3a1   : > { %v3374_v56 = vsub.s32 4294967266, %v3369_v34  ;;  %v3856_v54 = vsel %vm3852_vm2, %v3840_v11, %v3855_v0  ;;  %v3516_v40 = vadd.s32 1, %v7862_v19  ;;  %v3371_v7 = vshll.u32 %v11488_v50, %v3369_v34 }
 0x3a2   : > { %v11547_v62 = vmul.u32.u64.low %v11509_v17, %v3865_v37  ;;  %v11548_v13 = vmul.u32.u64.high %v11509_v17, %v3865_v37, %v11547_v62  ;;  %v11551_v28 = vmul.u32.u64.low %v11509_v17, %v3861_v43  ;;  %v11552_v45 = vmul.u32.u64.high %v11509_v17, %v3861_v43, %v11551_v28 }
 0x3a3   : > { %v3372_v18 = vshrl.u32 %v3354_v57, %v3370_v16  ;;  %v3375_v58 = vadd.s32 127, %v3374_v56  ;;  %vm3517_vm8 = vcmp.gt.s32.totalorder %v3516_v40, 0  ;;  %v8413_v24 = vpop.eup %8412  ;;  %vm3706_vm10 = vcmp.eq.s32.totalorder %v11482_v5, 0  ;;  %v11579_v2 = vpop.permute.xlu1 %3947 }
 0x3a4   : > { %v3857_v41 = vsel %vm3851_vm6, %v3854_v21, %v3856_v54  ;;  %v3513_v22 = vand.u32 8388607, %v3506_v3  ;;  %v3518_v9 = vsel %vm3517_vm8, %v3516_v40, 0  ;;  %v8415_v6 = vpop.eup %8414  ;;  %vm3709_vm9 = vcmp.eq.s32.totalorder %v11482_v5, 2 }
 0x3a5   : > { %v3710_v27 = vxor.u32 2147483648, %v8413_v24  ;;  %v3373_v50 = vor.u32 %v3372_v18, %v3371_v7  ;;  %v3376_v57 = vshll.u32 %v3375_v58, 23  ;;  %v3707_v46 = vxor.u32 2147483648, %v8415_v6 }
 0x3a6   : > { %v3387_v11 = vsel %vm11519_vm1, 0, %v11513_v60  ;;  %vm3875_vm12 = vc.u32 %v11548_v13, %v11551_v28  ;;  %v3876_v30 = vadd.s32 1, %v11552_v45  ;;  %v3873_v4 = vmul.u32 %v11509_v17, %v3857_v41 }
 0x3a7   : > { %v3711_v33 = vsel %vm3709_vm9, %v3710_v27, %v8415_v6  ;;  %v3377_v10 = vor.u32 4788187, %v3376_v57  ;;  %v3520_v61 = vand.u32 31, %v3518_v9  ;;  %v3708_v26 = vsel %vm3706_vm10, %v8413_v24, %v3707_v46  ;;  %v11603_v46 = vpop.permute.xlu1 %3951 }
 0x3a8   : > { %v3380_v19 = vcvt.s32.f32 %v3373_v50  ;;  %v3877_v12 = vsel %vm3875_vm12, %v3876_v30, %v11552_v45  ;;  %v3514_v25 = vor.u32 8388608, %v3513_v22  ;;  %v3712_v60 = vsel %vm3705_vm5, %v3708_v26, %v3711_v33 }
 0x3a9   : > { %v3378_v38 = vand.u32 2147483647, %v3377_v10  ;;  %v3878_v36 = vadd.s32 %v3877_v12, %v3873_v4  ;;  %v3521_v0 = vsub.s32 32, %v3520_v61  ;;  %v3713_v29 = vsel %vm3702_vm7, nan, %v3712_v60 }
 0x3aa   : > { %v3391_v42 = vadd.s32 3, %v3387_v11  ;;  %v3519_v8 = vshrl.u32 %v3518_v9, 5  ;;  %v3523_v17 = vshll.u32 %v8606_v23, %v3520_v61  ;;  %3935 = vst [vmem:[%s9106_s21 + $0x1a8] sm:$0xff] %v3713_v29  ;;  %v3526_v5 = vshll.u32 %v14448_v49, %v3520_v61 }
 0x3ab   : > { %v3381_v15 = vmul.f32 %v3380_v19, %v3378_v38  ;;  %v3879_v34 = vadd.s32 536870912, %v3878_v36  ;;  %v3524_v21 = vshrl.u32 %v14448_v49, %v3521_v0  ;;  %v3527_v43 = vshrl.u32 %v14446_v51, %v3521_v0 }
 0x3ac   : > { %v3529_v37 = vshll.u32 %v14446_v51, %v3520_v61  ;;  %v3530_v35 = vshrl.u32 %v14450_v53, %v3521_v0  ;;  %v3533_v16 = vshrl.u32 %v14455_v55, %v3521_v0  ;;  %v3532_v62 = vshll.u32 %v14450_v53, %v3520_v61 }
 0x3ad   : > { %v3382_v56 = vxor.u32 2147483648, %v3381_v15  ;;  %v11588_v54 = vshrl.u32 %v3879_v34, 30  ;;  %v3525_v40 = vor.u32 %v3524_v21, %v3523_v17  ;;  %v3528_v45 = vor.u32 %v3527_v43, %v3526_v5  ;;  %v11619_v17 = vpop.permute.xlu1 %3959 }
 0x3ae   : > { %v3531_v7 = vor.u32 %v3530_v35, %v3529_v37  ;;  %v3535_v18 = vshll.u32 %v14455_v55, %v3520_v61  ;;  %v3536_v58 = vshrl.u32 %v14453_v1, %v3521_v0  ;;  %v11595_v41 = vand.u32 3, %v3391_v42 }
 0x3af   : > { %v3383_v24 = vsel %vm3300_vm15, %v3382_v56, %v3381_v15  ;;  %v3881_v22 = vshll.u32 %v11588_v54, 30  ;;  %v3534_v9 = vor.u32 %v3533_v16, %v3532_v62  ;;  %v3554_v50 = vshll.u32 %v3514_v25, 8 }
 0x3b0   : > { %v3386_v6 = vsel %vm11519_vm1, %v11315_v52, %v3383_v24  ;;  %v3537_v27 = vor.u32 %v3536_v58, %v3535_v18  ;;  %v2240_v57 = vmul.f32 %v11529_v20, %v8807_v48  ;;  %vm3538_vm11 = vcmp.lt.s32.totalorder %v3519_v8, 1 }
 0x3b1   : > { %8416 = vcosq.f32 %v3386_v6  ;;  %v11605_v11 = vsub.s32 %v3878_v36, %v3881_v22  ;;  %vm3541_vm13 = vcmp.lt.s32.totalorder %v3519_v8, 4  ;;  %v3522_v30 = vshrl.u32 %v8606_v23, %v3521_v0  ;;  %v11636_v18 = vpop.permute.xlu1 %3967 }
 0x3b2   : > { %8418 = vsinq.f32 %v3386_v6  ;;  %v3543_v33 = vsel %vm3541_vm13, %v3531_v7, 2102212464  ;;  %v3546_v10 = vsel %vm3538_vm11, %v3525_v40, %v3528_v45  ;;  %vm3539_vm14 = vcmp.lt.s32.totalorder %v3519_v8, 2 }
 0x3b3   : > { %v3884_v59 = vsub.s32 0, %v11605_v11  ;;  %vm3540_vm15 = vcmp.lt.s32.totalorder %v3519_v8, 3  ;;  %v3547_v4 = vsel %vm3541_vm13, %v3534_v9, 920167782  ;;  %v3542_v61 = vsel %vm3538_vm11, %v3522_v30, %v3525_v40 }
 0x3b4   : > { %v3548_v26 = vsel %vm3540_vm15, %v3531_v7, %v3547_v4  ;;  %v3550_v20 = vsel %vm3538_vm11, %v3528_v45, %v3531_v7  ;;  %v3551_v19 = vsel %vm3541_vm13, %v3537_v27, 1326507024  ;;  %v3544_v25 = vsel %vm3540_vm15, %v3528_v45, %v3543_v33 }
 0x3b5   : > { %v7875_v12 = vmin.u32 %v3884_v59, %v11605_v11  ;;  %v3549_v60 = vsel %vm3539_vm14, %v3546_v10, %v3548_v26  ;;  %v3552_v38 = vsel %vm3540_vm15, %v3534_v9, %v3551_v19  ;;  %v11617_v42 = vadd.f32 %v2240_v57, %v11477_v44 }
 0x3b6   : > { %v3553_v36 = vsel %vm3539_vm14, %v3550_v20, %v3552_v38  ;;  %v11612_v0 = vmul.u32.u64.low %v3554_v50, %v3549_v60  ;;  %v11613_v29 = vmul.u32.u64.high %v3554_v50, %v3549_v60, %v11612_v0  ;;  %vm3820_vm0 = vcmp.lt.s32.totalorder %v11415_v14, 0 }
 0x3b7   : > { %v3886_v15 = vclz %v7875_v12  ;;  %v11621_v34 = vmul.u32.u64.low %v3554_v50, %v3553_v36  ;;  %v11622_v21 = vmul.u32.u64.high %v3554_v50, %v3553_v36, %v11621_v34  ;;  %v3545_v43 = vsel %vm3539_vm14, %v3542_v61, %v3544_v25 }
 0x3b8   : > { %v3717_v37 = vand.u32 2139095040, %v11617_v42  ;;  %vm3393_vm1 = vcmp.lt.s32.totalorder %v11595_v41, 2  ;;  %vm3394_vm2 = vcmp.eq.s32.totalorder %v11595_v41, 0  ;;  %vm3397_vm3 = vcmp.eq.s32.totalorder %v11595_v41, 2 }
 0x3b9   : > { %v7876_v5 = vadd.s32 4294967294, %v3886_v15  ;;  %v3564_v44 = vadd.s32 1, %v11613_v29  ;;  %v3874_v16 = vadd.s32 %v11551_v28, %v11548_v13  ;;  %v3904_v56 = vsub.s32 4, %v11588_v54 }
 0x3ba   : > { %v3718_v40 = vshrl.u32 %v3717_v37, 23  ;;  %v3561_v7 = vmul.u32 %v3554_v50, %v3545_v43  ;;  %vm3563_vm6 = vc.u32 %v11622_v21, %v11612_v0  ;;  %v3714_v9 = vand.u32 2147483647, %v11617_v42 }
 0x3bb   : > { %v8417_v35 = vpop.eup %8416  ;;  %vm7877_vm4 = vcmp.lt.s32.totalorder %v7876_v5, 0  ;;  %v3565_v6 = vsel %vm3563_vm6, %v3564_v44, %v11613_v29  ;;  %vm3390_vm5 = vweird.f32 %v11315_v52  ;;  %v3905_v59 = vsel %vm3820_vm0, %v3904_v56, %v11588_v54  ;;  %v11658_v52 = vpop.permute.xlu1 %3975 }
 0x3bc   : > { %v8419_v8 = vpop.eup %8418  ;;  %v3398_v62 = vxor.u32 2147483648, %v8417_v35  ;;  %v3889_v45 = vsel %vm7877_vm4, 0, %v7876_v5  ;;  %v7870_v27 = vadd.s32 4294967169, %v3718_v40  ;;  %v3566_v33 = vadd.s32 %v3565_v6, %v3561_v7 }
 0x3bd   : > { %v3395_v58 = vxor.u32 2147483648, %v8419_v8  ;;  %v3890_v24 = vsub.s32 32, %v3889_v45  ;;  %v3894_v22 = vsub.s32 4294967266, %v3889_v45  ;;  %v3891_v28 = vshll.u32 %v11605_v11, %v3889_v45 }
 0x3be   : > { %v3399_v13 = vsel %vm3397_vm3, %v3398_v62, %v8419_v8  ;;  %v3724_v4 = vadd.s32 1, %v7870_v27  ;;  %v3567_v20 = vadd.s32 536870912, %v3566_v33  ;;  %vm11654_vm7 = vcmp.le.f32.partialorder %v3818_v63, 0.7853982 }
 0x3bf   : > { %v3396_v50 = vsel %vm3394_vm2, %v8417_v35, %v3395_v58  ;;  %v3892_v57 = vshrl.u32 %v3874_v16, %v3890_v24  ;;  %v3895_v30 = vadd.s32 127, %v3894_v22  ;;  %v3721_v54 = vand.u32 8388607, %v3714_v9  ;;  %v11672_v40 = vpop.permute.xlu1 %3983 }
 0x3c0   : > { %v3400_v10 = vsel %vm3393_vm1, %v3396_v50, %v3399_v13  ;;  %vm3725_vm8 = vcmp.gt.s32.totalorder %v3724_v4, 0  ;;  %v11660_v12 = vshrl.u32 %v3567_v20, 30  ;;  %v3907_v60 = vsel %vm11654_vm7, 0, %v3905_v59 }
 0x3c1   : > { %v3401_v11 = vsel %vm3390_vm5, nan, %v3400_v10  ;;  %v3893_v61 = vor.u32 %v3892_v57, %v3891_v28  ;;  %v3896_v26 = vshll.u32 %v3895_v30, 23  ;;  %v3726_v25 = vsel %vm3725_vm8, %v3724_v4, 0 }
 0x3c2   : > { %3932 = vst [vmem:[%s9106_s21 + $0x148] sm:$0xff] %v3401_v11  ;;  %v3728_v38 = vand.u32 31, %v3726_v25  ;;  %v3569_v63 = vshll.u32 %v11660_v12, 30  ;;  %v3911_v5 = vadd.s32 3, %v3907_v60  ;;  %v3722_v37 = vor.u32 8388608, %v3721_v54 }
 0x3c3   : > { %v3897_v41 = vor.u32 4788187, %v3896_v26  ;;  %v3900_v29 = vcvt.s32.f32 %v3893_v61  ;;  %v3727_v44 = vshrl.u32 %v3726_v25, 5  ;;  %v3562_v4 = vadd.s32 %v11612_v0, %v11622_v21 }
 0x3c4   : > { %v3729_v15 = vsub.s32 32, %v3728_v38  ;;  %v11667_v43 = vsub.s32 %v3566_v33, %v3569_v63  ;;  %v3731_v35 = vshll.u32 %v8606_v23, %v3728_v38  ;;  %v3734_v45 = vshll.u32 %v14448_v49, %v3728_v38 }
 0x3c5   : > { %v3898_v36 = vand.u32 2147483647, %v3897_v41  ;;  %v3737_v24 = vshll.u32 %v14446_v51, %v3728_v38  ;;  %v3740_v22 = vshll.u32 %v14450_v53, %v3728_v38  ;;  %v3743_v50 = vshll.u32 %v14455_v55, %v3728_v38  ;;  %v11691_v41 = vpop.permute.xlu1 %3991 }
 0x3c6   : > { %v3732_v16 = vshrl.u32 %v14448_v49, %v3729_v15  ;;  %v3735_v56 = vshrl.u32 %v14446_v51, %v3729_v15  ;;  %v3572_v62 = vsub.s32 0, %v11667_v43  ;;  %v3738_v7 = vshrl.u32 %v14450_v53, %v3729_v15 }
 0x3c7   : > { %v3901_v34 = vmul.f32 %v3900_v29, %v3898_v36  ;;  %v3741_v13 = vshrl.u32 %v14455_v55, %v3729_v15  ;;  %v3744_v10 = vshrl.u32 %v14453_v1, %v3729_v15  ;;  %v3912_v59 = vand.u32 3, %v3911_v5 }
 0x3c8   : > { %v3733_v58 = vor.u32 %v3732_v16, %v3731_v35  ;;  %v7863_v6 = vmin.u32 %v3572_v62, %v11667_v43  ;;  %v3736_v27 = vor.u32 %v3735_v56, %v3734_v45  ;;  %v3739_v30 = vor.u32 %v3738_v7, %v3737_v24 }
 0x3c9   : > { %v3902_v8 = vxor.u32 2147483648, %v3901_v34  ;;  %v3742_v33 = vor.u32 %v3741_v13, %v3740_v22  ;;  %v3730_v61 = vshrl.u32 %v8606_v23, %v3729_v15  ;;  %v3745_v26 = vor.u32 %v3744_v10, %v3743_v50  ;;  %v11705_v45 = vpop.permute.xlu1 %3999 }
 0x3ca   : > { %v3574_v11 = vclz %v7863_v6  ;;  %v3762_v20 = vshll.u32 %v3722_v37, 8  ;;  %vm3746_vm10 = vcmp.lt.s32.totalorder %v3727_v44, 1  ;;  %vm3748_vm9 = vcmp.lt.s32.totalorder %v3727_v44, 3 }
 0x3cb   : > { %v3903_v28 = vsel %vm3820_vm0, %v3902_v8, %v3901_v34  ;;  %vm3749_vm12 = vcmp.lt.s32.totalorder %v3727_v44, 4  ;;  %v3754_v25 = vsel %vm3746_vm10, %v3733_v58, %v3736_v27  ;;  %v3758_v38 = vsel %vm3746_vm10, %v3736_v27, %v3739_v30 }
 0x3cc   : > { %v3906_v57 = vsel %vm11654_vm7, %v11415_v14, %v3903_v28  ;;  %v7864_v54 = vadd.s32 4294967294, %v3574_v11  ;;  %v3751_v19 = vsel %vm3749_vm12, %v3739_v30, 2102212464  ;;  %v3755_v60 = vsel %vm3749_vm12, %v3742_v33, 920167782 }
 0x3cd   : > { %8420 = vcosq.f32 %v3906_v57  ;;  %vm3747_vm13 = vcmp.lt.s32.totalorder %v3727_v44, 2  ;;  %v3756_v0 = vsel %vm3748_vm9, %v3739_v30, %v3755_v60  ;;  %v3759_v21 = vsel %vm3749_vm12, %v3745_v26, 1326507024  ;;  %v4040_v11 = vpop.permute.xlu1 %4039 }
 0x3ce   : > { %8422 = vsinq.f32 %v3906_v57  ;;  %vm7865_vm11 = vcmp.lt.s32.totalorder %v7864_v54, 0  ;;  %v3750_v29 = vsel %vm3746_vm10, %v3730_v61, %v3733_v58  ;;  %v3757_v63 = vsel %vm3747_vm13, %v3754_v25, %v3756_v0 }
 0x3cf   : > { %v3577_v36 = vsel %vm7865_vm11, 0, %v7864_v54  ;;  %v3760_v15 = vsel %vm3748_vm9, %v3742_v33, %v3759_v21  ;;  %v3752_v37 = vsel %vm3748_vm9, %v3736_v27, %v3751_v19  ;;  %vm3913_vm14 = vcmp.lt.s32.totalorder %v3912_v59, 2 }
 0x3d0   : > { %v3578_v34 = vsub.s32 32, %v3577_v36  ;;  %v3582_v5 = vsub.s32 4294967266, %v3577_v36  ;;  %v3761_v35 = vsel %vm3747_vm13, %v3758_v38, %v3760_v15  ;;  %v3579_v7 = vshll.u32 %v11667_v43, %v3577_v36  ;;  %v3944_v38 = vpop.permute.xlu0 %3943 }
 0x3d1   : > { %v11698_v16 = vmul.u32.u64.low %v3762_v20, %v3761_v35  ;;  %v11699_v56 = vmul.u32.u64.high %v3762_v20, %v3761_v35, %v11698_v16  ;;  %v11701_v8 = vmul.u32.u64.low %v3762_v20, %v3757_v63  ;;  %v11702_v62 = vmul.u32.u64.high %v3762_v20, %v3757_v63, %v11701_v8 }
 0x3d2   : > { %v3580_v58 = vshrl.u32 %v3562_v4, %v3578_v34  ;;  %v3583_v24 = vadd.s32 127, %v3582_v5  ;;  %v3753_v22 = vsel %vm3747_vm13, %v3750_v29, %v3752_v37  ;;  %vm3917_vm0 = vcmp.eq.s32.totalorder %v3912_v59, 2 }
 0x3d3   : > { %vm3771_vm15 = vc.u32 %v11699_v56, %v11701_v8  ;;  %v3772_v57 = vadd.s32 1, %v11702_v62  ;;  %v3769_v10 = vmul.u32 %v3762_v20, %v3753_v22  ;;  %vm3914_vm1 = vcmp.eq.s32.totalorder %v3912_v59, 0 }
 0x3d4   : > { %v3581_v28 = vor.u32 %v3580_v58, %v3579_v7  ;;  %v3584_v6 = vshll.u32 %v3583_v24, 23  ;;  %v3592_v44 = vsub.s32 4, %v11660_v12  ;;  %vm3910_vm2 = vweird.f32 %v11415_v14  ;;  %v4044_v14 = vpop.permute.xlu1 %4043  ;;  %v3956_v58 = vpop.permute.xlu0 %3955 }
 0x3d5   : > { %v3773_v4 = vsel %vm3771_vm15, %v3772_v57, %v11702_v62  ;;  %vm3508_vm3 = vcmp.lt.s32.totalorder %v11469_v32, 0  ;;  %v4003_v36 = vmul.f32 %v3944_v38, %v8794_v39  ;;  %v4004_v15 = vmul.f32 %v11579_v2, %v8794_v39 }
 0x3d6   : > { %v3585_v33 = vor.u32 4788187, %v3584_v6  ;;  %v3588_v54 = vcvt.s32.f32 %v3581_v28  ;;  %v3774_v19 = vadd.s32 %v3773_v4, %v3769_v10  ;;  %v3593_v21 = vsel %vm3508_vm3, %v3592_v44, %v11660_v12 }
 0x3d7   : > { %v8421_v13 = vpop.eup %8420  ;;  %vm3507_vm4 = vcmp.le.f32.partialorder %v3506_v3, 0.7853982  ;;  %v4019_v35 = vadd.f32 %v4003_v36, %v8804_v47  ;;  %v4099_v12 = vmul.f32 %v4040_v11, %v8807_v48  ;;  %v4020_v62 = vadd.f32 %v4004_v15, %v8804_v47 }
 0x3d8   : > { %v8423_v27 = vpop.eup %8422  ;;  %v3918_v50 = vxor.u32 2147483648, %v8421_v13  ;;  %v3586_v26 = vand.u32 2147483647, %v3585_v33  ;;  %v3775_v0 = vadd.s32 536870912, %v3774_v19  ;;  %v3595_v34 = vsel %vm3507_vm4, 0, %v3593_v21  ;;  %v3964_v11 = vpop.permute.xlu0 %3963 }
 0x3d9   : > { %v3915_v30 = vxor.u32 2147483648, %v8423_v27  ;;  %v4100_v7 = vmul.f32 %v4044_v14, %v8807_v48  ;;  %v3599_v2 = vadd.s32 3, %v3595_v34  ;;  %v11729_v3 = vadd.f32 %v4099_v12, %v4019_v35 }
 0x3da   : > { %v3919_v43 = vsel %vm3917_vm0, %v3918_v50, %v8423_v27  ;;  %v3589_v20 = vmul.f32 %v3588_v54, %v3586_v26  ;;  %v3776_v63 = vshrl.u32 %v3775_v0, 30  ;;  %v4006_v50 = vmul.f32 %v3956_v58, %v8794_v39 }
 0x3db   : > { %v3916_v61 = vsel %vm3914_vm1, %v8421_v13, %v3915_v30  ;;  %v11731_v22 = vadd.f32 %v4100_v7, %v4020_v62  ;;  %v4234_v28 = vand.u32 2147483647, %v11729_v3  ;;  %v4237_v6 = vand.u32 2139095040, %v11729_v3 }
 0x3dc   : > { %v3920_v25 = vsel %vm3913_vm14, %v3916_v61, %v3919_v43  ;;  %v3590_v29 = vxor.u32 2147483648, %v3589_v20  ;;  %v3777_v5 = vshll.u32 %v3776_v63, 30  ;;  %v3800_v13 = vsub.s32 4, %v3776_v63 }
 0x3dd   : > { %v3921_v60 = vsel %vm3910_vm2, nan, %v3920_v25  ;;  %v3600_v57 = vand.u32 3, %v3599_v2  ;;  %v4238_v30 = vshrl.u32 %v4237_v6, 23  ;;  %v4341_v33 = vand.u32 2139095040, %v11731_v22 }
 0x3de   : > { %3937 = vst [vmem:[%s9106_s21 + $0x1e8] sm:$0xff] %v3921_v60  ;;  %v3591_v59 = vsel %vm3508_vm3, %v3590_v29, %v3589_v20  ;;  %v3778_v16 = vsub.s32 %v3774_v19, %v3777_v5  ;;  %vm3716_vm6 = vcmp.lt.s32.totalorder %v11617_v42, 0  ;;  %v4241_v43 = vand.u32 8388607, %v4234_v28 }
 0x3df   : > { %v3594_v37 = vsel %vm3507_vm4, %v11469_v32, %v3591_v59  ;;  %vm3598_vm5 = vweird.f32 %v11469_v32  ;;  %vm11743_vm7 = vcmp.le.f32.partialorder %v3714_v9, 0.7853982  ;;  %v3801_v4 = vsel %vm3716_vm6, %v3800_v13, %v3776_v63 }
 0x3e0   : > { %8424 = vcosq.f32 %v3594_v37  ;;  %v3780_v24 = vsub.s32 0, %v3778_v16  ;;  %v7882_v61 = vadd.s32 4294967169, %v4238_v30  ;;  %v4342_v26 = vshrl.u32 %v4341_v33, 23 }
 0x3e1   : > { %8426 = vsinq.f32 %v3594_v37  ;;  %v11750_v19 = vadd.f32 %v4006_v50, %v8804_v47  ;;  %v11753_v25 = vmul.f32 %v3964_v11, %v8794_v39  ;;  %v4338_v60 = vand.u32 2147483647, %v11731_v22 }
 0x3e2   : > { %v7871_v27 = vmin.u32 %v3780_v24, %v3778_v16  ;;  %vm3601_vm8 = vcmp.lt.s32.totalorder %v3600_v57, 2  ;;  %vm3605_vm10 = vcmp.eq.s32.totalorder %v3600_v57, 2  ;;  %v4244_v9 = vadd.s32 1, %v7882_v61 }
 0x3e3   : > { %v7886_v20 = vadd.s32 4294967169, %v4342_v26  ;;  %v3770_v0 = vadd.s32 %v11701_v8, %v11699_v56  ;;  %v3803_v21 = vsel %vm11743_vm7, 0, %v3801_v4  ;;  %v4242_v36 = vor.u32 8388608, %v4241_v43 }
 0x3e4   : > { %v3782_v10 = vclz %v7871_v27  ;;  %vm4245_vm12 = vcmp.gt.s32.totalorder %v4244_v9, 0  ;;  %v11762_v37 = vand.u32 8388607, %v4338_v60  ;;  %vm3602_vm11 = vcmp.eq.s32.totalorder %v3600_v57, 0 }
 0x3e5   : > { %v4348_v14 = vadd.s32 1, %v7886_v20  ;;  %v4246_v35 = vsel %vm4245_vm12, %v4244_v9, 0  ;;  %v3807_v58 = vadd.s32 3, %v3803_v21  ;;  %v11766_v13 = vshll.u32 %v4242_v36, 8  ;;  %v11782_v36 = vpop.permute.xlu0 %3971 }
 0x3e6   : > { %v7872_v54 = vadd.s32 4294967294, %v3782_v10  ;;  %v4248_v24 = vand.u32 31, %v4246_v35  ;;  %v4346_v30 = vor.u32 8388608, %v11762_v37  ;;  %vm4236_vm12 = vcmp.lt.s32.totalorder %v11729_v3, 0 }
 0x3e7   : > { %vm4349_vm13 = vcmp.gt.s32.totalorder %v4348_v14, 0 }
 0x3e8   : > { %vm7873_vm9 = vcmp.lt.s32.totalorder %v7872_v54, 0  ;;  %v4249_v33 = vsub.s32 32, %v4248_v24  ;;  %v4251_v10 = vshll.u32 %v8606_v23, %v4248_v24  ;;  %v4350_v43 = vsel %vm4349_vm13, %v4348_v14, 0 }
 0x3e9   : > { %v3785_v15 = vsel %vm7873_vm9, 0, %v7872_v54  ;;  %v4254_v11 = vshll.u32 %v14448_v49, %v4248_v24  ;;  %v4257_v61 = vshll.u32 %v14446_v51, %v4248_v24  ;;  %v4260_v9 = vshll.u32 %v14450_v53, %v4248_v24 }
 0x3ea   : > { %v8425_v38 = vpop.eup %8424  ;;  %v3786_v34 = vsub.s32 32, %v3785_v15  ;;  %v3790_v5 = vsub.s32 4294967266, %v3785_v15  ;;  %v3787_v8 = vshll.u32 %v3778_v16, %v3785_v15  ;;  %v4247_v16 = vshrl.u32 %v4246_v35, 5 }
 0x3eb   : > { %v8427_v29 = vpop.eup %8426  ;;  %v3606_v63 = vxor.u32 2147483648, %v8425_v38  ;;  %v4252_v26 = vshrl.u32 %v14448_v49, %v4249_v33  ;;  %v4255_v32 = vshrl.u32 %v14446_v51, %v4249_v33  ;;  %v4258_v54 = vshrl.u32 %v14450_v53, %v4249_v33 }
 0x3ec   : > { %v3603_v59 = vxor.u32 2147483648, %v8427_v29  ;;  %v3788_v62 = vshrl.u32 %v3770_v0, %v3786_v34  ;;  %v3791_v7 = vadd.s32 127, %v3790_v5  ;;  %v4263_v0 = vshll.u32 %v14455_v55, %v4248_v24 }
 0x3ed   : > { %v3607_v56 = vsel %vm3605_vm10, %v3606_v63, %v8427_v29  ;;  %v4264_v21 = vshrl.u32 %v14453_v1, %v4249_v33  ;;  %v4253_v29 = vor.u32 %v4252_v26, %v4251_v10  ;;  %v4256_v63 = vor.u32 %v4255_v32, %v4254_v11 }
 0x3ee   : > { %v3604_v12 = vsel %vm3602_vm11, %v8425_v38, %v3603_v59  ;;  %v3789_v27 = vor.u32 %v3788_v62, %v3787_v8  ;;  %v3792_v50 = vshll.u32 %v3791_v7, 23  ;;  %v4261_v38 = vshrl.u32 %v14455_v55, %v4249_v33 }
 0x3ef   : > { %v3608_v2 = vsel %vm3601_vm8, %v3604_v12, %v3607_v56  ;;  %v4259_v15 = vor.u32 %v4258_v54, %v4257_v61  ;;  %vm4266_vm14 = vcmp.lt.s32.totalorder %v4247_v16, 1  ;;  %v4265_v34 = vor.u32 %v4264_v21, %v4263_v0 }
 0x3f0   : > { %v3609_v6 = vsel %vm3598_vm5, nan, %v3608_v2  ;;  %v3793_v4 = vor.u32 4788187, %v3792_v50  ;;  %v3796_v57 = vcvt.s32.f32 %v3789_v27  ;;  %v4262_v59 = vor.u32 %v4261_v38, %v4260_v9 }
 0x3f1   : > { %3934 = vst [vmem:[%s9106_s21 + $0x188] sm:$0xff] %v3609_v6  ;;  %vm4269_vm15 = vcmp.lt.s32.totalorder %v4247_v16, 4  ;;  %v4250_v5 = vshrl.u32 %v8606_v23, %v4249_v33  ;;  %v4274_v56 = vsel %vm4266_vm14, %v4253_v29, %v4256_v63  ;;  %v4278_v8 = vsel %vm4266_vm14, %v4256_v63, %v4259_v15  ;;  %v4052_v33 = vpop.permute.xlu1 %4051 }
 0x3f2   : > { %v3794_v20 = vand.u32 2147483647, %v3793_v4  ;;  %v4271_v37 = vsel %vm4269_vm15, %v4259_v15, 2102212464  ;;  %vm4268_vm0 = vcmp.lt.s32.totalorder %v4247_v16, 3  ;;  %vm4267_vm1 = vcmp.lt.s32.totalorder %v4247_v16, 2 }
 0x3f3   : > { %v4275_v12 = vsel %vm4269_vm15, %v4262_v59, 920167782  ;;  %v4279_v62 = vsel %vm4269_vm15, %v4265_v34, 1326507024  ;;  %v4270_v7 = vsel %vm4266_vm14, %v4250_v5, %v4253_v29  ;;  %v4272_v27 = vsel %vm4268_vm0, %v4256_v63, %v4271_v37 }
 0x3f4   : > { %v3797_v14 = vmul.f32 %v3796_v57, %v3794_v20  ;;  %v4276_v2 = vsel %vm4268_vm0, %v4259_v15, %v4275_v12  ;;  %v4280_v24 = vsel %vm4268_vm0, %v4262_v59, %v4279_v62  ;;  %v11792_v57 = vpop.permute.xlu0 %3979  ;;  %v4352_v26 = vand.u32 31, %v4350_v43 }
 0x3f5   : > { %v4277_v50 = vsel %vm4267_vm1, %v4274_v56, %v4276_v2  ;;  %v4281_v10 = vsel %vm4267_vm1, %v4278_v8, %v4280_v24  ;;  %v11798_v32 = vand.u32 3, %v3807_v58  ;;  %v11805_v38 = vshll.u32 %v4346_v30, 8 }
 0x3f6   : > { %v3798_v35 = vxor.u32 2147483648, %v3797_v14  ;;  %v11795_v11 = vmul.u32.u64.low %v11766_v13, %v4281_v10  ;;  %v11796_v61 = vmul.u32.u64.high %v11766_v13, %v4281_v10, %v11795_v11  ;;  %v4353_v20 = vsub.s32 32, %v4352_v26 }
 0x3f7   : > { %v11801_v54 = vmul.u32.u64.low %v11766_v13, %v4277_v50  ;;  %v11802_v9 = vmul.u32.u64.high %v11766_v13, %v4277_v50, %v11801_v54  ;;  %v4102_v44 = vmul.f32 %v4052_v33, %v8807_v48  ;;  %v4273_v0 = vsel %vm4267_vm1, %v4270_v7, %v4272_v27 }
 0x3f8   : > { %v3799_v6 = vsel %vm3716_vm6, %v3798_v35, %v3797_v14  ;;  %v11809_v21 = vshrl.u32 %v4350_v43, 5  ;;  %v4355_v29 = vshll.u32 %v8606_v23, %v4352_v26  ;;  %v4358_v58 = vshll.u32 %v14448_v49, %v4352_v26  ;;  %v11824_v34 = vpop.permute.xlu0 %3987 }
 0x3f9   : > { %v3802_v4 = vsel %vm11743_vm7, %v11617_v42, %v3799_v6  ;;  %vm4291_vm2 = vc.u32 %v11796_v61, %v11801_v54  ;;  %v4356_v63 = vshrl.u32 %v14448_v49, %v4353_v20  ;;  %v4361_v15 = vshll.u32 %v14446_v51, %v4352_v26 }
 0x3fa   : > { %8428 = vcosq.f32 %v3802_v4  ;;  %v4364_v30 = vshll.u32 %v14450_v53, %v4352_v26  ;;  %vm3813_vm3 = vcmp.eq.s32.totalorder %v11798_v32, 2  ;;  %v4292_v16 = vadd.s32 1, %v11802_v9 }
 0x3fb   : > { %8430 = vsinq.f32 %v3802_v4  ;;  %v4359_v43 = vshrl.u32 %v14446_v51, %v4353_v20  ;;  %v4362_v14 = vshrl.u32 %v14450_v53, %v4353_v20  ;;  %v4365_v59 = vshrl.u32 %v14455_v55, %v4353_v20 }
 0x3fc   : > { %vm3810_vm4 = vcmp.eq.s32.totalorder %v11798_v32, 0  ;;  %v4289_v5 = vmul.u32 %v11766_v13, %v4273_v0  ;;  %v4357_v37 = vor.u32 %v4356_v63, %v4355_v29  ;;  %v4367_v56 = vshll.u32 %v14455_v55, %v4352_v26  ;;  %v11850_v63 = vpop.permute.xlu0 %3995 }
 0x3fd   : > { %v4368_v8 = vshrl.u32 %v14453_v1, %v4353_v20  ;;  %vm3809_vm6 = vcmp.lt.s32.totalorder %v11798_v32, 2  ;;  %v4293_v35 = vsel %vm4291_vm2, %v4292_v16, %v11802_v9  ;;  %v4360_v12 = vor.u32 %v4359_v43, %v4358_v58 }
 0x3fe   : > { %v4363_v62 = vor.u32 %v4362_v14, %v4361_v15  ;;  %v4366_v7 = vor.u32 %v4365_v59, %v4364_v30  ;;  %v4294_v2 = vadd.s32 %v4293_v35, %v4289_v5  ;;  %vm4370_vm5 = vcmp.lt.s32.totalorder %v11809_v21, 1 }
 0x3ff   : > { %v4369_v24 = vor.u32 %v4368_v8, %v4367_v56  ;;  %vm4373_vm7 = vcmp.lt.s32.totalorder %v11809_v21, 4  ;;  %vm4372_vm8 = vcmp.lt.s32.totalorder %v11809_v21, 3  ;;  %v4378_v13 = vsel %vm4370_vm5, %v4357_v37, %v4360_v12  ;;  %v4060_v8 = vpop.permute.xlu1 %4059 }
 0x400   : > { %v4379_v6 = vsel %vm4373_vm7, %v4366_v7, 920167782  ;;  %v4382_v27 = vsel %vm4370_vm5, %v4360_v12, %v4363_v62  ;;  %v4295_v50 = vadd.s32 536870912, %v4294_v2  ;;  %v11844_v4 = vadd.f32 %v4102_v44, %v11750_v19 }
 0x401   : > { %v4380_v10 = vsel %vm4372_vm8, %v4363_v62, %v4379_v6  ;;  %v4383_v33 = vsel %vm4373_vm7, %v4369_v24, 1326507024  ;;  %v4354_v26 = vshrl.u32 %v8606_v23, %v4353_v20  ;;  %vm4371_vm10 = vcmp.lt.s32.totalorder %v11809_v21, 2 }
 0x402   : > { %v4375_v9 = vsel %vm4373_vm7, %v4363_v62, 2102212464  ;;  %v4384_v0 = vsel %vm4372_vm8, %v4366_v7, %v4383_v33  ;;  %v4296_v15 = vshrl.u32 %v4295_v50, 30  ;;  %v4381_v30 = vsel %vm4371_vm10, %v4378_v13, %v4380_v10  ;;  %v11879_v50 = vpop.permute.xlu0 %5811 }
 0x403   : > { %v4385_v19 = vsel %vm4371_vm10, %v4382_v27, %v4384_v0  ;;  %v4374_v20 = vsel %vm4370_vm5, %v4354_v26, %v4357_v37  ;;  %v4376_v5 = vsel %vm4372_vm8, %v4360_v12, %v4375_v9  ;;  %v4549_v56 = vand.u32 2139095040, %v11844_v4 }
 0x404   : > { %v8429_v11 = vpop.eup %8428  ;;  %v11859_v16 = vmul.u32.u64.low %v11805_v38, %v4385_v19  ;;  %v11860_v43 = vmul.u32.u64.high %v11805_v38, %v4385_v19, %v11859_v16  ;;  %v4297_v59 = vshll.u32 %v4296_v15, 30  ;;  %v4320_v62 = vsub.s32 4, %v4296_v15 }
 0x405   : > { %v8431_v29 = vpop.eup %8430  ;;  %v3814_v58 = vxor.u32 2147483648, %v8429_v11  ;;  %v11870_v37 = vmul.u32.u64.low %v11805_v38, %v4381_v30  ;;  %v11871_v7 = vmul.u32.u64.high %v11805_v38, %v4381_v30, %v11870_v37  ;;  %vm3806_vm9 = vweird.f32 %v11617_v42 }
 0x406   : > { %v3811_v44 = vxor.u32 2147483648, %v8431_v29  ;;  %v4298_v13 = vsub.s32 %v4294_v2, %v4297_v59  ;;  %v4550_v6 = vshrl.u32 %v4549_v56, 23  ;;  %v4104_v12 = vmul.f32 %v4060_v8, %v8807_v48 }
 0x407   : > { %v3815_v14 = vsel %vm3813_vm3, %v3814_v58, %v8431_v29  ;;  %v4377_v33 = vsel %vm4371_vm10, %v4374_v20, %v4376_v5  ;;  %vm4395_vm11 = vc.u32 %v11860_v43, %v11870_v37  ;;  %v4024_v32 = vadd.f32 %v11753_v25, %v8804_v47  ;;  %v11906_v20 = vpop.permute.xlu0 %5823 }
 0x408   : > { %v3812_v35 = vsel %vm3810_vm4, %v8429_v11, %v3811_v44  ;;  %v4300_v10 = vsub.s32 0, %v4298_v13  ;;  %v7894_v42 = vadd.s32 4294967169, %v4550_v6  ;;  %v4321_v2 = vsel %vm4236_vm12, %v4320_v62, %v4296_v15 }
 0x409   : > { %v3816_v24 = vsel %vm3809_vm6, %v3812_v35, %v3815_v14  ;;  %v4396_v11 = vadd.s32 1, %v11871_v7  ;;  %v4546_v26 = vand.u32 2147483647, %v11844_v4  ;;  %vm11892_vm13 = vcmp.le.f32.partialorder %v4234_v28, 0.7853982 }
 0x40a   : > { %v3817_v27 = vsel %vm3806_vm9, nan, %v3816_v24  ;;  %v7883_v9 = vmin.u32 %v4300_v10, %v4298_v13  ;;  %v4556_v0 = vadd.s32 1, %v7894_v42  ;;  %v4393_v29 = vmul.u32 %v11805_v38, %v4377_v33 }
 0x40b   : > { %3936 = vst [vmem:[%s9106_s21 + $0x1c8] sm:$0xff] %v3817_v27  ;;  %v4397_v58 = vsel %vm4395_vm11, %v4396_v11, %v11871_v7  ;;  %v11898_v25 = vadd.f32 %v4104_v12, %v4024_v32  ;;  %v4323_v15 = vsel %vm11892_vm13, 0, %v4321_v2  ;;  %v4553_v44 = vand.u32 8388607, %v4546_v26  ;;  %v11926_v32 = vpop.permute.xlu0 %5831 }
 0x40c   : > { %v4302_v30 = vclz %v7883_v9  ;;  %v4398_v19 = vadd.s32 %v4397_v58, %v4393_v29  ;;  %vm4557_vm14 = vcmp.gt.s32.totalorder %v4556_v0, 0  ;;  %v4010_v28 = vmul.f32 %v11782_v36, %v8794_v39 }
 0x40d   : > { %v4558_v38 = vsel %vm4557_vm14, %v4556_v0, 0  ;;  %v4327_v14 = vadd.s32 3, %v4323_v15  ;;  %v4757_v56 = vand.u32 2139095040, %v11898_v25  ;;  %v11911_v8 = vmul.f32 %v11561_v31, %v8794_v39 }
 0x40e   : > { %v7884_v16 = vadd.s32 4294967294, %v4302_v30  ;;  %v4399_v59 = vadd.s32 536870912, %v4398_v19  ;;  %v4560_v5 = vand.u32 31, %v4558_v38  ;;  %v4554_v7 = vor.u32 8388608, %v4553_v44 }
 0x40f   : > { %v11916_v36 = vadd.f32 %v4010_v28, %v8804_v47  ;;  %v4290_v6 = vadd.s32 %v11801_v54, %v11796_v61  ;;  %v11920_v10 = vand.u32 3, %v4327_v14  ;;  %v11923_v33 = vadd.s32 %v11870_v37, %v11860_v43 }
 0x410   : > { %vm7885_vm15 = vcmp.lt.s32.totalorder %v7884_v16, 0  ;;  %v11913_v62 = vshrl.u32 %v4399_v59, 30  ;;  %v4561_v24 = vsub.s32 32, %v4560_v5  ;;  %v4758_v42 = vshrl.u32 %v4757_v56, 23 }
 0x411   : > { %v4305_v35 = vsel %vm7885_vm15, 0, %v7884_v16  ;;  %v11933_v58 = vshll.u32 %v4554_v7, 8  ;;  %v11935_v30 = vshrl.u32 %v4558_v38, 5  ;;  %v4563_v15 = vshll.u32 %v8606_v23, %v4560_v5 }
 0x412   : > { %v4306_v27 = vsub.s32 32, %v4305_v35  ;;  %v4310_v12 = vsub.s32 4294967266, %v4305_v35  ;;  %v4401_v31 = vshll.u32 %v11913_v62, 30  ;;  %v4307_v2 = vshll.u32 %v4298_v13, %v4305_v35 }
 0x413   : > { %v4564_v0 = vshrl.u32 %v14448_v49, %v4561_v24  ;;  %v4567_v61 = vshrl.u32 %v14446_v51, %v4561_v24  ;;  %v4570_v54 = vshrl.u32 %v14450_v53, %v4561_v24  ;;  %v4566_v44 = vshll.u32 %v14448_v49, %v4560_v5 }
 0x414   : > { %v4308_v11 = vshrl.u32 %v4290_v6, %v4306_v27  ;;  %v4311_v9 = vadd.s32 127, %v4310_v12  ;;  %v11929_v29 = vsub.s32 %v4398_v19, %v4401_v31  ;;  %v4569_v28 = vshll.u32 %v14446_v51, %v4560_v5  ;;  %v11945_v27 = vpop.permute.xlu0 %5839 }
 0x415   : > { %v7902_v19 = vadd.s32 4294967169, %v4758_v42  ;;  %v4565_v14 = vor.u32 %v4564_v0, %v4563_v15  ;;  %v4572_v59 = vshll.u32 %v14450_v53, %v4560_v5  ;;  %v4573_v56 = vshrl.u32 %v14455_v55, %v4561_v24 }
 0x416   : > { %v4309_v43 = vor.u32 %v4308_v11, %v4307_v2  ;;  %v4312_v37 = vshll.u32 %v4311_v9, 23  ;;  %v4404_v13 = vsub.s32 0, %v11929_v29  ;;  %v4568_v7 = vor.u32 %v4567_v61, %v4566_v44 }
 0x417   : > { %v4571_v38 = vor.u32 %v4570_v54, %v4569_v28  ;;  %v4576_v6 = vshrl.u32 %v14453_v1, %v4561_v24  ;;  %v4574_v2 = vor.u32 %v4573_v56, %v4572_v59  ;;  %v4575_v11 = vshll.u32 %v14455_v55, %v4560_v5 }
 0x418   : > { %v4313_v16 = vor.u32 4788187, %v4312_v37  ;;  %v7887_v35 = vmin.u32 %v4404_v13, %v11929_v29  ;;  %v4316_v31 = vcvt.s32.f32 %v4309_v43  ;;  %vm4340_vm0 = vcmp.lt.s32.totalorder %v11731_v22, 0 }
 0x419   : > { %v4424_v9 = vsub.s32 4, %v11913_v62  ;;  %v4562_v0 = vshrl.u32 %v8606_v23, %v4561_v24  ;;  %vm4578_vm1 = vcmp.lt.s32.totalorder %v11935_v30, 1  ;;  %v4577_v54 = vor.u32 %v4576_v6, %v4575_v11 }
 0x41a   : > { %v4314_v12 = vand.u32 2147483647, %v4313_v16  ;;  %v4406_v42 = vclz %v7887_v35  ;;  %vm4580_vm2 = vcmp.lt.s32.totalorder %v11935_v30, 3  ;;  %vm4581_vm3 = vcmp.lt.s32.totalorder %v11935_v30, 4  ;;  %v11961_v35 = vpop.permute.xlu0 %5847 }
 0x41b   : > { %v4583_v43 = vsel %vm4581_vm3, %v4571_v38, 2102212464  ;;  %v4586_v15 = vsel %vm4578_vm1, %v4565_v14, %v4568_v7  ;;  %v4587_v13 = vsel %vm4581_vm3, %v4574_v2, 920167782  ;;  %vm4579_vm4 = vcmp.lt.s32.totalorder %v11935_v30, 2 }
 0x41c   : > { %v4317_v61 = vmul.f32 %v4316_v31, %v4314_v12  ;;  %v7888_v37 = vadd.s32 4294967294, %v4406_v42  ;;  %v4582_v44 = vsel %vm4578_vm1, %v4562_v0, %v4565_v14  ;;  %v4588_v28 = vsel %vm4580_vm2, %v4571_v38, %v4587_v13 }
 0x41d   : > { %v4589_v24 = vsel %vm4579_vm4, %v4586_v15, %v4588_v28  ;;  %v4590_v16 = vsel %vm4578_vm1, %v4568_v7, %v4571_v38  ;;  %v4591_v59 = vsel %vm4581_vm3, %v4577_v54, 1326507024  ;;  %v4584_v12 = vsel %vm4580_vm2, %v4568_v7, %v4583_v43 }
 0x41e   : > { %v4318_v5 = vxor.u32 2147483648, %v4317_v61  ;;  %vm7889_vm6 = vcmp.lt.s32.totalorder %v7888_v37, 0  ;;  %v4592_v14 = vsel %vm4580_vm2, %v4574_v2, %v4591_v59  ;;  %v4425_v21 = vsel %vm4340_vm0, %v4424_v9, %v11913_v62 }
 0x41f   : > { %v4409_v6 = vsel %vm7889_vm6, 0, %v7888_v37  ;;  %v4593_v0 = vsel %vm4579_vm4, %v4590_v16, %v4592_v14  ;;  %v4764_v37 = vadd.s32 1, %v7902_v19  ;;  %v14445_v15 = vand.u32 2147483647, %v11898_v25  ;;  %v11999_v19 = vpop.permute.xlu0 %5855 }
 0x420   : > { %v4319_v56 = vsel %vm4236_vm12, %v4318_v5, %v4317_v61  ;;  %v4410_v11 = vsub.s32 32, %v4409_v6  ;;  %v4411_v38 = vshll.u32 %v11929_v29, %v4409_v6  ;;  %v4414_v42 = vsub.s32 4294967266, %v4409_v6 }
 0x421   : > { %v4322_v31 = vsel %vm11892_vm13, %v11729_v3, %v4319_v56  ;;  %v11974_v61 = vmul.u32.u64.low %v11933_v58, %v4589_v24  ;;  %v11975_v54 = vmul.u32.u64.high %v11933_v58, %v4589_v24, %v11974_v61  ;;  %v4585_v28 = vsel %vm4579_vm4, %v4582_v44, %v4584_v12 }
 0x422   : > { %8432 = vcosq.f32 %v4322_v31  ;;  %v4412_v7 = vshrl.u32 %v11923_v33, %v4410_v11  ;;  %v4415_v2 = vadd.s32 127, %v4414_v42  ;;  %vm4765_vm5 = vcmp.gt.s32.totalorder %v4764_v37, 0 }
 0x423   : > { %8434 = vsinq.f32 %v4322_v31  ;;  %v11983_v29 = vmul.u32.u64.low %v11933_v58, %v4593_v0  ;;  %v11984_v43 = vmul.u32.u64.high %v11933_v58, %v4593_v0, %v11983_v29  ;;  %v11991_v33 = vmul.f32 %v11792_v57, %v8794_v39  ;;  %v4068_v57 = vpop.permute.xlu1 %4067 }
 0x424   : > { %v4413_v13 = vor.u32 %v4412_v7, %v4411_v38  ;;  %v4416_v5 = vshll.u32 %v4415_v2, 23  ;;  %vm11995_vm7 = vcmp.le.f32.partialorder %v4338_v60, 0.7853982  ;;  %v4604_v9 = vadd.s32 1, %v11975_v54  ;;  %v12022_v29 = vpop.permute.xlu0 %5863 }
 0x425   : > { %v4766_v24 = vsel %vm4765_vm5, %v4764_v37, 0  ;;  %vm4330_vm8 = vcmp.eq.s32.totalorder %v11920_v10, 0  ;;  %v4427_v44 = vsel %vm11995_vm7, 0, %v4425_v21  ;;  %vm4329_vm10 = vcmp.lt.s32.totalorder %v11920_v10, 2 }
 0x426   : > { %v4417_v30 = vor.u32 4788187, %v4416_v5  ;;  %v4768_v16 = vand.u32 31, %v4766_v24  ;;  %vm4333_vm9 = vcmp.eq.s32.totalorder %v11920_v10, 2  ;;  %v4601_v60 = vmul.u32 %v11933_v58, %v4585_v28 }
 0x427   : > { %vm4603_vm12 = vc.u32 %v11984_v43, %v11974_v61  ;;  %v12012_v59 = vand.u32 8388607, %v14445_v15  ;;  %vm4326_vm11 = vweird.f32 %v11729_v3  ;;  %v4420_v6 = vcvt.s32.f32 %v4413_v13 }
 0x428   : > { %v4418_v56 = vand.u32 2147483647, %v4417_v30  ;;  %v4605_v12 = vsel %vm4603_vm12, %v4604_v9, %v11975_v54  ;;  %v4769_v14 = vsub.s32 32, %v4768_v16  ;;  %v4431_v31 = vadd.s32 3, %v4427_v44 }
 0x429   : > { %v4606_v11 = vadd.s32 %v4605_v12, %v4601_v60  ;;  %v12016_v38 = vshrl.u32 %v4766_v24, 5  ;;  %v4106_v58 = vmul.f32 %v4068_v57, %v8807_v48  ;;  %v4771_v0 = vshll.u32 %v8606_v23, %v4768_v16 }
 0x42a   : > { %v4421_v42 = vmul.f32 %v4420_v6, %v4418_v56  ;;  %v4772_v7 = vshrl.u32 %v14448_v49, %v4769_v14  ;;  %v4775_v2 = vshrl.u32 %v14446_v51, %v4769_v14  ;;  %v4774_v54 = vshll.u32 %v14448_v49, %v4768_v16 }
 0x42b   : > { %v4607_v21 = vadd.s32 536870912, %v4606_v11  ;;  %v4777_v13 = vshll.u32 %v14446_v51, %v4768_v16  ;;  %v4778_v5 = vshrl.u32 %v14450_v53, %v4769_v14  ;;  %v4780_v30 = vshll.u32 %v14450_v53, %v4768_v16 }
 0x42c   : > { %v8433_v37 = vpop.eup %8432  ;;  %v4422_v24 = vxor.u32 2147483648, %v4421_v42  ;;  %v4781_v44 = vshrl.u32 %v14455_v55, %v4769_v14  ;;  %v4773_v56 = vor.u32 %v4772_v7, %v4771_v0  ;;  %v4783_v6 = vshll.u32 %v14455_v55, %v4768_v16 }
 0x42d   : > { %v8435_v28 = vpop.eup %8434  ;;  %v4334_v9 = vxor.u32 2147483648, %v8433_v37  ;;  %v4608_v60 = vshrl.u32 %v4607_v21, 30  ;;  %vm4548_vm13 = vcmp.lt.s32.totalorder %v11844_v4, 0  ;;  %v4776_v51 = vor.u32 %v4775_v2, %v4774_v54 }
 0x42e   : > { %v4331_v57 = vxor.u32 2147483648, %v8435_v28  ;;  %v4423_v15 = vsel %vm4340_vm0, %v4422_v24, %v4421_v42  ;;  %v4784_v49 = vshrl.u32 %v14453_v1, %v4769_v14  ;;  %v4779_v7 = vor.u32 %v4778_v5, %v4777_v13 }
 0x42f   : > { %v4335_v12 = vsel %vm4333_vm9, %v4334_v9, %v8435_v28  ;;  %v4426_v0 = vsel %vm11995_vm7, %v11731_v22, %v4423_v15  ;;  %v4609_v16 = vshll.u32 %v4608_v60, 30  ;;  %v4782_v42 = vor.u32 %v4781_v44, %v4780_v30  ;;  %v12048_v9 = vpop.permute.xlu0 %5871 }
 0x430   : > { %v4332_v53 = vsel %vm4330_vm8, %v8433_v37, %v4331_v57  ;;  %8436 = vcosq.f32 %v4426_v0  ;;  %v4785_v28 = vor.u32 %v4784_v49, %v4783_v6  ;;  %v4762_v37 = vor.u32 8388608, %v12012_v59 }
 0x431   : > { %v4336_v21 = vsel %vm4329_vm10, %v4332_v53, %v4335_v12  ;;  %8438 = vsinq.f32 %v4426_v0  ;;  %v12045_v54 = vsub.s32 %v4606_v11, %v4609_v16  ;;  %v4432_v15 = vand.u32 3, %v4431_v31 }
 0x432   : > { %v4337_v2 = vsel %vm4326_vm11, nan, %v4336_v21  ;;  %vm12053_vm14 = vcmp.le.f32.partialorder %v4546_v26, 0.7853982  ;;  %v4632_v53 = vsub.s32 4, %v4608_v60  ;;  %vm4786_vm15 = vcmp.lt.s32.totalorder %v12016_v38, 1 }
 0x433   : > { %5795 = vst [vmem:[%s9106_s21 + $0x30] sm:$0xff] %v4337_v2  ;;  %v12059_v49 = vadd.f32 %v4106_v58, %v11916_v36  ;;  %v4612_v3 = vsub.s32 0, %v12045_v54  ;;  %vm4788_vm0 = vcmp.lt.s32.totalorder %v12016_v38, 3  ;;  %vm4789_vm1 = vcmp.lt.s32.totalorder %v12016_v38, 4  ;;  %v4036_v12 = vpop.permute.xlu0 %4035 }
 0x434   : > { %v4794_v62 = vsel %vm4786_vm15, %v4773_v56, %v4776_v51  ;;  %v4770_v26 = vshrl.u32 %v8606_v23, %v4769_v14  ;;  %v4791_v59 = vsel %vm4789_vm1, %v4779_v7, 2102212464  ;;  %v4795_v31 = vsel %vm4789_vm1, %v4782_v42, 920167782 }
 0x435   : > { %v4799_v11 = vsel %vm4789_vm1, %v4785_v28, 1326507024  ;;  %v7895_v13 = vmin.u32 %v4612_v3, %v12045_v54  ;;  %vm4787_vm2 = vcmp.lt.s32.totalorder %v12016_v38, 2  ;;  %v4796_v36 = vsel %vm4788_vm0, %v4779_v7, %v4795_v31 }
 0x436   : > { %v4798_v58 = vsel %vm4786_vm15, %v4776_v51, %v4779_v7  ;;  %vm4433_vm3 = vcmp.lt.s32.totalorder %v4432_v15, 2  ;;  %vm4434_vm4 = vcmp.eq.s32.totalorder %v4432_v15, 0  ;;  %v4797_v5 = vsel %vm4787_vm2, %v4794_v62, %v4796_v36 }
 0x437   : > { %v4800_v14 = vsel %vm4788_vm0, %v4782_v42, %v4799_v11  ;;  %v4802_v24 = vshll.u32 %v4762_v37, 8  ;;  %vm4430_vm6 = vweird.f32 %v11731_v22  ;;  %v4614_v30 = vclz %v7895_v13 }
 0x438   : > { %v4633_v44 = vsel %vm4548_vm13, %v4632_v53, %v4608_v60  ;;  %v4790_v57 = vsel %vm4786_vm15, %v4770_v26, %v4773_v56  ;;  %v4792_v6 = vsel %vm4788_vm0, %v4776_v51, %v4791_v59  ;;  %v4801_v0 = vsel %vm4787_vm2, %v4798_v58, %v4800_v14 }
 0x439   : > { %v12086_v16 = vmul.u32.u64.low %v4802_v24, %v4797_v5  ;;  %v12087_v7 = vmul.u32.u64.high %v4802_v24, %v4797_v5, %v12086_v16  ;;  %v4965_v21 = vand.u32 2139095040, %v12059_v49  ;;  %vm4437_vm5 = vcmp.eq.s32.totalorder %v4432_v15, 2 }
 0x43a   : > { %v7896_v42 = vadd.s32 4294967294, %v4614_v30  ;;  %v12090_v28 = vmul.u32.u64.low %v4802_v24, %v4801_v0  ;;  %v12091_v2 = vmul.u32.u64.high %v4802_v24, %v4801_v0, %v12090_v28  ;;  %v8437_v60 = vpop.eup %8436  ;;  %v4602_v56 = vadd.s32 %v11974_v61, %v11984_v43 }
 0x43b   : > { %v4793_v51 = vsel %vm4787_vm2, %v4790_v57, %v4792_v6  ;;  %v4966_v37 = vshrl.u32 %v4965_v21, 23  ;;  %v4098_v53 = vmul.f32 %v4036_v12, %v8807_v48  ;;  %v8439_v3 = vpop.eup %8438  ;;  %v4438_v62 = vxor.u32 2147483648, %v8437_v60 }
 0x43c   : > { %vm7897_vm7 = vcmp.lt.s32.totalorder %v7896_v42, 0  ;;  %v4635_v26 = vsel %vm12053_vm14, 0, %v4633_v44  ;;  %v14452_v59 = vand.u32 2147483647, %v12059_v49  ;;  %v4435_v31 = vxor.u32 2147483648, %v8439_v3 }
 0x43d   : > { %v4617_v11 = vsel %vm7897_vm7, 0, %v7896_v42  ;;  %v4812_v13 = vadd.s32 1, %v12087_v7  ;;  %v7910_v36 = vadd.s32 4294967169, %v4966_v37  ;;  %v4439_v61 = vsel %vm4437_vm5, %v4438_v62, %v8439_v3 }
 0x43e   : > { %v4618_v43 = vsub.s32 32, %v4617_v11  ;;  %v4622_v38 = vsub.s32 4294967266, %v4617_v11  ;;  %v4809_v58 = vmul.u32 %v4802_v24, %v4793_v51  ;;  %v4436_v5 = vsel %vm4434_vm4, %v8437_v60, %v4435_v31 }
 0x43f   : > { %v4619_v14 = vshll.u32 %v12045_v54, %v4617_v11  ;;  %vm4811_vm8 = vc.u32 %v12091_v2, %v12086_v16  ;;  %v4972_v30 = vadd.s32 1, %v7910_v36  ;;  %v4440_v44 = vsel %vm4433_vm3, %v4436_v5, %v4439_v61 }
 0x440   : > { %v4620_v57 = vshrl.u32 %v4602_v56, %v4618_v43  ;;  %v4623_v6 = vadd.s32 127, %v4622_v38  ;;  %v4813_v12 = vsel %vm4811_vm8, %v4812_v13, %v12087_v7  ;;  %v4441_v0 = vsel %vm4430_vm6, nan, %v4440_v44 }
 0x441   : > { %v4639_v21 = vadd.s32 3, %v4635_v26  ;;  %v4814_v42 = vadd.s32 %v4813_v12, %v4809_v58  ;;  %vm4973_vm10 = vcmp.gt.s32.totalorder %v4972_v30, 0  ;;  %5796 = vst [vmem:[%s9106_s21 + $0x50] sm:$0xff] %v4441_v0  ;;  %v4969_v54 = vand.u32 8388607, %v14452_v59 }
 0x442   : > { %v4621_v24 = vor.u32 %v4620_v57, %v4619_v14  ;;  %v4624_v28 = vshll.u32 %v4623_v6, 23  ;;  %v4974_v60 = vsel %vm4973_vm10, %v4972_v30, 0  ;;  %v4018_v56 = vadd.f32 %v11911_v8, %v8804_v47 }
 0x443   : > { %v4815_v51 = vadd.s32 536870912, %v4814_v42  ;;  %v4976_v15 = vand.u32 31, %v4974_v60  ;;  %v12117_v22 = vadd.f32 %v11991_v33, %v8804_v47  ;;  %v12119_v7 = vand.u32 3, %v4639_v21 }
 0x444   : > { %v4625_v37 = vor.u32 4788187, %v4624_v28  ;;  %v4628_v31 = vcvt.s32.f32 %v4621_v24  ;;  %v4970_v11 = vor.u32 8388608, %v4969_v54  ;;  %v12123_v13 = vadd.f32 %v4098_v53, %v4018_v56 }
 0x445   : > { %v12121_v3 = vshrl.u32 %v4815_v51, 30  ;;  %v4977_v62 = vsub.s32 32, %v4976_v15  ;;  %v12126_v36 = vadd.s32 %v12086_v16, %v12091_v2  ;;  %v4979_v61 = vshll.u32 %v8606_v23, %v4976_v15 }
 0x446   : > { %v4626_v26 = vand.u32 2147483647, %v4625_v37  ;;  %v14528_v43 = vmov 2475754826   ;;  %v14529_v58 = vmov 2131351028   ;;  %v4991_v21 = vshll.u32 %v14455_v55, %v4976_v15 }
 0x447   : > { %v4817_v8 = vshll.u32 %v12121_v3, 30  ;;  %v4980_v33 = vshrl.u32 %v14528_v43, %v4977_v62  ;;  %v4983_v5 = vshrl.u32 %v14529_v58, %v4977_v62  ;;  %v14530_v14 = vmov 2102212464  }
 0x448   : > { %v4629_v38 = vmul.f32 %v4628_v31, %v4626_v26  ;;  %v4986_v30 = vshrl.u32 %v14530_v14, %v4977_v62  ;;  %v4989_v44 = vshrl.u32 %v14455_v55, %v4977_v62  ;;  %v4982_v53 = vshll.u32 %v14528_v43, %v4976_v15 }
 0x449   : > { %v12134_v57 = vsub.s32 %v4814_v42, %v4817_v8  ;;  %v4985_v16 = vshll.u32 %v14529_v58, %v4976_v15  ;;  %v4992_v2 = vshrl.u32 %v14453_v1, %v4977_v62  ;;  %v4975_v12 = vshrl.u32 %v4974_v60, 5 }
 0x44a   : > { %v4630_v6 = vxor.u32 2147483648, %v4629_v38  ;;  %v4988_v0 = vshll.u32 %v14530_v14, %v4976_v15  ;;  %v4981_v28 = vor.u32 %v4980_v33, %v4979_v61  ;;  %v4984_v54 = vor.u32 %v4983_v5, %v4982_v53 }
 0x44b   : > { %v4820_v24 = vsub.s32 0, %v12134_v57  ;;  %v4987_v51 = vor.u32 %v4986_v30, %v4985_v16  ;;  %vm4756_vm9 = vcmp.lt.s32.totalorder %v11898_v25, 0  ;;  %v5010_v37 = vshll.u32 %v4970_v11, 8 }
 0x44c   : > { %v4631_v42 = vsel %vm4548_vm13, %v4630_v6, %v4629_v38  ;;  %v4990_v56 = vor.u32 %v4989_v44, %v4988_v0  ;;  %v4133_v26 = vand.u32 2139095040, %v12123_v13  ;;  %v4840_v31 = vsub.s32 4, %v12121_v3 }
 0x44d   : > { %v4634_v60 = vsel %vm12053_vm14, %v11844_v4, %v4631_v42  ;;  %v7903_v15 = vmin.u32 %v4820_v24, %v12134_v57  ;;  %v4993_v8 = vor.u32 %v4992_v2, %v4991_v21  ;;  %v4978_v61 = vshrl.u32 %v8606_v23, %v4977_v62 }
 0x44e   : > { %8440 = vcosq.f32 %v4634_v60  ;;  %vm4994_vm12 = vcmp.lt.s32.totalorder %v4975_v12, 1  ;;  %vm4997_vm11 = vcmp.lt.s32.totalorder %v4975_v12, 4  ;;  %v14531_v33 = vand.u32 2147483647, %v11898_v25 }
 0x44f   : > { %8442 = vsinq.f32 %v4634_v60  ;;  %v4822_v38 = vclz %v7903_v15  ;;  %v4999_v10 = vsel %vm4997_vm11, %v4987_v51, 2102212464  ;;  %v5002_v5 = vsel %vm4994_vm12, %v4981_v28, %v4984_v54 }
 0x450   : > { %vm12154_vm13 = vcmp.le.f32.partialorder %v14531_v33, 0.7853982  ;;  %vm4995_vm14 = vcmp.lt.s32.totalorder %v4975_v12, 2  ;;  %vm4996_vm15 = vcmp.lt.s32.totalorder %v4975_v12, 3  ;;  %v5003_v30 = vsel %vm4997_vm11, %v4990_v56, 920167782  ;;  %v4076_v33 = vpop.permute.xlu1 %4075 }
 0x451   : > { %v5006_v44 = vsel %vm4994_vm12, %v4984_v54, %v4987_v51  ;;  %v7904_v53 = vadd.s32 4294967294, %v4822_v38  ;;  %v4998_v16 = vsel %vm4994_vm12, %v4978_v61, %v4981_v28  ;;  %v5004_v2 = vsel %vm4996_vm15, %v4987_v51, %v5003_v30 }
 0x452   : > { %v5007_v62 = vsel %vm4997_vm11, %v4993_v8, 1326507024  ;;  %v5000_v6 = vsel %vm4996_vm15, %v4984_v54, %v4999_v10  ;;  %v5005_v0 = vsel %vm4995_vm14, %v5002_v5, %v5004_v2  ;;  %v4134_v24 = vshrl.u32 %v4133_v26, 23 }
 0x453   : > { %v5008_v21 = vsel %vm4996_vm15, %v4990_v56, %v5007_v62  ;;  %vm7905_vm0 = vcmp.lt.s32.totalorder %v7904_v53, 0  ;;  %v12160_v60 = vmul.u32.u64.low %v5010_v37, %v5005_v0  ;;  %v12161_v15 = vmul.u32.u64.high %v5010_v37, %v5005_v0, %v12160_v60 }
 0x454   : > { %v5009_v42 = vsel %vm4995_vm14, %v5006_v44, %v5008_v21  ;;  %v4825_v59 = vsel %vm7905_vm0, 0, %v7904_v53  ;;  %v7878_v28 = vadd.s32 4294967169, %v4134_v24  ;;  %v4841_v54 = vsel %vm4756_vm9, %v4840_v31, %v12121_v3 }
 0x455   : > { %v12164_v1 = vmul.u32.u64.low %v5010_v37, %v5009_v42  ;;  %v12165_v55 = vmul.u32.u64.high %v5010_v37, %v5009_v42, %v12164_v1  ;;  %v4826_v51 = vsub.s32 32, %v4825_v59  ;;  %v4830_v8 = vsub.s32 4294967266, %v4825_v59 }
 0x456   : > { %v5001_v56 = vsel %vm4995_vm14, %v4998_v16, %v5000_v6  ;;  %vm4642_vm1 = vcmp.eq.s32.totalorder %v12119_v7, 0  ;;  %v4130_v26 = vand.u32 2147483647, %v12123_v13  ;;  %v4140_v61 = vadd.s32 1, %v7878_v28 }
 0x457   : > { %v4108_v38 = vmul.f32 %v4076_v33, %v8807_v48  ;;  %v4827_v10 = vshll.u32 %v12134_v57, %v4825_v59  ;;  %v4828_v1 = vshrl.u32 %v12126_v36, %v4826_v51  ;;  %v4831_v5 = vadd.s32 127, %v4830_v8 }
 0x458   : > { %v5020_v30 = vadd.s32 1, %v12161_v15  ;;  %v8441_v44 = vpop.eup %8440  ;;  %v4843_v3 = vsel %vm12154_vm13, 0, %v4841_v54  ;;  %v5017_v12 = vmul.u32 %v5010_v37, %v5001_v56  ;;  %vm5019_vm2 = vc.u32 %v12165_v55, %v12160_v60 }
 0x459   : > { %vm4141_vm3 = vcmp.gt.s32.totalorder %v4140_v61, 0  ;;  %v8443_v31 = vpop.eup %8442  ;;  %v4646_v53 = vxor.u32 2147483648, %v8441_v44  ;;  %v4829_v16 = vor.u32 %v4828_v1, %v4827_v10  ;;  %v4832_v2 = vshll.u32 %v4831_v5, 23 }
 0x45a   : > { %v5021_v59 = vsel %vm5019_vm2, %v5020_v30, %v12161_v15  ;;  %v4643_v57 = vxor.u32 2147483648, %v8443_v31  ;;  %vm4645_vm4 = vcmp.eq.s32.totalorder %v12119_v7, 2  ;;  %v4142_v62 = vsel %vm4141_vm3, %v4140_v61, 0 }
 0x45b   : > { %v5022_v36 = vadd.s32 %v5021_v59, %v5017_v12  ;;  %v4647_v6 = vsel %vm4645_vm4, %v4646_v53, %v8443_v31  ;;  %v4833_v0 = vor.u32 4788187, %v4832_v2  ;;  %v4847_v21 = vadd.s32 3, %v4843_v3 }
 0x45c   : > { %v4137_v37 = vand.u32 8388607, %v4130_v26  ;;  %vm4641_vm6 = vcmp.lt.s32.totalorder %v12119_v7, 2  ;;  %v4644_v24 = vsel %vm4642_vm1, %v8441_v44, %v4643_v57  ;;  %v4144_v33 = vand.u32 31, %v4142_v62 }
 0x45d   : > { %v5023_v42 = vadd.s32 536870912, %v5022_v36  ;;  %vm4638_vm5 = vweird.f32 %v11844_v4  ;;  %v4648_v15 = vsel %vm4641_vm6, %v4644_v24, %v4647_v6  ;;  %v4834_v28 = vand.u32 2147483647, %v4833_v0 }
 0x45e   : > { %v4836_v51 = vcvt.s32.f32 %v4829_v16  ;;  %v12191_v8 = vmul.f32 %v11603_v46, %v8794_v39  ;;  %v4649_v54 = vsel %vm4638_vm5, nan, %v4648_v15  ;;  %v4145_v61 = vsub.s32 32, %v4144_v33 }
 0x45f   : > { %v12193_v56 = vshrl.u32 %v5023_v42, 30  ;;  %5798 = vst [vmem:[%s9106_s21 + $0x90] sm:$0xff] %v4649_v54  ;;  %v12196_v1 = vand.u32 3, %v4847_v21  ;;  %v4138_v7 = vor.u32 8388608, %v4137_v37  ;;  %v12199_v5 = vadd.f32 %v4108_v38, %v12117_v22 }
 0x460   : > { %v4837_v10 = vmul.f32 %v4836_v51, %v4834_v28  ;;  %v4147_v30 = vshll.u32 %v8606_v23, %v4144_v33  ;;  %v4148_v44 = vshrl.u32 %v14528_v43, %v4145_v61  ;;  %v4150_v46 = vshll.u32 %v14528_v43, %v4144_v33 }
 0x461   : > { %v5025_v4 = vshll.u32 %v12193_v56, 30  ;;  %v4151_v12 = vshrl.u32 %v14529_v58, %v4145_v61  ;;  %v4154_v31 = vshrl.u32 %v14530_v14, %v4145_v61  ;;  %v14534_v53 = vmov 920167782  }
 0x462   : > { %v4838_v3 = vxor.u32 2147483648, %v4837_v10  ;;  %v4157_v16 = vshrl.u32 %v14534_v53, %v4145_v61  ;;  %v4143_v59 = vshrl.u32 %v4142_v62, 5  ;;  %v4153_v22 = vshll.u32 %v14529_v58, %v4144_v33 }
 0x463   : > { %v12208_v2 = vsub.s32 %v5022_v36, %v5025_v4  ;;  %v4156_v38 = vshll.u32 %v14530_v14, %v4144_v33  ;;  %v4149_v6 = vor.u32 %v4148_v44, %v4147_v30  ;;  %v4152_v0 = vor.u32 %v4151_v12, %v4150_v46 }
 0x464   : > { %v4839_v57 = vsel %vm4756_vm9, %v4838_v3, %v4837_v10  ;;  %v12214_v21 = vshll.u32 %v4138_v7, 8  ;;  %v4155_v36 = vor.u32 %v4154_v31, %v4153_v22  ;;  %v4159_v62 = vshll.u32 %v14534_v53, %v4144_v33 }
 0x465   : > { %v4842_v37 = vsel %vm12154_vm13, %v11898_v25, %v4839_v57  ;;  %v5028_v24 = vsub.s32 0, %v12208_v2  ;;  %v4158_v42 = vor.u32 %v4157_v16, %v4156_v38  ;;  %v14535_v15 = vmov 1326507024   ;;  %v4048_v57 = vpop.permute.xlu0 %4047 }
 0x466   : > { %8444 = vcosq.f32 %v4842_v37  ;;  %v4160_v28 = vshrl.u32 %v14535_v15, %v4145_v61  ;;  %v5173_v51 = vand.u32 2139095040, %v12199_v5  ;;  %vm4964_vm7 = vcmp.lt.s32.totalorder %v12059_v49, 0 }
 0x467   : > { %8446 = vsinq.f32 %v4842_v37  ;;  %v7911_v54 = vmin.u32 %v5028_v24, %v12208_v2  ;;  %vm4162_vm8 = vcmp.lt.s32.totalorder %v4143_v59, 1  ;;  %vm4165_vm10 = vcmp.lt.s32.totalorder %v4143_v59, 4 }
 0x468   : > { %v4161_v11 = vor.u32 %v4160_v28, %v4159_v62  ;;  %vm4163_vm9 = vcmp.lt.s32.totalorder %v4143_v59, 2  ;;  %v4170_v10 = vsel %vm4162_vm8, %v4149_v6, %v4152_v0  ;;  %v4171_v7 = vsel %vm4165_vm10, %v4158_v42, 920167782 }
 0x469   : > { %v5030_v4 = vclz %v7911_v54  ;;  %v4146_v30 = vshrl.u32 %v8606_v23, %v4145_v61  ;;  %vm4164_vm12 = vcmp.lt.s32.totalorder %v4143_v59, 3  ;;  %v4167_v33 = vsel %vm4165_vm10, %v4155_v36, 2102212464 }
 0x46a   : > { %v5048_v44 = vsub.s32 4, %v12193_v56  ;;  %v4172_v46 = vsel %vm4164_vm12, %v4155_v36, %v4171_v7  ;;  %v4174_v3 = vsel %vm4162_vm8, %v4152_v0, %v4155_v36  ;;  %v4175_v12 = vsel %vm4165_vm10, %v4161_v11, 1326507024 }
 0x46b   : > { %v7912_v31 = vadd.s32 4294967294, %v5030_v4  ;;  %v4166_v16 = vsel %vm4162_vm8, %v4146_v30, %v4149_v6  ;;  %v4173_v22 = vsel %vm4163_vm9, %v4170_v10, %v4172_v46  ;;  %v4176_v38 = vsel %vm4164_vm12, %v4158_v42, %v4175_v12 }
 0x46c   : > { %v4168_v37 = vsel %vm4164_vm12, %v4152_v0, %v4167_v33  ;;  %v4177_v24 = vsel %vm4163_vm9, %v4174_v3, %v4176_v38  ;;  %v12230_v62 = vmul.u32.u64.low %v12214_v21, %v4173_v22  ;;  %v12231_v28 = vmul.u32.u64.high %v12214_v21, %v4173_v22, %v12230_v62 }
 0x46d   : > { %vm4846_vm11 = vweird.f32 %v11898_v25  ;;  %v14536_v61 = vand.u32 2147483647, %v12059_v49  ;;  %vm7913_vm14 = vcmp.lt.s32.totalorder %v7912_v31, 0  ;;  %v5174_v0 = vshrl.u32 %v5173_v51, 23 }
 0x46e   : > { %v12242_v6 = vmul.u32.u64.low %v12214_v21, %v4177_v24  ;;  %v12243_v42 = vmul.u32.u64.high %v12214_v21, %v4177_v24, %v12242_v6  ;;  %vm4850_vm15 = vcmp.eq.s32.totalorder %v12196_v1, 0  ;;  %v5018_v54 = vadd.s32 %v12160_v60, %v12165_v55 }
 0x46f   : > { %vm12237_vm13 = vcmp.le.f32.partialorder %v14536_v61, 0.7853982  ;;  %v5033_v11 = vsel %vm7913_vm14, 0, %v7912_v31  ;;  %v4101_v10 = vmul.f32 %v4048_v57, %v8807_v48  ;;  %v4169_v30 = vsel %vm4163_vm9, %v4166_v16, %v4168_v37 }
 0x470   : > { %v5034_v7 = vsub.s32 32, %v5033_v11  ;;  %v5038_v4 = vsub.s32 4294967266, %v5033_v11  ;;  %v7918_v33 = vadd.s32 4294967169, %v5174_v0  ;;  %v8445_v46 = vpop.eup %8444  ;;  %vm4853_vm0 = vcmp.eq.s32.totalorder %v12196_v1, 2 }
 0x471   : > { %v5049_v51 = vsel %vm4964_vm7, %v5048_v44, %v12193_v56  ;;  %v4188_v3 = vadd.s32 1, %v12231_v28  ;;  %v5170_v12 = vand.u32 2147483647, %v12199_v5  ;;  %v8447_v55 = vpop.eup %8446  ;;  %v4854_v60 = vxor.u32 2147483648, %v8445_v46 }
 0x472   : > { %v5035_v31 = vshll.u32 %v12208_v2, %v5033_v11  ;;  %v5036_v22 = vshrl.u32 %v5018_v54, %v5034_v7  ;;  %v5039_v38 = vadd.s32 127, %v5038_v4  ;;  %v4851_v59 = vxor.u32 2147483648, %v8447_v55 }
 0x473   : > { %v4185_v16 = vmul.u32 %v12214_v21, %v4169_v30  ;;  %vm4187_vm1 = vc.u32 %v12243_v42, %v12230_v62  ;;  %v5180_v57 = vadd.s32 1, %v7918_v33  ;;  %v4855_v37 = vsel %vm4853_vm0, %v4854_v60, %v8447_v55 }
 0x474   : > { %v5037_v24 = vor.u32 %v5036_v22, %v5035_v31  ;;  %v5040_v56 = vshll.u32 %v5039_v38, 23  ;;  %v4189_v44 = vsel %vm4187_vm1, %v4188_v3, %v12231_v28  ;;  %vm4849_vm2 = vcmp.lt.s32.totalorder %v12196_v1, 2 }
 0x475   : > { %v4852_v2 = vsel %vm4850_vm15, %v8445_v46, %v4851_v59  ;;  %v4190_v61 = vadd.s32 %v4189_v44, %v4185_v16  ;;  %vm5181_vm3 = vcmp.gt.s32.totalorder %v5180_v57, 0  ;;  %v5177_v21 = vand.u32 8388607, %v5170_v12 }
 0x476   : > { %v4856_v6 = vsel %vm4849_vm2, %v4852_v2, %v4855_v37  ;;  %v5041_v0 = vor.u32 4788187, %v5040_v56  ;;  %v5182_v54 = vsel %vm5181_vm3, %v5180_v57, 0  ;;  %v5051_v7 = vsel %vm12237_vm13, 0, %v5049_v51 }
 0x477   : > { %v4857_v11 = vsel %vm4846_vm11, nan, %v4856_v6  ;;  %v4191_v28 = vadd.s32 536870912, %v4190_v61  ;;  %v5184_v4 = vand.u32 31, %v5182_v54  ;;  %v4021_v1 = vadd.f32 %v12191_v8, %v8804_v47 }
 0x478   : > { %v12274_v30 = vmul.f32 %v11619_v17, %v8794_v39  ;;  %5800 = vst [vmem:[%s9106_s21 + $0xd0] sm:$0xff] %v4857_v11  ;;  %v5042_v33 = vand.u32 2147483647, %v5041_v0  ;;  %v5044_v46 = vcvt.s32.f32 %v5037_v24  ;;  %v12279_v3 = vmul.f32 %v11636_v18, %v8794_v39 }
 0x479   : > { %v12283_v25 = vmul.f32 %v11658_v52, %v8794_v39  ;;  %v12285_v51 = vshrl.u32 %v4191_v28, 30  ;;  %v5185_v55 = vsub.s32 32, %v5184_v4  ;;  %v5055_v8 = vadd.s32 3, %v5051_v7 }
 0x47a   : > { %v5045_v60 = vmul.f32 %v5044_v46, %v5042_v33  ;;  %v5178_v31 = vor.u32 8388608, %v5177_v21  ;;  %v12287_v22 = vadd.f32 %v4101_v10, %v4021_v1  ;;  %v5183_v38 = vshrl.u32 %v5182_v54, 5 }
 0x47b   : > { %v4193_v17 = vshll.u32 %v12285_v51, 30  ;;  %v5187_v59 = vshll.u32 %v8606_v23, %v5184_v4  ;;  %v5188_v18 = vshrl.u32 %v14528_v43, %v5185_v55  ;;  %v5191_v57 = vshrl.u32 %v14529_v58, %v5185_v55 }
 0x47c   : > { %v5046_v16 = vxor.u32 2147483648, %v5045_v60  ;;  %v5194_v52 = vshrl.u32 %v14530_v14, %v5185_v55  ;;  %v5197_v37 = vshrl.u32 %v14534_v53, %v5185_v55  ;;  %v5190_v56 = vshll.u32 %v14528_v43, %v5184_v4 }
 0x47d   : > { %v12295_v24 = vsub.s32 %v4190_v61, %v4193_v17  ;;  %v5193_v10 = vshll.u32 %v14529_v58, %v5184_v4  ;;  %v5200_v44 = vshrl.u32 %v14535_v15, %v5185_v55  ;;  %v5189_v6 = vor.u32 %v5188_v18, %v5187_v59 }
 0x47e   : > { %v5047_v2 = vsel %vm4964_vm7, %v5046_v16, %v5045_v60  ;;  %v5196_v0 = vshll.u32 %v14530_v14, %v5184_v4  ;;  %v5199_v21 = vshll.u32 %v14534_v53, %v5184_v4  ;;  %v5192_v11 = vor.u32 %v5191_v57, %v5190_v56 }
 0x47f   : > { %v5050_v54 = vsel %vm12237_vm13, %v12059_v49, %v5047_v2  ;;  %v4196_v61 = vsub.s32 0, %v12295_v24  ;;  %v5195_v7 = vor.u32 %v5194_v52, %v5193_v10  ;;  %v12308_v28 = vand.u32 3, %v5055_v8 }
 0x480   : > { %8448 = vcosq.f32 %v5050_v54  ;;  %v5198_v1 = vor.u32 %v5197_v37, %v5196_v0  ;;  %v5201_v33 = vor.u32 %v5200_v44, %v5199_v21  ;;  %vm4132_vm4 = vcmp.lt.s32.totalorder %v12123_v13, 0 }
 0x481   : > { %8450 = vsinq.f32 %v5050_v54  ;;  %v7879_v46 = vmin.u32 %v4196_v61, %v12295_v24  ;;  %v12312_v60 = vshll.u32 %v5178_v31, 8  ;;  %v4445_v4 = vand.u32 2139095040, %v12287_v22 }
 0x482   : > { %v5186_v36 = vshrl.u32 %v8606_v23, %v5185_v55  ;;  %vm5202_vm6 = vcmp.lt.s32.totalorder %v5183_v38, 1  ;;  %vm5203_vm5 = vcmp.lt.s32.totalorder %v5183_v38, 2  ;;  %vm5204_vm7 = vcmp.lt.s32.totalorder %v5183_v38, 3 }
 0x483   : > { %v4198_v17 = vclz %v7879_v46  ;;  %vm5205_vm8 = vcmp.lt.s32.totalorder %v5183_v38, 4  ;;  %v5210_v8 = vsel %vm5202_vm6, %v5189_v6, %v5192_v11  ;;  %v5214_v59 = vsel %vm5202_vm6, %v5192_v11, %v5195_v7 }
 0x484   : > { %v5206_v18 = vsel %vm5202_vm6, %v5186_v36, %v5189_v6  ;;  %v5207_v16 = vsel %vm5205_vm8, %v5195_v7, 2102212464  ;;  %v5211_v57 = vsel %vm5205_vm8, %v5198_v1, 920167782  ;;  %v5215_v52 = vsel %vm5205_vm8, %v5201_v33, 1326507024 }
 0x485   : > { %vm5058_vm10 = vcmp.eq.s32.totalorder %v12308_v28, 0  ;;  %vm12319_vm9 = vcmp.le.f32.partialorder %v4130_v26, 0.7853982  ;;  %v7880_v55 = vadd.s32 4294967294, %v4198_v17  ;;  %v5208_v37 = vsel %vm5204_vm7, %v5192_v11, %v5207_v16 }
 0x486   : > { %v5212_v56 = vsel %vm5204_vm7, %v5195_v7, %v5211_v57  ;;  %v5216_v10 = vsel %vm5204_vm7, %v5198_v1, %v5215_v52  ;;  %vm5057_vm12 = vcmp.lt.s32.totalorder %v12308_v28, 2  ;;  %v4216_v44 = vsub.s32 4, %v12285_v51 }
 0x487   : > { %v5213_v2 = vsel %vm5203_vm5, %v5210_v8, %v5212_v56  ;;  %v5217_v6 = vsel %vm5203_vm5, %v5214_v59, %v5216_v10  ;;  %v4446_v0 = vshrl.u32 %v4445_v4, 23  ;;  %vm7881_vm11 = vcmp.lt.s32.totalorder %v7880_v55, 0 }
 0x488   : > { %v5209_v21 = vsel %vm5203_vm5, %v5206_v18, %v5208_v37  ;;  %v12329_v26 = vmul.u32.u64.low %v12312_v60, %v5217_v6  ;;  %v12330_v54 = vmul.u32.u64.high %v12312_v60, %v5217_v6, %v12329_v26  ;;  %v4201_v61 = vsel %vm7881_vm11, 0, %v7880_v55 }
 0x489   : > { %v12333_v11 = vmul.u32.u64.low %v12312_v60, %v5213_v2  ;;  %v12334_v7 = vmul.u32.u64.high %v12312_v60, %v5213_v2, %v12333_v11  ;;  %v7890_v1 = vadd.s32 4294967169, %v4446_v0  ;;  %vm5061_vm13 = vcmp.eq.s32.totalorder %v12308_v28, 2 }
 0x48a   : > { %v4186_v33 = vadd.s32 %v12230_v62, %v12243_v42  ;;  %v4202_v46 = vsub.s32 32, %v4201_v61  ;;  %v4206_v4 = vsub.s32 4294967266, %v4201_v61  ;;  %v8449_v38 = vpop.eup %8448  ;;  %v4217_v36 = vsel %vm4132_vm4, %v4216_v44, %v12285_v51 }
 0x48b   : > { %v5225_v17 = vmul.u32 %v12312_v60, %v5209_v21  ;;  %v14457_v8 = vand.u32 2147483647, %v12287_v22  ;;  %v4452_v59 = vadd.s32 1, %v7890_v1  ;;  %v8451_v18 = vpop.eup %8450  ;;  %v5062_v16 = vxor.u32 2147483648, %v8449_v38 }
 0x48c   : > { %v4203_v57 = vshll.u32 %v12295_v24, %v4201_v61  ;;  %v4204_v52 = vshrl.u32 %v4186_v33, %v4202_v46  ;;  %v4207_v55 = vadd.s32 127, %v4206_v4  ;;  %v5059_v37 = vxor.u32 2147483648, %v8451_v18 }
 0x48d   : > { %vm5227_vm14 = vc.u32 %v12330_v54, %v12333_v11  ;;  %v5228_v62 = vadd.s32 1, %v12334_v7  ;;  %vm4453_vm15 = vcmp.gt.s32.totalorder %v4452_v59, 0  ;;  %v5063_v42 = vsel %vm5061_vm13, %v5062_v16, %v8451_v18 }
 0x48e   : > { %v4205_v51 = vor.u32 %v4204_v52, %v4203_v57  ;;  %v4208_v60 = vshll.u32 %v4207_v55, 23  ;;  %v4454_v56 = vsel %vm4453_vm15, %v4452_v59, 0  ;;  %v5060_v10 = vsel %vm5058_vm10, %v8449_v38, %v5059_v37 }
 0x48f   : > { %v4219_v24 = vsel %vm12319_vm9, 0, %v4217_v36  ;;  %v5229_v44 = vsel %vm5227_vm14, %v5228_v62, %v12334_v7  ;;  %v4456_v2 = vand.u32 31, %v4454_v56  ;;  %vm5054_vm0 = vweird.f32 %v12059_v49  ;;  %v4056_v62 = vpop.permute.xlu0 %4055 }
 0x490   : > { %v5064_v6 = vsel %vm5057_vm12, %v5060_v10, %v5063_v42  ;;  %v4209_v0 = vor.u32 4788187, %v4208_v60  ;;  %v5230_v21 = vadd.s32 %v5229_v44, %v5225_v17  ;;  %v4023_v26 = vadd.f32 %v12274_v30, %v8804_v47 }
 0x491   : > { %v5065_v61 = vsel %vm5054_vm0, nan, %v5064_v6  ;;  %v4449_v1 = vand.u32 8388607, %v14457_v8  ;;  %v4457_v33 = vsub.s32 32, %v4456_v2  ;;  %v4212_v4 = vcvt.s32.f32 %v4205_v51 }
 0x492   : > { %5802 = vst [vmem:[%s9106_s21 + $0x110] sm:$0xff] %v5065_v61  ;;  %v4210_v46 = vand.u32 2147483647, %v4209_v0  ;;  %v4223_v7 = vadd.s32 3, %v4219_v24  ;;  %v5231_v38 = vadd.s32 536870912, %v5230_v21  ;;  %v4455_v36 = vshrl.u32 %v4454_v56, 5 }
 0x493   : > { %v4460_v49 = vshrl.u32 %v14528_v43, %v4457_v33  ;;  %v4463_v28 = vshrl.u32 %v14529_v58, %v4457_v33  ;;  %v4466_v17 = vshrl.u32 %v14530_v14, %v4457_v33  ;;  %v4459_v30 = vshll.u32 %v8606_v23, %v4456_v2 }
 0x494   : > { %v4213_v59 = vmul.f32 %v4212_v4, %v4210_v46  ;;  %v5232_v18 = vshrl.u32 %v5231_v38, 30  ;;  %v4469_v16 = vshrl.u32 %v14534_v53, %v4457_v33  ;;  %v4462_v57 = vshll.u32 %v14528_v43, %v4456_v2 }
 0x495   : > { %v4465_v52 = vshll.u32 %v14529_v58, %v4456_v2  ;;  %v4468_v55 = vshll.u32 %v14530_v14, %v4456_v2  ;;  %v4472_v37 = vshrl.u32 %v14535_v15, %v4457_v33  ;;  %v4450_v60 = vor.u32 8388608, %v4449_v1 }
 0x496   : > { %v4214_v42 = vxor.u32 2147483648, %v4213_v59  ;;  %v5233_v51 = vshll.u32 %v5232_v18, 30  ;;  %v4471_v56 = vshll.u32 %v14534_v53, %v4456_v2  ;;  %v4461_v10 = vor.u32 %v4460_v49, %v4459_v30 }
 0x497   : > { %v4464_v24 = vor.u32 %v4463_v28, %v4462_v57  ;;  %v4467_v44 = vor.u32 %v4466_v17, %v4465_v52  ;;  %v4470_v6 = vor.u32 %v4469_v16, %v4468_v55  ;;  %v4458_v46 = vshrl.u32 %v8606_v23, %v4457_v33 }
 0x498   : > { %v4215_v0 = vsel %vm4132_vm4, %v4214_v42, %v4213_v59  ;;  %v12376_v61 = vsub.s32 %v5230_v21, %v5233_v51  ;;  %v4103_v4 = vmul.f32 %v4056_v62, %v8807_v48  ;;  %v5256_v1 = vsub.s32 4, %v5232_v18 }
 0x499   : > { %v4218_v38 = vsel %vm12319_vm9, %v12123_v13, %v4215_v0  ;;  %v4473_v8 = vor.u32 %v4472_v37, %v4471_v56  ;;  %vm4474_vm1 = vcmp.lt.s32.totalorder %v4455_v36, 1  ;;  %vm4476_vm2 = vcmp.lt.s32.totalorder %v4455_v36, 3 }
 0x49a   : > { %8452 = vcosq.f32 %v4218_v38  ;;  %v5236_v2 = vsub.s32 0, %v12376_v61  ;;  %vm4477_vm3 = vcmp.lt.s32.totalorder %v4455_v36, 4  ;;  %v4482_v21 = vsel %vm4474_vm1, %v4461_v10, %v4464_v24 }
 0x49b   : > { %8454 = vsinq.f32 %v4218_v38  ;;  %v4479_v49 = vsel %vm4477_vm3, %v4467_v44, 2102212464  ;;  %v4483_v28 = vsel %vm4477_vm3, %v4470_v6, 920167782  ;;  %vm4475_vm4 = vcmp.lt.s32.totalorder %v4455_v36, 2 }
 0x49c   : > { %v7919_v33 = vmin.u32 %v5236_v2, %v12376_v61  ;;  %v4484_v17 = vsel %vm4476_vm2, %v4467_v44, %v4483_v28  ;;  %v4486_v31 = vsel %vm4474_vm1, %v4464_v24, %v4467_v44  ;;  %v4487_v30 = vsel %vm4477_vm3, %v4473_v8, 1326507024 }
 0x49d   : > { %v4485_v59 = vsel %vm4475_vm4, %v4482_v21, %v4484_v17  ;;  %v4490_v16 = vshll.u32 %v4450_v60, 8  ;;  %v12389_v57 = vadd.f32 %v4103_v4, %v4023_v26  ;;  %v4224_v52 = vand.u32 3, %v4223_v7 }
 0x49e   : > { %v5238_v55 = vclz %v7919_v33  ;;  %v4478_v37 = vsel %vm4474_vm1, %v4458_v46, %v4461_v10  ;;  %v4480_v62 = vsel %vm4476_vm2, %v4464_v24, %v4479_v49  ;;  %vm5172_vm6 = vcmp.lt.s32.totalorder %v12199_v5, 0 }
 0x49f   : > { %v4488_v42 = vsel %vm4476_vm2, %v4470_v6, %v4487_v30  ;;  %v12395_v51 = vmul.u32.u64.low %v4490_v16, %v4485_v59  ;;  %v12396_v56 = vmul.u32.u64.high %v4490_v16, %v4485_v59, %v12395_v51  ;;  %vm12400_vm5 = vcmp.le.f32.partialorder %v5170_v12, 0.7853982 }
 0x4a0   : > { %v7920_v26 = vadd.s32 4294967294, %v5238_v55  ;;  %v5257_v7 = vsel %vm5172_vm6, %v5256_v1, %v5232_v18  ;;  %v4489_v60 = vsel %vm4475_vm4, %v4486_v31, %v4488_v42  ;;  %v4481_v10 = vsel %vm4475_vm4, %v4478_v37, %v4480_v62 }
 0x4a1   : > { %v12408_v24 = vmul.u32.u64.low %v4490_v16, %v4489_v60  ;;  %v12409_v44 = vmul.u32.u64.high %v4490_v16, %v4489_v60, %v12408_v24  ;;  %v4653_v6 = vand.u32 2139095040, %v12389_v57  ;;  %vm4226_vm7 = vcmp.eq.s32.totalorder %v4224_v52, 0 }
 0x4a2   : > { %vm4229_vm8 = vcmp.eq.s32.totalorder %v4224_v52, 2  ;;  %v5226_v12 = vadd.s32 %v12333_v11, %v12330_v54  ;;  %vm7921_vm10 = vcmp.lt.s32.totalorder %v7920_v26, 0  ;;  %v4500_v46 = vadd.s32 1, %v12396_v56 }
 0x4a3   : > { %v5241_v0 = vsel %vm7921_vm10, 0, %v7920_v26  ;;  %v4650_v18 = vand.u32 2147483647, %v12389_v57  ;;  %v4654_v4 = vshrl.u32 %v4653_v6, 23  ;;  %v5259_v2 = vsel %vm12400_vm5, 0, %v5257_v7  ;;  %v4064_v26 = vpop.permute.xlu0 %4063 }
 0x4a4   : > { %v8453_v38 = vpop.eup %8452  ;;  %v5242_v36 = vsub.s32 32, %v5241_v0  ;;  %v5246_v1 = vsub.s32 4294967266, %v5241_v0  ;;  %v4497_v49 = vmul.u32 %v4490_v16, %v4481_v10  ;;  %v5243_v33 = vshll.u32 %v12376_v61, %v5241_v0 }
 0x4a5   : > { %v8455_v21 = vpop.eup %8454  ;;  %v4230_v28 = vxor.u32 2147483648, %v8453_v38  ;;  %vm4499_vm9 = vc.u32 %v12409_v44, %v12395_v51  ;;  %v7898_v54 = vadd.s32 4294967169, %v4654_v4  ;;  %v4657_v37 = vand.u32 8388607, %v4650_v18 }
 0x4a6   : > { %v4227_v11 = vxor.u32 2147483648, %v8455_v21  ;;  %v5244_v17 = vshrl.u32 %v5226_v12, %v5242_v36  ;;  %v5247_v31 = vadd.s32 127, %v5246_v1  ;;  %v4501_v59 = vsel %vm4499_vm9, %v4500_v46, %v12396_v56 }
 0x4a7   : > { %v4231_v30 = vsel %vm4229_vm8, %v4230_v28, %v8455_v21  ;;  %v4502_v55 = vadd.s32 %v4501_v59, %v4497_v49  ;;  %v4660_v16 = vadd.s32 1, %v7898_v54  ;;  %vm4225_vm12 = vcmp.lt.s32.totalorder %v4224_v52, 2 }
 0x4a8   : > { %v4228_v62 = vsel %vm4226_vm7, %v8453_v38, %v4227_v11  ;;  %v5245_v61 = vor.u32 %v5244_v17, %v5243_v33  ;;  %v5248_v42 = vshll.u32 %v5247_v31, 23  ;;  %vm4222_vm11 = vweird.f32 %v12123_v13 }
 0x4a9   : > { %v4232_v7 = vsel %vm4225_vm12, %v4228_v62, %v4231_v30  ;;  %v4503_v60 = vadd.s32 536870912, %v4502_v55  ;;  %vm4661_vm13 = vcmp.gt.s32.totalorder %v4660_v16, 0  ;;  %v5263_v24 = vadd.s32 3, %v5259_v2 }
 0x4aa   : > { %v4233_v56 = vsel %vm4222_vm11, nan, %v4232_v7  ;;  %v5249_v10 = vor.u32 4788187, %v5248_v42  ;;  %v4662_v6 = vsel %vm4661_vm13, %v4660_v16, 0  ;;  %v4658_v0 = vor.u32 8388608, %v4657_v37 }
 0x4ab   : > { %5794 = vst [vmem:[%s9106_s21 + $0x10] sm:$0xff] %v4233_v56  ;;  %v4504_v12 = vshrl.u32 %v4503_v60, 30  ;;  %v4664_v46 = vand.u32 31, %v4662_v6  ;;  %v4105_v4 = vmul.f32 %v4064_v26, %v8807_v48  ;;  %v5252_v38 = vcvt.s32.f32 %v5245_v61 }
 0x4ac   : > { %v5250_v52 = vand.u32 2147483647, %v5249_v10  ;;  %v4025_v36 = vadd.f32 %v12279_v3, %v8804_v47  ;;  %v12432_v49 = vadd.f32 %v12283_v25, %v8804_v47  ;;  %v12434_v2 = vand.u32 3, %v5263_v24 }
 0x4ad   : > { %v4505_v1 = vshll.u32 %v4504_v12, 30  ;;  %v4665_v13 = vsub.s32 32, %v4664_v46  ;;  %v4498_v28 = vadd.s32 %v12395_v51, %v12409_v44  ;;  %v12440_v11 = vshll.u32 %v4658_v0, 8 }
 0x4ae   : > { %v5253_v21 = vmul.f32 %v5252_v38, %v5250_v52  ;;  %v12442_v17 = vadd.f32 %v4105_v4, %v4025_v36  ;;  %v4667_v31 = vshll.u32 %v8606_v23, %v4664_v46  ;;  %vm4444_vm14 = vcmp.lt.s32.totalorder %v12287_v22, 0 }
 0x4af   : > { %v12437_v33 = vsub.s32 %v4502_v55, %v4505_v1  ;;  %v4668_v54 = vshrl.u32 %v14528_v43, %v4665_v13  ;;  %v4671_v59 = vshrl.u32 %v14529_v58, %v4665_v13  ;;  %v4674_v25 = vshrl.u32 %v14530_v14, %v4665_v13 }
 0x4b0   : > { %v5254_v3 = vxor.u32 2147483648, %v5253_v21  ;;  %v4670_v51 = vshll.u32 %v14528_v43, %v4664_v46  ;;  %v4673_v44 = vshll.u32 %v14529_v58, %v4664_v46  ;;  %v4677_v55 = vshrl.u32 %v14534_v53, %v4665_v13 }
 0x4b1   : > { %v4508_v30 = vsub.s32 0, %v12437_v33  ;;  %v4663_v16 = vshrl.u32 %v4662_v6, 5  ;;  %v4669_v62 = vor.u32 %v4668_v54, %v4667_v31  ;;  %v4676_v61 = vshll.u32 %v14530_v14, %v4664_v46 }
 0x4b2   : > { %v5255_v37 = vsel %vm5172_vm6, %v5254_v3, %v5253_v21  ;;  %v4672_v7 = vor.u32 %v4671_v59, %v4670_v51  ;;  %v4675_v60 = vor.u32 %v4674_v25, %v4673_v44  ;;  %v4679_v10 = vshll.u32 %v14534_v53, %v4664_v46 }
 0x4b3   : > { %v5258_v42 = vsel %vm12400_vm5, %v12199_v5, %v5255_v37  ;;  %v7891_v26 = vmin.u32 %v4508_v30, %v12437_v33  ;;  %v4678_v56 = vor.u32 %v4677_v55, %v4676_v61  ;;  %v4680_v24 = vshrl.u32 %v14535_v15, %v4665_v13 }
 0x4b4   : > { %8456 = vcosq.f32 %v5258_v42  ;;  %v14543_v6 = vand.u32 2147483647, %v12287_v22  ;;  %v4858_v8 = vand.u32 2147483647, %v12442_v17  ;;  %v4861_v52 = vand.u32 2139095040, %v12442_v17 }
 0x4b5   : > { %8458 = vsinq.f32 %v5258_v42  ;;  %v4510_v4 = vclz %v7891_v26  ;;  %v4528_v38 = vsub.s32 4, %v4504_v12  ;;  %v4666_v36 = vshrl.u32 %v8606_v23, %v4665_v13 }
 0x4b6   : > { %vm12463_vm15 = vcmp.le.f32.partialorder %v14543_v6, 0.7853982  ;;  %v4681_v1 = vor.u32 %v4680_v24, %v4679_v10  ;;  %vm4682_vm0 = vcmp.lt.s32.totalorder %v4663_v16, 1  ;;  %vm4684_vm1 = vcmp.lt.s32.totalorder %v4663_v16, 3 }
 0x4b7   : > { %v7892_v46 = vadd.s32 4294967294, %v4510_v4  ;;  %vm4685_vm2 = vcmp.lt.s32.totalorder %v4663_v16, 4  ;;  %v4690_v21 = vsel %vm4682_vm0, %v4669_v62, %v4672_v7  ;;  %v4694_v31 = vsel %vm4682_vm0, %v4672_v7, %v4675_v60 }
 0x4b8   : > { %v4687_v54 = vsel %vm4685_vm2, %v4675_v60, 2102212464  ;;  %v4691_v3 = vsel %vm4685_vm2, %v4678_v56, 920167782  ;;  %v4695_v59 = vsel %vm4685_vm2, %v4681_v1, 1326507024  ;;  %v4529_v13 = vsel %vm4444_vm14, %v4528_v38, %v4504_v12 }
 0x4b9   : > { %vm7893_vm3 = vcmp.lt.s32.totalorder %v7892_v46, 0  ;;  %vm4683_vm4 = vcmp.lt.s32.totalorder %v4663_v16, 2  ;;  %v4692_v25 = vsel %vm4684_vm1, %v4675_v60, %v4691_v3  ;;  %v4696_v30 = vsel %vm4684_vm1, %v4678_v56, %v4695_v59 }
 0x4ba   : > { %v4513_v51 = vsel %vm7893_vm3, 0, %v7892_v46  ;;  %v4693_v44 = vsel %vm4683_vm4, %v4690_v21, %v4692_v25  ;;  %v4697_v55 = vsel %vm4683_vm4, %v4694_v31, %v4696_v30  ;;  %vm5262_vm6 = vweird.f32 %v12199_v5 }
 0x4bb   : > { %v4514_v37 = vsub.s32 32, %v4513_v51  ;;  %v4518_v61 = vsub.s32 4294967266, %v4513_v51  ;;  %v4686_v42 = vsel %vm4682_vm0, %v4666_v36, %v4669_v62  ;;  %v4688_v26 = vsel %vm4684_vm1, %v4672_v7, %v4687_v54  ;;  %v4072_v36 = vpop.permute.xlu0 %4071 }
 0x4bc   : > { %v12482_v60 = vmul.u32.u64.low %v12440_v11, %v4697_v55  ;;  %v12483_v10 = vmul.u32.u64.high %v12440_v11, %v4697_v55, %v12482_v60  ;;  %v12486_v56 = vmul.u32.u64.low %v12440_v11, %v4693_v44  ;;  %v12487_v24 = vmul.u32.u64.high %v12440_v11, %v4693_v44, %v12486_v56 }
 0x4bd   : > { %v4515_v12 = vshll.u32 %v12437_v33, %v4513_v51  ;;  %v4516_v6 = vshrl.u32 %v4498_v28, %v4514_v37  ;;  %v4519_v4 = vadd.s32 127, %v4518_v61  ;;  %v4862_v38 = vshrl.u32 %v4861_v52, 23 }
 0x4be   : > { %v8457_v1 = vpop.eup %8456  ;;  %vm5266_vm5 = vcmp.eq.s32.totalorder %v12434_v2, 0  ;;  %vm5269_vm7 = vcmp.eq.s32.totalorder %v12434_v2, 2  ;;  %v4531_v62 = vsel %vm12463_vm15, 0, %v4529_v13  ;;  %v4689_v7 = vsel %vm4683_vm4, %v4686_v42, %v4688_v26 }
 0x4bf   : > { %v8459_v46 = vpop.eup %8458  ;;  %v5270_v21 = vxor.u32 2147483648, %v8457_v1  ;;  %v4517_v54 = vor.u32 %v4516_v6, %v4515_v12  ;;  %v4520_v3 = vshll.u32 %v4519_v4, 23  ;;  %v7906_v31 = vadd.s32 4294967169, %v4862_v38 }
 0x4c0   : > { %v5267_v33 = vxor.u32 2147483648, %v8459_v46  ;;  %vm4707_vm8 = vc.u32 %v12483_v10, %v12486_v56  ;;  %v4708_v28 = vadd.s32 1, %v12487_v24  ;;  %v4865_v52 = vand.u32 8388607, %v4858_v8 }
 0x4c1   : > { %v5271_v59 = vsel %vm5269_vm7, %v5270_v21, %v8459_v46  ;;  %v4521_v25 = vor.u32 4788187, %v4520_v3  ;;  %v4705_v16 = vmul.u32 %v12440_v11, %v4689_v7  ;;  %v4107_v30 = vmul.f32 %v4072_v36, %v8807_v48 }
 0x4c2   : > { %vm5265_vm10 = vcmp.lt.s32.totalorder %v12434_v2, 2  ;;  %v5268_v51 = vsel %vm5266_vm5, %v8457_v1, %v5267_v33  ;;  %v4709_v13 = vsel %vm4707_vm8, %v4708_v28, %v12487_v24  ;;  %v4868_v44 = vadd.s32 1, %v7906_v31 }
 0x4c3   : > { %v5272_v55 = vsel %vm5265_vm10, %v5268_v51, %v5271_v59  ;;  %v4522_v37 = vand.u32 2147483647, %v4521_v25  ;;  %v4524_v61 = vcvt.s32.f32 %v4517_v54  ;;  %v4710_v42 = vadd.s32 %v4709_v13, %v4705_v16 }
 0x4c4   : > { %v5273_v26 = vsel %vm5262_vm6, nan, %v5272_v55  ;;  %v4535_v60 = vadd.s32 3, %v4531_v62  ;;  %v4866_v12 = vor.u32 8388608, %v4865_v52  ;;  %vm4869_vm9 = vcmp.gt.s32.totalorder %v4868_v44, 0 }
 0x4c5   : > { %5804 = vst [vmem:[%s9106_s21 + $0x150] sm:$0xff] %v5273_v26  ;;  %v4525_v11 = vmul.f32 %v4524_v61, %v4522_v37  ;;  %v4711_v6 = vadd.s32 536870912, %v4710_v42  ;;  %v4870_v4 = vsel %vm4869_vm9, %v4868_v44, 0  ;;  %v12509_v2 = vadd.f32 %v4107_v30, %v12432_v49 }
 0x4c6   : > { %v4872_v38 = vand.u32 31, %v4870_v4  ;;  %v12515_v7 = vmul.f32 %v11824_v34, %v8794_v39  ;;  %v12517_v5 = vand.u32 3, %v4535_v60  ;;  %v12520_v62 = vadd.s32 %v12486_v56, %v12483_v10 }
 0x4c7   : > { %v4526_v24 = vxor.u32 2147483648, %v4525_v11  ;;  %v12511_v1 = vshrl.u32 %v4711_v6, 30  ;;  %v12525_v21 = vshll.u32 %v4866_v12, 8  ;;  %v5069_v54 = vand.u32 2139095040, %v12509_v2 }
 0x4c8   : > { %v4873_v36 = vsub.s32 32, %v4872_v38  ;;  %v4875_v3 = vshll.u32 %v8606_v23, %v4872_v38  ;;  %v4878_v33 = vshll.u32 %v14528_v43, %v4872_v38  ;;  %v4871_v52 = vshrl.u32 %v4870_v4, 5 }
 0x4c9   : > { %v4527_v46 = vsel %vm4444_vm14, %v4526_v24, %v4525_v11  ;;  %v4713_v49 = vshll.u32 %v12511_v1, 30  ;;  %v4881_v59 = vshll.u32 %v14529_v58, %v4872_v38  ;;  %v4884_v0 = vshll.u32 %v14530_v14, %v4872_v38 }
 0x4ca   : > { %v4530_v34 = vsel %vm12463_vm15, %v12287_v22, %v4527_v46  ;;  %v4876_v31 = vshrl.u32 %v14528_v43, %v4873_v36  ;;  %v4879_v10 = vshrl.u32 %v14529_v58, %v4873_v36  ;;  %v4882_v28 = vshrl.u32 %v14530_v14, %v4873_v36 }
 0x4cb   : > { %8460 = vcosq.f32 %v4530_v34  ;;  %v12534_v56 = vsub.s32 %v4710_v42, %v4713_v49  ;;  %v4885_v51 = vshrl.u32 %v14534_v53, %v4873_v36  ;;  %v4887_v44 = vshll.u32 %v14534_v53, %v4872_v38 }
 0x4cc   : > { %8462 = vsinq.f32 %v4530_v34  ;;  %v4877_v16 = vor.u32 %v4876_v31, %v4875_v3  ;;  %v4880_v30 = vor.u32 %v4879_v10, %v4878_v33  ;;  %v4883_v13 = vor.u32 %v4882_v28, %v4881_v59 }
 0x4cd   : > { %v4716_v25 = vsub.s32 0, %v12534_v56  ;;  %v4888_v55 = vshrl.u32 %v14535_v15, %v4873_v36  ;;  %v5066_v37 = vand.u32 2147483647, %v12509_v2  ;;  %vm4541_vm12 = vcmp.eq.s32.totalorder %v12517_v5, 2 }
 0x4ce   : > { %vm4652_vm11 = vcmp.lt.s32.totalorder %v12389_v57, 0  ;;  %v4874_v42 = vshrl.u32 %v8606_v23, %v4873_v36  ;;  %v4886_v26 = vor.u32 %v4885_v51, %v4884_v0  ;;  %v5070_v60 = vshrl.u32 %v5069_v54, 23 }
 0x4cf   : > { %v7899_v61 = vmin.u32 %v4716_v25, %v12534_v56  ;;  %vm4538_vm13 = vcmp.eq.s32.totalorder %v12517_v5, 0  ;;  %v4889_v12 = vor.u32 %v4888_v55, %v4887_v44  ;;  %vm4890_vm14 = vcmp.lt.s32.totalorder %v4871_v52, 1 }
 0x4d0   : > { %vm4891_vm15 = vcmp.lt.s32.totalorder %v4871_v52, 2  ;;  %vm4892_vm0 = vcmp.lt.s32.totalorder %v4871_v52, 3  ;;  %vm4537_vm1 = vcmp.lt.s32.totalorder %v12517_v5, 2  ;;  %vm4893_vm2 = vcmp.lt.s32.totalorder %v4871_v52, 4 }
 0x4d1   : > { %v4718_v11 = vclz %v7899_v61  ;;  %v4894_v6 = vsel %vm4890_vm14, %v4874_v42, %v4877_v16  ;;  %v4898_v4 = vsel %vm4890_vm14, %v4877_v16, %v4880_v30  ;;  %vm4534_vm3 = vweird.f32 %v12287_v22 }
 0x4d2   : > { %v4895_v38 = vsel %vm4893_vm2, %v4883_v13, 2102212464  ;;  %v4899_v24 = vsel %vm4893_vm2, %v4886_v26, 920167782  ;;  %v4902_v46 = vsel %vm4890_vm14, %v4880_v30, %v4883_v13  ;;  %v4903_v36 = vsel %vm4893_vm2, %v4889_v12, 1326507024 }
 0x4d3   : > { %v7900_v49 = vadd.s32 4294967294, %v4718_v11  ;;  %v4896_v54 = vsel %vm4892_vm0, %v4880_v30, %v4895_v38  ;;  %v4900_v34 = vsel %vm4892_vm0, %v4883_v13, %v4899_v24  ;;  %v4904_v3 = vsel %vm4892_vm0, %v4886_v26, %v4903_v36 }
 0x4d4   : > { %v4736_v31 = vsub.s32 4, %v12511_v1  ;;  %v4901_v10 = vsel %vm4891_vm15, %v4898_v4, %v4900_v34  ;;  %v4905_v33 = vsel %vm4891_vm15, %v4902_v46, %v4904_v3  ;;  %v7914_v28 = vadd.s32 4294967169, %v5070_v60 }
 0x4d5   : > { %v8461_v59 = vpop.eup %8460  ;;  %vm7901_vm4 = vcmp.lt.s32.totalorder %v7900_v49, 0  ;;  %v4897_v0 = vsel %vm4891_vm15, %v4894_v6, %v4896_v54  ;;  %v12557_v25 = vmul.u32.u64.low %v12525_v21, %v4905_v33  ;;  %v12558_v16 = vmul.u32.u64.high %v12525_v21, %v4905_v33, %v12557_v25 }
 0x4d6   : > { %v8463_v51 = vpop.eup %8462  ;;  %v4542_v44 = vxor.u32 2147483648, %v8461_v59  ;;  %v4721_v30 = vsel %vm7901_vm4, 0, %v7900_v49  ;;  %v12561_v13 = vmul.u32.u64.low %v12525_v21, %v4901_v10  ;;  %v12562_v55 = vmul.u32.u64.high %v12525_v21, %v4901_v10, %v12561_v13 }
 0x4d7   : > { %v4539_v61 = vxor.u32 2147483648, %v8463_v51  ;;  %v4722_v42 = vsub.s32 32, %v4721_v30  ;;  %v4726_v26 = vsub.s32 4294967266, %v4721_v30  ;;  %v5073_v60 = vand.u32 8388607, %v5066_v37 }
 0x4d8   : > { %v4543_v52 = vsel %vm4541_vm12, %v4542_v44, %v8463_v51  ;;  %v4737_v12 = vsel %vm4652_vm11, %v4736_v31, %v12511_v1  ;;  %v4913_v11 = vmul.u32 %v12525_v21, %v4897_v0  ;;  %v5076_v6 = vadd.s32 1, %v7914_v28 }
 0x4d9   : > { %v4540_v4 = vsel %vm4538_vm13, %v8461_v59, %v4539_v61  ;;  %v4723_v38 = vshll.u32 %v12534_v56, %v4721_v30  ;;  %v4724_v24 = vshrl.u32 %v12520_v62, %v4722_v42  ;;  %v4727_v46 = vadd.s32 127, %v4726_v26 }
 0x4da   : > { %v4544_v36 = vsel %vm4537_vm1, %v4540_v4, %v4543_v52  ;;  %vm4915_vm6 = vc.u32 %v12558_v16, %v12561_v13  ;;  %v4916_v49 = vadd.s32 1, %v12562_v55  ;;  %vm5077_vm5 = vcmp.gt.s32.totalorder %v5076_v6, 0 }
 0x4db   : > { %v4545_v1 = vsel %vm4534_vm3, nan, %v4544_v36  ;;  %v4725_v21 = vor.u32 %v4724_v24, %v4723_v38  ;;  %v4728_v54 = vshll.u32 %v4727_v46, 23  ;;  %v5078_v34 = vsel %vm5077_vm5, %v5076_v6, 0 }
 0x4dc   : > { %5797 = vst [vmem:[%s9106_s21 + $0x70] sm:$0xff] %v4545_v1  ;;  %v4917_v56 = vsel %vm4915_vm6, %v4916_v49, %v12562_v55  ;;  %v5080_v62 = vand.u32 31, %v5078_v34  ;;  %vm12588_vm7 = vcmp.le.f32.partialorder %v4650_v18, 0.7853982  ;;  %v4030_v10 = vadd.f32 %v12515_v7, %v8804_v47 }
 0x4dd   : > { %v4729_v3 = vor.u32 4788187, %v4728_v54  ;;  %v4918_v31 = vadd.s32 %v4917_v56, %v4913_v11  ;;  %v4739_v22 = vsel %vm12588_vm7, 0, %v4737_v12  ;;  %v5074_v33 = vor.u32 8388608, %v5073_v60  ;;  %v4084_v60 = vpop.permute.xlu0 %4083 }
 0x4de   : > { %v5081_v28 = vsub.s32 32, %v5080_v62  ;;  %v4732_v0 = vcvt.s32.f32 %v4725_v21  ;;  %v5083_v51 = vshll.u32 %v8606_v23, %v5080_v62  ;;  %v5086_v44 = vshll.u32 %v14528_v43, %v5080_v62 }
 0x4df   : > { %v4730_v59 = vand.u32 2147483647, %v4729_v3  ;;  %v4919_v25 = vadd.s32 536870912, %v4918_v31  ;;  %v5079_v52 = vshrl.u32 %v5078_v34, 5  ;;  %v5089_v12 = vshll.u32 %v14529_v58, %v5080_v62 }
 0x4e0   : > { %v5084_v18 = vshrl.u32 %v14528_v43, %v5081_v28  ;;  %v5087_v30 = vshrl.u32 %v14529_v58, %v5081_v28  ;;  %v5090_v55 = vshrl.u32 %v14530_v14, %v5081_v28  ;;  %v5093_v42 = vshrl.u32 %v14534_v53, %v5081_v28 }
 0x4e1   : > { %v4733_v61 = vmul.f32 %v4732_v0, %v4730_v59  ;;  %v4920_v7 = vshrl.u32 %v4919_v25, 30  ;;  %v5096_v26 = vshrl.u32 %v14535_v15, %v5081_v28  ;;  %v5092_v11 = vshll.u32 %v14530_v14, %v5080_v62 }
 0x4e2   : > { %v5095_v6 = vshll.u32 %v14534_v53, %v5080_v62  ;;  %v5085_v24 = vor.u32 %v5084_v18, %v5083_v51  ;;  %v5088_v46 = vor.u32 %v5087_v30, %v5086_v44  ;;  %v4743_v36 = vadd.s32 3, %v4739_v22 }
 0x4e3   : > { %v4734_v4 = vxor.u32 2147483648, %v4733_v61  ;;  %v4921_v38 = vshll.u32 %v4920_v7, 30  ;;  %v5091_v49 = vor.u32 %v5090_v55, %v5089_v12  ;;  %v5094_v1 = vor.u32 %v5093_v42, %v5092_v11 }
 0x4e4   : > { %v4110_v21 = vmul.f32 %v4084_v60, %v8807_v48  ;;  %v5097_v34 = vor.u32 %v5096_v26, %v5095_v6  ;;  %v5114_v3 = vshll.u32 %v5074_v33, 8  ;;  %v5082_v59 = vshrl.u32 %v8606_v23, %v5081_v28 }
 0x4e5   : > { %v4735_v54 = vsel %vm4652_vm11, %v4734_v4, %v4733_v61  ;;  %v12609_v56 = vsub.s32 %v4918_v31, %v4921_v38  ;;  %vm5098_vm8 = vcmp.lt.s32.totalorder %v5079_v52, 1  ;;  %vm5099_vm10 = vcmp.lt.s32.totalorder %v5079_v52, 2  ;;  %v5816_v61 = vpop.permute.xlu1 %5815 }
 0x4e6   : > { %v4738_v62 = vsel %vm12588_vm7, %v12389_v57, %v4735_v54  ;;  %vm5101_vm9 = vcmp.lt.s32.totalorder %v5079_v52, 4  ;;  %v5106_v0 = vsel %vm5098_vm8, %v5085_v24, %v5088_v46  ;;  %vm5100_vm12 = vcmp.lt.s32.totalorder %v5079_v52, 3 }
 0x4e7   : > { %8464 = vcosq.f32 %v4738_v62  ;;  %v4924_v22 = vsub.s32 0, %v12609_v56  ;;  %v5103_v31 = vsel %vm5101_vm9, %v5091_v49, 2102212464  ;;  %v5107_v25 = vsel %vm5101_vm9, %v5094_v1, 920167782 }
 0x4e8   : > { %8466 = vsinq.f32 %v4738_v62  ;;  %v5108_v51 = vsel %vm5100_vm12, %v5091_v49, %v5107_v25  ;;  %v5110_v5 = vsel %vm5098_vm8, %v5088_v46, %v5091_v49  ;;  %v5111_v18 = vsel %vm5101_vm9, %v5097_v34, 1326507024 }
 0x4e9   : > { %v7907_v33 = vmin.u32 %v4924_v22, %v12609_v56  ;;  %v4944_v44 = vsub.s32 4, %v4920_v7  ;;  %v5109_v28 = vsel %vm5099_vm10, %v5106_v0, %v5108_v51  ;;  %v5112_v30 = vsel %vm5100_vm12, %v5094_v1, %v5111_v18 }
 0x4ea   : > { %v12620_v55 = vadd.f32 %v4110_v21, %v4030_v10  ;;  %v4744_v42 = vand.u32 3, %v4743_v36  ;;  %v5102_v60 = vsel %vm5098_vm8, %v5082_v59, %v5085_v24  ;;  %v5104_v12 = vsel %vm5100_vm12, %v5088_v46, %v5103_v31 }
 0x4eb   : > { %v4926_v26 = vclz %v7907_v33  ;;  %v4017_v11 = vmul.f32 %v11705_v45, %v8794_v39  ;;  %v5113_v6 = vsel %vm5099_vm10, %v5110_v5, %v5112_v30  ;;  %vm4860_vm11 = vcmp.lt.s32.totalorder %v12442_v17, 0 }
 0x4ec   : > { %v12626_v4 = vmul.u32.u64.low %v5114_v3, %v5109_v28  ;;  %v12627_v38 = vmul.u32.u64.high %v5114_v3, %v5109_v28, %v12626_v4  ;;  %v12631_v10 = vmul.u32.u64.low %v5114_v3, %v5113_v6  ;;  %v12632_v1 = vmul.u32.u64.high %v5114_v3, %v5113_v6, %v12631_v10 }
 0x4ed   : > { %v7908_v49 = vadd.s32 4294967294, %v4926_v26  ;;  %v5875_v36 = vmul.f32 %v5816_v61, %v8794_v39  ;;  %v4945_v24 = vsel %vm4860_vm11, %v4944_v44, %v4920_v7  ;;  %v5105_v46 = vsel %vm5099_vm10, %v5102_v60, %v5104_v12  ;;  %v4096_v60 = vpop.permute.xlu0 %4095 }
 0x4ee   : > { %v5381_v45 = vand.u32 2139095040, %v12620_v55  ;;  %vm4746_vm13 = vcmp.eq.s32.totalorder %v4744_v42, 0  ;;  %vm4749_vm14 = vcmp.eq.s32.totalorder %v4744_v42, 2  ;;  %vm12641_vm15 = vcmp.le.f32.partialorder %v4858_v8, 0.7853982 }
 0x4ef   : > { %vm7909_vm0 = vcmp.lt.s32.totalorder %v7908_v49, 0  ;;  %v4914_v54 = vadd.s32 %v12561_v13, %v12558_v16  ;;  %v5124_v62 = vadd.s32 1, %v12627_v38  ;;  %v4947_v0 = vsel %vm12641_vm15, 0, %v4945_v24 }
 0x4f0   : > { %v4929_v34 = vsel %vm7909_vm0, 0, %v7908_v49  ;;  %v5382_v7 = vshrl.u32 %v5381_v45, 23  ;;  %v5121_v31 = vmul.u32 %v5114_v3, %v5105_v46  ;;  %vm5123_vm1 = vc.u32 %v12632_v1, %v12626_v4 }
 0x4f1   : > { %v8465_v52 = vpop.eup %8464  ;;  %v4930_v59 = vsub.s32 32, %v4929_v34  ;;  %v4934_v22 = vsub.s32 4294967266, %v4929_v34  ;;  %v4931_v33 = vshll.u32 %v12609_v56, %v4929_v34  ;;  %v5125_v18 = vsel %vm5123_vm1, %v5124_v62, %v12627_v38 }
 0x4f2   : > { %v8467_v25 = vpop.eup %8466  ;;  %v4750_v8 = vxor.u32 2147483648, %v8465_v52  ;;  %v7926_v51 = vadd.s32 4294967169, %v5382_v7  ;;  %v5126_v28 = vadd.s32 %v5125_v18, %v5121_v31  ;;  %v5378_v30 = vand.u32 2147483647, %v12620_v55 }
 0x4f3   : > { %v4747_v16 = vxor.u32 2147483648, %v8467_v25  ;;  %v4932_v13 = vshrl.u32 %v4914_v54, %v4930_v59  ;;  %v4935_v5 = vadd.s32 127, %v4934_v22  ;;  %vm4745_vm2 = vcmp.lt.s32.totalorder %v4744_v42, 2 }
 0x4f4   : > { %v4751_v44 = vsel %vm4749_vm14, %v4750_v8, %v8467_v25  ;;  %v5388_v3 = vadd.s32 1, %v7926_v51  ;;  %vm4742_vm3 = vweird.f32 %v12389_v57  ;;  %v5127_v6 = vadd.s32 536870912, %v5126_v28 }
 0x4f5   : > { %v4748_v61 = vsel %vm4746_vm13, %v8465_v52, %v4747_v16  ;;  %v4933_v56 = vor.u32 %v4932_v13, %v4931_v33  ;;  %v4936_v26 = vshll.u32 %v4935_v5, 23  ;;  %v4951_v10 = vadd.s32 3, %v4947_v0 }
 0x4f6   : > { %v4752_v12 = vsel %vm4745_vm2, %v4748_v61, %v4751_v44  ;;  %vm5389_vm4 = vcmp.gt.s32.totalorder %v5388_v3, 0  ;;  %v12659_v46 = vshrl.u32 %v5127_v6, 30  ;;  %v5385_v45 = vand.u32 8388607, %v5378_v30 }
 0x4f7   : > { %v4753_v49 = vsel %vm4742_vm3, nan, %v4752_v12  ;;  %v4937_v38 = vor.u32 4788187, %v4936_v26  ;;  %v5390_v24 = vsel %vm5389_vm4, %v5388_v3, 0  ;;  %v4113_v54 = vmul.f32 %v4096_v60, %v8807_v48 }
 0x4f8   : > { %5799 = vst [vmem:[%s9106_s21 + $0xb0] sm:$0xff] %v4753_v49  ;;  %v5392_v42 = vand.u32 31, %v5390_v24  ;;  %v4940_v62 = vcvt.s32.f32 %v4933_v56  ;;  %v4033_v57 = vadd.f32 %v4017_v11, %v8804_v47  ;;  %v5129_v7 = vshll.u32 %v12659_v46, 30 }
 0x4f9   : > { %v4938_v34 = vand.u32 2147483647, %v4937_v38  ;;  %v12667_v59 = vadd.f32 %v5875_v36, %v8804_v47  ;;  %v12669_v0 = vand.u32 3, %v4951_v10  ;;  %v5386_v25 = vor.u32 8388608, %v5385_v45 }
 0x4fa   : > { %v5393_v52 = vsub.s32 32, %v5392_v42  ;;  %v12671_v31 = vsub.s32 %v5126_v28, %v5129_v7  ;;  %v12674_v33 = vadd.f32 %v4113_v54, %v4033_v57  ;;  %v5395_v16 = vshll.u32 %v8606_v23, %v5392_v42 }
 0x4fb   : > { %v4941_v22 = vmul.f32 %v4940_v62, %v4938_v34  ;;  %v5398_v5 = vshll.u32 %v14528_v43, %v5392_v42  ;;  %v5401_v18 = vshll.u32 %v14529_v58, %v5392_v42  ;;  %v5391_v3 = vshrl.u32 %v5390_v24, 5 }
 0x4fc   : > { %v5396_v8 = vshrl.u32 %v14528_v43, %v5393_v52  ;;  %v5399_v11 = vshrl.u32 %v14529_v58, %v5393_v52  ;;  %v5402_v13 = vshrl.u32 %v14530_v14, %v5393_v52  ;;  %v5132_v36 = vsub.s32 0, %v12671_v31 }
 0x4fd   : > { %v4942_v51 = vxor.u32 2147483648, %v4941_v22  ;;  %v5405_v44 = vshrl.u32 %v14534_v53, %v5393_v52  ;;  %v5404_v56 = vshll.u32 %v14530_v14, %v5392_v42  ;;  %v5407_v38 = vshll.u32 %v14534_v53, %v5392_v42 }
 0x4fe   : > { %v5397_v61 = vor.u32 %v5396_v8, %v5395_v16  ;;  %v7915_v60 = vmin.u32 %v5132_v36, %v12671_v31  ;;  %v5400_v12 = vor.u32 %v5399_v11, %v5398_v5  ;;  %v5403_v6 = vor.u32 %v5402_v13, %v5401_v18 }
 0x4ff   : > { %v4943_v28 = vsel %vm4860_vm11, %v4942_v51, %v4941_v22  ;;  %v5406_v49 = vor.u32 %v5405_v44, %v5404_v56  ;;  %v5408_v10 = vshrl.u32 %v14535_v15, %v5393_v52  ;;  %vm5068_vm6 = vcmp.lt.s32.totalorder %v12509_v2, 0  ;;  %v5912_v44 = vpop.permute.xlu0 %5911 }
 0x500   : > { %v4946_v26 = vsel %vm12641_vm15, %v12442_v17, %v4943_v28  ;;  %v5122_v24 = vadd.s32 %v12626_v4, %v12632_v1  ;;  %v5134_v45 = vclz %v7915_v60  ;;  %v12695_v54 = vshll.u32 %v5386_v25, 8 }
 0x501   : > { %8468 = vcosq.f32 %v4946_v26  ;;  %v5394_v21 = vshrl.u32 %v8606_v23, %v5393_v52  ;;  %v5409_v34 = vor.u32 %v5408_v10, %v5407_v38  ;;  %vm5410_vm5 = vcmp.lt.s32.totalorder %v5391_v3, 1 }
 0x502   : > { %8470 = vsinq.f32 %v4946_v26  ;;  %v5693_v62 = vand.u32 2139095040, %v12674_v33  ;;  %v7916_v57 = vadd.s32 4294967294, %v5134_v45  ;;  %vm5412_vm7 = vcmp.lt.s32.totalorder %v5391_v3, 3 }
 0x503   : > { %vm5413_vm8 = vcmp.lt.s32.totalorder %v5391_v3, 4  ;;  %v5418_v42 = vsel %vm5410_vm5, %v5397_v61, %v5400_v12  ;;  %vm12702_vm10 = vcmp.le.f32.partialorder %v5066_v37, 0.7853982  ;;  %v5422_v22 = vsel %vm5410_vm5, %v5400_v12, %v5403_v6 }
 0x504   : > { %v5415_v4 = vsel %vm5413_vm8, %v5403_v6, 2102212464  ;;  %v5419_v1 = vsel %vm5413_vm8, %v5406_v49, 920167782  ;;  %v5423_v52 = vsel %vm5413_vm8, %v5409_v34, 1326507024  ;;  %vm4950_vm13 = vweird.f32 %v12442_v17 }
 0x505   : > { %vm4954_vm9 = vcmp.eq.s32.totalorder %v12669_v0, 0  ;;  %vm7917_vm12 = vcmp.lt.s32.totalorder %v7916_v57, 0  ;;  %vm5411_vm11 = vcmp.lt.s32.totalorder %v5391_v3, 2  ;;  %v5420_v25 = vsel %vm5412_vm7, %v5403_v6, %v5419_v1 }
 0x506   : > { %v5424_v8 = vsel %vm5412_vm7, %v5406_v49, %v5423_v52  ;;  %v5137_v51 = vsel %vm7917_vm12, 0, %v7916_v57  ;;  %v5152_v16 = vsub.s32 4, %v12659_v46  ;;  %v5421_v37 = vsel %vm5411_vm11, %v5418_v42, %v5420_v25  ;;  %v12731_v57 = vpop.permute.xlu1 %5819 }
 0x507   : > { %v5425_v11 = vsel %vm5411_vm11, %v5422_v22, %v5424_v8  ;;  %v5138_v13 = vsub.s32 32, %v5137_v51  ;;  %v5142_v36 = vsub.s32 4294967266, %v5137_v51  ;;  %v5414_v5 = vsel %vm5410_vm5, %v5394_v21, %v5397_v61 }
 0x508   : > { %v5416_v18 = vsel %vm5412_vm7, %v5400_v12, %v5415_v4  ;;  %v12717_v28 = vmul.u32.u64.low %v12695_v54, %v5425_v11  ;;  %v12718_v56 = vmul.u32.u64.high %v12695_v54, %v5425_v11, %v12717_v28  ;;  %v5139_v6 = vshll.u32 %v12671_v31, %v5137_v51 }
 0x509   : > { %v12721_v26 = vmul.u32.u64.low %v12695_v54, %v5421_v37  ;;  %v12722_v60 = vmul.u32.u64.high %v12695_v54, %v5421_v37, %v12721_v26  ;;  %v5140_v49 = vshrl.u32 %v5122_v24, %v5138_v13  ;;  %v5143_v38 = vadd.s32 127, %v5142_v36 }
 0x50a   : > { %v5694_v10 = vshrl.u32 %v5693_v62, 23  ;;  %vm4957_vm14 = vcmp.eq.s32.totalorder %v12669_v0, 2  ;;  %v5153_v61 = vsel %vm5068_vm6, %v5152_v16, %v12659_v46  ;;  %v5417_v12 = vsel %vm5411_vm11, %v5414_v5, %v5416_v18 }
 0x50b   : > { %v8469_v45 = vpop.eup %8468  ;;  %v5971_v21 = vmul.f32 %v5912_v44, %v8807_v48  ;;  %v5141_v4 = vor.u32 %v5140_v49, %v5139_v6  ;;  %v5144_v31 = vshll.u32 %v5143_v38, 23  ;;  %vm5435_vm15 = vc.u32 %v12718_v56, %v12721_v26 }
 0x50c   : > { %v8471_v34 = vpop.eup %8470  ;;  %v4958_v42 = vxor.u32 2147483648, %v8469_v45  ;;  %v7938_v24 = vadd.s32 4294967169, %v5694_v10  ;;  %v5436_v62 = vadd.s32 1, %v12722_v60  ;;  %v5690_v22 = vand.u32 2147483647, %v12674_v33 }
 0x50d   : > { %v4955_v1 = vxor.u32 2147483648, %v8471_v34  ;;  %v5145_v3 = vor.u32 4788187, %v5144_v31  ;;  %v5155_v52 = vsel %vm12702_vm10, 0, %v5153_v61  ;;  %v5433_v25 = vmul.u32 %v12695_v54, %v5417_v12  ;;  %v5828_v54 = vpop.permute.xlu1 %5827 }
 0x50e   : > { %v4959_v46 = vsel %vm4957_vm14, %v4958_v42, %v8471_v34  ;;  %vm4953_vm0 = vcmp.lt.s32.totalorder %v12669_v0, 2  ;;  %v5437_v51 = vsel %vm5435_vm15, %v5436_v62, %v12722_v60  ;;  %v5700_v16 = vadd.s32 1, %v7938_v24 }
 0x50f   : > { %v4956_v8 = vsel %vm4954_vm9, %v8469_v45, %v4955_v1  ;;  %v5146_v11 = vand.u32 2147483647, %v5145_v3  ;;  %v5148_v13 = vcvt.s32.f32 %v5141_v4  ;;  %v5438_v36 = vadd.s32 %v5437_v51, %v5433_v25 }
 0x510   : > { %v4960_v37 = vsel %vm4953_vm0, %v4956_v8, %v4959_v46  ;;  %v5159_v18 = vadd.s32 3, %v5155_v52  ;;  %v5697_v44 = vand.u32 8388607, %v5690_v22  ;;  %vm5701_vm1 = vcmp.gt.s32.totalorder %v5700_v16, 0 }
 0x511   : > { %v4961_v5 = vsel %vm4950_vm13, nan, %v4960_v37  ;;  %v5149_v28 = vmul.f32 %v5148_v13, %v5146_v11  ;;  %v5439_v0 = vadd.s32 536870912, %v5438_v36  ;;  %v5702_v6 = vsel %vm5701_vm1, %v5700_v16, 0 }
 0x512   : > { %5801 = vst [vmem:[%s9106_s21 + $0xf0] sm:$0xff] %v4961_v5  ;;  %v12751_v60 = vadd.f32 %v5971_v21, %v12667_v59  ;;  %v5704_v49 = vand.u32 31, %v5702_v6  ;;  %v12756_v17 = vmul.f32 %v5828_v54, %v8794_v39  ;;  %v12758_v45 = vand.u32 3, %v5159_v18 }
 0x513   : > { %v5150_v38 = vxor.u32 2147483648, %v5149_v28  ;;  %v12753_v10 = vshrl.u32 %v5439_v0, 30  ;;  %v12761_v61 = vadd.s32 %v12721_v26, %v12718_v56  ;;  %v5698_v59 = vor.u32 8388608, %v5697_v44 }
 0x514   : > { %v5705_v12 = vsub.s32 32, %v5704_v49  ;;  %v6109_v21 = vand.u32 2139095040, %v12751_v60  ;;  %v5707_v31 = vshll.u32 %v8606_v23, %v5704_v49  ;;  %v5710_v1 = vshll.u32 %v14528_v43, %v5704_v49 }
 0x515   : > { %v5151_v34 = vsel %vm5068_vm6, %v5150_v38, %v5149_v28  ;;  %v5441_v42 = vshll.u32 %v12753_v10, 30  ;;  %v5703_v46 = vshrl.u32 %v5702_v6, 5  ;;  %v5713_v3 = vshll.u32 %v14529_v58, %v5704_v49 }
 0x516   : > { %v5154_v4 = vsel %vm12702_vm10, %v12509_v2, %v5151_v34  ;;  %v5708_v24 = vshrl.u32 %v14528_v43, %v5705_v12  ;;  %v5711_v56 = vshrl.u32 %v14529_v58, %v5705_v12  ;;  %v5714_v62 = vshrl.u32 %v14530_v14, %v5705_v12 }
 0x517   : > { %8472 = vcosq.f32 %v5154_v4  ;;  %v12773_v26 = vsub.s32 %v5438_v36, %v5441_v42  ;;  %v5716_v7 = vshll.u32 %v14530_v14, %v5704_v49  ;;  %v5717_v51 = vshrl.u32 %v14534_v53, %v5705_v12 }
 0x518   : > { %8474 = vsinq.f32 %v5154_v4  ;;  %v5709_v25 = vor.u32 %v5708_v24, %v5707_v31  ;;  %v5712_v8 = vor.u32 %v5711_v56, %v5710_v1  ;;  %v5715_v16 = vor.u32 %v5714_v62, %v5713_v3 }
 0x519   : > { %v5444_v52 = vsub.s32 0, %v12773_v26  ;;  %v5719_v37 = vshll.u32 %v14534_v53, %v5704_v49  ;;  %v5720_v11 = vshrl.u32 %v14535_v15, %v5705_v12  ;;  %v12783_v13 = vshll.u32 %v5698_v59, 8 }
 0x51a   : > { %vm5165_vm2 = vcmp.eq.s32.totalorder %v12758_v45, 2  ;;  %vm5380_vm3 = vcmp.lt.s32.totalorder %v12620_v55, 0  ;;  %v5706_v5 = vshrl.u32 %v8606_v23, %v5705_v12  ;;  %v5718_v18 = vor.u32 %v5717_v51, %v5716_v7 }
 0x51b   : > { %v7927_v36 = vmin.u32 %v5444_v52, %v12773_v26  ;;  %v6110_v44 = vshrl.u32 %v6109_v21, 23  ;;  %vm5162_vm4 = vcmp.eq.s32.totalorder %v12758_v45, 0  ;;  %v5721_v54 = vor.u32 %v5720_v11, %v5719_v37 }
 0x51c   : > { %vm5722_vm6 = vcmp.lt.s32.totalorder %v5703_v46, 1  ;;  %vm5723_vm5 = vcmp.lt.s32.totalorder %v5703_v46, 2  ;;  %vm5724_vm7 = vcmp.lt.s32.totalorder %v5703_v46, 3  ;;  %vm5161_vm8 = vcmp.lt.s32.totalorder %v12758_v45, 2 }
 0x51d   : > { %v5446_v28 = vclz %v7927_v36  ;;  %vm5725_vm10 = vcmp.lt.s32.totalorder %v5703_v46, 4  ;;  %v5726_v0 = vsel %vm5722_vm6, %v5706_v5, %v5709_v25  ;;  %v5730_v6 = vsel %vm5722_vm6, %v5709_v25, %v5712_v8 }
 0x51e   : > { %vm5158_vm9 = vweird.f32 %v12509_v2  ;;  %v5727_v49 = vsel %vm5725_vm10, %v5715_v16, 2102212464  ;;  %v5731_v38 = vsel %vm5725_vm10, %v5718_v18, 920167782  ;;  %v5734_v34 = vsel %vm5722_vm6, %v5712_v8, %v5715_v16 }
 0x51f   : > { %v5735_v12 = vsel %vm5725_vm10, %v5721_v54, 1326507024  ;;  %v7928_v42 = vadd.s32 4294967294, %v5446_v28  ;;  %v5728_v59 = vsel %vm5724_vm7, %v5712_v8, %v5727_v49  ;;  %v5732_v21 = vsel %vm5724_vm7, %v5715_v16, %v5731_v38 }
 0x520   : > { %v5736_v4 = vsel %vm5724_vm7, %v5718_v18, %v5735_v12  ;;  %v5464_v31 = vsub.s32 4, %v12753_v10  ;;  %v5733_v24 = vsel %vm5723_vm5, %v5730_v6, %v5732_v21  ;;  %v7946_v1 = vadd.s32 4294967169, %v6110_v44  ;;  %v5836_v12 = vpop.permute.xlu1 %5835 }
 0x521   : > { %v5737_v56 = vsel %vm5723_vm5, %v5734_v34, %v5736_v4  ;;  %v8473_v62 = vpop.eup %8472  ;;  %vm7929_vm12 = vcmp.lt.s32.totalorder %v7928_v42, 0  ;;  %v5729_v3 = vsel %vm5723_vm5, %v5726_v0, %v5728_v59  ;;  %v6106_v18 = vand.u32 2147483647, %v12751_v60 }
 0x522   : > { %v12797_v7 = vmul.u32.u64.low %v12783_v13, %v5737_v56  ;;  %v12798_v52 = vmul.u32.u64.high %v12783_v13, %v5737_v56, %v12797_v7  ;;  %v8475_v25 = vpop.eup %8474  ;;  %v5166_v51 = vxor.u32 2147483648, %v8473_v62  ;;  %v5449_v8 = vsel %vm7929_vm12, 0, %v7928_v42 }
 0x523   : > { %v12801_v16 = vmul.u32.u64.low %v12783_v13, %v5733_v24  ;;  %v12802_v37 = vmul.u32.u64.high %v12783_v13, %v5733_v24, %v12801_v16  ;;  %v5163_v11 = vxor.u32 2147483648, %v8475_v25  ;;  %v5450_v36 = vsub.s32 32, %v5449_v8 }
 0x524   : > { %v5454_v5 = vsub.s32 4294967266, %v5449_v8  ;;  %v5167_v46 = vsel %vm5165_vm2, %v5166_v51, %v8475_v25  ;;  %v5465_v44 = vsel %vm5380_vm3, %v5464_v31, %v12753_v10  ;;  %v5745_v54 = vmul.u32 %v12783_v13, %v5729_v3 }
 0x525   : > { %v6116_v28 = vadd.s32 1, %v7946_v1  ;;  %v5164_v0 = vsel %vm5162_vm4, %v8473_v62, %v5163_v11  ;;  %v5451_v6 = vshll.u32 %v12773_v26, %v5449_v8  ;;  %v5452_v49 = vshrl.u32 %v12761_v61, %v5450_v36  ;;  %v5924_v26 = vpop.permute.xlu0 %5923 }
 0x526   : > { %v5455_v38 = vadd.s32 127, %v5454_v5  ;;  %v5168_v34 = vsel %vm5161_vm8, %v5164_v0, %v5167_v46  ;;  %vm5747_vm11 = vc.u32 %v12798_v52, %v12801_v16  ;;  %v5748_v10 = vadd.s32 1, %v12802_v37 }
 0x527   : > { %vm6117_vm13 = vcmp.gt.s32.totalorder %v6116_v28, 0  ;;  %v5169_v13 = vsel %vm5158_vm9, nan, %v5168_v34  ;;  %v5453_v42 = vor.u32 %v5452_v49, %v5451_v6  ;;  %v12825_v61 = vmul.f32 %v11672_v40, %v8794_v39 }
 0x528   : > { %v5456_v59 = vshll.u32 %v5455_v38, 23  ;;  %v6118_v21 = vsel %vm6117_vm13, %v6116_v28, 0  ;;  %v5894_v45 = vadd.f32 %v12756_v17, %v8804_v47  ;;  %5803 = vst [vmem:[%s9106_s21 + $0x130] sm:$0xff] %v5169_v13  ;;  %v5749_v4 = vsel %vm5747_vm11, %v5748_v10, %v12802_v37 }
 0x529   : > { %v6120_v31 = vand.u32 31, %v6118_v21  ;;  %v12832_v24 = vmul.f32 %v5836_v12, %v8794_v39  ;;  %vm12836_vm14 = vcmp.le.f32.partialorder %v5378_v30, 0.7853982  ;;  %v5750_v1 = vadd.s32 %v5749_v4, %v5745_v54  ;;  %v12846_v30 = vpop.permute.xlu1 %5843 }
 0x52a   : > { %v5457_v56 = vor.u32 4788187, %v5456_v59  ;;  %v5467_v40 = vsel %vm12836_vm14, 0, %v5465_v44  ;;  %v6113_v17 = vand.u32 8388607, %v6106_v18  ;;  %v5974_v3 = vmul.f32 %v5924_v26, %v8807_v48 }
 0x52b   : > { %v6121_v62 = vsub.s32 32, %v6120_v31  ;;  %v5460_v25 = vcvt.s32.f32 %v5453_v42  ;;  %v5751_v51 = vadd.s32 536870912, %v5750_v1  ;;  %v6123_v8 = vshll.u32 %v8606_v23, %v6120_v31 }
 0x52c   : > { %v5458_v7 = vand.u32 2147483647, %v5457_v56  ;;  %v6126_v11 = vshll.u32 %v14528_v43, %v6120_v31  ;;  %v6119_v0 = vshrl.u32 %v6118_v21, 5  ;;  %v6129_v6 = vshll.u32 %v14529_v58, %v6120_v31 }
 0x52d   : > { %v6124_v37 = vshrl.u32 %v14528_v43, %v6121_v62  ;;  %v6127_v36 = vshrl.u32 %v14529_v58, %v6121_v62  ;;  %v6130_v5 = vshrl.u32 %v14530_v14, %v6121_v62  ;;  %v5752_v44 = vshrl.u32 %v5751_v51, 30  ;;  %v12866_v51 = vpop.permute.xlu1 %5851 }
 0x52e   : > { %v5461_v46 = vmul.f32 %v5460_v25, %v5458_v7  ;;  %v6133_v54 = vshrl.u32 %v14534_v53, %v6121_v62  ;;  %v6136_v28 = vshrl.u32 %v14535_v15, %v6121_v62  ;;  %v6132_v49 = vshll.u32 %v14530_v14, %v6120_v31 }
 0x52f   : > { %v6135_v38 = vshll.u32 %v14534_v53, %v6120_v31  ;;  %v5753_v12 = vshll.u32 %v5752_v44, 30  ;;  %v6125_v10 = vor.u32 %v6124_v37, %v6123_v8  ;;  %v6128_v13 = vor.u32 %v6127_v36, %v6126_v11 }
 0x530   : > { %v5462_v34 = vxor.u32 2147483648, %v5461_v46  ;;  %v5471_v42 = vadd.s32 3, %v5467_v40  ;;  %v6114_v59 = vor.u32 8388608, %v6113_v17  ;;  %v6131_v26 = vor.u32 %v6130_v5, %v6129_v6 }
 0x531   : > { %v6134_v4 = vor.u32 %v6133_v54, %v6132_v49  ;;  %v12859_v7 = vsub.s32 %v5750_v1, %v5753_v12  ;;  %v6137_v21 = vor.u32 %v6136_v28, %v6135_v38  ;;  %v12861_v25 = vadd.f32 %v5974_v3, %v5894_v45 }
 0x532   : > { %v5463_v56 = vsel %vm5380_vm3, %v5462_v34, %v5461_v46  ;;  %v6122_v8 = vshrl.u32 %v8606_v23, %v6121_v62  ;;  %vm6138_vm15 = vcmp.lt.s32.totalorder %v6119_v0, 1  ;;  %vm6139_vm0 = vcmp.lt.s32.totalorder %v6119_v0, 2 }
 0x533   : > { %v5466_v31 = vsel %vm12836_vm14, %v12620_v55, %v5463_v56  ;;  %v5756_v40 = vsub.s32 0, %v12859_v7  ;;  %vm6141_vm1 = vcmp.lt.s32.totalorder %v6119_v0, 4  ;;  %v6146_v1 = vsel %vm6138_vm15, %v6125_v10, %v6128_v13 }
 0x534   : > { %8476 = vcosq.f32 %v5466_v31  ;;  %vm6140_vm2 = vcmp.lt.s32.totalorder %v6119_v0, 3  ;;  %v6143_v45 = vsel %vm6141_vm1, %v6131_v26, 2102212464  ;;  %v6147_v17 = vsel %vm6141_vm1, %v6134_v4, 920167782 }
 0x535   : > { %8478 = vsinq.f32 %v5466_v31  ;;  %v7939_v3 = vmin.u32 %v5756_v40, %v12859_v7  ;;  %v6148_v2 = vsel %vm6140_vm2, %v6131_v26, %v6147_v17  ;;  %v6150_v37 = vsel %vm6138_vm15, %v6128_v13, %v6131_v26  ;;  %v12881_v26 = vpop.permute.xlu1 %5859 }
 0x536   : > { %v6151_v11 = vsel %vm6141_vm1, %v6137_v21, 1326507024  ;;  %v5776_v36 = vsub.s32 4, %v5752_v44  ;;  %v6149_v62 = vsel %vm6139_vm0, %v6146_v1, %v6148_v2  ;;  %v6154_v46 = vshll.u32 %v6114_v59, 8 }
 0x537   : > { %v6152_v5 = vsel %vm6140_vm2, %v6134_v4, %v6151_v11  ;;  %v5472_v54 = vand.u32 3, %v5471_v42  ;;  %v5758_v28 = vclz %v7939_v3  ;;  %v6142_v6 = vsel %vm6138_vm15, %v6122_v8, %v6125_v10 }
 0x538   : > { %v6144_v49 = vsel %vm6140_vm2, %v6128_v13, %v6143_v45  ;;  %vm5692_vm3 = vcmp.lt.s32.totalorder %v12674_v33, 0  ;;  %v6153_v38 = vsel %vm6139_vm0, %v6150_v37, %v6152_v5  ;;  %v6421_v42 = vand.u32 2139095040, %v12861_v25 }
 0x539   : > { %v12877_v34 = vmul.u32.u64.low %v6154_v46, %v6149_v62  ;;  %v12878_v12 = vmul.u32.u64.high %v6154_v46, %v6149_v62, %v12877_v34  ;;  %v7940_v56 = vadd.s32 4294967294, %v5758_v28  ;;  %vm5470_vm4 = vweird.f32 %v12620_v55 }
 0x53a   : > { %v12883_v21 = vmul.u32.u64.low %v6154_v46, %v6153_v38  ;;  %v12884_v31 = vmul.u32.u64.high %v6154_v46, %v6153_v38, %v12883_v21  ;;  %vm12890_vm6 = vcmp.le.f32.partialorder %v5690_v22, 0.7853982  ;;  %v5777_v13 = vsel %vm5692_vm3, %v5776_v36, %v5752_v44  ;;  %v5932_v38 = vpop.permute.xlu0 %5931 }
 0x53b   : > { %v6145_v59 = vsel %vm6139_vm0, %v6142_v6, %v6144_v49  ;;  %vm5473_vm5 = vcmp.lt.s32.totalorder %v5472_v54, 2  ;;  %vm5477_vm7 = vcmp.eq.s32.totalorder %v5472_v54, 2  ;;  %vm7941_vm8 = vcmp.lt.s32.totalorder %v7940_v56, 0 }
 0x53c   : > { %v6422_v4 = vshrl.u32 %v6421_v42, 23  ;;  %v5746_v8 = vadd.s32 %v12801_v16, %v12798_v52  ;;  %v5761_v40 = vsel %vm7941_vm8, 0, %v7940_v56  ;;  %v6164_v1 = vadd.s32 1, %v12878_v12  ;;  %v12906_v16 = vpop.permute.xlu1 %5867 }
 0x53d   : > { %v6418_v22 = vand.u32 2147483647, %v12861_v25  ;;  %v5762_v17 = vsub.s32 32, %v5761_v40  ;;  %v5766_v3 = vsub.s32 4294967266, %v5761_v40  ;;  %v5779_v44 = vsel %vm12890_vm6, 0, %v5777_v13 }
 0x53e   : > { %v8477_v45 = vpop.eup %8476  ;;  %v6161_v0 = vmul.u32 %v6154_v46, %v6145_v59  ;;  %v5763_v11 = vshll.u32 %v12859_v7, %v5761_v40  ;;  %vm6163_vm10 = vc.u32 %v12884_v31, %v12877_v34  ;;  %v7958_v52 = vadd.s32 4294967169, %v6422_v4 }
 0x53f   : > { %v8479_v2 = vpop.eup %8478  ;;  %v5478_v37 = vxor.u32 2147483648, %v8477_v45  ;;  %v5764_v62 = vshrl.u32 %v5746_v8, %v5762_v17  ;;  %v5767_v5 = vadd.s32 127, %v5766_v3  ;;  %v6165_v28 = vsel %vm6163_vm10, %v6164_v1, %v12878_v12 }
 0x540   : > { %v5475_v36 = vxor.u32 2147483648, %v8479_v2  ;;  %vm5474_vm9 = vcmp.eq.s32.totalorder %v5472_v54, 0  ;;  %v6166_v46 = vadd.s32 %v6165_v28, %v6161_v0  ;;  %v6428_v49 = vadd.s32 1, %v7958_v52  ;;  %v4080_v3 = vpop.permute.xlu1 %4079 }
 0x541   : > { %v5479_v6 = vsel %vm5477_vm7, %v5478_v37, %v8479_v2  ;;  %v5765_v7 = vor.u32 %v5764_v62, %v5763_v11  ;;  %v5768_v21 = vshll.u32 %v5767_v5, 23  ;;  %v5783_v42 = vadd.s32 3, %v5779_v44 }
 0x542   : > { %v5476_v56 = vsel %vm5474_vm9, %v8477_v45, %v5475_v36  ;;  %v6167_v59 = vadd.s32 536870912, %v6166_v46  ;;  %v6425_v4 = vand.u32 8388607, %v6418_v22  ;;  %vm6429_vm12 = vcmp.gt.s32.totalorder %v6428_v49, 0 }
 0x543   : > { %v5480_v13 = vsel %vm5473_vm5, %v5476_v56, %v5479_v6  ;;  %v5769_v8 = vor.u32 4788187, %v5768_v21  ;;  %v6430_v40 = vsel %vm6429_vm12, %v6428_v49, 0  ;;  %v5976_v1 = vmul.f32 %v5932_v38, %v8807_v48 }
 0x544   : > { %v5481_v12 = vsel %vm5470_vm4, nan, %v5480_v13  ;;  %v6168_v17 = vshrl.u32 %v6167_v59, 30  ;;  %v6432_v45 = vand.u32 31, %v6430_v40  ;;  %v12919_v54 = vadd.f32 %v12825_v61, %v8804_v47 }
 0x545   : > { %5806 = vst [vmem:[%s9106_s21 + $0x190] sm:$0xff] %v5481_v12  ;;  %v5896_v44 = vadd.f32 %v12832_v24, %v8804_v47  ;;  %v5770_v0 = vand.u32 2147483647, %v5769_v8  ;;  %v5772_v2 = vcvt.s32.f32 %v5765_v7  ;;  %v12923_v37 = vand.u32 3, %v5783_v42 }
 0x546   : > { %vm6108_vm11 = vcmp.lt.s32.totalorder %v12751_v60, 0  ;;  %v6169_v55 = vshll.u32 %v6168_v17, 30  ;;  %v6433_v11 = vsub.s32 32, %v6432_v45  ;;  %v6426_v36 = vor.u32 8388608, %v6425_v4 }
 0x547   : > { %v5773_v52 = vmul.f32 %v5772_v2, %v5770_v0  ;;  %v12926_v62 = vadd.f32 %v5976_v1, %v5896_v44  ;;  %v12929_v5 = vmul.f32 %v4080_v3, %v8807_v48  ;;  %v6162_v61 = vadd.s32 %v12877_v34, %v12884_v31 }
 0x548   : > { %v12933_v28 = vsub.s32 %v6166_v46, %v6169_v55  ;;  %v12935_v24 = vshrl.u32 %v6430_v40, 5  ;;  %v6436_v6 = vshrl.u32 %v14528_v43, %v6433_v11  ;;  %v6435_v38 = vshll.u32 %v8606_v23, %v6432_v45 }
 0x549   : > { %v5774_v49 = vxor.u32 2147483648, %v5773_v52  ;;  %v6439_v56 = vshrl.u32 %v14529_v58, %v6433_v11  ;;  %v6442_v7 = vshrl.u32 %v14530_v14, %v6433_v11  ;;  %v6438_v42 = vshll.u32 %v14528_v43, %v6432_v45 }
 0x54a   : > { %v6172_v21 = vsub.s32 0, %v12933_v28  ;;  %v6441_v13 = vshll.u32 %v14529_v58, %v6432_v45  ;;  %v6445_v34 = vshrl.u32 %v14534_v53, %v6433_v11  ;;  %v6192_v46 = vsub.s32 4, %v6168_v17 }
 0x54b   : > { %v5775_v31 = vsel %vm5692_vm3, %v5774_v49, %v5773_v52  ;;  %v6437_v59 = vor.u32 %v6436_v6, %v6435_v38  ;;  %v6444_v4 = vshll.u32 %v14530_v14, %v6432_v45  ;;  %v6440_v40 = vor.u32 %v6439_v56, %v6438_v42 }
 0x54c   : > { %v5778_v12 = vsel %vm12890_vm6, %v12674_v33, %v5775_v31  ;;  %v7947_v8 = vmin.u32 %v6172_v21, %v12933_v28  ;;  %v6443_v1 = vor.u32 %v6442_v7, %v6441_v13  ;;  %v6447_v44 = vshll.u32 %v14534_v53, %v6432_v45 }
 0x54d   : > { %8480 = vcosq.f32 %v5778_v12  ;;  %v6446_v3 = vor.u32 %v6445_v34, %v6444_v4  ;;  %v6448_v0 = vshrl.u32 %v14535_v15, %v6433_v11  ;;  %vm12956_vm13 = vcmp.le.f32.partialorder %v6106_v18, 0.7853982 }
 0x54e   : > { %8482 = vsinq.f32 %v5778_v12  ;;  %v6174_v55 = vclz %v7947_v8  ;;  %v12960_v10 = vshll.u32 %v6426_v36, 8  ;;  %v6629_v52 = vand.u32 2139095040, %v12926_v62 }
 0x54f   : > { %v6193_v6 = vsel %vm6108_vm11, %v6192_v46, %v6168_v17  ;;  %v6434_v49 = vshrl.u32 %v8606_v23, %v6433_v11  ;;  %v6449_v45 = vor.u32 %v6448_v0, %v6447_v44  ;;  %vm6450_vm14 = vcmp.lt.s32.totalorder %v12935_v24, 1 }
 0x550   : > { %v7948_v38 = vadd.s32 4294967294, %v6174_v55  ;;  %vm6452_vm15 = vcmp.lt.s32.totalorder %v12935_v24, 3  ;;  %vm6453_vm0 = vcmp.lt.s32.totalorder %v12935_v24, 4  ;;  %v6458_v18 = vsel %vm6450_vm14, %v6437_v59, %v6440_v40 }
 0x551   : > { %v6455_v36 = vsel %vm6453_vm0, %v6443_v1, 2102212464  ;;  %v6459_v56 = vsel %vm6453_vm0, %v6446_v3, 920167782  ;;  %v6462_v7 = vsel %vm6450_vm14, %v6440_v40, %v6443_v1  ;;  %v6463_v21 = vsel %vm6453_vm0, %v6449_v45, 1326507024 }
 0x552   : > { %vm5786_vm1 = vcmp.eq.s32.totalorder %v12923_v37, 0  ;;  %vm7949_vm2 = vcmp.lt.s32.totalorder %v7948_v38, 0  ;;  %vm6451_vm3 = vcmp.lt.s32.totalorder %v12935_v24, 2  ;;  %v6460_v17 = vsel %vm6452_vm15, %v6443_v1, %v6459_v56 }
 0x553   : > { %v6464_v11 = vsel %vm6452_vm15, %v6446_v3, %v6463_v21  ;;  %vm5785_vm4 = vcmp.lt.s32.totalorder %v12923_v37, 2  ;;  %v6177_v42 = vsel %vm7949_vm2, 0, %v7948_v38  ;;  %v6454_v13 = vsel %vm6450_vm14, %v6434_v49, %v6437_v59 }
 0x554   : > { %v6461_v34 = vsel %vm6451_vm3, %v6458_v18, %v6460_v17  ;;  %v6465_v31 = vsel %vm6451_vm3, %v6462_v7, %v6464_v11  ;;  %vm5782_vm6 = vweird.f32 %v12674_v33  ;;  %v6178_v46 = vsub.s32 32, %v6177_v42 }
 0x555   : > { %v6182_v4 = vsub.s32 4294967266, %v6177_v42  ;;  %v6456_v12 = vsel %vm6452_vm15, %v6440_v40, %v6455_v36  ;;  %v6630_v8 = vshrl.u32 %v6629_v52, 23  ;;  %v6179_v0 = vshll.u32 %v12933_v28, %v6177_v42 }
 0x556   : > { %v12990_v1 = vmul.u32.u64.low %v12960_v10, %v6465_v31  ;;  %v12991_v3 = vmul.u32.u64.high %v12960_v10, %v6465_v31, %v12990_v1  ;;  %v12994_v59 = vmul.u32.u64.low %v12960_v10, %v6461_v34  ;;  %v12995_v44 = vmul.u32.u64.high %v12960_v10, %v6461_v34, %v12994_v59 }
 0x557   : > { %v6180_v55 = vshrl.u32 %v6162_v61, %v6178_v46  ;;  %v6183_v49 = vadd.s32 127, %v6182_v4  ;;  %v7966_v45 = vadd.s32 4294967169, %v6630_v8  ;;  %v8481_v38 = vpop.eup %8480  ;;  %vm5789_vm5 = vcmp.eq.s32.totalorder %v12923_v37, 2 }
 0x558   : > { %v6195_v40 = vsel %vm12956_vm13, 0, %v6193_v6  ;;  %v6457_v52 = vsel %vm6451_vm3, %v6454_v13, %v6456_v12  ;;  %v6626_v18 = vand.u32 2147483647, %v12926_v62  ;;  %v8483_v36 = vpop.eup %8482  ;;  %v5790_v56 = vxor.u32 2147483648, %v8481_v38 }
 0x559   : > { %v6181_v7 = vor.u32 %v6180_v55, %v6179_v0  ;;  %v6184_v21 = vshll.u32 %v6183_v49, 23  ;;  %v6636_v17 = vadd.s32 1, %v7966_v45  ;;  %v5787_v28 = vxor.u32 2147483648, %v8483_v36 }
 0x55a   : > { %vm6475_vm7 = vc.u32 %v12991_v3, %v12994_v59  ;;  %v6476_v61 = vadd.s32 1, %v12995_v44  ;;  %v13010_v11 = vadd.f32 %v12929_v5, %v12919_v54  ;;  %v5791_v6 = vsel %vm5789_vm5, %v5790_v56, %v8483_v36 }
 0x55b   : > { %v6185_v24 = vor.u32 4788187, %v6184_v21  ;;  %v6473_v42 = vmul.u32 %v12960_v10, %v6457_v52  ;;  %vm6637_vm8 = vcmp.gt.s32.totalorder %v6636_v17, 0  ;;  %v5788_v13 = vsel %vm5786_vm1, %v8481_v38, %v5787_v28 }
 0x55c   : > { %v6199_v34 = vadd.s32 3, %v6195_v40  ;;  %v6477_v31 = vsel %vm6475_vm7, %v6476_v61, %v12995_v44  ;;  %v6638_v46 = vsel %vm6637_vm8, %v6636_v17, 0  ;;  %v5792_v4 = vsel %vm5785_vm4, %v5788_v13, %v5791_v6 }
 0x55d   : > { %v6186_v12 = vand.u32 2147483647, %v6185_v24  ;;  %v6188_v8 = vcvt.s32.f32 %v6181_v7  ;;  %v6478_v54 = vadd.s32 %v6477_v31, %v6473_v42  ;;  %v13020_v5 = vmul.f32 %v11691_v41, %v8794_v39 }
 0x55e   : > { %v5793_v10 = vsel %vm5782_vm6, nan, %v5792_v4  ;;  %v6640_v1 = vand.u32 31, %v6638_v46  ;;  %v13026_v0 = vmul.f32 %v12846_v30, %v8794_v39  ;;  %v6633_v37 = vand.u32 8388607, %v6626_v18 }
 0x55f   : > { %5809 = vst [vmem:[%s9106_s21 + $0x1f0] sm:$0xff] %v5793_v10  ;;  %v6189_v44 = vmul.f32 %v6188_v8, %v6186_v12  ;;  %v6479_v55 = vadd.s32 536870912, %v6478_v54  ;;  %v13031_v49 = vand.u32 3, %v6199_v34  ;;  %v6639_v45 = vshrl.u32 %v6638_v46, 5 }
 0x560   : > { %v6641_v38 = vsub.s32 32, %v6640_v1  ;;  %v5277_v41 = vand.u32 2139095040, %v13010_v11  ;;  %v6643_v52 = vshll.u32 %v8606_v23, %v6640_v1  ;;  %v6646_v30 = vshll.u32 %v14528_v43, %v6640_v1 }
 0x561   : > { %v6190_v40 = vxor.u32 2147483648, %v6189_v44  ;;  %v13034_v33 = vshrl.u32 %v6479_v55, 30  ;;  %v6649_v7 = vshll.u32 %v14529_v58, %v6640_v1  ;;  %v6652_v61 = vshll.u32 %v14530_v14, %v6640_v1 }
 0x562   : > { %v6644_v36 = vshrl.u32 %v14528_v43, %v6641_v38  ;;  %v6647_v56 = vshrl.u32 %v14529_v58, %v6641_v38  ;;  %v6650_v21 = vshrl.u32 %v14530_v14, %v6641_v38  ;;  %v6653_v6 = vshrl.u32 %v14534_v53, %v6641_v38 }
 0x563   : > { %v6191_v17 = vsel %vm6108_vm11, %v6190_v40, %v6189_v44  ;;  %v6481_v28 = vshll.u32 %v13034_v33, 30  ;;  %v6634_v46 = vor.u32 8388608, %v6633_v37  ;;  %v6655_v12 = vshll.u32 %v14534_v53, %v6640_v1 }
 0x564   : > { %v6194_v24 = vsel %vm12956_vm13, %v12751_v60, %v6191_v17  ;;  %v6645_v42 = vor.u32 %v6644_v36, %v6643_v52  ;;  %v6648_v13 = vor.u32 %v6647_v56, %v6646_v30  ;;  %v6651_v34 = vor.u32 %v6650_v21, %v6649_v7 }
 0x565   : > { %8484 = vcosq.f32 %v6194_v24  ;;  %v13050_v31 = vsub.s32 %v6478_v54, %v6481_v28  ;;  %v6654_v4 = vor.u32 %v6653_v6, %v6652_v61  ;;  %v6656_v8 = vshrl.u32 %v14535_v15, %v6641_v38 }
 0x566   : > { %8486 = vsinq.f32 %v6194_v24  ;;  %v5278_v10 = vshrl.u32 %v5277_v41, 23  ;;  %vm6420_vm10 = vcmp.lt.s32.totalorder %v12861_v25, 0  ;;  %vm6658_vm9 = vcmp.lt.s32.totalorder %v6639_v45, 1 }
 0x567   : > { %v6484_v44 = vsub.s32 0, %v13050_v31  ;;  %vm6660_vm12 = vcmp.lt.s32.totalorder %v6639_v45, 3  ;;  %vm6661_vm11 = vcmp.lt.s32.totalorder %v6639_v45, 4  ;;  %v6657_v2 = vor.u32 %v6656_v8, %v6655_v12 }
 0x568   : > { %v6663_v55 = vsel %vm6661_vm11, %v6651_v34, 2102212464  ;;  %v6666_v54 = vsel %vm6658_vm9, %v6645_v42, %v6648_v13  ;;  %v6667_v40 = vsel %vm6661_vm11, %v6654_v4, 920167782  ;;  %v6642_v52 = vshrl.u32 %v8606_v23, %v6641_v38 }
 0x569   : > { %v7959_v37 = vmin.u32 %v6484_v44, %v13050_v31  ;;  %vm6659_vm13 = vcmp.lt.s32.totalorder %v6639_v45, 2  ;;  %v6668_v1 = vsel %vm6660_vm12, %v6651_v34, %v6667_v40  ;;  %v6670_v30 = vsel %vm6658_vm9, %v6648_v13, %v6651_v34 }
 0x56a   : > { %v6669_v41 = vsel %vm6659_vm13, %v6666_v54, %v6668_v1  ;;  %v6671_v36 = vsel %vm6661_vm11, %v6657_v2, 1326507024  ;;  %v6674_v56 = vshll.u32 %v6634_v46, 8  ;;  %vm6201_vm14 = vcmp.lt.s32.totalorder %v13031_v49, 2 }
 0x56b   : > { %v6486_v7 = vclz %v7959_v37  ;;  %v6662_v21 = vsel %vm6658_vm9, %v6642_v52, %v6645_v42  ;;  %v6664_v17 = vsel %vm6660_vm12, %v6648_v13, %v6663_v55  ;;  %vm6198_vm15 = vweird.f32 %v12751_v60 }
 0x56c   : > { %vm13068_vm0 = vcmp.le.f32.partialorder %v6418_v22, 0.7853982  ;;  %v6504_v28 = vsub.s32 4, %v13034_v33  ;;  %v6672_v61 = vsel %vm6660_vm12, %v6654_v4, %v6671_v36  ;;  %vm6202_vm1 = vcmp.eq.s32.totalorder %v13031_v49, 0 }
 0x56d   : > { %v13074_v6 = vmul.u32.u64.low %v6674_v56, %v6669_v41  ;;  %v13075_v24 = vmul.u32.u64.high %v6674_v56, %v6669_v41, %v13074_v6  ;;  %v7960_v42 = vadd.s32 4294967294, %v6486_v7  ;;  %v6673_v13 = vsel %vm6659_vm13, %v6670_v30, %v6672_v61 }
 0x56e   : > { %v7922_v34 = vadd.s32 4294967169, %v5278_v10  ;;  %vm6205_vm2 = vcmp.eq.s32.totalorder %v13031_v49, 2  ;;  %v6665_v22 = vsel %vm6659_vm13, %v6662_v21, %v6664_v17  ;;  %v6474_v4 = vadd.s32 %v12994_v59, %v12991_v3 }
 0x56f   : > { %v13082_v46 = vmul.u32.u64.low %v6674_v56, %v6673_v13  ;;  %v13083_v12 = vmul.u32.u64.high %v6674_v56, %v6673_v13, %v13082_v46  ;;  %v8485_v8 = vpop.eup %8484  ;;  %vm7961_vm3 = vcmp.lt.s32.totalorder %v7960_v42, 0  ;;  %v5274_v44 = vand.u32 2147483647, %v13010_v11 }
 0x570   : > { %v5284_v2 = vadd.s32 1, %v7922_v34  ;;  %v8487_v55 = vpop.eup %8486  ;;  %v6206_v54 = vxor.u32 2147483648, %v8485_v8  ;;  %v6489_v40 = vsel %vm7961_vm3, 0, %v7960_v42  ;;  %v6505_v10 = vsel %vm6420_vm10, %v6504_v28, %v13034_v33  ;;  %v5940_v28 = vpop.permute.xlu0 %5939 }
 0x571   : > { %v6684_v45 = vadd.s32 1, %v13075_v24  ;;  %v6203_v37 = vxor.u32 2147483648, %v8487_v55  ;;  %v6490_v52 = vsub.s32 32, %v6489_v40  ;;  %v6494_v1 = vsub.s32 4294967266, %v6489_v40 }
 0x572   : > { %v6681_v41 = vmul.u32 %v6674_v56, %v6665_v22  ;;  %v6207_v3 = vsel %vm6205_vm2, %v6206_v54, %v8487_v55  ;;  %v6491_v59 = vshll.u32 %v13050_v31, %v6489_v40  ;;  %vm6683_vm4 = vc.u32 %v13083_v12, %v13074_v6 }
 0x573   : > { %vm5285_vm6 = vcmp.gt.s32.totalorder %v5284_v2, 0  ;;  %v6204_v30 = vsel %vm6202_vm1, %v8485_v8, %v6203_v37  ;;  %v6492_v33 = vshrl.u32 %v6474_v4, %v6490_v52  ;;  %v6495_v36 = vadd.s32 127, %v6494_v1 }
 0x574   : > { %v6685_v7 = vsel %vm6683_vm4, %v6684_v45, %v13075_v24  ;;  %v6208_v56 = vsel %vm6201_vm14, %v6204_v30, %v6207_v3  ;;  %v5281_v17 = vand.u32 8388607, %v5274_v44  ;;  %v5286_v31 = vsel %vm5285_vm6, %v5284_v2, 0 }
 0x575   : > { %v6686_v21 = vadd.s32 %v6685_v7, %v6681_v41  ;;  %v6209_v61 = vsel %vm6198_vm15, nan, %v6208_v56  ;;  %v6493_v42 = vor.u32 %v6492_v33, %v6491_v59  ;;  %v6496_v13 = vshll.u32 %v6495_v36, 23 }
 0x576   : > { %v6507_v34 = vsel %vm13068_vm0, 0, %v6505_v10  ;;  %v13110_v24 = vadd.f32 %v13020_v5, %v8804_v47  ;;  %7667 = vst [vmem:[%s9106_s21 + $0x38] sm:$0xff] %v6209_v61  ;;  %v5288_v22 = vand.u32 31, %v5286_v31  ;;  %v5898_v46 = vadd.f32 %v13026_v0, %v8804_v47 }
 0x577   : > { %v6687_v49 = vadd.s32 536870912, %v6686_v21  ;;  %v13117_v8 = vmul.f32 %v12866_v51, %v8794_v39  ;;  %v6497_v60 = vor.u32 4788187, %v6496_v13  ;;  %v5978_v4 = vmul.f32 %v5940_v28, %v8807_v48 }
 0x578   : > { %v6511_v2 = vadd.s32 3, %v6507_v34  ;;  %v5282_v54 = vor.u32 8388608, %v5281_v17  ;;  %v5289_v40 = vsub.s32 32, %v5288_v22  ;;  %v6500_v5 = vcvt.s32.f32 %v6493_v42 }
 0x579   : > { %v6688_v55 = vshrl.u32 %v6687_v49, 30  ;;  %v6498_v10 = vand.u32 2147483647, %v6497_v60  ;;  %v13120_v45 = vshrl.u32 %v5286_v31, 5  ;;  %v5291_v37 = vshll.u32 %v8606_v23, %v5288_v22 }
 0x57a   : > { %v5292_v0 = vshrl.u32 %v14528_v43, %v5289_v40  ;;  %v5294_v1 = vshll.u32 %v14528_v43, %v5288_v22  ;;  %v5297_v51 = vshll.u32 %v14529_v58, %v5288_v22  ;;  %v5295_v3 = vshrl.u32 %v14529_v58, %v5289_v40 }
 0x57b   : > { %v6689_v52 = vshll.u32 %v6688_v55, 30  ;;  %v6501_v41 = vmul.f32 %v6500_v5, %v6498_v10  ;;  %v5298_v59 = vshrl.u32 %v14530_v14, %v5289_v40  ;;  %v5301_v30 = vshrl.u32 %v14534_v53, %v5289_v40 }
 0x57c   : > { %v13129_v33 = vand.u32 3, %v6511_v2  ;;  %v5300_v7 = vshll.u32 %v14530_v14, %v5288_v22  ;;  %v5304_v56 = vshrl.u32 %v14535_v15, %v5289_v40  ;;  %vm6628_vm5 = vcmp.lt.s32.totalorder %v12926_v62, 0 }
 0x57d   : > { %v13131_v36 = vsub.s32 %v6686_v21, %v6689_v52  ;;  %v6502_v17 = vxor.u32 2147483648, %v6501_v41  ;;  %v5293_v31 = vor.u32 %v5292_v0, %v5291_v37  ;;  %v5296_v28 = vor.u32 %v5295_v3, %v5294_v1 }
 0x57e   : > { %v5299_v61 = vor.u32 %v5298_v59, %v5297_v51  ;;  %v5302_v13 = vor.u32 %v5301_v30, %v5300_v7  ;;  %v5303_v34 = vshll.u32 %v14534_v53, %v5288_v22  ;;  %v13138_v49 = vadd.f32 %v5978_v4, %v5898_v46 }
 0x57f   : > { %v6692_v42 = vsub.s32 0, %v13131_v36  ;;  %v6503_v21 = vsel %vm6420_vm10, %v6502_v17, %v6501_v41  ;;  %v5290_v60 = vshrl.u32 %v8606_v23, %v5289_v40  ;;  %vm5306_vm7 = vcmp.lt.s32.totalorder %v13120_v45, 1 }
 0x580   : > { %v5322_v2 = vshll.u32 %v5282_v54, 8  ;;  %v6506_v10 = vsel %vm13068_vm0, %v12861_v25, %v6503_v21  ;;  %v5305_v37 = vor.u32 %v5304_v56, %v5303_v34  ;;  %vm5309_vm8 = vcmp.lt.s32.totalorder %v13120_v45, 4 }
 0x581   : > { %v7967_v5 = vmin.u32 %v6692_v42, %v13131_v36  ;;  %8488 = vcosq.f32 %v6506_v10  ;;  %vm13151_vm9 = vcmp.le.f32.partialorder %v6626_v18, 0.7853982  ;;  %v5311_v46 = vsel %vm5309_vm8, %v5299_v61, 2102212464 }
 0x582   : > { %v5314_v4 = vsel %vm5306_vm7, %v5293_v31, %v5296_v28  ;;  %v5315_v38 = vsel %vm5309_vm8, %v5302_v13, 920167782  ;;  %8490 = vsinq.f32 %v6506_v10  ;;  %v6712_v40 = vsub.s32 4, %v6688_v55 }
 0x583   : > { %v6694_v54 = vclz %v7967_v5  ;;  %vm5308_vm10 = vcmp.lt.s32.totalorder %v13120_v45, 3  ;;  %vm5307_vm12 = vcmp.lt.s32.totalorder %v13120_v45, 2  ;;  %v5310_v18 = vsel %vm5306_vm7, %v5290_v60, %v5293_v31 }
 0x584   : > { %v5316_v52 = vsel %vm5308_vm10, %v5299_v61, %v5315_v38  ;;  %v5318_v0 = vsel %vm5306_vm7, %v5296_v28, %v5299_v61  ;;  %v5312_v51 = vsel %vm5308_vm10, %v5296_v28, %v5311_v46  ;;  %v5319_v3 = vsel %vm5309_vm8, %v5305_v37, 1326507024 }
 0x585   : > { %v7968_v1 = vadd.s32 4294967294, %v6694_v54  ;;  %v5317_v41 = vsel %vm5307_vm12, %v5314_v4, %v5316_v52  ;;  %v5320_v59 = vsel %vm5308_vm10, %v5302_v13, %v5319_v3  ;;  %v6837_v56 = vand.u32 2139095040, %v13138_v49 }
 0x586   : > { %v13171_v30 = vmul.u32.u64.low %v5322_v2, %v5317_v41  ;;  %v13172_v7 = vmul.u32.u64.high %v5322_v2, %v5317_v41, %v13171_v30  ;;  %v6713_v17 = vsel %vm6628_vm5, %v6712_v40, %v6688_v55  ;;  %v5321_v31 = vsel %vm5307_vm12, %v5318_v0, %v5320_v59 }
 0x587   : > { %vm7969_vm11 = vcmp.lt.s32.totalorder %v7968_v1, 0  ;;  %v6834_v28 = vand.u32 2147483647, %v13138_v49  ;;  %vm6513_vm13 = vcmp.lt.s32.totalorder %v13129_v33, 2  ;;  %v6838_v34 = vshrl.u32 %v6837_v56, 23 }
 0x588   : > { %v6697_v61 = vsel %vm7969_vm11, 0, %v7968_v1  ;;  %v13182_v42 = vmul.u32.u64.low %v5322_v2, %v5321_v31  ;;  %v13183_v13 = vmul.u32.u64.high %v5322_v2, %v5321_v31, %v13182_v42  ;;  %v6682_v21 = vadd.s32 %v13074_v6, %v13083_v12  ;;  %v4088_v6 = vpop.permute.xlu1 %4087 }
 0x589   : > { %v6698_v60 = vsub.s32 32, %v6697_v61  ;;  %v6702_v10 = vsub.s32 4294967266, %v6697_v61  ;;  %v5313_v55 = vsel %vm5307_vm12, %v5310_v18, %v5312_v51  ;;  %vm6514_vm14 = vcmp.eq.s32.totalorder %v13129_v33, 0 }
 0x58a   : > { %vm6517_vm15 = vcmp.eq.s32.totalorder %v13129_v33, 2  ;;  %v5332_v5 = vadd.s32 1, %v13172_v7  ;;  %v7974_v37 = vadd.s32 4294967169, %v6838_v34  ;;  %v6699_v46 = vshll.u32 %v13131_v36, %v6697_v61 }
 0x58b   : > { %v6700_v4 = vshrl.u32 %v6682_v21, %v6698_v60  ;;  %v6703_v38 = vadd.s32 127, %v6702_v10  ;;  %v6715_v54 = vsel %vm13151_vm9, 0, %v6713_v17  ;;  %v8489_v12 = vpop.eup %8488  ;;  %v5329_v40 = vmul.u32 %v5322_v2, %v5313_v55  ;;  %v5948_v60 = vpop.permute.xlu0 %5947 }
 0x58c   : > { %vm5331_vm0 = vc.u32 %v13183_v13, %v13171_v30  ;;  %v6841_v45 = vand.u32 8388607, %v6834_v28  ;;  %v6844_v18 = vadd.s32 1, %v7974_v37  ;;  %v8491_v52 = vpop.eup %8490  ;;  %v6518_v0 = vxor.u32 2147483648, %v8489_v12 }
 0x58d   : > { %v6701_v1 = vor.u32 %v6700_v4, %v6699_v46  ;;  %v6704_v51 = vshll.u32 %v6703_v38, 23  ;;  %v5333_v36 = vsel %vm5331_vm0, %v5332_v5, %v13172_v7  ;;  %v6515_v41 = vxor.u32 2147483648, %v8491_v52 }
 0x58e   : > { %v5334_v3 = vadd.s32 %v5333_v36, %v5329_v40  ;;  %vm6845_vm1 = vcmp.gt.s32.totalorder %v6844_v18, 0  ;;  %v4111_v59 = vmul.f32 %v4088_v6, %v8807_v48  ;;  %v6519_v2 = vsel %vm6517_vm15, %v6518_v0, %v8491_v52 }
 0x58f   : > { %v6705_v56 = vor.u32 4788187, %v6704_v51  ;;  %v6719_v17 = vadd.s32 3, %v6715_v54  ;;  %v6846_v31 = vsel %vm6845_vm1, %v6844_v18, 0  ;;  %v6516_v61 = vsel %vm6514_vm14, %v8489_v12, %v6515_v41 }
 0x590   : > { %v5335_v42 = vadd.s32 536870912, %v5334_v3  ;;  %v6842_v34 = vor.u32 8388608, %v6841_v45  ;;  %v6848_v21 = vand.u32 31, %v6846_v31  ;;  %vm6510_vm2 = vweird.f32 %v12861_v25 }
 0x591   : > { %v6520_v7 = vsel %vm6513_vm13, %v6516_v61, %v6519_v2  ;;  %v6706_v10 = vand.u32 2147483647, %v6705_v56  ;;  %v6708_v55 = vcvt.s32.f32 %v6701_v1  ;;  %vm5276_vm3 = vcmp.lt.s32.totalorder %v13010_v11, 0 }
 0x592   : > { %v6521_v5 = vsel %vm6510_vm2, nan, %v6520_v7  ;;  %v5336_v37 = vshrl.u32 %v5335_v42, 30  ;;  %v6849_v46 = vsub.s32 32, %v6848_v21  ;;  %v13210_v38 = vand.u32 3, %v6719_v17 }
 0x593   : > { %7670 = vst [vmem:[%s9106_s21 + $0x98] sm:$0xff] %v6521_v5  ;;  %v6709_v4 = vmul.f32 %v6708_v55, %v6706_v10  ;;  %v13213_v54 = vadd.f32 %v4111_v59, %v13110_v24  ;;  %v13216_v6 = vmul.f32 %v5948_v60, %v8807_v48  ;;  %v6851_v33 = vshll.u32 %v8606_v23, %v6848_v21 }
 0x594   : > { %v5337_v25 = vshll.u32 %v5336_v37, 30  ;;  %v6852_v12 = vshrl.u32 %v14528_v43, %v6849_v46  ;;  %v13220_v40 = vshll.u32 %v6842_v34, 8  ;;  %v6855_v18 = vshrl.u32 %v14529_v58, %v6849_v46 }
 0x595   : > { %v6710_v45 = vxor.u32 2147483648, %v6709_v4  ;;  %v6858_v52 = vshrl.u32 %v14530_v14, %v6849_v46  ;;  %v6861_v0 = vshrl.u32 %v14534_v53, %v6849_v46  ;;  %v6847_v24 = vshrl.u32 %v6846_v31, 5 }
 0x596   : > { %v13225_v1 = vsub.s32 %v5334_v3, %v5337_v25  ;;  %v6854_v51 = vshll.u32 %v14528_v43, %v6848_v21  ;;  %v6857_v36 = vshll.u32 %v14529_v58, %v6848_v21  ;;  %vm13233_vm4 = vcmp.le.f32.partialorder %v5274_v44, 0.7853982 }
 0x597   : > { %v6711_v41 = vsel %vm6628_vm5, %v6710_v45, %v6709_v4  ;;  %v5360_v2 = vsub.s32 4, %v5336_v37  ;;  %v6853_v56 = vor.u32 %v6852_v12, %v6851_v33  ;;  %v6860_v17 = vshll.u32 %v14530_v14, %v6848_v21 }
 0x598   : > { %v6714_v3 = vsel %vm13151_vm9, %v12926_v62, %v6711_v41  ;;  %v5340_v31 = vsub.s32 0, %v13225_v1  ;;  %v6856_v61 = vor.u32 %v6855_v18, %v6854_v51  ;;  %v6863_v42 = vshll.u32 %v14534_v53, %v6848_v21 }
 0x599   : > { %8492 = vcosq.f32 %v6714_v3  ;;  %v6859_v34 = vor.u32 %v6858_v52, %v6857_v36  ;;  %v6862_v60 = vor.u32 %v6861_v0, %v6860_v17  ;;  %v6864_v44 = vshrl.u32 %v14535_v15, %v6849_v46 }
 0x59a   : > { %8494 = vsinq.f32 %v6714_v3  ;;  %v7923_v7 = vmin.u32 %v5340_v31, %v13225_v1  ;;  %v6850_v10 = vshrl.u32 %v8606_v23, %v6849_v46  ;;  %v5485_v55 = vand.u32 2139095040, %v13213_v54 }
 0x59b   : > { %v5361_v22 = vsel %vm5276_vm3, %v5360_v2, %v5336_v37  ;;  %v6865_v5 = vor.u32 %v6864_v44, %v6863_v42  ;;  %vm6866_vm6 = vcmp.lt.s32.totalorder %v6847_v24, 1  ;;  %vm6867_vm5 = vcmp.lt.s32.totalorder %v6847_v24, 2 }
 0x59c   : > { %v5342_v4 = vclz %v7923_v7  ;;  %vm6868_vm7 = vcmp.lt.s32.totalorder %v6847_v24, 3  ;;  %vm6869_vm8 = vcmp.lt.s32.totalorder %v6847_v24, 4  ;;  %v6874_v21 = vsel %vm6866_vm6, %v6853_v56, %v6856_v61 }
 0x59d   : > { %v6871_v25 = vsel %vm6869_vm8, %v6859_v34, 2102212464  ;;  %v6875_v33 = vsel %vm6869_vm8, %v6862_v60, 920167782  ;;  %v6878_v12 = vsel %vm6866_vm6, %v6856_v61, %v6859_v34  ;;  %v6879_v45 = vsel %vm6869_vm8, %v6865_v5, 1326507024 }
 0x59e   : > { %vm6722_vm9 = vcmp.eq.s32.totalorder %v13210_v38, 0  ;;  %v7924_v18 = vadd.s32 4294967294, %v5342_v4  ;;  %v6870_v46 = vsel %vm6866_vm6, %v6850_v10, %v6853_v56  ;;  %v6876_v52 = vsel %vm6868_vm7, %v6859_v34, %v6875_v33 }
 0x59f   : > { %v6880_v0 = vsel %vm6868_vm7, %v6862_v60, %v6879_v45  ;;  %vm6721_vm10 = vcmp.lt.s32.totalorder %v13210_v38, 2  ;;  %v6872_v37 = vsel %vm6868_vm7, %v6856_v61, %v6871_v25  ;;  %v6877_v51 = vsel %vm6867_vm5, %v6874_v21, %v6876_v52 }
 0x5a0   : > { %v6881_v36 = vsel %vm6867_vm5, %v6878_v12, %v6880_v0  ;;  %v5486_v41 = vshrl.u32 %v5485_v55, 23  ;;  %vm7925_vm12 = vcmp.lt.s32.totalorder %v7924_v18, 0  ;;  %v5363_v2 = vsel %vm13233_vm4, 0, %v5361_v22 }
 0x5a1   : > { %v13256_v17 = vmul.u32.u64.low %v13220_v40, %v6881_v36  ;;  %v13257_v3 = vmul.u32.u64.high %v13220_v40, %v6881_v36, %v13256_v17  ;;  %v5345_v31 = vsel %vm7925_vm12, 0, %v7924_v18  ;;  %v5330_v34 = vadd.s32 %v13171_v30, %v13183_v13 }
 0x5a2   : > { %v13260_v56 = vmul.u32.u64.low %v13220_v40, %v6877_v51  ;;  %v13261_v42 = vmul.u32.u64.high %v13220_v40, %v6877_v51, %v13260_v56  ;;  %v7930_v61 = vadd.s32 4294967169, %v5486_v41  ;;  %v5346_v60 = vsub.s32 32, %v5345_v31 }
 0x5a3   : > { %v5350_v44 = vsub.s32 4294967266, %v5345_v31  ;;  %v6873_v7 = vsel %vm6867_vm5, %v6870_v46, %v6872_v37  ;;  %v8493_v10 = vpop.eup %8492  ;;  %vm6725_vm11 = vcmp.eq.s32.totalorder %v13210_v38, 2  ;;  %v5367_v55 = vadd.s32 3, %v5363_v2 }
 0x5a4   : > { %v5482_v22 = vand.u32 2147483647, %v13213_v54  ;;  %v5492_v5 = vadd.s32 1, %v7930_v61  ;;  %v8495_v4 = vpop.eup %8494  ;;  %v6726_v21 = vxor.u32 2147483648, %v8493_v10  ;;  %v5347_v25 = vshll.u32 %v13225_v1, %v5345_v31 }
 0x5a5   : > { %v5348_v33 = vshrl.u32 %v5330_v34, %v5346_v60  ;;  %v5351_v12 = vadd.s32 127, %v5350_v44  ;;  %v6723_v45 = vxor.u32 2147483648, %v8495_v4  ;;  %v6889_v30 = vmul.u32 %v13220_v40, %v6873_v7 }
 0x5a6   : > { %vm6891_vm13 = vc.u32 %v13257_v3, %v13260_v56  ;;  %v6892_v13 = vadd.s32 1, %v13261_v42  ;;  %v6727_v24 = vsel %vm6725_vm11, %v6726_v21, %v8495_v4  ;;  %vm5493_vm14 = vcmp.gt.s32.totalorder %v5492_v5, 0 }
 0x5a7   : > { %v5349_v18 = vor.u32 %v5348_v33, %v5347_v25  ;;  %v5352_v46 = vshll.u32 %v5351_v12, 23  ;;  %v6724_v52 = vsel %vm6722_vm9, %v8493_v10, %v6723_v45  ;;  %v13279_v0 = vand.u32 8388607, %v5482_v22 }
 0x5a8   : > { %v6893_v1 = vsel %vm6891_vm13, %v6892_v13, %v13261_v42  ;;  %v5494_v40 = vsel %vm5493_vm14, %v5492_v5, 0  ;;  %vm6718_vm15 = vweird.f32 %v12926_v62  ;;  %v6728_v37 = vsel %vm6721_vm10, %v6724_v52, %v6727_v24 }
 0x5a9   : > { %v5353_v51 = vor.u32 4788187, %v5352_v46  ;;  %v6894_v36 = vadd.s32 %v6893_v1, %v6889_v30  ;;  %v13286_v41 = vmul.f32 %v11850_v63, %v8794_v39  ;;  %v5900_v2 = vadd.f32 %v13117_v8, %v8804_v47 }
 0x5aa   : > { %v6729_v17 = vsel %vm6718_vm15, nan, %v6728_v37  ;;  %v5496_v31 = vand.u32 31, %v5494_v40  ;;  %v13292_v42 = vmul.f32 %v12881_v26, %v8794_v39  ;;  %v5356_v61 = vcvt.s32.f32 %v5349_v18 }
 0x5ab   : > { %7672 = vst [vmem:[%s9106_s21 + $0xd8] sm:$0xff] %v6729_v17  ;;  %v5354_v62 = vand.u32 2147483647, %v5353_v51  ;;  %v6895_v38 = vadd.s32 536870912, %v6894_v36  ;;  %v13295_v34 = vand.u32 3, %v5367_v55  ;;  %v5490_v60 = vor.u32 8388608, %v13279_v0 }
 0x5ac   : > { %v5497_v44 = vsub.s32 32, %v5496_v31  ;;  %v13299_v63 = vadd.f32 %v13216_v6, %v5900_v2  ;;  %v5495_v10 = vshrl.u32 %v5494_v40, 5  ;;  %v5499_v5 = vshll.u32 %v8606_v23, %v5496_v31 }
 0x5ad   : > { %v5357_v7 = vmul.f32 %v5356_v61, %v5354_v62  ;;  %v6896_v8 = vshrl.u32 %v6895_v38, 30  ;;  %vm6836_vm0 = vcmp.lt.s32.totalorder %v13138_v49, 0  ;;  %v5502_v4 = vshll.u32 %v14528_v43, %v5496_v31 }
 0x5ae   : > { %v5500_v26 = vshrl.u32 %v14528_v43, %v5497_v44  ;;  %v5503_v55 = vshrl.u32 %v14529_v58, %v5497_v44  ;;  %v5506_v21 = vshrl.u32 %v14530_v14, %v5497_v44  ;;  %v5505_v6 = vshll.u32 %v14529_v58, %v5496_v31 }
 0x5af   : > { %v5358_v25 = vxor.u32 2147483648, %v5357_v7  ;;  %v6897_v33 = vshll.u32 %v6896_v8, 30  ;;  %v5509_v12 = vshrl.u32 %v14534_v53, %v5497_v44  ;;  %v5508_v30 = vshll.u32 %v14530_v14, %v5496_v31 }
 0x5b0   : > { %v5501_v45 = vor.u32 %v5500_v26, %v5499_v5  ;;  %v5511_v13 = vshll.u32 %v14534_v53, %v5496_v31  ;;  %v5512_v24 = vshrl.u32 %v14535_v15, %v5497_v44  ;;  %v5504_v52 = vor.u32 %v5503_v55, %v5502_v4 }
 0x5b1   : > { %v5359_v18 = vsel %vm5276_vm3, %v5358_v25, %v5357_v7  ;;  %v13314_v46 = vsub.s32 %v6894_v36, %v6897_v33  ;;  %v5507_v1 = vor.u32 %v5506_v21, %v5505_v6  ;;  %v5510_v40 = vor.u32 %v5509_v12, %v5508_v30 }
 0x5b2   : > { %v5362_v0 = vsel %vm13233_vm4, %v13010_v11, %v5359_v18  ;;  %v5513_v37 = vor.u32 %v5512_v24, %v5511_v13  ;;  %v7045_v51 = vand.u32 2139095040, %v13299_v63  ;;  %v6920_v17 = vsub.s32 4, %v6896_v8 }
 0x5b3   : > { %8496 = vcosq.f32 %v5362_v0  ;;  %v6900_v2 = vsub.s32 0, %v13314_v46  ;;  %v5498_v31 = vshrl.u32 %v8606_v23, %v5497_v44  ;;  %vm5514_vm1 = vcmp.lt.s32.totalorder %v5495_v10, 1 }
 0x5b4   : > { %8498 = vsinq.f32 %v5362_v0  ;;  %vm5516_vm2 = vcmp.lt.s32.totalorder %v5495_v10, 3  ;;  %vm5517_vm3 = vcmp.lt.s32.totalorder %v5495_v10, 4  ;;  %v5522_v59 = vsel %vm5514_vm1, %v5501_v45, %v5504_v52 }
 0x5b5   : > { %v7975_v36 = vmin.u32 %v6900_v2, %v13314_v46  ;;  %v5518_v62 = vsel %vm5514_vm1, %v5498_v31, %v5501_v45  ;;  %v5519_v61 = vsel %vm5517_vm3, %v5507_v1, 2102212464  ;;  %v5523_v7 = vsel %vm5517_vm3, %v5510_v40, 920167782 }
 0x5b6   : > { %v5520_v38 = vsel %vm5516_vm2, %v5504_v52, %v5519_v61  ;;  %v5526_v5 = vsel %vm5514_vm1, %v5504_v52, %v5507_v1  ;;  %v5527_v26 = vsel %vm5517_vm3, %v5513_v37, 1326507024  ;;  %vm13326_vm4 = vcmp.le.f32.partialorder %v6834_v28, 0.7853982 }
 0x5b7   : > { %v6902_v44 = vclz %v7975_v36  ;;  %v6921_v55 = vsel %vm6836_vm0, %v6920_v17, %v6896_v8  ;;  %v5530_v21 = vshll.u32 %v5490_v60, 8  ;;  %vm5515_vm6 = vcmp.lt.s32.totalorder %v5495_v10, 2 }
 0x5b8   : > { %v5524_v25 = vsel %vm5516_vm2, %v5507_v1, %v5523_v7  ;;  %v5528_v33 = vsel %vm5516_vm2, %v5510_v40, %v5527_v26  ;;  %v7046_v6 = vshrl.u32 %v7045_v51, 23  ;;  %vm5369_vm5 = vcmp.lt.s32.totalorder %v13295_v34, 2 }
 0x5b9   : > { %v7976_v12 = vadd.s32 4294967294, %v6902_v44  ;;  %v5521_v45 = vsel %vm5515_vm6, %v5518_v62, %v5520_v38  ;;  %v5525_v30 = vsel %vm5515_vm6, %v5522_v59, %v5524_v25  ;;  %v5529_v28 = vsel %vm5515_vm6, %v5526_v5, %v5528_v33  ;;  %v4092_v25 = vpop.permute.xlu1 %4091 }
 0x5ba   : > { %v13335_v13 = vmul.u32.u64.low %v5530_v21, %v5529_v28  ;;  %v13336_v24 = vmul.u32.u64.high %v5530_v21, %v5529_v28, %v13335_v13  ;;  %v13338_v18 = vmul.u32.u64.low %v5530_v21, %v5525_v30  ;;  %v13339_v52 = vmul.u32.u64.high %v5530_v21, %v5525_v30, %v13338_v18 }
 0x5bb   : > { %vm5370_vm7 = vcmp.eq.s32.totalorder %v13295_v34, 0  ;;  %vm5373_vm8 = vcmp.eq.s32.totalorder %v13295_v34, 2  ;;  %vm7977_vm9 = vcmp.lt.s32.totalorder %v7976_v12, 0  ;;  %v7982_v60 = vadd.s32 4294967169, %v7046_v6 }
 0x5bc   : > { %v6890_v8 = vadd.s32 %v13260_v56, %v13257_v3  ;;  %v6905_v10 = vsel %vm7977_vm9, 0, %v7976_v12  ;;  %v6923_v1 = vsel %vm13326_vm4, 0, %v6921_v55  ;;  %v7042_v0 = vand.u32 2147483647, %v13299_v63 }
 0x5bd   : > { %v8497_v40 = vpop.eup %8496  ;;  %v6906_v37 = vsub.s32 32, %v6905_v10  ;;  %v6910_v51 = vsub.s32 4294967266, %v6905_v10  ;;  %v5537_v2 = vmul.u32 %v5530_v21, %v5521_v45  ;;  %v7052_v17 = vadd.s32 1, %v7982_v60 }
 0x5be   : > { %v8499_v31 = vpop.eup %8498  ;;  %v5374_v36 = vxor.u32 2147483648, %v8497_v40  ;;  %v6907_v62 = vshll.u32 %v13314_v46, %v6905_v10  ;;  %vm5539_vm10 = vc.u32 %v13336_v24, %v13338_v18  ;;  %v5540_v3 = vadd.s32 1, %v13339_v52 }
 0x5bf   : > { %v5371_v56 = vxor.u32 2147483648, %v8499_v31  ;;  %v6908_v61 = vshrl.u32 %v6890_v8, %v6906_v37  ;;  %v6911_v59 = vadd.s32 127, %v6910_v51  ;;  %vm7053_vm12 = vcmp.gt.s32.totalorder %v7052_v17, 0 }
 0x5c0   : > { %v5375_v38 = vsel %vm5373_vm8, %v5374_v36, %v8499_v31  ;;  %v6927_v7 = vadd.s32 3, %v6923_v1  ;;  %v5541_v5 = vsel %vm5539_vm10, %v5540_v3, %v13339_v52  ;;  %v7054_v26 = vsel %vm7053_vm12, %v7052_v17, 0 }
 0x5c1   : > { %v5372_v46 = vsel %vm5370_vm7, %v8497_v40, %v5371_v56  ;;  %v6909_v44 = vor.u32 %v6908_v61, %v6907_v62  ;;  %v6912_v55 = vshll.u32 %v6911_v59, 23  ;;  %v5542_v21 = vadd.s32 %v5541_v5, %v5537_v2 }
 0x5c2   : > { %v4032_v33 = vadd.f32 %v13286_v41, %v8804_v47  ;;  %vm5366_vm11 = vweird.f32 %v13010_v11  ;;  %v5376_v6 = vsel %vm5369_vm5, %v5372_v46, %v5375_v38  ;;  %v7056_v12 = vand.u32 31, %v7054_v26 }
 0x5c3   : > { %v13365_v45 = vmul.f32 %v12906_v16, %v8794_v39  ;;  %v5377_v30 = vsel %vm5366_vm11, nan, %v5376_v6  ;;  %v6913_v28 = vor.u32 4788187, %v6912_v55  ;;  %v5543_v13 = vadd.s32 536870912, %v5542_v21 }
 0x5c4   : > { %v13369_v52 = vadd.f32 %v13292_v42, %v8804_v47  ;;  %5805 = vst [vmem:[%s9106_s21 + $0x170] sm:$0xff] %v5377_v30  ;;  %v7049_v41 = vand.u32 8388607, %v7042_v0  ;;  %v7057_v11 = vsub.s32 32, %v7056_v12  ;;  %v4112_v34 = vmul.f32 %v4092_v25, %v8807_v48 }
 0x5c5   : > { %v6914_v60 = vand.u32 2147483647, %v6913_v28  ;;  %v6916_v8 = vcvt.s32.f32 %v6909_v44  ;;  %v13375_v10 = vand.u32 3, %v6927_v7  ;;  %v5544_v16 = vshrl.u32 %v5543_v13, 30 }
 0x5c6   : > { %v7055_v1 = vshrl.u32 %v7054_v26, 5  ;;  %v7060_v40 = vshrl.u32 %v14528_v43, %v7057_v11  ;;  %v7063_v37 = vshrl.u32 %v14529_v58, %v7057_v11  ;;  %v7066_v42 = vshrl.u32 %v14530_v14, %v7057_v11 }
 0x5c7   : > { %v6917_v51 = vmul.f32 %v6916_v8, %v6914_v60  ;;  %v5545_v2 = vshll.u32 %v5544_v16, 30  ;;  %v7065_v17 = vshll.u32 %v14529_v58, %v7056_v12  ;;  %v7069_v31 = vshrl.u32 %v14534_v53, %v7057_v11 }
 0x5c8   : > { %vm5484_vm13 = vcmp.lt.s32.totalorder %v13213_v54, 0  ;;  %v7059_v36 = vshll.u32 %v8606_v23, %v7056_v12  ;;  %v7062_v62 = vshll.u32 %v14528_v43, %v7056_v12  ;;  %v7068_v3 = vshll.u32 %v14530_v14, %v7056_v12 }
 0x5c9   : > { %v7072_v56 = vshrl.u32 %v14535_v15, %v7057_v11  ;;  %v6918_v61 = vxor.u32 2147483648, %v6917_v51  ;;  %v13387_v59 = vsub.s32 %v5542_v21, %v5545_v2  ;;  %v7050_v38 = vor.u32 8388608, %v7049_v41 }
 0x5ca   : > { %v7067_v7 = vor.u32 %v7066_v42, %v7065_v17  ;;  %v7061_v5 = vor.u32 %v7060_v40, %v7059_v36  ;;  %v7064_v26 = vor.u32 %v7063_v37, %v7062_v62  ;;  %v7070_v46 = vor.u32 %v7069_v31, %v7068_v3  ;;  %v5956_v36 = vpop.permute.xlu0 %5955 }
 0x5cb   : > { %v7071_v44 = vshll.u32 %v14534_v53, %v7056_v12  ;;  %v6919_v55 = vsel %vm6836_vm0, %v6918_v61, %v6917_v51  ;;  %v5548_v25 = vsub.s32 0, %v13387_v59  ;;  %v7058_v6 = vshrl.u32 %v8606_v23, %v7057_v11 }
 0x5cc   : > { %v13394_v30 = vadd.f32 %v4112_v34, %v4032_v33  ;;  %v6922_v21 = vsel %vm13326_vm4, %v13138_v49, %v6919_v55  ;;  %v5568_v28 = vsub.s32 4, %v5544_v16  ;;  %vm7077_vm14 = vcmp.lt.s32.totalorder %v7055_v1, 4 }
 0x5cd   : > { %v7073_v13 = vor.u32 %v7072_v56, %v7071_v44  ;;  %8500 = vcosq.f32 %v6922_v21  ;;  %v7931_v41 = vmin.u32 %v5548_v25, %v13387_v59  ;;  %vm7074_vm15 = vcmp.lt.s32.totalorder %v7055_v1, 1 }
 0x5ce   : > { %v7079_v12 = vsel %vm7077_vm14, %v7067_v7, 2102212464  ;;  %8502 = vsinq.f32 %v6922_v21  ;;  %vm7076_vm0 = vcmp.lt.s32.totalorder %v7055_v1, 3  ;;  %v7082_v60 = vsel %vm7074_vm15, %v7061_v5, %v7064_v26 }
 0x5cf   : > { %v7083_v8 = vsel %vm7077_vm14, %v7070_v46, 920167782  ;;  %v5550_v40 = vclz %v7931_v41  ;;  %v7078_v11 = vsel %vm7074_vm15, %v7058_v6, %v7061_v5  ;;  %v7080_v33 = vsel %vm7076_vm0, %v7064_v26, %v7079_v12 }
 0x5d0   : > { %v7086_v34 = vsel %vm7074_vm15, %v7064_v26, %v7067_v7  ;;  %vm7075_vm1 = vcmp.lt.s32.totalorder %v7055_v1, 2  ;;  %v7084_v37 = vsel %vm7076_vm0, %v7067_v7, %v7083_v8  ;;  %v7087_v4 = vsel %vm7077_vm14, %v7073_v13, 1326507024 }
 0x5d1   : > { %v7090_v42 = vshll.u32 %v7050_v38, 8  ;;  %v7932_v51 = vadd.s32 4294967294, %v5550_v40  ;;  %v5569_v2 = vsel %vm5484_vm13, %v5568_v28, %v5544_v16  ;;  %v7085_v17 = vsel %vm7075_vm1, %v7082_v60, %v7084_v37 }
 0x5d2   : > { %v7088_v31 = vsel %vm7076_vm0, %v7070_v46, %v7087_v4  ;;  %v7081_v62 = vsel %vm7075_vm1, %v7078_v11, %v7080_v33  ;;  %v5589_v1 = vand.u32 2139095040, %v13394_v30  ;;  %vm6926_vm3 = vweird.f32 %v13138_v49 }
 0x5d3   : > { %v7089_v3 = vsel %vm7075_vm1, %v7086_v34, %v7088_v31  ;;  %v13402_v56 = vmul.u32.u64.low %v7090_v42, %v7085_v17  ;;  %v13403_v61 = vmul.u32.u64.high %v7090_v42, %v7085_v17, %v13402_v56  ;;  %vm7933_vm2 = vcmp.lt.s32.totalorder %v7932_v51, 0 }
 0x5d4   : > { %v13406_v5 = vmul.u32.u64.low %v7090_v42, %v7089_v3  ;;  %v13407_v26 = vmul.u32.u64.high %v7090_v42, %v7089_v3, %v13406_v5  ;;  %vm6929_vm4 = vcmp.lt.s32.totalorder %v13375_v10, 2  ;;  %vm13414_vm6 = vcmp.le.f32.partialorder %v5482_v22, 0.7853982 }
 0x5d5   : > { %v5553_v38 = vsel %vm7933_vm2, 0, %v7932_v51  ;;  %v5982_v7 = vmul.f32 %v5956_v36, %v8807_v48  ;;  %v5538_v46 = vadd.s32 %v13338_v18, %v13336_v24  ;;  %v5590_v25 = vshrl.u32 %v5589_v1, 23 }
 0x5d6   : > { %v5554_v44 = vsub.s32 32, %v5553_v38  ;;  %v5558_v55 = vsub.s32 4294967266, %v5553_v38  ;;  %vm6933_vm5 = vcmp.eq.s32.totalorder %v13375_v10, 2  ;;  %v5571_v6 = vsel %vm13414_vm6, 0, %v5569_v2 }
 0x5d7   : > { %v7097_v21 = vmul.u32 %v7090_v42, %v7081_v62  ;;  %v7100_v22 = vadd.s32 1, %v13403_v61  ;;  %v8501_v28 = vpop.eup %8500  ;;  %v5555_v13 = vshll.u32 %v13387_v59, %v5553_v38  ;;  %vm7099_vm7 = vc.u32 %v13407_v26, %v13402_v56 }
 0x5d8   : > { %v5556_v41 = vshrl.u32 %v5538_v46, %v5554_v44  ;;  %v5559_v12 = vadd.s32 127, %v5558_v55  ;;  %v8503_v24 = vpop.eup %8502  ;;  %v6934_v18 = vxor.u32 2147483648, %v8501_v28  ;;  %v7934_v8 = vadd.s32 4294967169, %v5590_v25 }
 0x5d9   : > { %v7101_v60 = vsel %vm7099_vm7, %v7100_v22, %v13403_v61  ;;  %v13430_v40 = vadd.f32 %v5982_v7, %v13369_v52  ;;  %v6931_v11 = vxor.u32 2147483648, %v8503_v24  ;;  %vm6930_vm8 = vcmp.eq.s32.totalorder %v13375_v10, 0 }
 0x5da   : > { %v5557_v33 = vor.u32 %v5556_v41, %v5555_v13  ;;  %v5560_v34 = vshll.u32 %v5559_v12, 23  ;;  %v7102_v37 = vadd.s32 %v7101_v60, %v7097_v21  ;;  %v6935_v59 = vsel %vm6933_vm5, %v6934_v18, %v8503_v24 }
 0x5db   : > { %v5586_v4 = vand.u32 2147483647, %v13394_v30  ;;  %v5596_v42 = vadd.s32 1, %v7934_v8  ;;  %v6932_v51 = vsel %vm6930_vm8, %v8501_v28, %v6931_v11  ;;  %v5575_v17 = vadd.s32 3, %v5571_v6 }
 0x5dc   : > { %v5561_v2 = vor.u32 4788187, %v5560_v34  ;;  %v7103_v31 = vadd.s32 536870912, %v7102_v37  ;;  %v6936_v52 = vsel %vm6929_vm4, %v6932_v51, %v6935_v59  ;;  %v5564_v36 = vcvt.s32.f32 %v5557_v33 }
 0x5dd   : > { %vm5597_vm9 = vcmp.gt.s32.totalorder %v5596_v42, 0  ;;  %v7253_v62 = vand.u32 2139095040, %v13430_v40  ;;  %v6937_v3 = vsel %vm6926_vm3, nan, %v6936_v52  ;;  %v13446_v7 = vmul.f32 %v11879_v50, %v8794_v39 }
 0x5de   : > { %v5562_v61 = vand.u32 2147483647, %v5561_v2  ;;  %v13441_v5 = vshrl.u32 %v7103_v31, 30  ;;  %v5598_v1 = vsel %vm5597_vm9, %v5596_v42, 0  ;;  %7674 = vst [vmem:[%s9106_s21 + $0x118] sm:$0xff] %v6937_v3  ;;  %v13451_v44 = vadd.f32 %v13365_v45, %v8804_v47 }
 0x5df   : > { %v5600_v38 = vand.u32 31, %v5598_v1  ;;  %v13453_v55 = vand.u32 3, %v5575_v17  ;;  %v5593_v49 = vand.u32 8388607, %v5586_v4  ;;  %v13459_v22 = vshrl.u32 %v5598_v1, 5 }
 0x5e0   : > { %v5565_v46 = vmul.f32 %v5564_v36, %v5562_v61  ;;  %v7105_v10 = vshll.u32 %v13441_v5, 30  ;;  %v7254_v50 = vshrl.u32 %v7253_v62, 23  ;;  %v7098_v16 = vadd.s32 %v13402_v56, %v13407_v26 }
 0x5e1   : > { %v5601_v25 = vsub.s32 32, %v5600_v38  ;;  %v5603_v28 = vshll.u32 %v8606_v23, %v5600_v38  ;;  %v5606_v41 = vshll.u32 %v14528_v43, %v5600_v38  ;;  %v5609_v18 = vshll.u32 %v14529_v58, %v5600_v38 }
 0x5e2   : > { %v5566_v6 = vxor.u32 2147483648, %v5565_v46  ;;  %v13457_v21 = vsub.s32 %v7102_v37, %v7105_v10  ;;  %v5612_v33 = vshll.u32 %v14530_v14, %v5600_v38  ;;  %v5615_v2 = vshll.u32 %v14534_v53, %v5600_v38 }
 0x5e3   : > { %v5604_v13 = vshrl.u32 %v14528_v43, %v5601_v25  ;;  %v5607_v45 = vshrl.u32 %v14529_v58, %v5601_v25  ;;  %v5610_v60 = vshrl.u32 %v14530_v14, %v5601_v25  ;;  %v5613_v34 = vshrl.u32 %v14534_v53, %v5601_v25 }
 0x5e4   : > { %v5567_v12 = vsel %vm5484_vm13, %v5566_v6, %v5565_v46  ;;  %v7108_v24 = vsub.s32 0, %v13457_v21  ;;  %v5616_v17 = vshrl.u32 %v14535_v15, %v5601_v25  ;;  %v5594_v52 = vor.u32 8388608, %v5593_v49 }
 0x5e5   : > { %v5570_v8 = vsel %vm13414_vm6, %v13213_v54, %v5567_v12  ;;  %v5605_v11 = vor.u32 %v5604_v13, %v5603_v28  ;;  %v5608_v59 = vor.u32 %v5607_v45, %v5606_v41  ;;  %v5611_v42 = vor.u32 %v5610_v60, %v5609_v18 }
 0x5e6   : > { %8504 = vcosq.f32 %v5570_v8  ;;  %v7983_v37 = vmin.u32 %v7108_v24, %v13457_v21  ;;  %v5614_v51 = vor.u32 %v5613_v34, %v5612_v33  ;;  %v7250_v36 = vand.u32 2147483647, %v13430_v40 }
 0x5e7   : > { %8506 = vsinq.f32 %v5570_v8  ;;  %v5602_v62 = vshrl.u32 %v8606_v23, %v5601_v25  ;;  %v5617_v3 = vor.u32 %v5616_v17, %v5615_v2  ;;  %vm5618_vm10 = vcmp.lt.s32.totalorder %v13459_v22, 1 }
 0x5e8   : > { %v7110_v31 = vclz %v7983_v37  ;;  %v7990_v61 = vadd.s32 4294967169, %v7254_v50  ;;  %vm5620_vm12 = vcmp.lt.s32.totalorder %v13459_v22, 3  ;;  %vm5621_vm11 = vcmp.lt.s32.totalorder %v13459_v22, 4 }
 0x5e9   : > { %v5626_v38 = vsel %vm5618_vm10, %v5605_v11, %v5608_v59  ;;  %vm5578_vm13 = vcmp.eq.s32.totalorder %v13453_v55, 0  ;;  %v5623_v56 = vsel %vm5621_vm11, %v5611_v42, 2102212464  ;;  %v5627_v26 = vsel %vm5621_vm11, %v5614_v51, 920167782 }
 0x5ea   : > { %v7984_v1 = vadd.s32 4294967294, %v7110_v31  ;;  %v5630_v46 = vsel %vm5618_vm10, %v5608_v59, %v5611_v42  ;;  %v5631_v10 = vsel %vm5621_vm11, %v5617_v3, 1326507024  ;;  %vm5577_vm14 = vcmp.lt.s32.totalorder %v13453_v55, 2 }
 0x5eb   : > { %vm7044_vm15 = vcmp.lt.s32.totalorder %v13299_v63, 0  ;;  %vm5619_vm1 = vcmp.lt.s32.totalorder %v13459_v22, 2  ;;  %v5628_v49 = vsel %vm5620_vm12, %v5611_v42, %v5627_v26  ;;  %v5632_v25 = vsel %vm5620_vm12, %v5614_v51, %v5631_v10  ;;  %v5964_v26 = vpop.permute.xlu0 %5963 }
 0x5ec   : > { %vm7985_vm0 = vcmp.lt.s32.totalorder %v7984_v1, 0  ;;  %vm5574_vm2 = vweird.f32 %v13213_v54  ;;  %v5629_v50 = vsel %vm5619_vm1, %v5626_v38, %v5628_v49  ;;  %v5633_v28 = vsel %vm5619_vm1, %v5630_v46, %v5632_v25 }
 0x5ed   : > { %v7113_v6 = vsel %vm7985_vm0, 0, %v7984_v1  ;;  %v5634_v13 = vshll.u32 %v5594_v52, 8  ;;  %v5622_v12 = vsel %vm5618_vm10, %v5602_v62, %v5605_v11  ;;  %v5624_v24 = vsel %vm5620_vm12, %v5608_v59, %v5623_v56 }
 0x5ee   : > { %v7114_v41 = vsub.s32 32, %v7113_v6  ;;  %v7118_v45 = vsub.s32 4294967266, %v7113_v6  ;;  %v7115_v37 = vshll.u32 %v13457_v21, %v7113_v6  ;;  %v7260_v2 = vadd.s32 1, %v7990_v61 }
 0x5ef   : > { %v13506_v18 = vmul.u32.u64.low %v5634_v13, %v5633_v28  ;;  %v13507_v60 = vmul.u32.u64.high %v5634_v13, %v5633_v28, %v13506_v18  ;;  %v13509_v8 = vmul.u32.u64.low %v5634_v13, %v5629_v50  ;;  %v13510_v33 = vmul.u32.u64.high %v5634_v13, %v5629_v50, %v13509_v8 }
 0x5f0   : > { %v8505_v34 = vpop.eup %8504  ;;  %v7116_v42 = vshrl.u32 %v7098_v16, %v7114_v41  ;;  %v7119_v51 = vadd.s32 127, %v7118_v45  ;;  %vm5581_vm3 = vcmp.eq.s32.totalorder %v13453_v55, 2  ;;  %v7128_v31 = vsub.s32 4, %v13441_v5 }
 0x5f1   : > { %v8507_v17 = vpop.eup %8506  ;;  %v5582_v11 = vxor.u32 2147483648, %v8505_v34  ;;  %v5625_v59 = vsel %vm5619_vm1, %v5622_v12, %v5624_v24  ;;  %vm7261_vm4 = vcmp.gt.s32.totalorder %v7260_v2, 0  ;;  %vm5643_vm6 = vc.u32 %v13507_v60, %v13509_v8 }
 0x5f2   : > { %v5579_v52 = vxor.u32 2147483648, %v8507_v17  ;;  %v7117_v62 = vor.u32 %v7116_v42, %v7115_v37  ;;  %v7120_v3 = vshll.u32 %v7119_v51, 23  ;;  %v5644_v21 = vadd.s32 1, %v13510_v33 }
 0x5f3   : > { %v5583_v1 = vsel %vm5581_vm3, %v5582_v11, %v8507_v17  ;;  %v13523_v16 = vand.u32 8388607, %v7250_v36  ;;  %v5641_v38 = vmul.u32 %v5634_v13, %v5625_v59  ;;  %v7262_v56 = vsel %vm7261_vm4, %v7260_v2, 0 }
 0x5f4   : > { %v5580_v61 = vsel %vm5578_vm13, %v8505_v34, %v5579_v52  ;;  %v7121_v22 = vor.u32 4788187, %v7120_v3  ;;  %v7129_v10 = vsel %vm7044_vm15, %v7128_v31, %v13441_v5  ;;  %v5645_v49 = vsel %vm5643_vm6, %v5644_v21, %v13510_v33 }
 0x5f5   : > { %v5584_v46 = vsel %vm5577_vm14, %v5580_v61, %v5583_v1  ;;  %v7264_v25 = vand.u32 31, %v7262_v56  ;;  %v7124_v28 = vcvt.s32.f32 %v7117_v62  ;;  %v5646_v41 = vadd.s32 %v5645_v49, %v5641_v38 }
 0x5f6   : > { %v5585_v6 = vsel %vm5574_vm2, nan, %v5584_v46  ;;  %v7122_v50 = vand.u32 2147483647, %v7121_v22  ;;  %vm13538_vm5 = vcmp.le.f32.partialorder %v7042_v0, 0.7853982  ;;  %v7258_v55 = vor.u32 8388608, %v13523_v16 }
 0x5f7   : > { %5807 = vst [vmem:[%s9106_s21 + $0x1b0] sm:$0xff] %v5585_v6  ;;  %v7265_v45 = vsub.s32 32, %v7264_v25  ;;  %v5984_v5 = vmul.f32 %v5964_v26, %v8807_v48  ;;  %v7131_v54 = vsel %vm13538_vm5, 0, %v7129_v10  ;;  %v5647_v24 = vadd.s32 536870912, %v5646_v41 }
 0x5f8   : > { %v7125_v12 = vmul.f32 %v7124_v28, %v7122_v50  ;;  %v7267_v18 = vshll.u32 %v8606_v23, %v7264_v25  ;;  %v7270_v34 = vshll.u32 %v14528_v43, %v7264_v25  ;;  %v7263_v11 = vshrl.u32 %v7262_v56, 5 }
 0x5f9   : > { %v7268_v33 = vshrl.u32 %v14528_v43, %v7265_v45  ;;  %v7271_v0 = vshrl.u32 %v14529_v58, %v7265_v45  ;;  %v7274_v37 = vshrl.u32 %v14530_v14, %v7265_v45  ;;  %v5648_v51 = vshrl.u32 %v5647_v24, 30 }
 0x5fa   : > { %v7126_v42 = vxor.u32 2147483648, %v7125_v12  ;;  %v7277_v2 = vshrl.u32 %v14534_v53, %v7265_v45  ;;  %v7280_v17 = vshrl.u32 %v14535_v15, %v7265_v45  ;;  %v7273_v31 = vshll.u32 %v14529_v58, %v7264_v25 }
 0x5fb   : > { %v7276_v59 = vshll.u32 %v14530_v14, %v7264_v25  ;;  %v7279_v52 = vshll.u32 %v14534_v53, %v7264_v25  ;;  %v5649_v3 = vshll.u32 %v5648_v51, 30  ;;  %v7269_v1 = vor.u32 %v7268_v33, %v7267_v18 }
 0x5fc   : > { %v7127_v62 = vsel %vm7044_vm15, %v7126_v42, %v7125_v12  ;;  %v7272_v21 = vor.u32 %v7271_v0, %v7270_v34  ;;  %v7275_v61 = vor.u32 %v7274_v37, %v7273_v31  ;;  %v7135_v56 = vadd.s32 3, %v7131_v54 }
 0x5fd   : > { %v7130_v16 = vsel %vm13538_vm5, %v13299_v63, %v7127_v62  ;;  %v7278_v22 = vor.u32 %v7277_v2, %v7276_v59  ;;  %v7281_v38 = vor.u32 %v7280_v17, %v7279_v52  ;;  %v13561_v26 = vsub.s32 %v5646_v41, %v5649_v3 }
 0x5fe   : > { %8508 = vcosq.f32 %v7130_v16  ;;  %v13564_v46 = vadd.f32 %v5984_v5, %v13451_v44  ;;  %v5672_v10 = vsub.s32 4, %v5648_v51  ;;  %v7266_v49 = vshrl.u32 %v8606_v23, %v7265_v45 }
 0x5ff   : > { %8510 = vsinq.f32 %v7130_v16  ;;  %vm7282_vm7 = vcmp.lt.s32.totalorder %v7263_v11, 1  ;;  %v5652_v25 = vsub.s32 0, %v13561_v26  ;;  %vm7284_vm8 = vcmp.lt.s32.totalorder %v7263_v11, 3 }
 0x600   : > { %vm7285_vm9 = vcmp.lt.s32.totalorder %v7263_v11, 4  ;;  %v7290_v6 = vsel %vm7282_vm7, %v7269_v1, %v7272_v21  ;;  %v7294_v13 = vsel %vm7282_vm7, %v7272_v21, %v7275_v61  ;;  %vm7283_vm10 = vcmp.lt.s32.totalorder %v7263_v11, 2 }
 0x601   : > { %v7287_v50 = vsel %vm7285_vm9, %v7275_v61, 2102212464  ;;  %v7291_v28 = vsel %vm7285_vm9, %v7278_v22, 920167782  ;;  %v7295_v41 = vsel %vm7285_vm9, %v7281_v38, 1326507024  ;;  %v7935_v12 = vmin.u32 %v5652_v25, %v13561_v26 }
 0x602   : > { %v7292_v44 = vsel %vm7284_vm8, %v7275_v61, %v7291_v28  ;;  %v7296_v5 = vsel %vm7284_vm8, %v7278_v22, %v7295_v41  ;;  %v7136_v45 = vand.u32 3, %v7135_v56  ;;  %v7298_v18 = vshll.u32 %v7258_v55, 8 }
 0x603   : > { %v7293_v54 = vsel %vm7283_vm10, %v7290_v6, %v7292_v44  ;;  %v7297_v24 = vsel %vm7283_vm10, %v7294_v13, %v7296_v5  ;;  %vm5588_vm12 = vcmp.lt.s32.totalorder %v13394_v30, 0  ;;  %v5654_v33 = vclz %v7935_v12 }
 0x604   : > { %v7286_v34 = vsel %vm7282_vm7, %v7266_v49, %v7269_v1  ;;  %v7288_v0 = vsel %vm7284_vm8, %v7272_v21, %v7287_v50  ;;  %v13578_v37 = vmul.u32.u64.low %v7298_v18, %v7297_v24  ;;  %v13579_v42 = vmul.u32.u64.high %v7298_v18, %v7297_v24, %v13578_v37  ;;  %v5908_v49 = vpop.permute.xlu1 %5907 }
 0x605   : > { %v13581_v2 = vmul.u32.u64.low %v7298_v18, %v7293_v54  ;;  %v13582_v17 = vmul.u32.u64.high %v7298_v18, %v7293_v54, %v13581_v2  ;;  %v5876_v31 = vmul.f32 %v12731_v57, %v8794_v39  ;;  %v7936_v59 = vadd.s32 4294967294, %v5654_v33 }
 0x606   : > { %v5673_v55 = vsel %vm5588_vm12, %v5672_v10, %v5648_v51  ;;  %v7461_v52 = vand.u32 2139095040, %v13564_v46  ;;  %vm7137_vm11 = vcmp.lt.s32.totalorder %v7136_v45, 2  ;;  %vm7138_vm13 = vcmp.eq.s32.totalorder %v7136_v45, 0 }
 0x607   : > { %vm7141_vm14 = vcmp.eq.s32.totalorder %v7136_v45, 2  ;;  %vm13592_vm15 = vcmp.le.f32.partialorder %v5586_v4, 0.7853982  ;;  %v5642_v1 = vadd.s32 %v13509_v8, %v13507_v60  ;;  %vm7937_vm0 = vcmp.lt.s32.totalorder %v7936_v59, 0 }
 0x608   : > { %v8509_v3 = vpop.eup %8508  ;;  %v7289_v57 = vsel %vm7283_vm10, %v7286_v34, %v7288_v0  ;;  %v7462_v21 = vshrl.u32 %v7461_v52, 23  ;;  %v5657_v61 = vsel %vm7937_vm0, 0, %v7936_v59  ;;  %v5675_v22 = vsel %vm13592_vm15, 0, %v5673_v55  ;;  %v5916_v45 = vpop.permute.xlu1 %5915 }
 0x609   : > { %v8511_v51 = vpop.eup %8510  ;;  %v7142_v16 = vxor.u32 2147483648, %v8509_v3  ;;  %v7458_v38 = vand.u32 2147483647, %v13564_v46  ;;  %v5658_v56 = vsub.s32 32, %v5657_v61  ;;  %v5662_v10 = vsub.s32 4294967266, %v5657_v61 }
 0x60a   : > { %v7139_v4 = vxor.u32 2147483648, %v8511_v51  ;;  %vm7307_vm1 = vc.u32 %v13579_v42, %v13581_v2  ;;  %v7305_v8 = vmul.u32 %v7298_v18, %v7289_v57  ;;  %v7308_v11 = vadd.s32 1, %v13582_v17 }
 0x60b   : > { %v7143_v60 = vsel %vm7141_vm14, %v7142_v16, %v8511_v51  ;;  %v7998_v25 = vadd.s32 4294967169, %v7462_v21  ;;  %v5659_v50 = vshll.u32 %v13561_v26, %v5657_v61  ;;  %v5660_v28 = vshrl.u32 %v5642_v1, %v5658_v56 }
 0x60c   : > { %v7140_v6 = vsel %vm7138_vm13, %v8509_v3, %v7139_v4  ;;  %v5663_v13 = vadd.s32 127, %v5662_v10  ;;  %vm7134_vm2 = vweird.f32 %v13299_v63  ;;  %v7309_v12 = vsel %vm7307_vm1, %v7308_v11, %v13582_v17 }
 0x60d   : > { %v7144_v41 = vsel %vm7137_vm11, %v7140_v6, %v7143_v60  ;;  %v7468_v44 = vadd.s32 1, %v7998_v25  ;;  %v5661_v54 = vor.u32 %v5660_v28, %v5659_v50  ;;  %v7310_v18 = vadd.s32 %v7309_v12, %v7305_v8 }
 0x60e   : > { %v7145_v5 = vsel %vm7134_vm2, nan, %v7144_v41  ;;  %v5664_v24 = vshll.u32 %v5663_v13, 23  ;;  %v5679_v33 = vadd.s32 3, %v5675_v22  ;;  %v5970_v34 = vmul.f32 %v5908_v49, %v8807_v48 }
 0x60f   : > { %7676 = vst [vmem:[%s9106_s21 + $0x158] sm:$0xff] %v7145_v5  ;;  %vm7469_vm3 = vcmp.gt.s32.totalorder %v7468_v44, 0  ;;  %v7311_v26 = vadd.s32 536870912, %v7310_v18  ;;  %v7465_v37 = vand.u32 8388607, %v7458_v38  ;;  %v5890_v17 = vadd.f32 %v13446_v7, %v8804_v47 }
 0x610   : > { %v5665_v0 = vor.u32 4788187, %v5664_v24  ;;  %v7470_v63 = vsel %vm7469_vm3, %v7468_v44, 0  ;;  %v13619_v59 = vmul.f32 %v11906_v20, %v8794_v39  ;;  %v13623_v55 = vmul.f32 %v11926_v32, %v8794_v39 }
 0x611   : > { %v7472_v52 = vand.u32 31, %v7470_v63  ;;  %v13626_v3 = vadd.f32 %v5876_v31, %v8804_v47  ;;  %v5668_v57 = vcvt.s32.f32 %v5661_v54  ;;  %v13628_v21 = vshrl.u32 %v7311_v26, 30 }
 0x612   : > { %v5666_v1 = vand.u32 2147483647, %v5665_v0  ;;  %v13630_v51 = vand.u32 3, %v5679_v33  ;;  %v13632_v7 = vadd.f32 %v5970_v34, %v5890_v17  ;;  %v13635_v20 = vmul.f32 %v5916_v45, %v8807_v48 }
 0x613   : > { %v7473_v16 = vsub.s32 32, %v7472_v52  ;;  %v7313_v32 = vshll.u32 %v13628_v21, 30  ;;  %v7466_v22 = vor.u32 8388608, %v7465_v37  ;;  %v7475_v4 = vshll.u32 %v8606_v23, %v7472_v52 }
 0x614   : > { %v5669_v61 = vmul.f32 %v5668_v57, %v5666_v1  ;;  %v7478_v56 = vshll.u32 %v14528_v43, %v7472_v52  ;;  %v7481_v11 = vshll.u32 %v14529_v58, %v7472_v52  ;;  %v7471_v6 = vshrl.u32 %v7470_v63, 5 }
 0x615   : > { %v7476_v31 = vshrl.u32 %v14528_v43, %v7473_v16  ;;  %v7479_v10 = vshrl.u32 %v14529_v58, %v7473_v16  ;;  %v7482_v49 = vshrl.u32 %v14530_v14, %v7473_v16  ;;  %v13643_v8 = vsub.s32 %v7310_v18, %v7313_v32 }
 0x616   : > { %v5670_v60 = vxor.u32 2147483648, %v5669_v61  ;;  %v7485_v25 = vshrl.u32 %v14534_v53, %v7473_v16  ;;  %v7484_v28 = vshll.u32 %v14530_v14, %v7472_v52  ;;  %v6005_v13 = vand.u32 2139095040, %v13632_v7 }
 0x617   : > { %v7477_v50 = vor.u32 %v7476_v31, %v7475_v4  ;;  %v7316_v12 = vsub.s32 0, %v13643_v8  ;;  %v7480_v44 = vor.u32 %v7479_v10, %v7478_v56  ;;  %v7483_v5 = vor.u32 %v7482_v49, %v7481_v11 }
 0x618   : > { %v5671_v41 = vsel %vm5588_vm12, %v5670_v60, %v5669_v61  ;;  %v7486_v24 = vor.u32 %v7485_v25, %v7484_v28  ;;  %v7487_v18 = vshll.u32 %v14534_v53, %v7472_v52  ;;  %v7488_v33 = vshrl.u32 %v14535_v15, %v7473_v16 }
 0x619   : > { %v5674_v54 = vsel %vm13592_vm15, %v13394_v30, %v5671_v41  ;;  %v7306_v34 = vadd.s32 %v13581_v2, %v13579_v42  ;;  %v7991_v0 = vmin.u32 %v7316_v12, %v13643_v8  ;;  %v13660_v26 = vshll.u32 %v7466_v22, 8 }
 0x61a   : > { %8512 = vcosq.f32 %v5674_v54  ;;  %v7474_v37 = vshrl.u32 %v8606_v23, %v7473_v16  ;;  %v7489_v63 = vor.u32 %v7488_v33, %v7487_v18  ;;  %v6006_v45 = vshrl.u32 %v6005_v13, 23 }
 0x61b   : > { %8514 = vsinq.f32 %v5674_v54  ;;  %vm7252_vm4 = vcmp.lt.s32.totalorder %v13430_v40, 0  ;;  %v7318_v62 = vclz %v7991_v0  ;;  %vm7490_vm6 = vcmp.lt.s32.totalorder %v7471_v6, 1 }
 0x61c   : > { %vm7491_vm5 = vcmp.lt.s32.totalorder %v7471_v6, 2  ;;  %vm7493_vm7 = vcmp.lt.s32.totalorder %v7471_v6, 4  ;;  %vm7492_vm8 = vcmp.lt.s32.totalorder %v7471_v6, 3  ;;  %v7498_v52 = vsel %vm7490_vm6, %v7477_v50, %v7480_v44 }
 0x61d   : > { %v7495_v17 = vsel %vm7493_vm7, %v7483_v5, 2102212464  ;;  %v7499_v1 = vsel %vm7493_vm7, %v7486_v24, 920167782  ;;  %v7992_v42 = vadd.s32 4294967294, %v7318_v62  ;;  %v7494_v2 = vsel %vm7490_vm6, %v7474_v37, %v7477_v50 }
 0x61e   : > { %v7500_v57 = vsel %vm7492_vm8, %v7483_v5, %v7499_v1  ;;  %v7502_v61 = vsel %vm7490_vm6, %v7480_v44, %v7483_v5  ;;  %vm5682_vm9 = vcmp.eq.s32.totalorder %v13630_v51, 0  ;;  %vm13668_vm10 = vcmp.le.f32.partialorder %v7250_v36, 0.7853982 }
 0x61f   : > { %v7496_v32 = vsel %vm7492_vm8, %v7480_v44, %v7495_v17  ;;  %v7501_v22 = vsel %vm7491_vm5, %v7498_v52, %v7500_v57  ;;  %v7503_v4 = vsel %vm7493_vm7, %v7489_v63, 1326507024  ;;  %v7942_v31 = vadd.s32 4294967169, %v6006_v45 }
 0x620   : > { %vm5681_vm12 = vcmp.lt.s32.totalorder %v13630_v51, 2  ;;  %vm7993_vm11 = vcmp.lt.s32.totalorder %v7992_v42, 0  ;;  %v7504_v56 = vsel %vm7492_vm8, %v7486_v24, %v7503_v4  ;;  %v7336_v60 = vsub.s32 4, %v13628_v21 }
 0x621   : > { %v13677_v10 = vmul.u32.u64.low %v13660_v26, %v7501_v22  ;;  %v13678_v49 = vmul.u32.u64.high %v13660_v26, %v7501_v22, %v13677_v10  ;;  %v7321_v36 = vsel %vm7993_vm11, 0, %v7992_v42  ;;  %v7505_v11 = vsel %vm7491_vm5, %v7502_v61, %v7504_v56 }
 0x622   : > { %v6012_v25 = vadd.s32 1, %v7942_v31  ;;  %v7322_v50 = vsub.s32 32, %v7321_v36  ;;  %v7326_v28 = vsub.s32 4294967266, %v7321_v36  ;;  %v7497_v13 = vsel %vm7491_vm5, %v7494_v2, %v7496_v32 }
 0x623   : > { %v6002_v41 = vand.u32 2147483647, %v13632_v7  ;;  %v7323_v12 = vshll.u32 %v13643_v8, %v7321_v36  ;;  %v13687_v44 = vmul.u32.u64.low %v13660_v26, %v7505_v11  ;;  %v13688_v5 = vmul.u32.u64.high %v13660_v26, %v7505_v11, %v13687_v44 }
 0x624   : > { %vm6013_vm13 = vcmp.gt.s32.totalorder %v6012_v25, 0  ;;  %v8513_v54 = vpop.eup %8512  ;;  %v7324_v24 = vshrl.u32 %v7306_v34, %v7322_v50  ;;  %v7327_v18 = vadd.s32 127, %v7326_v28  ;;  %v7516_v33 = vadd.s32 1, %v13678_v49 }
 0x625   : > { %v6014_v0 = vsel %vm6013_vm13, %v6012_v25, 0  ;;  %v8515_v37 = vpop.eup %8514  ;;  %vm5685_vm14 = vcmp.eq.s32.totalorder %v13630_v51, 2  ;;  %v5686_v6 = vxor.u32 2147483648, %v8513_v54  ;;  %v7337_v63 = vsel %vm7252_vm4, %v7336_v60, %v13628_v21 }
 0x626   : > { %v6016_v8 = vand.u32 31, %v6014_v0  ;;  %v5683_v45 = vxor.u32 2147483648, %v8515_v37  ;;  %v7325_v62 = vor.u32 %v7324_v24, %v7323_v12  ;;  %v7328_v17 = vshll.u32 %v7327_v18, 23 }
 0x627   : > { %v13697_v52 = vand.u32 8388607, %v6002_v41  ;;  %v5687_v34 = vsel %vm5685_vm14, %v5686_v6, %v8515_v37  ;;  %v7513_v1 = vmul.u32 %v13660_v26, %v7497_v13  ;;  %vm7515_vm15 = vc.u32 %v13688_v5, %v13677_v10 }
 0x628   : > { %v6017_v42 = vsub.s32 32, %v6016_v8  ;;  %v5684_v2 = vsel %vm5682_vm9, %v8513_v54, %v5683_v45  ;;  %v7329_v21 = vor.u32 4788187, %v7328_v17  ;;  %v7339_v57 = vsel %vm13668_vm10, 0, %v7337_v63 }
 0x629   : > { %v7517_v61 = vsel %vm7515_vm15, %v7516_v33, %v13678_v49  ;;  %vm5678_vm0 = vweird.f32 %v13394_v30  ;;  %v5688_v32 = vsel %vm5681_vm12, %v5684_v2, %v5687_v34  ;;  %v13712_v26 = vadd.f32 %v13635_v20, %v13626_v3 }
 0x62a   : > { %v7518_v22 = vadd.s32 %v7517_v61, %v7513_v1  ;;  %v5689_v4 = vsel %vm5678_vm0, nan, %v5688_v32  ;;  %v7330_v31 = vand.u32 2147483647, %v7329_v21  ;;  %v7332_v56 = vcvt.s32.f32 %v7325_v62 }
 0x62b   : > { %v6010_v36 = vor.u32 8388608, %v13697_v52  ;;  %5808 = vst [vmem:[%s9106_s21 + $0x1d0] sm:$0xff] %v5689_v4  ;;  %v7343_v60 = vadd.s32 3, %v7339_v57  ;;  %v6020_v49 = vshrl.u32 %v14528_v43, %v6017_v42  ;;  %v6023_v30 = vshrl.u32 %v14529_v58, %v6017_v42 }
 0x62c   : > { %v7519_v11 = vadd.s32 536870912, %v7518_v22  ;;  %v7333_v25 = vmul.f32 %v7332_v56, %v7330_v31  ;;  %v6015_v51 = vshrl.u32 %v6014_v0, 5  ;;  %v6026_v50 = vshrl.u32 %v14530_v14, %v6017_v42 }
 0x62d   : > { %v6029_v28 = vshrl.u32 %v14534_v53, %v6017_v42  ;;  %v6019_v20 = vshll.u32 %v8606_v23, %v6016_v8  ;;  %v6022_v13 = vshll.u32 %v14528_v43, %v6016_v8  ;;  %v6025_v12 = vshll.u32 %v14529_v58, %v6016_v8 }
 0x62e   : > { %v7520_v3 = vshrl.u32 %v7519_v11, 30  ;;  %v7334_v44 = vxor.u32 2147483648, %v7333_v25  ;;  %v6028_v54 = vshll.u32 %v14530_v14, %v6016_v8  ;;  %v6031_v24 = vshll.u32 %v14534_v53, %v6016_v8 }
 0x62f   : > { %v6032_v18 = vshrl.u32 %v14535_v15, %v6017_v42  ;;  %v13726_v33 = vand.u32 3, %v7343_v60  ;;  %v6021_v37 = vor.u32 %v6020_v49, %v6019_v20  ;;  %v6024_v6 = vor.u32 %v6023_v30, %v6022_v13 }
 0x630   : > { %v7521_v0 = vshll.u32 %v7520_v3, 30  ;;  %v7335_v63 = vsel %vm7252_vm4, %v7334_v44, %v7333_v25  ;;  %v6027_v45 = vor.u32 %v6026_v50, %v6025_v12  ;;  %v6030_v62 = vor.u32 %v6029_v28, %v6028_v54 }
 0x631   : > { %v6033_v17 = vor.u32 %v6032_v18, %v6031_v24  ;;  %v7338_v52 = vsel %vm13668_vm10, %v13430_v40, %v7335_v63  ;;  %v6018_v8 = vshrl.u32 %v8606_v23, %v6017_v42  ;;  %v6213_v1 = vand.u32 2139095040, %v13712_v26 }
 0x632   : > { %v13733_v34 = vsub.s32 %v7518_v22, %v7521_v0  ;;  %8516 = vcosq.f32 %v7338_v52  ;;  %v7544_v2 = vsub.s32 4, %v7520_v3  ;;  %vm6034_vm1 = vcmp.lt.s32.totalorder %v6015_v51, 1 }
 0x633   : > { %vm6036_vm2 = vcmp.lt.s32.totalorder %v6015_v51, 3  ;;  %8518 = vsinq.f32 %v7338_v52  ;;  %vm6037_vm3 = vcmp.lt.s32.totalorder %v6015_v51, 4  ;;  %v6042_v57 = vsel %vm6034_vm1, %v6021_v37, %v6024_v6 }
 0x634   : > { %v7524_v21 = vsub.s32 0, %v13733_v34  ;;  %v6039_v61 = vsel %vm6037_vm3, %v6027_v45, 2102212464  ;;  %v6043_v32 = vsel %vm6037_vm3, %v6030_v62, 920167782  ;;  %v6046_v16 = vsel %vm6034_vm1, %v6024_v6, %v6027_v45 }
 0x635   : > { %v6047_v22 = vsel %vm6037_vm3, %v6033_v17, 1326507024  ;;  %vm6035_vm4 = vcmp.lt.s32.totalorder %v6015_v51, 2  ;;  %v6044_v42 = vsel %vm6036_vm2, %v6027_v45, %v6043_v32  ;;  %v6050_v11 = vshll.u32 %v6010_v36, 8 }
 0x636   : > { %v7999_v4 = vmin.u32 %v7524_v21, %v13733_v34  ;;  %v6048_v31 = vsel %vm6036_vm2, %v6030_v62, %v6047_v22  ;;  %v6045_v56 = vsel %vm6035_vm4, %v6042_v57, %v6044_v42  ;;  %v6214_v49 = vshrl.u32 %v6213_v1, 23 }
 0x637   : > { %v6049_v60 = vsel %vm6035_vm4, %v6046_v16, %v6048_v31  ;;  %vm7460_vm6 = vcmp.lt.s32.totalorder %v13564_v46, 0  ;;  %v6038_v25 = vsel %vm6034_vm1, %v6018_v8, %v6021_v37  ;;  %v6040_v50 = vsel %vm6036_vm2, %v6024_v6, %v6039_v61  ;;  %v5920_v6 = vpop.permute.xlu1 %5919 }
 0x638   : > { %v7526_v30 = vclz %v7999_v4  ;;  %v13748_v28 = vmul.u32.u64.low %v6050_v11, %v6049_v60  ;;  %v13749_v20 = vmul.u32.u64.high %v6050_v11, %v6049_v60, %v13748_v28  ;;  %vm7342_vm5 = vweird.f32 %v13430_v40 }
 0x639   : > { %v13751_v13 = vmul.u32.u64.low %v6050_v11, %v6045_v56  ;;  %v13752_v12 = vmul.u32.u64.high %v6050_v11, %v6045_v56, %v13751_v13  ;;  %vm13758_vm7 = vcmp.le.f32.partialorder %v7458_v38, 0.7853982  ;;  %v7545_v54 = vsel %vm7460_vm6, %v7544_v2, %v7520_v3 }
 0x63a   : > { %v8000_v44 = vadd.s32 4294967294, %v7526_v30  ;;  %v7950_v24 = vadd.s32 4294967169, %v6214_v49  ;;  %vm7345_vm8 = vcmp.lt.s32.totalorder %v13726_v33, 2  ;;  %vm7346_vm9 = vcmp.eq.s32.totalorder %v13726_v33, 0 }
 0x63b   : > { %v6041_v18 = vsel %vm6035_vm4, %v6038_v25, %v6040_v50  ;;  %v6210_v0 = vand.u32 2147483647, %v13712_v26  ;;  %vm7349_vm10 = vcmp.eq.s32.totalorder %v13726_v33, 2  ;;  %v7514_v38 = vadd.s32 %v13677_v10, %v13688_v5 }
 0x63c   : > { %vm8001_vm12 = vcmp.lt.s32.totalorder %v8000_v44, 0  ;;  %v6220_v37 = vadd.s32 1, %v7950_v24  ;;  %v8517_v63 = vpop.eup %8516  ;;  %v7547_v3 = vsel %vm13758_vm7, 0, %v7545_v54  ;;  %vm6059_vm11 = vc.u32 %v13749_v20, %v13751_v13 }
 0x63d   : > { %v7529_v45 = vsel %vm8001_vm12, 0, %v8000_v44  ;;  %v6060_v51 = vadd.s32 1, %v13752_v12  ;;  %v8519_v62 = vpop.eup %8518  ;;  %v7350_v17 = vxor.u32 2147483648, %v8517_v63  ;;  %v6057_v1 = vmul.u32 %v6050_v11, %v6041_v18  ;;  %v5928_v11 = vpop.permute.xlu1 %5927 }
 0x63e   : > { %v7530_v52 = vsub.s32 32, %v7529_v45  ;;  %v7534_v8 = vsub.s32 4294967266, %v7529_v45  ;;  %v7347_v2 = vxor.u32 2147483648, %v8519_v62  ;;  %v7531_v10 = vshll.u32 %v13733_v34, %v7529_v45 }
 0x63f   : > { %v6061_v5 = vsel %vm6059_vm11, %v6060_v51, %v13752_v12  ;;  %vm6221_vm13 = vcmp.gt.s32.totalorder %v6220_v37, 0  ;;  %v7351_v21 = vsel %vm7349_vm10, %v7350_v17, %v8519_v62  ;;  %v7551_v22 = vadd.s32 3, %v7547_v3 }
 0x640   : > { %v7532_v57 = vshrl.u32 %v7514_v38, %v7530_v52  ;;  %v7535_v61 = vadd.s32 127, %v7534_v8  ;;  %v6062_v32 = vadd.s32 %v6061_v5, %v6057_v1  ;;  %v7348_v16 = vsel %vm7346_vm9, %v8517_v63, %v7347_v2 }
 0x641   : > { %v6217_v4 = vand.u32 8388607, %v6210_v0  ;;  %v6222_v42 = vsel %vm6221_vm13, %v6220_v37, 0  ;;  %v7352_v34 = vsel %vm7345_vm8, %v7348_v16, %v7351_v21  ;;  %v5893_v49 = vadd.f32 %v13619_v59, %v8804_v47 }
 0x642   : > { %v7533_v31 = vor.u32 %v7532_v57, %v7531_v10  ;;  %v7536_v56 = vshll.u32 %v7535_v61, 23  ;;  %v6063_v60 = vadd.s32 536870912, %v6062_v32  ;;  %v7353_v30 = vsel %vm7342_vm5, nan, %v7352_v34 }
 0x643   : > { %v6224_v25 = vand.u32 31, %v6222_v42  ;;  %v5973_v50 = vmul.f32 %v5920_v6, %v8807_v48  ;;  %v13793_v28 = vadd.f32 %v13623_v55, %v8804_v47  ;;  %v13797_v33 = vmul.f32 %v11945_v27, %v8794_v39  ;;  %7678 = vst [vmem:[%s9106_s21 + $0x198] sm:$0xff] %v7353_v30 }
 0x644   : > { %v7537_v12 = vor.u32 4788187, %v7536_v56  ;;  %v13800_v44 = vshrl.u32 %v6063_v60, 30  ;;  %v13804_v59 = vmul.f32 %v11961_v35, %v8794_v39  ;;  %v6218_v40 = vor.u32 8388608, %v6217_v4 }
 0x645   : > { %v6225_v54 = vsub.s32 32, %v6224_v25  ;;  %v13807_v24 = vmul.f32 %v5928_v11, %v8807_v48  ;;  %v7540_v55 = vcvt.s32.f32 %v7533_v31  ;;  %v13809_v38 = vand.u32 3, %v7551_v22 }
 0x646   : > { %v7538_v18 = vand.u32 2147483647, %v7537_v12  ;;  %v6065_v27 = vshll.u32 %v13800_v44, 30  ;;  %v13815_v45 = vadd.f32 %v5973_v50, %v5893_v49  ;;  %v6227_v51 = vshll.u32 %v8606_v23, %v6224_v25 }
 0x647   : > { %v6228_v37 = vshrl.u32 %v14528_v43, %v6225_v54  ;;  %v6231_v6 = vshrl.u32 %v14529_v58, %v6225_v54  ;;  %v6234_v63 = vshrl.u32 %v14530_v14, %v6225_v54  ;;  %v6237_v62 = vshrl.u32 %v14534_v53, %v6225_v54 }
 0x648   : > { %v7541_v35 = vmul.f32 %v7540_v55, %v7538_v18  ;;  %v13817_v3 = vsub.s32 %v6062_v32, %v6065_v27  ;;  %v6223_v17 = vshrl.u32 %v6222_v42, 5  ;;  %v6230_v52 = vshll.u32 %v14528_v43, %v6224_v25 }
 0x649   : > { %v6233_v8 = vshll.u32 %v14529_v58, %v6224_v25  ;;  %v13823_v1 = vshll.u32 %v6218_v40, 8  ;;  %v6229_v5 = vor.u32 %v6228_v37, %v6227_v51  ;;  %v6236_v21 = vshll.u32 %v14530_v14, %v6224_v25 }
 0x64a   : > { %v7542_v2 = vxor.u32 2147483648, %v7541_v35  ;;  %v6068_v10 = vsub.s32 0, %v13817_v3  ;;  %v6232_v57 = vor.u32 %v6231_v6, %v6230_v52  ;;  %v6239_v32 = vshll.u32 %v14534_v53, %v6224_v25 }
 0x64b   : > { %v6235_v61 = vor.u32 %v6234_v63, %v6233_v8  ;;  %v6240_v16 = vshrl.u32 %v14535_v15, %v6225_v54  ;;  %vm6004_vm14 = vcmp.lt.s32.totalorder %v13632_v7, 0  ;;  %v6238_v42 = vor.u32 %v6237_v62, %v6236_v21 }
 0x64c   : > { %v7543_v22 = vsel %vm7460_vm6, %v7542_v2, %v7541_v35  ;;  %v7943_v4 = vmin.u32 %v6068_v10, %v13817_v3  ;;  %v6317_v34 = vand.u32 2139095040, %v13815_v45  ;;  %v6088_v56 = vsub.s32 4, %v13800_v44 }
 0x64d   : > { %v7546_v31 = vsel %vm13758_vm7, %v13564_v46, %v7543_v22  ;;  %v6226_v60 = vshrl.u32 %v8606_v23, %v6225_v54  ;;  %v6241_v11 = vor.u32 %v6240_v16, %v6239_v32  ;;  %vm6242_vm15 = vcmp.lt.s32.totalorder %v6223_v17, 1 }
 0x64e   : > { %8520 = vcosq.f32 %v7546_v31  ;;  %v6070_v49 = vclz %v7943_v4  ;;  %vm6245_vm0 = vcmp.lt.s32.totalorder %v6223_v17, 4  ;;  %vm13841_vm1 = vcmp.le.f32.partialorder %v6002_v41, 0.7853982 }
 0x64f   : > { %8522 = vsinq.f32 %v7546_v31  ;;  %vm6243_vm2 = vcmp.lt.s32.totalorder %v6223_v17, 2  ;;  %v6247_v25 = vsel %vm6245_vm0, %v6235_v61, 2102212464  ;;  %v6250_v36 = vsel %vm6242_vm15, %v6229_v5, %v6232_v57 }
 0x650   : > { %v7944_v50 = vadd.s32 4294967294, %v6070_v49  ;;  %vm6244_vm3 = vcmp.lt.s32.totalorder %v6223_v17, 3  ;;  %v6251_v12 = vsel %vm6245_vm0, %v6238_v42, 920167782  ;;  %v6254_v40 = vsel %vm6242_vm15, %v6232_v57, %v6235_v61 }
 0x651   : > { %v6246_v54 = vsel %vm6242_vm15, %v6226_v60, %v6229_v5  ;;  %v6252_v18 = vsel %vm6244_vm3, %v6235_v61, %v6251_v12  ;;  %v6255_v55 = vsel %vm6245_vm0, %v6241_v11, 1326507024  ;;  %v6318_v27 = vshrl.u32 %v6317_v34, 23 }
 0x652   : > { %vm7945_vm4 = vcmp.lt.s32.totalorder %v7944_v50, 0  ;;  %v6248_v37 = vsel %vm6244_vm3, %v6232_v57, %v6247_v25  ;;  %v6253_v6 = vsel %vm6243_vm2, %v6250_v36, %v6252_v18  ;;  %v6256_v63 = vsel %vm6244_vm3, %v6238_v42, %v6255_v55 }
 0x653   : > { %v6073_v41 = vsel %vm7945_vm4, 0, %v7944_v50  ;;  %v6257_v35 = vsel %vm6243_vm2, %v6254_v40, %v6256_v63  ;;  %v13848_v51 = vmul.u32.u64.low %v13823_v1, %v6253_v6  ;;  %v13849_v62 = vmul.u32.u64.high %v13823_v1, %v6253_v6, %v13848_v51 }
 0x654   : > { %vm7553_vm6 = vcmp.lt.s32.totalorder %v13809_v38, 2  ;;  %v6058_v52 = vadd.s32 %v13751_v13, %v13749_v20  ;;  %v6074_v8 = vsub.s32 32, %v6073_v41  ;;  %v6078_v2 = vsub.s32 4294967266, %v6073_v41 }
 0x655   : > { %v7954_v10 = vadd.s32 4294967169, %v6318_v27  ;;  %vm7550_vm5 = vweird.f32 %v13564_v46  ;;  %v6089_v5 = vsel %vm6004_vm14, %v6088_v56, %v13800_v44  ;;  %v6249_v21 = vsel %vm6243_vm2, %v6246_v54, %v6248_v37 }
 0x656   : > { %v13861_v57 = vmul.u32.u64.low %v13823_v1, %v6257_v35  ;;  %v13862_v61 = vmul.u32.u64.high %v13823_v1, %v6257_v35, %v13861_v57  ;;  %v6075_v32 = vshll.u32 %v13817_v3, %v6073_v41  ;;  %v6076_v16 = vshrl.u32 %v6058_v52, %v6074_v8 }
 0x657   : > { %v6079_v22 = vadd.s32 127, %v6078_v2  ;;  %v6324_v20 = vadd.s32 1, %v7954_v10  ;;  %vm7554_vm7 = vcmp.eq.s32.totalorder %v13809_v38, 0  ;;  %v6268_v13 = vadd.s32 1, %v13849_v62 }
 0x658   : > { %v6314_v4 = vand.u32 2147483647, %v13815_v45  ;;  %v13870_v44 = vadd.f32 %v13807_v24, %v13793_v28  ;;  %v8521_v17 = vpop.eup %8520  ;;  %v6077_v42 = vor.u32 %v6076_v16, %v6075_v32  ;;  %v6091_v31 = vsel %vm13841_vm1, 0, %v6089_v5 }
 0x659   : > { %v6080_v34 = vshll.u32 %v6079_v22, 23  ;;  %vm6325_vm8 = vcmp.gt.s32.totalorder %v6324_v20, 0  ;;  %v8523_v3 = vpop.eup %8522  ;;  %v7558_v56 = vxor.u32 2147483648, %v8521_v17  ;;  %v6265_v60 = vmul.u32 %v13823_v1, %v6249_v21 }
 0x65a   : > { %vm6267_vm9 = vc.u32 %v13862_v61, %v13848_v51  ;;  %v6326_v11 = vsel %vm6325_vm8, %v6324_v20, 0  ;;  %v7555_v49 = vxor.u32 2147483648, %v8523_v3  ;;  %vm7557_vm10 = vcmp.eq.s32.totalorder %v13809_v38, 2 }
 0x65b   : > { %v6081_v28 = vor.u32 4788187, %v6080_v34  ;;  %v6269_v24 = vsel %vm6267_vm9, %v6268_v13, %v13849_v62  ;;  %v7559_v25 = vsel %vm7557_vm10, %v7558_v56, %v8523_v3  ;;  %v6321_v50 = vand.u32 8388607, %v6314_v4 }
 0x65c   : > { %v6270_v36 = vadd.s32 %v6269_v24, %v6265_v60  ;;  %v6328_v12 = vand.u32 31, %v6326_v11  ;;  %v7556_v1 = vsel %vm7554_vm7, %v8521_v17, %v7555_v49  ;;  %v6084_v54 = vcvt.s32.f32 %v6077_v42 }
 0x65d   : > { %v6082_v40 = vand.u32 2147483647, %v6081_v28  ;;  %v6095_v18 = vadd.s32 3, %v6091_v31  ;;  %v7560_v55 = vsel %vm7553_vm6, %v7556_v1, %v7559_v25  ;;  %v6525_v6 = vand.u32 2139095040, %v13870_v44 }
 0x65e   : > { %v6271_v27 = vadd.s32 536870912, %v6270_v36  ;;  %v6329_v37 = vsub.s32 32, %v6328_v12  ;;  %v7561_v63 = vsel %vm7550_vm5, nan, %v7560_v55  ;;  %v6331_v35 = vshll.u32 %v8606_v23, %v6328_v12 }
 0x65f   : > { %v6085_v41 = vmul.f32 %v6084_v54, %v6082_v40  ;;  %v6334_v62 = vshll.u32 %v14528_v43, %v6328_v12  ;;  %7680 = vst [vmem:[%s9106_s21 + $0x1d8] sm:$0xff] %v7561_v63  ;;  %v6337_v38 = vshll.u32 %v14529_v58, %v6328_v12  ;;  %v6340_v21 = vshll.u32 %v14530_v14, %v6328_v12 }
 0x660   : > { %v6272_v52 = vshrl.u32 %v6271_v27, 30  ;;  %v6332_v8 = vshrl.u32 %v14528_v43, %v6329_v37  ;;  %v6335_v2 = vshrl.u32 %v14529_v58, %v6329_v37  ;;  %v6338_v5 = vshrl.u32 %v14530_v14, %v6329_v37 }
 0x661   : > { %v6086_v10 = vxor.u32 2147483648, %v6085_v41  ;;  %v6341_v46 = vshrl.u32 %v14534_v53, %v6329_v37  ;;  %v13897_v57 = vand.u32 3, %v6095_v18  ;;  %vm6212_vm12 = vcmp.lt.s32.totalorder %v13712_v26, 0 }
 0x662   : > { %v6273_v32 = vshll.u32 %v6272_v52, 30  ;;  %v6327_v16 = vshrl.u32 %v6326_v11, 5  ;;  %v6333_v22 = vor.u32 %v6332_v8, %v6331_v35  ;;  %v6336_v13 = vor.u32 %v6335_v2, %v6334_v62 }
 0x663   : > { %v6087_v20 = vsel %vm6004_vm14, %v6086_v10, %v6085_v41  ;;  %v6339_v17 = vor.u32 %v6338_v5, %v6337_v38  ;;  %v6342_v42 = vor.u32 %v6341_v46, %v6340_v21  ;;  %v6343_v3 = vshll.u32 %v14534_v53, %v6328_v12 }
 0x664   : > { %v6090_v34 = vsel %vm13841_vm1, %v13632_v7, %v6087_v20  ;;  %v13905_v31 = vsub.s32 %v6270_v36, %v6273_v32  ;;  %v6344_v56 = vshrl.u32 %v14535_v15, %v6329_v37  ;;  %v6322_v60 = vor.u32 8388608, %v6321_v50  ;;  %v5936_v32 = vpop.permute.xlu1 %5935 }
 0x665   : > { %8524 = vcosq.f32 %v6090_v34  ;;  %v6522_v11 = vand.u32 2147483647, %v13870_v44  ;;  %v6526_v49 = vshrl.u32 %v6525_v6, 23  ;;  %vm13912_vm11 = vcmp.le.f32.partialorder %v6210_v0, 0.7853982 }
 0x666   : > { %8526 = vsinq.f32 %v6090_v34  ;;  %v6276_v30 = vsub.s32 0, %v13905_v31  ;;  %v6330_v24 = vshrl.u32 %v8606_v23, %v6329_v37  ;;  %v6345_v25 = vor.u32 %v6344_v56, %v6343_v3 }
 0x667   : > { %v6296_v36 = vsub.s32 4, %v6272_v52  ;;  %vm6346_vm13 = vcmp.lt.s32.totalorder %v6327_v16, 1  ;;  %vm6348_vm14 = vcmp.lt.s32.totalorder %v6327_v16, 3  ;;  %vm6349_vm15 = vcmp.lt.s32.totalorder %v6327_v16, 4 }
 0x668   : > { %v7951_v50 = vmin.u32 %v6276_v30, %v13905_v31  ;;  %v6351_v12 = vsel %vm6349_vm15, %v6339_v17, 2102212464  ;;  %v6354_v1 = vsel %vm6346_vm13, %v6333_v22, %v6336_v13  ;;  %v6355_v40 = vsel %vm6349_vm15, %v6342_v42, 920167782 }
 0x669   : > { %v6356_v54 = vsel %vm6348_vm14, %v6339_v17, %v6355_v40  ;;  %v6358_v0 = vsel %vm6346_vm13, %v6336_v13, %v6339_v17  ;;  %v6359_v18 = vsel %vm6349_vm15, %v6345_v25, 1326507024  ;;  %v6362_v55 = vshll.u32 %v6322_v60, 8 }
 0x66a   : > { %v6278_v27 = vclz %v7951_v50  ;;  %vm6347_vm0 = vcmp.lt.s32.totalorder %v6327_v16, 2  ;;  %v6350_v6 = vsel %vm6346_vm13, %v6330_v24, %v6333_v22  ;;  %v6352_v37 = vsel %vm6348_vm14, %v6336_v13, %v6351_v12 }
 0x66b   : > { %v6297_v63 = vsel %vm6212_vm12, %v6296_v36, %v6272_v52  ;;  %v6357_v41 = vsel %vm6347_vm0, %v6354_v1, %v6356_v54  ;;  %v6360_v35 = vsel %vm6348_vm14, %v6342_v42, %v6359_v18  ;;  %v7962_v62 = vadd.s32 4294967169, %v6526_v49  ;;  %v5944_v18 = vpop.permute.xlu1 %5943 }
 0x66c   : > { %vm6094_vm1 = vweird.f32 %v13632_v7  ;;  %v7952_v8 = vadd.s32 4294967294, %v6278_v27  ;;  %v6361_v2 = vsel %vm6347_vm0, %v6358_v0, %v6360_v35  ;;  %vm6097_vm2 = vcmp.lt.s32.totalorder %v13897_v57, 2 }
 0x66d   : > { %v13925_v38 = vmul.u32.u64.low %v6362_v55, %v6357_v41  ;;  %v13926_v10 = vmul.u32.u64.high %v6362_v55, %v6357_v41, %v13925_v38  ;;  %v6353_v5 = vsel %vm6347_vm0, %v6350_v6, %v6352_v37  ;;  %vm6098_vm3 = vcmp.eq.s32.totalorder %v13897_v57, 0 }
 0x66e   : > { %v13930_v21 = vmul.u32.u64.low %v6362_v55, %v6361_v2  ;;  %v13931_v46 = vmul.u32.u64.high %v6362_v55, %v6361_v2, %v13930_v21  ;;  %vm6101_vm4 = vcmp.eq.s32.totalorder %v13897_v57, 2  ;;  %vm7953_vm6 = vcmp.lt.s32.totalorder %v7952_v8, 0 }
 0x66f   : > { %v6532_v52 = vadd.s32 1, %v7962_v62  ;;  %v8525_v16 = vpop.eup %8524  ;;  %v6266_v22 = vadd.s32 %v13848_v51, %v13862_v61  ;;  %v6281_v20 = vsel %vm7953_vm6, 0, %v7952_v8  ;;  %v6299_v13 = vsel %vm13912_vm11, 0, %v6297_v63 }
 0x670   : > { %v13941_v17 = vand.u32 8388607, %v6522_v11  ;;  %v8527_v42 = vpop.eup %8526  ;;  %v6102_v34 = vxor.u32 2147483648, %v8525_v16  ;;  %v6282_v3 = vsub.s32 32, %v6281_v20  ;;  %v6286_v56 = vsub.s32 4294967266, %v6281_v20 }
 0x671   : > { %v6369_v60 = vmul.u32 %v6362_v55, %v6353_v5  ;;  %v6099_v49 = vxor.u32 2147483648, %v8527_v42  ;;  %v6283_v30 = vshll.u32 %v13905_v31, %v6281_v20  ;;  %vm6371_vm5 = vc.u32 %v13931_v46, %v13925_v38 }
 0x672   : > { %v6372_v51 = vadd.s32 1, %v13926_v10  ;;  %v6103_v61 = vsel %vm6101_vm4, %v6102_v34, %v8527_v42  ;;  %v6284_v24 = vshrl.u32 %v6266_v22, %v6282_v3  ;;  %v6287_v25 = vadd.s32 127, %v6286_v56 }
 0x673   : > { %vm6533_vm7 = vcmp.gt.s32.totalorder %v6532_v52, 0  ;;  %v6100_v36 = vsel %vm6098_vm3, %v8525_v16, %v6099_v49  ;;  %v6303_v50 = vadd.s32 3, %v6299_v13  ;;  %v5897_v55 = vadd.f32 %v13797_v33, %v8804_v47 }
 0x674   : > { %v6373_v12 = vsel %vm6371_vm5, %v6372_v51, %v13926_v10  ;;  %v6534_v1 = vsel %vm6533_vm7, %v6532_v52, 0  ;;  %v6104_v31 = vsel %vm6097_vm2, %v6100_v36, %v6103_v61  ;;  %v6285_v40 = vor.u32 %v6284_v24, %v6283_v30 }
 0x675   : > { %v6288_v54 = vshll.u32 %v6287_v25, 23  ;;  %v6374_v0 = vadd.s32 %v6373_v12, %v6369_v60  ;;  %v6105_v27 = vsel %vm6094_vm1, nan, %v6104_v31  ;;  %v6536_v6 = vand.u32 31, %v6534_v1 }
 0x676   : > { %v13960_v37 = vadd.f32 %v13804_v59, %v8804_v47  ;;  %v13964_v63 = vmul.f32 %v11999_v19, %v8794_v39  ;;  %7666 = vst [vmem:[%s9106_s21 + $0x18] sm:$0xff] %v6105_v27  ;;  %v13967_v35 = vand.u32 3, %v6303_v50  ;;  %v5977_v33 = vmul.f32 %v5936_v32, %v8807_v48 }
 0x677   : > { %v6289_v57 = vor.u32 4788187, %v6288_v54  ;;  %v6375_v41 = vadd.s32 536870912, %v6374_v0  ;;  %v6537_v62 = vsub.s32 32, %v6536_v6  ;;  %v13971_v7 = vmul.f32 %v5944_v18, %v8807_v48 }
 0x678   : > { %v6292_v2 = vcvt.s32.f32 %v6285_v40  ;;  %v6530_v59 = vor.u32 8388608, %v13941_v17  ;;  %v6535_v5 = vshrl.u32 %v6534_v1, 5  ;;  %v6545_v20 = vshll.u32 %v14529_v58, %v6536_v6 }
 0x679   : > { %v6290_v8 = vand.u32 2147483647, %v6289_v57  ;;  %v6376_v10 = vshrl.u32 %v6375_v41, 30  ;;  %v6540_v19 = vshrl.u32 %v14528_v43, %v6537_v62  ;;  %v6543_v21 = vshrl.u32 %v14529_v58, %v6537_v62 }
 0x67a   : > { %v6546_v52 = vshrl.u32 %v14530_v14, %v6537_v62  ;;  %v6549_v32 = vshrl.u32 %v14534_v53, %v6537_v62  ;;  %vm6316_vm8 = vcmp.lt.s32.totalorder %v13815_v45, 0  ;;  %v6539_v13 = vshll.u32 %v8606_v23, %v6536_v6 }
 0x67b   : > { %v6293_v16 = vmul.f32 %v6292_v2, %v6290_v8  ;;  %v6377_v22 = vshll.u32 %v6376_v10, 30  ;;  %v6542_v42 = vshll.u32 %v14528_v43, %v6536_v6  ;;  %v6548_v17 = vshll.u32 %v14530_v14, %v6536_v6 }
 0x67c   : > { %v6552_v34 = vshrl.u32 %v14535_v15, %v6537_v62  ;;  %v6547_v60 = vor.u32 %v6546_v52, %v6545_v20  ;;  %v13986_v49 = vadd.f32 %v5977_v33, %v5897_v55  ;;  %v6541_v30 = vor.u32 %v6540_v19, %v6539_v13 }
 0x67d   : > { %v6294_v3 = vxor.u32 2147483648, %v6293_v16  ;;  %v13984_v56 = vsub.s32 %v6374_v0, %v6377_v22  ;;  %v6544_v51 = vor.u32 %v6543_v21, %v6542_v42  ;;  %v6550_v61 = vor.u32 %v6549_v32, %v6548_v17 }
 0x67e   : > { %v6551_v24 = vshll.u32 %v14534_v53, %v6536_v6  ;;  %v6538_v50 = vshrl.u32 %v8606_v23, %v6537_v62  ;;  %v6570_v12 = vshll.u32 %v6530_v59, 8  ;;  %v6400_v31 = vsub.s32 4, %v6376_v10 }
 0x67f   : > { %v6295_v25 = vsel %vm6212_vm12, %v6294_v3, %v6293_v16  ;;  %v6380_v36 = vsub.s32 0, %v13984_v56  ;;  %vm6557_vm9 = vcmp.lt.s32.totalorder %v6535_v5, 4  ;;  %vm13998_vm10 = vcmp.le.f32.partialorder %v6314_v4, 0.7853982 }
 0x680   : > { %v6298_v1 = vsel %vm13912_vm11, %v13712_v26, %v6295_v25  ;;  %v6553_v40 = vor.u32 %v6552_v34, %v6551_v24  ;;  %vm6554_vm12 = vcmp.lt.s32.totalorder %v6535_v5, 1  ;;  %v6559_v18 = vsel %vm6557_vm9, %v6547_v60, 2102212464 }
 0x681   : > { %8528 = vcosq.f32 %v6298_v1  ;;  %v7955_v0 = vmin.u32 %v6380_v36, %v13984_v56  ;;  %vm6555_vm13 = vcmp.lt.s32.totalorder %v6535_v5, 2  ;;  %v6562_v55 = vsel %vm6554_vm12, %v6541_v30, %v6544_v51 }
 0x682   : > { %8530 = vsinq.f32 %v6298_v1  ;;  %v6563_v28 = vsel %vm6557_vm9, %v6550_v61, 920167782  ;;  %vm6556_vm11 = vcmp.lt.s32.totalorder %v6535_v5, 3  ;;  %v6558_v6 = vsel %vm6554_vm12, %v6538_v50, %v6541_v30 }
 0x683   : > { %v6382_v27 = vclz %v7955_v0  ;;  %v6566_v57 = vsel %vm6554_vm12, %v6544_v51, %v6547_v60  ;;  %v6560_v41 = vsel %vm6556_vm11, %v6544_v51, %v6559_v18  ;;  %v6564_v62 = vsel %vm6556_vm11, %v6547_v60, %v6563_v28 }
 0x684   : > { %v6567_v4 = vsel %vm6557_vm9, %v6553_v40, 1326507024  ;;  %v6733_v33 = vand.u32 2139095040, %v13986_v49  ;;  %v6401_v2 = vsel %vm6316_vm8, %v6400_v31, %v6376_v10  ;;  %v6565_v59 = vsel %vm6555_vm13, %v6562_v55, %v6564_v62  ;;  %v5952_v62 = vpop.permute.xlu1 %5951 }
 0x685   : > { %v7956_v8 = vadd.s32 4294967294, %v6382_v27  ;;  %v6568_v19 = vsel %vm6556_vm11, %v6550_v61, %v6567_v4  ;;  %v14011_v52 = vmul.u32.u64.low %v6570_v12, %v6565_v59  ;;  %v14012_v16 = vmul.u32.u64.high %v6570_v12, %v6565_v59, %v14011_v52 }
 0x686   : > { %v6569_v21 = vsel %vm6555_vm13, %v6566_v57, %v6568_v19  ;;  %v6734_v22 = vshrl.u32 %v6733_v33, 23  ;;  %v6561_v20 = vsel %vm6555_vm13, %v6558_v6, %v6560_v41  ;;  %vm6305_vm15 = vcmp.lt.s32.totalorder %v13967_v35, 2 }
 0x687   : > { %vm7957_vm14 = vcmp.lt.s32.totalorder %v7956_v8, 0  ;;  %v14016_v32 = vmul.u32.u64.low %v6570_v12, %v6569_v21  ;;  %v14017_v13 = vmul.u32.u64.high %v6570_v12, %v6569_v21, %v14016_v32  ;;  %vm6306_vm0 = vcmp.eq.s32.totalorder %v13967_v35, 0 }
 0x688   : > { %v6385_v10 = vsel %vm7957_vm14, 0, %v7956_v8  ;;  %v7970_v42 = vadd.s32 4294967169, %v6734_v22  ;;  %v6370_v17 = vadd.s32 %v13925_v38, %v13931_v46  ;;  %v6730_v60 = vand.u32 2147483647, %v13986_v49 }
 0x689   : > { %v6386_v34 = vsub.s32 32, %v6385_v10  ;;  %v6390_v3 = vsub.s32 4294967266, %v6385_v10  ;;  %v6403_v5 = vsel %vm13998_vm10, 0, %v6401_v2  ;;  %v6577_v30 = vmul.u32 %v6570_v12, %v6561_v20 }
 0x68a   : > { %v6580_v51 = vadd.s32 1, %v14012_v16  ;;  %v6740_v61 = vadd.s32 1, %v7970_v42  ;;  %v6387_v25 = vshll.u32 %v13984_v56, %v6385_v10  ;;  %vm6579_vm1 = vc.u32 %v14017_v13, %v14011_v52 }
 0x68b   : > { %v8529_v24 = vpop.eup %8528  ;;  %v6388_v36 = vshrl.u32 %v6370_v17, %v6386_v34  ;;  %v6391_v50 = vadd.s32 127, %v6390_v3  ;;  %vm6309_vm2 = vcmp.eq.s32.totalorder %v13967_v35, 2  ;;  %v6407_v55 = vadd.s32 3, %v6403_v5 }
 0x68c   : > { %v8531_v38 = vpop.eup %8530  ;;  %v6310_v46 = vxor.u32 2147483648, %v8529_v24  ;;  %v6581_v1 = vsel %vm6579_vm1, %v6580_v51, %v14012_v16  ;;  %vm6741_vm3 = vcmp.gt.s32.totalorder %v6740_v61, 0  ;;  %v6737_v56 = vand.u32 8388607, %v6730_v60 }
 0x68d   : > { %v6307_v31 = vxor.u32 2147483648, %v8531_v38  ;;  %v6389_v12 = vor.u32 %v6388_v36, %v6387_v25  ;;  %v6392_v40 = vshll.u32 %v6391_v50, 23  ;;  %v6582_v0 = vadd.s32 %v6581_v1, %v6577_v30 }
 0x68e   : > { %v6311_v18 = vsel %vm6309_vm2, %v6310_v46, %v8531_v38  ;;  %v6742_v28 = vsel %vm6741_vm3, %v6740_v61, 0  ;;  %v14038_v41 = vadd.f32 %v13971_v7, %v13960_v37  ;;  %v14042_v4 = vadd.f32 %v13964_v63, %v8804_v47 }
 0x68f   : > { %v6308_v27 = vsel %vm6306_vm0, %v8529_v24, %v6307_v31  ;;  %v6393_v6 = vor.u32 4788187, %v6392_v40  ;;  %v6583_v57 = vadd.s32 536870912, %v6582_v0  ;;  %vm6302_vm4 = vweird.f32 %v13712_v26 }
 0x690   : > { %v6312_v33 = vsel %vm6305_vm15, %v6308_v27, %v6311_v18  ;;  %v6744_v8 = vand.u32 31, %v6742_v28  ;;  %v6396_v19 = vcvt.s32.f32 %v6389_v12  ;;  %v14050_v16 = vand.u32 3, %v6407_v55 }
 0x691   : > { %v6313_v2 = vsel %vm6302_vm4, nan, %v6312_v33  ;;  %v6394_v59 = vand.u32 2147483647, %v6393_v6  ;;  %v14047_v21 = vshrl.u32 %v6583_v57, 30  ;;  %v6738_v37 = vor.u32 8388608, %v6737_v56 }
 0x692   : > { %7668 = vst [vmem:[%s9106_s21 + $0x58] sm:$0xff] %v6313_v2  ;;  %v6745_v7 = vsub.s32 32, %v6744_v8  ;;  %v14053_v22 = vmul.f32 %v5952_v62, %v8807_v48  ;;  %v6747_v35 = vshll.u32 %v8606_v23, %v6744_v8  ;;  %v6941_v20 = vand.u32 2139095040, %v14038_v41 }
 0x693   : > { %v6397_v63 = vmul.f32 %v6396_v19, %v6394_v59  ;;  %v6585_v26 = vshll.u32 %v14047_v21, 30  ;;  %v6750_v10 = vshll.u32 %v14528_v43, %v6744_v8  ;;  %v6753_v5 = vshll.u32 %v14529_v58, %v6744_v8 }
 0x694   : > { %v6748_v32 = vshrl.u32 %v14528_v43, %v6745_v7  ;;  %v6751_v42 = vshrl.u32 %v14529_v58, %v6745_v7  ;;  %v6754_v17 = vshrl.u32 %v14530_v14, %v6745_v7  ;;  %v6757_v30 = vshrl.u32 %v14534_v53, %v6745_v7 }
 0x695   : > { %v6398_v34 = vxor.u32 2147483648, %v6397_v63  ;;  %v14062_v3 = vsub.s32 %v6582_v0, %v6585_v26  ;;  %v6743_v51 = vshrl.u32 %v6742_v28, 5  ;;  %v6756_v24 = vshll.u32 %v14530_v14, %v6744_v8 }
 0x696   : > { %v6749_v61 = vor.u32 %v6748_v32, %v6747_v35  ;;  %v6938_v25 = vand.u32 2147483647, %v14038_v41  ;;  %v6752_v38 = vor.u32 %v6751_v42, %v6750_v10  ;;  %v6755_v46 = vor.u32 %v6754_v17, %v6753_v5 }
 0x697   : > { %v6399_v36 = vsel %vm6316_vm8, %v6398_v34, %v6397_v63  ;;  %v6588_v50 = vsub.s32 0, %v14062_v3  ;;  %vm6524_vm6 = vcmp.lt.s32.totalorder %v13870_v44, 0  ;;  %v6758_v31 = vor.u32 %v6757_v30, %v6756_v24 }
 0x698   : > { %v6402_v1 = vsel %vm13998_vm10, %v13815_v45, %v6399_v36  ;;  %v6759_v12 = vshll.u32 %v14534_v53, %v6744_v8  ;;  %v6760_v40 = vshrl.u32 %v14535_v15, %v6745_v7  ;;  %v14078_v18 = vshll.u32 %v6738_v37, 8 }
 0x699   : > { %8532 = vcosq.f32 %v6402_v1  ;;  %v7963_v0 = vmin.u32 %v6588_v50, %v14062_v3  ;;  %v6942_v55 = vshrl.u32 %v6941_v20, 23  ;;  %v6608_v56 = vsub.s32 4, %v14047_v21 }
 0x69a   : > { %8534 = vsinq.f32 %v6402_v1  ;;  %v6746_v28 = vshrl.u32 %v8606_v23, %v6745_v7  ;;  %v6761_v54 = vor.u32 %v6760_v40, %v6759_v12  ;;  %vm14084_vm5 = vcmp.le.f32.partialorder %v6522_v11, 0.7853982 }
 0x69b   : > { %v6590_v6 = vclz %v7963_v0  ;;  %vm6762_vm7 = vcmp.lt.s32.totalorder %v6743_v51, 1  ;;  %vm6763_vm8 = vcmp.lt.s32.totalorder %v6743_v51, 2  ;;  %vm6765_vm9 = vcmp.lt.s32.totalorder %v6743_v51, 4 }
 0x69c   : > { %vm6764_vm10 = vcmp.lt.s32.totalorder %v6743_v51, 3  ;;  %v6767_v57 = vsel %vm6765_vm9, %v6755_v46, 2102212464  ;;  %v6770_v62 = vsel %vm6762_vm7, %v6749_v61, %v6752_v38  ;;  %v6771_v33 = vsel %vm6765_vm9, %v6758_v31, 920167782 }
 0x69d   : > { %v7964_v8 = vadd.s32 4294967294, %v6590_v6  ;;  %v6766_v2 = vsel %vm6762_vm7, %v6746_v28, %v6749_v61  ;;  %v6772_v59 = vsel %vm6764_vm10, %v6755_v46, %v6771_v33  ;;  %v6774_v19 = vsel %vm6762_vm7, %v6752_v38, %v6755_v46 }
 0x69e   : > { %vm6410_vm12 = vcmp.eq.s32.totalorder %v14050_v16, 0  ;;  %v6768_v37 = vsel %vm6764_vm10, %v6752_v38, %v6767_v57  ;;  %v6773_v11 = vsel %vm6763_vm8, %v6770_v62, %v6772_v59  ;;  %v6775_v7 = vsel %vm6765_vm9, %v6761_v54, 1326507024 }
 0x69f   : > { %v7978_v63 = vadd.s32 4294967169, %v6942_v55  ;;  %vm6409_vm13 = vcmp.lt.s32.totalorder %v14050_v16, 2  ;;  %vm7965_vm11 = vcmp.lt.s32.totalorder %v7964_v8, 0  ;;  %v6776_v26 = vsel %vm6764_vm10, %v6758_v31, %v6775_v7 }
 0x6a0   : > { %v14092_v35 = vmul.u32.u64.low %v14078_v18, %v6773_v11  ;;  %v14093_v20 = vmul.u32.u64.high %v14078_v18, %v6773_v11, %v14092_v35  ;;  %v6578_v32 = vadd.s32 %v14011_v52, %v14017_v13  ;;  %v6593_v10 = vsel %vm7965_vm11, 0, %v7964_v8 }
 0x6a1   : > { %v6777_v42 = vsel %vm6763_vm8, %v6774_v19, %v6776_v26  ;;  %v6948_v17 = vadd.s32 1, %v7978_v63  ;;  %v6594_v34 = vsub.s32 32, %v6593_v10  ;;  %v6598_v5 = vsub.s32 4294967266, %v6593_v10 }
 0x6a2   : > { %v6609_v30 = vsel %vm6524_vm6, %v6608_v56, %v14047_v21  ;;  %v6769_v61 = vsel %vm6763_vm8, %v6766_v2, %v6768_v37  ;;  %v6595_v24 = vshll.u32 %v14062_v3, %v6593_v10  ;;  %v6788_v46 = vadd.s32 1, %v14093_v20 }
 0x6a3   : > { %v14105_v36 = vmul.u32.u64.low %v14078_v18, %v6777_v42  ;;  %v14106_v50 = vmul.u32.u64.high %v14078_v18, %v6777_v42, %v14105_v36  ;;  %vm6949_vm14 = vcmp.gt.s32.totalorder %v6948_v17, 0  ;;  %v8533_v52 = vpop.eup %8532  ;;  %v6596_v13 = vshrl.u32 %v6578_v32, %v6594_v34 }
 0x6a4   : > { %v6599_v38 = vadd.s32 127, %v6598_v5  ;;  %v6950_v1 = vsel %vm6949_vm14, %v6948_v17, 0  ;;  %v8535_v31 = vpop.eup %8534  ;;  %vm6413_vm15 = vcmp.eq.s32.totalorder %v14050_v16, 2  ;;  %v6414_v12 = vxor.u32 2147483648, %v8533_v52 }
 0x6a5   : > { %v6611_v21 = vsel %vm14084_vm5, 0, %v6609_v30  ;;  %v6952_v51 = vand.u32 31, %v6950_v1  ;;  %v6411_v3 = vxor.u32 2147483648, %v8535_v31  ;;  %v6597_v40 = vor.u32 %v6596_v13, %v6595_v24 }
 0x6a6   : > { %v6600_v0 = vshll.u32 %v6599_v38, 23  ;;  %v6945_v55 = vand.u32 8388607, %v6938_v25  ;;  %v6415_v56 = vsel %vm6413_vm15, %v6414_v12, %v8535_v31  ;;  %v6785_v28 = vmul.u32 %v14078_v18, %v6769_v61 }
 0x6a7   : > { %vm6787_vm0 = vc.u32 %v14106_v50, %v14092_v35  ;;  %v6953_v54 = vsub.s32 32, %v6952_v51  ;;  %v6412_v6 = vsel %vm6410_vm12, %v8533_v52, %v6411_v3  ;;  %v6615_v62 = vadd.s32 3, %v6611_v21 }
 0x6a8   : > { %v6601_v57 = vor.u32 4788187, %v6600_v0  ;;  %v6789_v33 = vsel %vm6787_vm0, %v6788_v46, %v14093_v20  ;;  %vm6406_vm1 = vweird.f32 %v13815_v45  ;;  %v6416_v8 = vsel %vm6409_vm13, %v6412_v6, %v6415_v56 }
 0x6a9   : > { %v6790_v2 = vadd.s32 %v6789_v33, %v6785_v28  ;;  %v14125_v18 = vadd.f32 %v14053_v22, %v14042_v4  ;;  %v6417_v59 = vsel %vm6406_vm1, nan, %v6416_v8  ;;  %v6604_v37 = vcvt.s32.f32 %v6597_v40 }
 0x6aa   : > { %v6602_v19 = vand.u32 2147483647, %v6601_v57  ;;  %v6946_v11 = vor.u32 8388608, %v6945_v55  ;;  %7669 = vst [vmem:[%s9106_s21 + $0x78] sm:$0xff] %v6417_v59  ;;  %v6956_v63 = vshrl.u32 %v14528_v43, %v6953_v54  ;;  %v6959_v26 = vshrl.u32 %v14529_v58, %v6953_v54 }
 0x6ab   : > { %v6791_v7 = vadd.s32 536870912, %v6790_v2  ;;  %v6962_v45 = vshrl.u32 %v14530_v14, %v6953_v54  ;;  %v14131_v16 = vand.u32 3, %v6615_v62  ;;  %v6951_v32 = vshrl.u32 %v6950_v1, 5 }
 0x6ac   : > { %v6605_v20 = vmul.f32 %v6604_v37, %v6602_v19  ;;  %v6965_v10 = vshrl.u32 %v14534_v53, %v6953_v54  ;;  %v6955_v22 = vshll.u32 %v8606_v23, %v6952_v51  ;;  %v6958_v42 = vshll.u32 %v14528_v43, %v6952_v51 }
 0x6ad   : > { %v6792_v4 = vshrl.u32 %v6791_v7, 30  ;;  %v6961_v17 = vshll.u32 %v14529_v58, %v6952_v51  ;;  %vm6732_vm2 = vcmp.lt.s32.totalorder %v13986_v49, 0  ;;  %v6964_v5 = vshll.u32 %v14530_v14, %v6952_v51 }
 0x6ae   : > { %v6606_v34 = vxor.u32 2147483648, %v6605_v20  ;;  %v6967_v30 = vshll.u32 %v14534_v53, %v6952_v51  ;;  %v6968_v61 = vshrl.u32 %v14535_v15, %v6953_v54  ;;  %v6957_v36 = vor.u32 %v6956_v63, %v6955_v22 }
 0x6af   : > { %v6793_v24 = vshll.u32 %v6792_v4, 30  ;;  %v6960_v52 = vor.u32 %v6959_v26, %v6958_v42  ;;  %v6963_v13 = vor.u32 %v6962_v45, %v6961_v17  ;;  %v6966_v46 = vor.u32 %v6965_v10, %v6964_v5  ;;  %v5960_v17 = vpop.permute.xlu1 %5959 }
 0x6b0   : > { %v6607_v38 = vsel %vm6524_vm6, %v6606_v34, %v6605_v20  ;;  %v6969_v1 = vor.u32 %v6968_v61, %v6967_v30  ;;  %v14143_v31 = vshll.u32 %v6946_v11, 8  ;;  %v6954_v51 = vshrl.u32 %v8606_v23, %v6953_v54 }
 0x6b1   : > { %v6610_v12 = vsel %vm14084_vm5, %v13870_v44, %v6607_v38  ;;  %v14148_v21 = vsub.s32 %v6790_v2, %v6793_v24  ;;  %vm6970_vm3 = vcmp.lt.s32.totalorder %v6951_v32, 1  ;;  %v6816_v3 = vsub.s32 4, %v6792_v4 }
 0x6b2   : > { %8536 = vcosq.f32 %v6610_v12  ;;  %vm6971_vm4 = vcmp.lt.s32.totalorder %v6951_v32, 2  ;;  %vm6973_vm7 = vcmp.lt.s32.totalorder %v6951_v32, 4  ;;  %v6978_v55 = vsel %vm6970_vm3, %v6957_v36, %v6960_v52 }
 0x6b3   : > { %8538 = vsinq.f32 %v6610_v12  ;;  %v6796_v40 = vsub.s32 0, %v14148_v21  ;;  %v6975_v0 = vsel %vm6973_vm7, %v6963_v13, 2102212464  ;;  %vm6972_vm6 = vcmp.lt.s32.totalorder %v6951_v32, 3 }
 0x6b4   : > { %v6979_v56 = vsel %vm6973_vm7, %v6966_v46, 920167782  ;;  %v6982_v28 = vsel %vm6970_vm3, %v6960_v52, %v6963_v13  ;;  %v6983_v6 = vsel %vm6973_vm7, %v6969_v1, 1326507024  ;;  %v6974_v57 = vsel %vm6970_vm3, %v6954_v51, %v6957_v36 }
 0x6b5   : > { %v7971_v27 = vmin.u32 %v6796_v40, %v14148_v21  ;;  %v6980_v62 = vsel %vm6972_vm6, %v6963_v13, %v6979_v56  ;;  %v6984_v33 = vsel %vm6972_vm6, %v6966_v46, %v6983_v6  ;;  %v6976_v54 = vsel %vm6972_vm6, %v6960_v52, %v6975_v0  ;;  %v5968_v40 = vpop.permute.xlu1 %5967 }
 0x6b6   : > { %v6981_v8 = vsel %vm6971_vm4, %v6978_v55, %v6980_v62  ;;  %v6985_v2 = vsel %vm6971_vm4, %v6982_v28, %v6984_v33  ;;  %v7149_v59 = vand.u32 2139095040, %v14125_v18  ;;  %v5887_v19 = vmul.f32 %v12022_v29, %v8794_v39 }
 0x6b7   : > { %v6798_v37 = vclz %v7971_v27  ;;  %v6817_v11 = vsel %vm6732_vm2, %v6816_v3, %v6792_v4  ;;  %v14161_v7 = vmul.u32.u64.low %v14143_v31, %v6985_v2  ;;  %v14162_v63 = vmul.u32.u64.high %v14143_v31, %v6985_v2, %v14161_v7 }
 0x6b8   : > { %v14165_v26 = vmul.u32.u64.low %v14143_v31, %v6981_v8  ;;  %v14166_v45 = vmul.u32.u64.high %v14143_v31, %v6981_v8, %v14165_v26  ;;  %v6977_v10 = vsel %vm6971_vm4, %v6974_v57, %v6976_v54  ;;  %v7146_v22 = vand.u32 2147483647, %v14125_v18 }
 0x6b9   : > { %v7972_v20 = vadd.s32 4294967294, %v6798_v37  ;;  %v7150_v42 = vshrl.u32 %v7149_v59, 23  ;;  %v5889_v29 = vmul.f32 %v12048_v9, %v8794_v39  ;;  %vm6618_vm5 = vcmp.eq.s32.totalorder %v14131_v16, 0 }
 0x6ba   : > { %vm6621_vm8 = vcmp.eq.s32.totalorder %v14131_v16, 2  ;;  %vm14176_vm9 = vcmp.le.f32.partialorder %v6730_v60, 0.7853982  ;;  %v6786_v32 = vadd.s32 %v14092_v35, %v14106_v50  ;;  %v6993_v30 = vmul.u32 %v14143_v31, %v6977_v10 }
 0x6bb   : > { %vm7973_vm10 = vcmp.lt.s32.totalorder %v7972_v20, 0  ;;  %v6819_v34 = vsel %vm14176_vm9, 0, %v6817_v11  ;;  %v7986_v5 = vadd.s32 4294967169, %v7150_v42  ;;  %vm6995_vm12 = vc.u32 %v14162_v63, %v14165_v26 }
 0x6bc   : > { %v8537_v39 = vpop.eup %8536  ;;  %v6801_v9 = vsel %vm7973_vm10, 0, %v7972_v20  ;;  %v6996_v60 = vadd.s32 1, %v14166_v45  ;;  %v7153_v35 = vand.u32 8388607, %v7146_v22  ;;  %vm6614_vm13 = vweird.f32 %v13870_v44 }
 0x6bd   : > { %v8539_v61 = vpop.eup %8538  ;;  %v6622_v24 = vxor.u32 2147483648, %v8537_v39  ;;  %v6802_v36 = vsub.s32 32, %v6801_v9  ;;  %v6806_v52 = vsub.s32 4294967266, %v6801_v9  ;;  %v6803_v13 = vshll.u32 %v14148_v21, %v6801_v9 }
 0x6be   : > { %v6619_v50 = vxor.u32 2147483648, %v8539_v61  ;;  %v6997_v38 = vsel %vm6995_vm12, %v6996_v60, %v14166_v45  ;;  %v7156_v46 = vadd.s32 1, %v7986_v5  ;;  %vm6617_vm11 = vcmp.lt.s32.totalorder %v14131_v16, 2 }
 0x6bf   : > { %v6623_v1 = vsel %vm6621_vm8, %v6622_v24, %v8539_v61  ;;  %v6804_v31 = vshrl.u32 %v6786_v32, %v6802_v36  ;;  %v6807_v12 = vadd.s32 127, %v6806_v52  ;;  %v6998_v51 = vadd.s32 %v6997_v38, %v6993_v30 }
 0x6c0   : > { %v6620_v3 = vsel %vm6618_vm5, %v8537_v39, %v6619_v50  ;;  %vm7157_vm14 = vcmp.gt.s32.totalorder %v7156_v46, 0  ;;  %v6823_v6 = vadd.s32 3, %v6819_v34  ;;  %v7154_v27 = vor.u32 8388608, %v7153_v35 }
 0x6c1   : > { %v6624_v21 = vsel %vm6617_vm11, %v6620_v3, %v6623_v1  ;;  %v6805_v0 = vor.u32 %v6804_v31, %v6803_v13  ;;  %v6808_v55 = vshll.u32 %v6807_v12, 23  ;;  %v6999_v56 = vadd.s32 536870912, %v6998_v51 }
 0x6c2   : > { %v6625_v28 = vsel %vm6614_vm13, nan, %v6624_v21  ;;  %v7158_v57 = vsel %vm7157_vm14, %v7156_v46, 0  ;;  %v5983_v44 = vmul.f32 %v5960_v17, %v8807_v48  ;;  %v5985_v54 = vmul.f32 %v5968_v40, %v8807_v48 }
 0x6c3   : > { %7671 = vst [vmem:[%s9106_s21 + $0xb8] sm:$0xff] %v6625_v28  ;;  %v6809_v62 = vor.u32 4788187, %v6808_v55  ;;  %v7000_v33 = vshrl.u32 %v6999_v56, 30  ;;  %v5903_v16 = vadd.f32 %v5887_v19, %v8804_v47  ;;  %v7160_v8 = vand.u32 31, %v7158_v57 }
 0x6c4   : > { %v5905_v2 = vadd.f32 %v5889_v29, %v8804_v47  ;;  %v6812_v37 = vcvt.s32.f32 %v6805_v0  ;;  %v14202_v7 = vand.u32 3, %v6823_v6  ;;  %v6994_v45 = vadd.s32 %v14165_v26, %v14162_v63 }
 0x6c5   : > { %v6810_v59 = vand.u32 2147483647, %v6809_v62  ;;  %v7001_v11 = vshll.u32 %v7000_v33, 30  ;;  %v7161_v20 = vsub.s32 32, %v7160_v8  ;;  %v14205_v10 = vshll.u32 %v7154_v27, 8 }
 0x6c6   : > { %v14209_v17 = vadd.f32 %v5983_v44, %v5903_v16  ;;  %v14211_v48 = vadd.f32 %v5985_v54, %v5905_v2  ;;  %v7159_v19 = vshrl.u32 %v7158_v57, 5  ;;  %v7163_v47 = vshll.u32 %v8606_v23, %v7160_v8 }
 0x6c7   : > { %v6813_v42 = vmul.f32 %v6812_v37, %v6810_v59  ;;  %v14207_v32 = vsub.s32 %v6998_v51, %v7001_v11  ;;  %v7164_v29 = vshrl.u32 %v14528_v43, %v7161_v20  ;;  %v7167_v34 = vshrl.u32 %v14529_v58, %v7161_v20 }
 0x6c8   : > { %vm6940_vm15 = vcmp.lt.s32.totalorder %v14038_v41, 0  ;;  %v7166_v26 = vshll.u32 %v14528_v43, %v7160_v8  ;;  %v7170_v39 = vshrl.u32 %v14530_v14, %v7161_v20  ;;  %v7169_v30 = vshll.u32 %v14529_v58, %v7160_v8 }
 0x6c9   : > { %v6814_v5 = vxor.u32 2147483648, %v6813_v42  ;;  %v7004_v63 = vsub.s32 0, %v14207_v32  ;;  %v7165_v9 = vor.u32 %v7164_v29, %v7163_v47  ;;  %v7172_v60 = vshll.u32 %v14530_v14, %v7160_v8 }
 0x6ca   : > { %v7173_v61 = vshrl.u32 %v14534_v53, %v7161_v20  ;;  %v7168_v52 = vor.u32 %v7167_v34, %v7166_v26  ;;  %v7175_v35 = vshll.u32 %v14534_v53, %v7160_v8  ;;  %v7171_v13 = vor.u32 %v7170_v39, %v7169_v30 }
 0x6cb   : > { %v6815_v24 = vsel %vm6732_vm2, %v6814_v5, %v6813_v42  ;;  %v7979_v36 = vmin.u32 %v7004_v63, %v14207_v32  ;;  %v7176_v46 = vshrl.u32 %v14535_v15, %v7161_v20  ;;  %v7024_v31 = vsub.s32 4, %v7000_v33 }
 0x6cc   : > { %v6818_v50 = vsel %vm14176_vm9, %v13986_v49, %v6815_v24  ;;  %v7174_v38 = vor.u32 %v7173_v61, %v7172_v60  ;;  %v7357_v12 = vand.u32 2139095040, %v14209_v17  ;;  %vm14234_vm0 = vcmp.le.f32.partialorder %v6938_v25, 0.7853982 }
 0x6cd   : > { %8540 = vcosq.f32 %v6818_v50  ;;  %v7006_v1 = vclz %v7979_v36  ;;  %v7162_v3 = vshrl.u32 %v8606_v23, %v7161_v20  ;;  %v7177_v4 = vor.u32 %v7176_v46, %v7175_v35 }
 0x6ce   : > { %8542 = vsinq.f32 %v6818_v50  ;;  %vm7178_vm1 = vcmp.lt.s32.totalorder %v7159_v19, 1  ;;  %vm7180_vm2 = vcmp.lt.s32.totalorder %v7159_v19, 3  ;;  %vm7181_vm3 = vcmp.lt.s32.totalorder %v7159_v19, 4 }
 0x6cf   : > { %v7980_v40 = vadd.s32 4294967294, %v7006_v1  ;;  %v7186_v21 = vsel %vm7178_vm1, %v7165_v9, %v7168_v52  ;;  %v7183_v0 = vsel %vm7181_vm3, %v7171_v13, 2102212464  ;;  %v7187_v55 = vsel %vm7181_vm3, %v7174_v38, 920167782 }
 0x6d0   : > { %v7190_v56 = vsel %vm7178_vm1, %v7168_v52, %v7171_v13  ;;  %v7191_v28 = vsel %vm7181_vm3, %v7177_v4, 1326507024  ;;  %vm7179_vm7 = vcmp.lt.s32.totalorder %v7159_v19, 2  ;;  %v7188_v25 = vsel %vm7180_vm2, %v7171_v13, %v7187_v55 }
 0x6d1   : > { %vm7981_vm4 = vcmp.lt.s32.totalorder %v7980_v40, 0  ;;  %v7192_v6 = vsel %vm7180_vm2, %v7174_v38, %v7191_v28  ;;  %v7025_v57 = vsel %vm6940_vm15, %v7024_v31, %v7000_v33  ;;  %v7189_v62 = vsel %vm7179_vm7, %v7186_v21, %v7188_v25 }
 0x6d2   : > { %v7009_v27 = vsel %vm7981_vm4, 0, %v7980_v40  ;;  %v7193_v44 = vsel %vm7179_vm7, %v7190_v56, %v7192_v6  ;;  %vm6825_vm6 = vcmp.lt.s32.totalorder %v14202_v7, 2  ;;  %v7182_v8 = vsel %vm7178_vm1, %v7162_v3, %v7165_v9 }
 0x6d3   : > { %v7010_v54 = vsub.s32 32, %v7009_v27  ;;  %v7014_v16 = vsub.s32 4294967266, %v7009_v27  ;;  %v7184_v2 = vsel %vm7180_vm2, %v7168_v52, %v7183_v0  ;;  %vm6822_vm5 = vweird.f32 %v13986_v49 }
 0x6d4   : > { %v14252_v59 = vmul.u32.u64.low %v14205_v10, %v7193_v44  ;;  %v14253_v37 = vmul.u32.u64.high %v14205_v10, %v7193_v44, %v14252_v59  ;;  %v14256_v33 = vmul.u32.u64.low %v14205_v10, %v7189_v62  ;;  %v14257_v11 = vmul.u32.u64.high %v14205_v10, %v7189_v62, %v14256_v33 }
 0x6d5   : > { %v7011_v20 = vshll.u32 %v14207_v32, %v7009_v27  ;;  %v7012_v42 = vshrl.u32 %v6994_v45, %v7010_v54  ;;  %v7015_v47 = vadd.s32 127, %v7014_v16  ;;  %v7358_v29 = vshrl.u32 %v7357_v12, 23 }
 0x6d6   : > { %vm6826_vm8 = vcmp.eq.s32.totalorder %v14202_v7, 0  ;;  %vm6829_vm9 = vcmp.eq.s32.totalorder %v14202_v7, 2  ;;  %v7185_v34 = vsel %vm7179_vm7, %v7182_v8, %v7184_v2  ;;  %v7354_v5 = vand.u32 2147483647, %v14209_v17 }
 0x6d7   : > { %v8541_v63 = vpop.eup %8540  ;;  %v7013_v26 = vor.u32 %v7012_v42, %v7011_v20  ;;  %v7016_v39 = vshll.u32 %v7015_v47, 23  ;;  %v7027_v9 = vsel %vm14234_vm0, 0, %v7025_v57  ;;  %v7994_v30 = vadd.s32 4294967169, %v7358_v29 }
 0x6d8   : > { %v8543_v60 = vpop.eup %8542  ;;  %v6830_v32 = vxor.u32 2147483648, %v8541_v63  ;;  %vm7203_vm10 = vc.u32 %v14253_v37, %v14256_v33  ;;  %v7204_v45 = vadd.s32 1, %v14257_v11  ;;  %v7565_v61 = vand.u32 2139095040, %v14211_v48 }
 0x6d9   : > { %v6827_v19 = vxor.u32 2147483648, %v8543_v60  ;;  %v7017_v24 = vor.u32 4788187, %v7016_v39  ;;  %v7201_v36 = vmul.u32 %v14205_v10, %v7185_v34  ;;  %v7364_v52 = vadd.s32 1, %v7994_v30 }
 0x6da   : > { %v6831_v35 = vsel %vm6829_vm9, %v6830_v32, %v8543_v60  ;;  %v7020_v50 = vcvt.s32.f32 %v7013_v26  ;;  %v7205_v13 = vsel %vm7203_vm10, %v7204_v45, %v14257_v11  ;;  %v7361_v38 = vand.u32 8388607, %v7354_v5 }
 0x6db   : > { %v6828_v46 = vsel %vm6826_vm8, %v8541_v63, %v6827_v19  ;;  %v7018_v1 = vand.u32 2147483647, %v7017_v24  ;;  %v7206_v31 = vadd.s32 %v7205_v13, %v7201_v36  ;;  %vm7365_vm12 = vcmp.gt.s32.totalorder %v7364_v52, 0 }
 0x6dc   : > { %v6832_v10 = vsel %vm6825_vm6, %v6828_v46, %v6831_v35  ;;  %v7031_v12 = vadd.s32 3, %v7027_v9  ;;  %v7366_v3 = vsel %vm7365_vm12, %v7364_v52, 0  ;;  %v7566_v4 = vshrl.u32 %v7565_v61, 23 }
 0x6dd   : > { %v6833_v40 = vsel %vm6822_vm5, nan, %v6832_v10  ;;  %v7021_v21 = vmul.f32 %v7020_v50, %v7018_v1  ;;  %v7207_v0 = vadd.s32 536870912, %v7206_v31  ;;  %v7368_v55 = vand.u32 31, %v7366_v3 }
 0x6de   : > { %7673 = vst [vmem:[%s9106_s21 + $0xf8] sm:$0xff] %v6833_v40  ;;  %v14286_v25 = vand.u32 3, %v7031_v12  ;;  %v7362_v6 = vor.u32 8388608, %v7361_v38  ;;  %v8002_v57 = vadd.s32 4294967169, %v7566_v4  ;;  %v14291_v44 = vshrl.u32 %v7366_v3, 5 }
 0x6df   : > { %v7022_v56 = vxor.u32 2147483648, %v7021_v21  ;;  %v14284_v28 = vshrl.u32 %v7207_v0, 30  ;;  %v7369_v27 = vsub.s32 32, %v7368_v55  ;;  %v7371_v49 = vshll.u32 %v8606_v23, %v7368_v55 }
 0x6e0   : > { %v7374_v8 = vshll.u32 %v14528_v43, %v7368_v55  ;;  %v7377_v11 = vshll.u32 %v14529_v58, %v7368_v55  ;;  %v7380_v47 = vshll.u32 %v14530_v14, %v7368_v55  ;;  %v7562_v51 = vand.u32 2147483647, %v14211_v48 }
 0x6e1   : > { %v7023_v7 = vsel %vm6940_vm15, %v7022_v56, %v7021_v21  ;;  %v7209_v62 = vshll.u32 %v14284_v28, 30  ;;  %v7372_v16 = vshrl.u32 %v14528_v43, %v7369_v27  ;;  %v7375_v2 = vshrl.u32 %v14529_v58, %v7369_v27 }
 0x6e2   : > { %v7026_v54 = vsel %vm14234_vm0, %v14038_v41, %v7023_v7  ;;  %v7378_v20 = vshrl.u32 %v14530_v14, %v7369_v27  ;;  %v7381_v26 = vshrl.u32 %v14534_v53, %v7369_v27  ;;  %v7383_v39 = vshll.u32 %v14534_v53, %v7368_v55 }
 0x6e3   : > { %8544 = vcosq.f32 %v7026_v54  ;;  %v14300_v59 = vsub.s32 %v7206_v31, %v7209_v62  ;;  %v7373_v42 = vor.u32 %v7372_v16, %v7371_v49  ;;  %v7376_v34 = vor.u32 %v7375_v2, %v7374_v8 }
 0x6e4   : > { %8546 = vsinq.f32 %v7026_v54  ;;  %v7379_v63 = vor.u32 %v7378_v20, %v7377_v11  ;;  %v7384_v9 = vshrl.u32 %v14535_v15, %v7369_v27  ;;  %v14310_v30 = vshll.u32 %v7362_v6, 8 }
 0x6e5   : > { %v7212_v29 = vsub.s32 0, %v14300_v59  ;;  %v7572_v60 = vadd.s32 1, %v8002_v57  ;;  %vm7037_vm13 = vcmp.eq.s32.totalorder %v14286_v25, 2  ;;  %vm7148_vm11 = vcmp.lt.s32.totalorder %v14125_v18, 0 }
 0x6e6   : > { %v7202_v32 = vadd.s32 %v14256_v33, %v14253_v37  ;;  %v7382_v61 = vor.u32 %v7381_v26, %v7380_v47  ;;  %vm7386_vm14 = vcmp.lt.s32.totalorder %v14291_v44, 1  ;;  %vm7034_vm15 = vcmp.eq.s32.totalorder %v14286_v25, 0 }
 0x6e7   : > { %v7987_v45 = vmin.u32 %v7212_v29, %v14300_v59  ;;  %v7370_v19 = vshrl.u32 %v8606_v23, %v7369_v27  ;;  %v7385_v24 = vor.u32 %v7384_v9, %v7383_v39  ;;  %vm7387_vm0 = vcmp.lt.s32.totalorder %v14291_v44, 2 }
 0x6e8   : > { %vm7389_vm1 = vcmp.lt.s32.totalorder %v14291_v44, 4  ;;  %vm7033_vm2 = vcmp.lt.s32.totalorder %v14286_v25, 2  ;;  %v7394_v37 = vsel %vm7386_vm14, %v7373_v42, %v7376_v34  ;;  %v7398_v33 = vsel %vm7386_vm14, %v7376_v34, %v7379_v63 }
 0x6e9   : > { %v7214_v36 = vclz %v7987_v45  ;;  %v7391_v52 = vsel %vm7389_vm1, %v7379_v63, 2102212464  ;;  %vm7030_vm3 = vweird.f32 %v14038_v41  ;;  %vm7388_vm4 = vcmp.lt.s32.totalorder %v14291_v44, 3 }
 0x6ea   : > { %v7395_v35 = vsel %vm7389_vm1, %v7382_v61, 920167782  ;;  %v7399_v50 = vsel %vm7389_vm1, %v7385_v24, 1326507024  ;;  %vm7573_vm7 = vcmp.gt.s32.totalorder %v7572_v60, 0  ;;  %v7232_v38 = vsub.s32 4, %v14284_v28 }
 0x6eb   : > { %v7988_v13 = vadd.s32 4294967294, %v7214_v36  ;;  %v7396_v46 = vsel %vm7388_vm4, %v7379_v63, %v7395_v35  ;;  %v7400_v1 = vsel %vm7388_vm4, %v7382_v61, %v7399_v50  ;;  %v7390_v31 = vsel %vm7386_vm14, %v7370_v19, %v7373_v42 }
 0x6ec   : > { %v7392_v10 = vsel %vm7388_vm4, %v7376_v34, %v7391_v52  ;;  %v7397_v12 = vsel %vm7387_vm0, %v7394_v37, %v7396_v46  ;;  %v7401_v3 = vsel %vm7387_vm0, %v7398_v33, %v7400_v1  ;;  %v7574_v0 = vsel %vm7573_vm7, %v7572_v60, 0 }
 0x6ed   : > { %v8545_v4 = vpop.eup %8544  ;;  %vm7989_vm6 = vcmp.lt.s32.totalorder %v7988_v13, 0  ;;  %v14337_v40 = vmul.u32.u64.low %v14310_v30, %v7401_v3  ;;  %v14338_v21 = vmul.u32.u64.high %v14310_v30, %v7401_v3, %v14337_v40  ;;  %v14347_v54 = vand.u32 8388607, %v7562_v51 }
 0x6ee   : > { %v8547_v55 = vpop.eup %8546  ;;  %v7038_v56 = vxor.u32 2147483648, %v8545_v4  ;;  %v7217_v6 = vsel %vm7989_vm6, 0, %v7988_v13  ;;  %v14341_v27 = vmul.u32.u64.low %v14310_v30, %v7397_v12  ;;  %v14342_v57 = vmul.u32.u64.high %v14310_v30, %v7397_v12, %v14341_v27 }
 0x6ef   : > { %v7035_v7 = vxor.u32 2147483648, %v8547_v55  ;;  %v7218_v62 = vsub.s32 32, %v7217_v6  ;;  %v7222_v49 = vsub.s32 4294967266, %v7217_v6  ;;  %v14354_v8 = vsel %vm7148_vm11, %v7232_v38, %v14284_v28 }
 0x6f0   : > { %v7039_v16 = vsel %vm7037_vm13, %v7038_v56, %v8547_v55  ;;  %v7393_v2 = vsel %vm7387_vm0, %v7390_v31, %v7392_v10  ;;  %v7576_v11 = vand.u32 31, %v7574_v0  ;;  %v7219_v42 = vshll.u32 %v14300_v59, %v7217_v6 }
 0x6f1   : > { %v7036_v20 = vsel %vm7034_vm15, %v8545_v4, %v7035_v7  ;;  %v7220_v47 = vshrl.u32 %v7202_v32, %v7218_v62  ;;  %v7223_v29 = vadd.s32 127, %v7222_v49  ;;  %vm7411_vm5 = vc.u32 %v14338_v21, %v14341_v27 }
 0x6f2   : > { %v7040_v34 = vsel %vm7033_vm2, %v7036_v20, %v7039_v16  ;;  %v7412_v28 = vadd.s32 1, %v14342_v57  ;;  %v7577_v63 = vsub.s32 32, %v7576_v11  ;;  %v7409_v9 = vmul.u32 %v14310_v30, %v7393_v2 }
 0x6f3   : > { %v7041_v44 = vsel %vm7030_vm3, nan, %v7040_v34  ;;  %v7221_v26 = vor.u32 %v7220_v47, %v7219_v42  ;;  %v7224_v39 = vshll.u32 %v7223_v29, 23  ;;  %v7575_v60 = vshrl.u32 %v7574_v0, 5 }
 0x6f4   : > { %7675 = vst [vmem:[%s9106_s21 + $0x138] sm:$0xff] %v7041_v44  ;;  %v7413_v59 = vsel %vm7411_vm5, %v7412_v28, %v14342_v57  ;;  %v7579_v25 = vshll.u32 %v8606_v23, %v7576_v11  ;;  %v7580_v32 = vshrl.u32 %v14528_v43, %v7577_v63  ;;  %v7582_v19 = vshll.u32 %v14528_v43, %v7576_v11 }
 0x6f5   : > { %v7225_v45 = vor.u32 4788187, %v7224_v39  ;;  %v7414_v61 = vadd.s32 %v7413_v59, %v7409_v9  ;;  %v7583_v24 = vshrl.u32 %v14529_v58, %v7577_v63  ;;  %v7228_v41 = vcvt.s32.f32 %v7221_v26 }
 0x6f6   : > { %v7581_v36 = vor.u32 %v7580_v32, %v7579_v25  ;;  %v7585_v52 = vshll.u32 %v14529_v58, %v7576_v11  ;;  %v7586_v30 = vshrl.u32 %v14530_v14, %v7577_v63  ;;  %v7588_v35 = vshll.u32 %v14530_v14, %v7576_v11 }
 0x6f7   : > { %v7226_v37 = vand.u32 2147483647, %v7225_v45  ;;  %v7415_v33 = vadd.s32 536870912, %v7414_v61  ;;  %v7589_v50 = vshrl.u32 %v14534_v53, %v7577_v63  ;;  %v7584_v13 = vor.u32 %v7583_v24, %v7582_v19 }
 0x6f8   : > { %v7587_v38 = vor.u32 %v7586_v30, %v7585_v52  ;;  %v7591_v46 = vshll.u32 %v14534_v53, %v7576_v11  ;;  %v7592_v43 = vshrl.u32 %v14535_v15, %v7577_v63  ;;  %vm14383_vm8 = vcmp.le.f32.partialorder %v7146_v22, 0.7853982 }
 0x6f9   : > { %v7229_v58 = vmul.f32 %v7228_v41, %v7226_v37  ;;  %v14387_v31 = vshrl.u32 %v7415_v33, 30  ;;  %v7590_v10 = vor.u32 %v7589_v50, %v7588_v35  ;;  %v7235_v14 = vsel %vm14383_vm8, 0, %v14354_v8 }
 0x6fa   : > { %v7570_v12 = vor.u32 8388608, %v14347_v54  ;;  %v7593_v3 = vor.u32 %v7592_v43, %v7591_v46  ;;  %vm7594_vm9 = vcmp.lt.s32.totalorder %v7575_v60, 1  ;;  %vm7596_vm10 = vcmp.lt.s32.totalorder %v7575_v60, 3 }
 0x6fb   : > { %v7230_v53 = vxor.u32 2147483648, %v7229_v58  ;;  %v7417_v15 = vshll.u32 %v14387_v31, 30  ;;  %vm7597_vm12 = vcmp.lt.s32.totalorder %v7575_v60, 4  ;;  %v7602_v22 = vsel %vm7594_vm9, %v7581_v36, %v7584_v13 }
 0x6fc   : > { %v7603_v4 = vsel %vm7597_vm12, %v7590_v10, 920167782  ;;  %v7606_v40 = vsel %vm7594_vm9, %v7584_v13, %v7587_v38  ;;  %v7607_v0 = vsel %vm7597_vm12, %v7593_v3, 1326507024  ;;  %vm7595_vm13 = vcmp.lt.s32.totalorder %v7575_v60, 2 }
 0x6fd   : > { %v7231_v55 = vsel %vm7148_vm11, %v7230_v53, %v7229_v58  ;;  %v7418_v56 = vsub.s32 %v7414_v61, %v7417_v15  ;;  %v7604_v6 = vsel %vm7596_vm10, %v7587_v38, %v7603_v4  ;;  %v7578_v7 = vshrl.u32 %v8606_v23, %v7577_v63 }
 0x6fe   : > { %v7234_v57 = vsel %vm14383_vm8, %v14125_v18, %v7231_v55  ;;  %v7599_v62 = vsel %vm7597_vm12, %v7587_v38, 2102212464  ;;  %v7608_v49 = vsel %vm7596_vm10, %v7590_v10, %v7607_v0  ;;  %v7605_v16 = vsel %vm7595_vm13, %v7602_v22, %v7604_v6 }
 0x6ff   : > { %8548 = vcosq.f32 %v7234_v57  ;;  %v7420_v54 = vsub.s32 0, %v7418_v56  ;;  %v7609_v8 = vsel %vm7595_vm13, %v7606_v40, %v7608_v49  ;;  %v7610_v2 = vshll.u32 %v7570_v12, 8 }
 0x700   : > { %8550 = vsinq.f32 %v7234_v57  ;;  %v7239_v11 = vadd.s32 3, %v7235_v14  ;;  %v7598_v42 = vsel %vm7594_vm9, %v7578_v7, %v7581_v36  ;;  %v7600_v47 = vsel %vm7596_vm10, %v7584_v13, %v7599_v62 }
 0x701   : > { %v7995_v20 = vmin.u32 %v7420_v54, %v7418_v56  ;;  %v14408_v29 = vmul.u32.u64.low %v7610_v2, %v7609_v8  ;;  %v14409_v34 = vmul.u32.u64.high %v7610_v2, %v7609_v8, %v14408_v29  ;;  %v7601_v44 = vsel %vm7595_vm13, %v7598_v42, %v7600_v47 }
 0x702   : > { %v14411_v23 = vmul.u32.u64.low %v7610_v2, %v7605_v16  ;;  %v14412_v28 = vmul.u32.u64.high %v7610_v2, %v7605_v16, %v14411_v23  ;;  %v7240_v39 = vand.u32 3, %v7239_v11  ;;  %v7617_v59 = vmul.u32 %v7610_v2, %v7601_v44 }
 0x703   : > { %v7422_v63 = vclz %v7995_v20  ;;  %v7410_v61 = vadd.s32 %v14341_v27, %v14338_v21  ;;  %vm7238_vm2 = vweird.f32 %v14125_v18  ;;  %v7440_v53 = vsub.s32 4, %v14387_v31 }
 0x704   : > { %vm7619_vm11 = vc.u32 %v14409_v34, %v14411_v23  ;;  %v7620_v9 = vadd.s32 1, %v14412_v28  ;;  %vm7245_vm15 = vcmp.eq.s32.totalorder %v7240_v39, 2  ;;  %vm7241_vm0 = vcmp.lt.s32.totalorder %v7240_v39, 2 }
 0x705   : > { %v7996_v26 = vadd.s32 4294967294, %v7422_v63  ;;  %vm7242_vm1 = vcmp.eq.s32.totalorder %v7240_v39, 0  ;;  %vm7356_vm3 = vcmp.lt.s32.totalorder %v14209_v17, 0  ;;  %vm7355_vm4 = vcmp.le.f32.partialorder %v7354_v5, 0.7853982 }
 0x706   : > { %v7621_v32 = vsel %vm7619_vm11, %v7620_v9, %v14412_v28  ;;  %v7441_v40 = vsel %vm7356_vm3, %v7440_v53, %v14387_v31  ;;  %v7618_v62 = vadd.s32 %v14411_v23, %v14409_v34  ;;  %vm7446_vm9 = vweird.f32 %v14209_v17 }
 0x707   : > { %vm7997_vm14 = vcmp.lt.s32.totalorder %v7996_v26, 0  ;;  %v7622_v41 = vadd.s32 %v7621_v32, %v7617_v59  ;;  %v7443_v6 = vsel %vm7355_vm4, 0, %v7441_v40  ;;  %vm7564_vm10 = vcmp.lt.s32.totalorder %v14211_v48, 0 }
 0x708   : > { %v7425_v25 = vsel %vm7997_vm14, 0, %v7996_v26  ;;  %v7447_v7 = vadd.s32 3, %v7443_v6  ;;  %vm7563_vm12 = vcmp.le.f32.partialorder %v7562_v51, 0.7853982 }
 0x709   : > { %v8549_v45 = vpop.eup %8548  ;;  %v7426_v19 = vsub.s32 32, %v7425_v25  ;;  %v7430_v24 = vsub.s32 4294967266, %v7425_v25  ;;  %v7427_v52 = vshll.u32 %v7418_v56, %v7425_v25  ;;  %v7623_v35 = vadd.s32 536870912, %v7622_v41 }
 0x70a   : > { %v8551_v60 = vpop.eup %8550  ;;  %v7246_v36 = vxor.u32 2147483648, %v8549_v45  ;;  %v7448_v2 = vand.u32 3, %v7447_v7 }
 0x70b   : > { %v7243_v30 = vxor.u32 2147483648, %v8551_v60  ;;  %v7428_v37 = vshrl.u32 %v7410_v61, %v7426_v19  ;;  %v7431_v33 = vadd.s32 127, %v7430_v24  ;;  %v7624_v43 = vshrl.u32 %v7623_v35, 30 }
 0x70c   : > { %v7247_v50 = vsel %vm7245_vm15, %v7246_v36, %v8551_v60  ;;  %vm7453_vm6 = vcmp.eq.s32.totalorder %v7448_v2, 2  ;;  %vm7450_vm5 = vcmp.eq.s32.totalorder %v7448_v2, 0  ;;  %vm7449_vm8 = vcmp.lt.s32.totalorder %v7448_v2, 2 }
 0x70d   : > { %v7244_v13 = vsel %vm7242_vm1, %v8549_v45, %v7243_v30  ;;  %v7429_v38 = vor.u32 %v7428_v37, %v7427_v52  ;;  %v7432_v46 = vshll.u32 %v7431_v33, 23  ;;  %v7625_v58 = vshll.u32 %v7624_v43, 30 }
 0x70e   : > { %v7248_v21 = vsel %vm7241_vm0, %v7244_v13, %v7247_v50  ;;  %v7648_v39 = vsub.s32 4, %v7624_v43  ;;  %vm7654_vm15 = vweird.f32 %v14211_v48 }
 0x70f   : > { %v7249_v27 = vsel %vm7238_vm2, nan, %v7248_v21  ;;  %v7433_v1 = vor.u32 4788187, %v7432_v46  ;;  %v7436_v14 = vcvt.s32.f32 %v7429_v38  ;;  %v7626_v12 = vsub.s32 %v7622_v41, %v7625_v58 }
 0x710   : > { %7677 = vst [vmem:[%s9106_s21 + $0x178] sm:$0xff] %v7249_v27  ;;  %v7649_v45 = vsel %vm7564_vm10, %v7648_v39, %v7624_v43 }
 0x711   : > { %v7434_v10 = vand.u32 2147483647, %v7433_v1  ;;  %v7628_v15 = vsub.s32 0, %v7626_v12  ;;  %v7651_v19 = vsel %vm7563_vm12, 0, %v7649_v45 }
 0x712   : > { %v7655_v24 = vadd.s32 3, %v7651_v19 }
 0x713   : > { %v7437_v3 = vmul.f32 %v7436_v14, %v7434_v10  ;;  %v8003_v4 = vmin.u32 %v7628_v15, %v7626_v12 }
 0x714   : > { %v7656_v41 = vand.u32 3, %v7655_v24 }
 0x715   : > { %v7438_v22 = vxor.u32 2147483648, %v7437_v3  ;;  %v7630_v0 = vclz %v8003_v4 }
 0x716   : > { %vm7661_vm13 = vcmp.eq.s32.totalorder %v7656_v41, 2  ;;  %vm7658_vm11 = vcmp.eq.s32.totalorder %v7656_v41, 0  ;;  %vm7657_vm14 = vcmp.lt.s32.totalorder %v7656_v41, 2 }
 0x717   : > { %v7439_v18 = vsel %vm7356_vm3, %v7438_v22, %v7437_v3  ;;  %v8004_v56 = vadd.s32 4294967294, %v7630_v0 }
 0x718   : > { %v7442_v55 = vsel %vm7355_vm4, %v14209_v17, %v7439_v18 }
 0x719   : > { %8552 = vcosq.f32 %v7442_v55  ;;  %vm8005_vm7 = vcmp.lt.s32.totalorder %v8004_v56, 0 }
 0x71a   : > { %8554 = vsinq.f32 %v7442_v55  ;;  %v7633_v57 = vsel %vm8005_vm7, 0, %v8004_v56 }
 0x71b   : > { %v7634_v49 = vsub.s32 32, %v7633_v57  ;;  %v7638_v54 = vsub.s32 4294967266, %v7633_v57  ;;  %v7635_v16 = vshll.u32 %v7626_v12, %v7633_v57 }
 0x71d   : > { %v7636_v8 = vshrl.u32 %v7618_v62, %v7634_v49  ;;  %v7639_v5 = vadd.s32 127, %v7638_v54 }
 0x71f   : > { %v7637_v11 = vor.u32 %v7636_v8, %v7635_v16  ;;  %v7640_v31 = vshll.u32 %v7639_v5, 23 }
 0x721   : > { %v7641_v42 = vor.u32 4788187, %v7640_v31  ;;  %v7644_v44 = vcvt.s32.f32 %v7637_v11 }
 0x723   : > { %v8553_v20 = vpop.eup %8552  ;;  %v7642_v63 = vand.u32 2147483647, %v7641_v42 }
 0x724   : > { %v8555_v47 = vpop.eup %8554  ;;  %v7454_v29 = vxor.u32 2147483648, %v8553_v20 }
 0x725   : > { %v7451_v28 = vxor.u32 2147483648, %v8555_v47  ;;  %v7645_v23 = vmul.f32 %v7644_v44, %v7642_v63 }
 0x726   : > { %v7455_v26 = vsel %vm7453_vm6, %v7454_v29, %v8555_v47 }
 0x727   : > { %v7452_v34 = vsel %vm7450_vm5, %v8553_v20, %v7451_v28  ;;  %v7646_v25 = vxor.u32 2147483648, %v7645_v23 }
 0x728   : > { %v7456_v9 = vsel %vm7449_vm8, %v7452_v34, %v7455_v26 }
 0x729   : > { %v7457_v59 = vsel %vm7446_vm9, nan, %v7456_v9  ;;  %v7647_v32 = vsel %vm7564_vm10, %v7646_v25, %v7645_v23 }
 0x72a   : > { %7679 = vst [vmem:[%s9106_s21 + $0x1b8] sm:$0xff] %v7457_v59  ;;  %v7650_v61 = vsel %vm7563_vm12, %v14211_v48, %v7647_v32 }
 0x72b   : > { %8556 = vcosq.f32 %v7650_v61 }
 0x72c   : > { %8558 = vsinq.f32 %v7650_v61 }
 0x735   : > { %v8557_v17 = vpop.eup %8556 }
 0x736   : > { %v8559_v60 = vpop.eup %8558  ;;  %v7662_v36 = vxor.u32 2147483648, %v8557_v17 }
 0x737   : > { %v7659_v52 = vxor.u32 2147483648, %v8559_v60 }
 0x738   : > { %v7663_v30 = vsel %vm7661_vm13, %v7662_v36, %v8559_v60 }
 0x739   : > { %v7660_v37 = vsel %vm7658_vm11, %v8557_v17, %v7659_v52 }
 0x73a   : > { %v7664_v51 = vsel %vm7657_vm14, %v7660_v37, %v7663_v30 }
 0x73b   : > { %v7665_v33 = vsel %vm7654_vm15, nan, %v7664_v51 }
 0x73c   : > { %7681 = vst [vmem:[%s9106_s21 + $0x1f8] sm:$0xff] %v7665_v33 }
 0x73d PF: > { %s12_s9 = sadd.s32 1, %s8598_s9  }
 0x73e   : > { %p9_p4 = scmp.ge.s32.totalorder %s12_s9, 4  }
 0x740   :  { %11 = sbr.rel (!%p9_p4) target bundleno = 1 (0x1), region = 58 }

</bundles_post_ra>
